<compile_context>
chip_gen: v7x
topology: tpu7x:2x2x1
jax: 0.10.0
libtpu: 0.0.40
codegen_flags: <defaults>
</compile_context>

<pallas_src>
import jax
import jax.numpy as jnp
from jax.experimental import pallas as pl
from jax.experimental.pallas import tpu as pltpu


D_IN, D1, D2, D3, D_OUT = 4096, 1024, 256, 64, 7
D_OUT_PAD = 128  # lane-dense logits block; sliced back to 7 in the wrapper


def mlp_kernel(x_ref, w1_ref, b1_ref, w2_ref, b2_ref, w3_ref, b3_ref,
               w4_ref, b4_ref, out_ref):
    """Fused 4-layer MLP over one batch tile.

    Grid = (batch tiles,) marked "parallel". All weights have constant index
    maps, so they are fetched once and stay VMEM-resident; only x and the
    logits stream per batch tile.
    """
    # fc1: bf16 operands, f32 accumulation; (identity dropout) + relu
    h1 = jnp.dot(x_ref[...], w1_ref[...],
                 preferred_element_type=jnp.float32) + b1_ref[...]
    h1 = jnp.maximum(h1, 0.0)
    # fc2: bf16 weights, f32 accumulate; (identity dropout) + relu
    h2 = jnp.dot(h1.astype(jnp.bfloat16), w2_ref[...],
                 preferred_element_type=jnp.float32) + b2_ref[...]
    h2 = jnp.maximum(h2, 0.0)
    # fc3 + relu (tiny, f32)
    h3 = jnp.dot(h2, w3_ref[...],
                 preferred_element_type=jnp.float32) + b3_ref[...]
    h3 = jnp.maximum(h3, 0.0)
    # fc4 (logits, no activation); output columns padded to 128 lanes
    logits = jnp.dot(h3, w4_ref[...],
                     preferred_element_type=jnp.float32) + b4_ref[...]
    out_ref[...] = logits.astype(out_ref.dtype)


def classifier_forward(x, params):
    """x: [B, 4096] float32 -> logits [B, 7] float32."""
    w1, b1, w2, b2, w3, b3, w4, b4 = params
    B = x.shape[0]

    # Pad fc4 to a full 128-lane output so logit stores are unmasked vst.
    w4p = jnp.zeros((D3, D_OUT_PAD), jnp.float32).at[:, :D_OUT].set(w4)
    b4p = jnp.zeros((1, D_OUT_PAD), jnp.float32).at[:, :D_OUT].set(b4)

    # Batch tiling: 256 rows fills the 256x256 MXU on v6e/v7x; small batches
    # round up to a sublane multiple (8) and are zero-padded.
    BM = 256 if B >= 256 else ((B + 7) // 8) * 8
    n_b = pl.cdiv(B, BM)
    B_pad = n_b * BM

    xb = x.astype(jnp.bfloat16)  # half the streamed x bytes, no in-kernel cast
    if B_pad != B:
        xb = jnp.pad(xb, ((0, B_pad - B), (0, 0)))

    out = pl.pallas_call(
        mlp_kernel,
        out_shape=jax.ShapeDtypeStruct((B_pad, D_OUT_PAD), jnp.float32),
        grid_spec=pltpu.PrefetchScalarGridSpec(
            num_scalar_prefetch=0,
            grid=(n_b,),
            in_specs=[
                pl.BlockSpec((BM, D_IN),      lambda b: (b, 0)),  # x tile (bf16)
                pl.BlockSpec((D_IN, D1),      lambda b: (0, 0)),  # W1 (bf16, DMA'd once)
                pl.BlockSpec((1, D1),         lambda b: (0, 0)),  # b1
                pl.BlockSpec((D1, D2),        lambda b: (0, 0)),  # W2 (bf16, resident)
                pl.BlockSpec((1, D2),         lambda b: (0, 0)),  # b2
                pl.BlockSpec((D2, D3),        lambda b: (0, 0)),  # W3
                pl.BlockSpec((1, D3),         lambda b: (0, 0)),  # b3
                pl.BlockSpec((D3, D_OUT_PAD), lambda b: (0, 0)),  # W4 (padded)
                pl.BlockSpec((1, D_OUT_PAD),  lambda b: (0, 0)),  # b4 (padded)
            ],
            out_specs=pl.BlockSpec((BM, D_OUT_PAD), lambda b: (b, 0)),
        ),
        compiler_params=pltpu.CompilerParams(
            dimension_semantics=("parallel",),
            vmem_limit_bytes=40 << 20,  # ~22 MiB used at BM=256; fits v5e/v6e/v7x
        ),
    )(xb, w1, b1, w2, b2, w3, b3, w4p, b4p)

    return out[:B, :D_OUT]


def init_params(key):
    """Torch-like init: U(-1/sqrt(fan_in), 1/sqrt(fan_in)); W1/W2 stored bf16."""
    dims = [(D_IN, D1), (D1, D2), (D2, D3), (D3, D_OUT)]
    params = []
    for i, (fan_in, fan_out) in enumerate(dims):
        kw, kb, key = jax.random.split(key, 3)
        bound = 1.0 / jnp.sqrt(float(fan_in))
        w = jax.random.uniform(kw, (fan_in, fan_out), jnp.float32, -bound, bound)
        b = jax.random.uniform(kb, (1, fan_out), jnp.float32, -bound, bound)
        if i < 2:  # the two large, HBM-bandwidth-dominant weights
            w = w.astype(jnp.bfloat16)
        params += [w, b]
    return params


def reference_forward(x, params):
    """Pure-JAX reference using the same (bf16-stored) weights, f32 math."""
    w1, b1, w2, b2, w3, b3, w4, b4 = [p.astype(jnp.float32) for p in params]
    hp = jax.lax.Precision.HIGHEST
    h = jnp.maximum(jnp.dot(x, w1, precision=hp) + b1, 0.0)
    h = jnp.maximum(jnp.dot(h, w2, precision=hp) + b2, 0.0)
    h = jnp.maximum(jnp.dot(h, w3, precision=hp) + b3, 0.0)
    return jnp.dot(h, w4, precision=hp) + b4


if __name__ == "__main__":
    key = jax.random.PRNGKey(0)
    kx, kx2, kp = jax.random.split(key, 3)
    params = init_params(kp)

    # Case 1: small aligned batch.
    B = 8
    x = jax.random.normal(kx, (B, D_IN), jnp.float32)
    out = jax.block_until_ready(classifier_forward(x, params))
    ref = reference_forward(x, params)
    assert out.shape == (B, D_OUT)
    # bf16 MXU operands (f32 accumulate) vs f32 reference -> ~0.2-0.5% error.
    assert jnp.allclose(out, ref, atol=2e-2, rtol=2e-2), "mismatch vs reference (B=8)"

    # Case 2: ragged batch exercising the pad + slice path.
    B2 = 5
    x2 = jax.random.normal(kx2, (B2, D_IN), jnp.float32)
    out2 = jax.block_until_ready(classifier_forward(x2, params))
    ref2 = reference_forward(x2, params)
    assert out2.shape == (B2, D_OUT)
    assert jnp.allclose(out2, ref2, atol=2e-2, rtol=2e-2), "mismatch vs reference (B=5)"

    print("KERNEL_OK")
</pallas_src>

<mosaic_0001>
module attributes {stable_mosaic.version = 11 : i64} {
  func.func @mlp_kernel(%arg0: i32, %arg1: memref<8x4096xbf16, #tpu.memory_space<vmem>>, %arg2: memref<4096x1024xbf16, #tpu.memory_space<vmem>>, %arg3: memref<1x1024xf32, #tpu.memory_space<vmem>>, %arg4: memref<1024x256xbf16, #tpu.memory_space<vmem>>, %arg5: memref<1x256xf32, #tpu.memory_space<vmem>>, %arg6: memref<256x64xf32, #tpu.memory_space<vmem>>, %arg7: memref<1x64xf32, #tpu.memory_space<vmem>>, %arg8: memref<64x128xf32, #tpu.memory_space<vmem>>, %arg9: memref<1x128xf32, #tpu.memory_space<vmem>>, %arg10: memref<8x128xf32, #tpu.memory_space<vmem>>) attributes {dimension_semantics = [#tpu.dimension_semantics<parallel>], iteration_bounds = array<i64: 1>, scalar_prefetch = 0 : i64, scratch_operands = 0 : i64, tpu.core_type = #tpu.core_type<tc>, window_params = [{transform_indices = @transform_0, window_bounds = array<i64: 8, 4096>}, {pipeline_mode = #tpu.pipeline_mode<synchronous>, transform_indices = @transform_1, window_bounds = array<i64: 4096, 1024>}, {pipeline_mode = #tpu.pipeline_mode<synchronous>, transform_indices = @transform_2, window_bounds = array<i64: 1, 1024>}, {pipeline_mode = #tpu.pipeline_mode<synchronous>, transform_indices = @transform_3, window_bounds = array<i64: 1024, 256>}, {pipeline_mode = #tpu.pipeline_mode<synchronous>, transform_indices = @transform_4, window_bounds = array<i64: 1, 256>}, {pipeline_mode = #tpu.pipeline_mode<synchronous>, transform_indices = @transform_5, window_bounds = array<i64: 256, 64>}, {pipeline_mode = #tpu.pipeline_mode<synchronous>, transform_indices = @transform_6, window_bounds = array<i64: 1, 64>}, {pipeline_mode = #tpu.pipeline_mode<synchronous>, transform_indices = @transform_7, window_bounds = array<i64: 64, 128>}, {pipeline_mode = #tpu.pipeline_mode<synchronous>, transform_indices = @transform_8, window_bounds = array<i64: 1, 128>}, {transform_indices = @transform_9, window_bounds = array<i64: 8, 128>}]} {
    %c0 = arith.constant 0 : index
    %c0_0 = arith.constant 0 : index
    %0 = vector.load %arg1[%c0, %c0_0] : memref<8x4096xbf16, #tpu.memory_space<vmem>>, vector<8x4096xbf16>
    %c0_1 = arith.constant 0 : index
    %c0_2 = arith.constant 0 : index
    %1 = vector.load %arg2[%c0_1, %c0_2] : memref<4096x1024xbf16, #tpu.memory_space<vmem>>, vector<4096x1024xbf16>
    %cst = arith.constant dense<0.000000e+00> : vector<8x1024xf32>
    %2 = tpu.matmul %0, %1, %cst {dimension_numbers = #tpu.dot_dimension_numbers<[1], [0], [0], [1], [0, 0, 1, 1], [], []>} : vector<8x4096xbf16>, vector<4096x1024xbf16>, vector<8x1024xf32> -> vector<8x1024xf32>
    %c0_3 = arith.constant 0 : index
    %c0_4 = arith.constant 0 : index
    %3 = vector.load %arg3[%c0_3, %c0_4] : memref<1x1024xf32, #tpu.memory_space<vmem>>, vector<1x1024xf32>
    %4 = vector.broadcast %3 : vector<1x1024xf32> to vector<8x1024xf32>
    %5 = arith.addf %2, %4 : vector<8x1024xf32>
    %cst_5 = arith.constant 0.000000e+00 : f32
    %6 = vector.broadcast %cst_5 : f32 to vector<8x1024xf32>
    %7 = arith.maximumf %5, %6 : vector<8x1024xf32>
    %8 = arith.truncf %7 : vector<8x1024xf32> to vector<8x1024xbf16>
    %c0_6 = arith.constant 0 : index
    %c0_7 = arith.constant 0 : index
    %9 = vector.load %arg4[%c0_6, %c0_7] : memref<1024x256xbf16, #tpu.memory_space<vmem>>, vector<1024x256xbf16>
    %cst_8 = arith.constant dense<0.000000e+00> : vector<8x256xf32>
    %10 = tpu.matmul %8, %9, %cst_8 {dimension_numbers = #tpu.dot_dimension_numbers<[1], [0], [0], [1], [0, 0, 1, 1], [], []>} : vector<8x1024xbf16>, vector<1024x256xbf16>, vector<8x256xf32> -> vector<8x256xf32>
    %c0_9 = arith.constant 0 : index
    %c0_10 = arith.constant 0 : index
    %11 = vector.load %arg5[%c0_9, %c0_10] : memref<1x256xf32, #tpu.memory_space<vmem>>, vector<1x256xf32>
    %12 = vector.broadcast %11 : vector<1x256xf32> to vector<8x256xf32>
    %13 = arith.addf %10, %12 : vector<8x256xf32>
    %cst_11 = arith.constant 0.000000e+00 : f32
    %14 = vector.broadcast %cst_11 : f32 to vector<8x256xf32>
    %15 = arith.maximumf %13, %14 : vector<8x256xf32>
    %c0_12 = arith.constant 0 : index
    %c0_13 = arith.constant 0 : index
    %16 = vector.load %arg6[%c0_12, %c0_13] : memref<256x64xf32, #tpu.memory_space<vmem>>, vector<256x64xf32>
    %cst_14 = arith.constant dense<0.000000e+00> : vector<8x64xf32>
    %17 = tpu.matmul %15, %16, %cst_14 {dimension_numbers = #tpu.dot_dimension_numbers<[1], [0], [0], [1], [0, 0, 1, 1], [], []>} : vector<8x256xf32>, vector<256x64xf32>, vector<8x64xf32> -> vector<8x64xf32>
    %c0_15 = arith.constant 0 : index
    %c0_16 = arith.constant 0 : index
    %18 = vector.load %arg7[%c0_15, %c0_16] : memref<1x64xf32, #tpu.memory_space<vmem>>, vector<1x64xf32>
    %19 = vector.broadcast %18 : vector<1x64xf32> to vector<8x64xf32>
    %20 = arith.addf %17, %19 : vector<8x64xf32>
    %cst_17 = arith.constant 0.000000e+00 : f32
    %21 = vector.broadcast %cst_17 : f32 to vector<8x64xf32>
    %22 = arith.maximumf %20, %21 : vector<8x64xf32>
    %c0_18 = arith.constant 0 : index
    %c0_19 = arith.constant 0 : index
    %23 = vector.load %arg8[%c0_18, %c0_19] : memref<64x128xf32, #tpu.memory_space<vmem>>, vector<64x128xf32>
    %cst_20 = arith.constant dense<0.000000e+00> : vector<8x128xf32>
    %24 = tpu.matmul %22, %23, %cst_20 {dimension_numbers = #tpu.dot_dimension_numbers<[1], [0], [0], [1], [0, 0, 1, 1], [], []>} : vector<8x64xf32>, vector<64x128xf32>, vector<8x128xf32> -> vector<8x128xf32>
    %c0_21 = arith.constant 0 : index
    %c0_22 = arith.constant 0 : index
    %25 = vector.load %arg9[%c0_21, %c0_22] : memref<1x128xf32, #tpu.memory_space<vmem>>, vector<1x128xf32>
    %26 = vector.broadcast %25 : vector<1x128xf32> to vector<8x128xf32>
    %27 = arith.addf %24, %26 : vector<8x128xf32>
    %c0_23 = arith.constant 0 : index
    %c0_24 = arith.constant 0 : index
    %28 = vector.load %arg10[%c0_23, %c0_24] : memref<8x128xf32, #tpu.memory_space<vmem>>, vector<8x128xf32>
    tpu.vector_store %arg10[%c0_23, %c0_24], %27 {strides = array<i32>} : memref<8x128xf32, #tpu.memory_space<vmem>>, vector<8x128xf32>,
    return
  }
  func.func @transform_0(%arg0: i32) -> (i32, i32) {
    %c0_i32 = arith.constant 0 : i32
    %c0_i32_0 = arith.constant 0 : i32
    return %arg0, %c0_i32 : i32, i32
  }
  func.func @transform_1(%arg0: i32) -> (i32, i32) {
    %c0_i32 = arith.constant 0 : i32
    %c0_i32_0 = arith.constant 0 : i32
    %c0_i32_1 = arith.constant 0 : i32
    return %c0_i32, %c0_i32_0 : i32, i32
  }
  func.func @transform_2(%arg0: i32) -> (i32, i32) {
    %c0_i32 = arith.constant 0 : i32
    %c0_i32_0 = arith.constant 0 : i32
    %c0_i32_1 = arith.constant 0 : i32
    return %c0_i32, %c0_i32_0 : i32, i32
  }
  func.func @transform_3(%arg0: i32) -> (i32, i32) {
    %c0_i32 = arith.constant 0 : i32
    %c0_i32_0 = arith.constant 0 : i32
    %c0_i32_1 = arith.constant 0 : i32
    return %c0_i32, %c0_i32_0 : i32, i32
  }
  func.func @transform_4(%arg0: i32) -> (i32, i32) {
    %c0_i32 = arith.constant 0 : i32
    %c0_i32_0 = arith.constant 0 : i32
    %c0_i32_1 = arith.constant 0 : i32
    return %c0_i32, %c0_i32_0 : i32, i32
  }
  func.func @transform_5(%arg0: i32) -> (i32, i32) {
    %c0_i32 = arith.constant 0 : i32
    %c0_i32_0 = arith.constant 0 : i32
    %c0_i32_1 = arith.constant 0 : i32
    return %c0_i32, %c0_i32_0 : i32, i32
  }
  func.func @transform_6(%arg0: i32) -> (i32, i32) {
    %c0_i32 = arith.constant 0 : i32
    %c0_i32_0 = arith.constant 0 : i32
    %c0_i32_1 = arith.constant 0 : i32
    return %c0_i32, %c0_i32_0 : i32, i32
  }
  func.func @transform_7(%arg0: i32) -> (i32, i32) {
    %c0_i32 = arith.constant 0 : i32
    %c0_i32_0 = arith.constant 0 : i32
    %c0_i32_1 = arith.constant 0 : i32
    return %c0_i32, %c0_i32_0 : i32, i32
  }
  func.func @transform_8(%arg0: i32) -> (i32, i32) {
    %c0_i32 = arith.constant 0 : i32
    %c0_i32_0 = arith.constant 0 : i32
    %c0_i32_1 = arith.constant 0 : i32
    return %c0_i32, %c0_i32_0 : i32, i32
  }
  func.func @transform_9(%arg0: i32) -> (i32, i32) {
    %c0_i32 = arith.constant 0 : i32
    %c0_i32_0 = arith.constant 0 : i32
    return %arg0, %c0_i32 : i32, i32
  }
}

</mosaic_0001>

<bundles_post_ra>
// kernel: tpu_custom_call.1
= control target key start
LH: loop header
LB: loop body
LE: loop exit
PB: predicated region body
PF: predicated region fallthrough
CT: control target
= control target key end

     0   :  { %14 = vsyncpa [#allocation3], 0  ;;  %s20031_s0 = inlined_call_operand.hbm [shape: bf16[8,4096], index: 0, kind: input, shape index: {}]   ;;  %s20032_s1 = inlined_call_operand.hbm [shape: bf16[4096,1024], index: 1, kind: input, shape index: {}]   ;;  %s20033_s2 = inlined_call_operand.hbm [shape: f32[1,1024], index: 2, kind: input, shape index: {}]   ;;  %s20034_s3 = inlined_call_operand.hbm [shape: bf16[1024,256], index: 3, kind: input, shape index: {}]   ;;  %s20035_s4 = inlined_call_operand.hbm [shape: f32[1,256], index: 4, kind: input, shape index: {}]   ;;  %s20036_s5 = inlined_call_operand.vmem [shape: f32[256,64], index: 5, kind: input, shape index: {}]   ;;  %s20037_s6 = inlined_call_operand.hbm [shape: f32[1,64], index: 6, kind: input, shape index: {}]   ;;  %s20038_s7 = inlined_call_operand.hbm [shape: f32[64,128], index: 7, kind: input, shape index: {}]   ;;  %s20039_s8 = inlined_call_operand.hbm [shape: f32[1,128], index: 8, kind: input, shape index: {}]   ;;  %s20040_s9 = inlined_call_operand.hbm [shape: f32[8,128], index: 9, kind: output, shape index: {}]  }
   0x1   :  { %15 = vsyncpa [#allocation6], 0 }
   0x2   :  { %16 = vsyncpa [#allocation9], 0 }
   0x3   :  { %17 = vsyncpa [#allocation12], 0 }
   0x4   :  { %18 = vsyncpa [#allocation15], 0 }
   0x5   :  { %19 = vsyncpa [#allocation4], 0  ;;  %s19425_s30 = smov [#allocation5]   ;;  %s19215_s13 = scalar_lea.hbm %s20032_s1, 262144 }
   0x6   :  { %s35_s10 = sshll.u32 %s19425_s30, 4  ;;  %p19216_p0 = scmp.ne.s32.totalorder %s20032_s1, %s19215_s13  ;;  %s36_s10 = int_to_ptr.vmem [resolvable:$true] %s35_s10 }
   0x7   :  { %p19219_p1 = scmp.lt.u32.totalorder %s19215_s13, %s20032_s1 }
   0x9   :  { %p19221_p2 = pnand %p19219_p1, %p19216_p0 }
   0xb   :  { %19224 = shalt.err (!%p19221_p2)
}
   0xc   :  { %s19225_s18 = scalar_lea.vmem %s36_s10, 262144  ;;  %p19230_p4 = scmp.lt.s32.totalorder %s36_s10, %s36_s10 }
   0xd   :  { %p19226_p3 = scmp.ne.s32.totalorder %s36_s10, %s19225_s18  ;;  %p19231_p5 = scmp.lt.s32.totalorder %s19225_s18, %s19225_s18 }
   0xf   :  { %p19232_p6 = por %p19231_p5, %p19230_p4 }
  0x11   :  { %p19233_p7 = pnand %p19232_p6, %p19226_p3 }
  0x13   :  { %19236 = shalt.err (!%p19233_p7)
}
  0x14   :  { %s19426_s19 = smov 512   ;;  %s19427_s20 = smov 32  }
  0x15   :  { %41 = dma.hbm_to_vmem [thread:$0]  %s20032_s1, 262144, %s36_s10, [#allocation6], %s19426_s19, %s19426_s19, %s19427_s20  }
  0x16   :  { %s19428_s23 = smov [#allocation8]   ;;  %s19237_s27 = scalar_lea.hbm %s20034_s3, 16384 }
  0x17   :  { %s57_s24 = sshll.u32 %s19428_s23, 4  ;;  %p19238_p8 = scmp.ne.s32.totalorder %s20034_s3, %s19237_s27  ;;  %s58_s24 = int_to_ptr.vmem [resolvable:$true] %s57_s24 }
  0x18   :  { %p19241_p9 = scmp.lt.u32.totalorder %s19237_s27, %s20034_s3 }
  0x1a   :  { %p19243_p10 = pnand %p19241_p9, %p19238_p8 }
  0x1c   :  { %19246 = shalt.err (!%p19243_p10)
}
  0x1d   :  { %s19247_s12 = scalar_lea.vmem %s58_s24, 16384  ;;  %p19252_p12 = scmp.lt.s32.totalorder %s58_s24, %s58_s24 }
  0x1e   :  { %p19248_p11 = scmp.ne.s32.totalorder %s58_s24, %s19247_s12  ;;  %p19253_p13 = scmp.lt.s32.totalorder %s19247_s12, %s19247_s12 }
  0x20   :  { %p19254_p0 = por %p19253_p13, %p19252_p12 }
  0x22   :  { %p19255_p1 = pnand %p19254_p0, %p19248_p11 }
  0x24   :  { %19258 = shalt.err (!%p19255_p1)
}
  0x25   :  { %s19429_s1 = smov 128   ;;  %s19430_s10 = smov 8  }
  0x26   :  { %63 = dma.hbm_to_vmem [thread:$0]  %s20034_s3, 16384, %s58_s24, [#allocation9], %s19429_s1, %s19429_s1, %s19430_s10  }
  0x27   :  { %s19431_s15 = smov [#allocation11]   ;;  %s19432_s17 = smov [#allocation2]  }
  0x28   :  { %s82_s16 = sshll.u32 %s19431_s15, 4  ;;  %s26_s18 = sshll.u32 %s19432_s17, 4  ;;  %s83_s16 = int_to_ptr.vmem [resolvable:$true] %s82_s16  ;;  %s27_s18 = int_to_ptr.vmem [resolvable:$true] %s26_s18 }
  0x29   :  { %s19259_s21 = scalar_lea.hbm %s20037_s6, 16 }
  0x2a   :  { %p19260_p2 = scmp.ne.s32.totalorder %s20037_s6, %s19259_s21  ;;  %p19263_p3 = scmp.lt.u32.totalorder %s19259_s21, %s20037_s6 }
  0x2c   :  { %p19265_p4 = pnand %p19263_p3, %p19260_p2 }
  0x2e   :  { %19268 = shalt.err (!%p19265_p4)
}
  0x2f   :  { %s19269_s3 = scalar_lea.vmem %s83_s16, 16  ;;  %s19273_s24 = scalar_lea.vmem %s83_s16, 32 }
  0x30   :  { %p19270_p5 = scmp.ne.s32.totalorder %s83_s16, %s19269_s3  ;;  %p19274_p6 = scmp.lt.s32.totalorder %s83_s16, %s83_s16 }
  0x31   :  { %p19275_p7 = scmp.lt.s32.totalorder %s19273_s24, %s19269_s3 }
  0x33   :  { %p19276_p8 = por %p19275_p7, %p19274_p6 }
  0x35   :  { %p19277_p9 = pnand %p19276_p8, %p19270_p5 }
  0x37   :  { %19280 = shalt.err (!%p19277_p9)
}
  0x38   :  { %85 = dma.hbm_to_vmem [thread:$0]  %s20037_s6, 16, %s83_s16, [#allocation12]  }
  0x39   :  { %s19281_s11 = scalar_lea.hbm %s20031_s0, 2048 }
  0x3a   :  { %p19282_p10 = scmp.ne.s32.totalorder %s20031_s0, %s19281_s11  ;;  %p19285_p11 = scmp.lt.u32.totalorder %s19281_s11, %s20031_s0 }
  0x3c   :  { %p19287_p12 = pnand %p19285_p11, %p19282_p10 }
  0x3e   :  { %19290 = shalt.err (!%p19287_p12)
}
  0x3f   :  { %s19291_s17 = scalar_lea.vmem %s27_s18, 2048  ;;  %p19296_p0 = scmp.lt.s32.totalorder %s27_s18, %s27_s18 }
  0x40   :  { %p19292_p13 = scmp.ne.s32.totalorder %s27_s18, %s19291_s17  ;;  %p19297_p1 = scmp.lt.s32.totalorder %s19291_s17, %s19291_s17 }
  0x42   :  { %p19298_p2 = por %p19297_p1, %p19296_p0 }
  0x44   :  { %p19299_p3 = pnand %p19298_p2, %p19292_p13 }
  0x46   :  { %19302 = shalt.err (!%p19299_p3)
}
  0x47   :  { %29 = dma.hbm_to_vmem [thread:$0]  %s20031_s0, 2048, %s27_s18, [#allocation3]  }
  0x48   :  { %s19433_s19 = smov [#allocation7]   ;;  %s19434_s21 = smov [#allocation10]  }
  0x49   :  { %s48_s20 = sshll.u32 %s19433_s19, 4  ;;  %s70_s22 = sshll.u32 %s19434_s21, 4  ;;  %s49_s20 = int_to_ptr.vmem [resolvable:$true] %s48_s20  ;;  %s71_s22 = int_to_ptr.vmem [resolvable:$true] %s70_s22 }
  0x4a   :  { %s19303_s26 = scalar_lea.hbm %s20033_s2, 128 }
  0x4b   :  { %p19304_p4 = scmp.ne.s32.totalorder %s20033_s2, %s19303_s26  ;;  %p19307_p5 = scmp.lt.u32.totalorder %s19303_s26, %s20033_s2 }
  0x4d   :  { %p19309_p6 = pnand %p19307_p5, %p19304_p4 }
  0x4f   :  { %19312 = shalt.err (!%p19309_p6)
}
  0x50   :  { %s19313_s0 = scalar_lea.vmem %s49_s20, 128  ;;  %p19318_p8 = scmp.lt.s32.totalorder %s49_s20, %s49_s20 }
  0x51   :  { %p19314_p7 = scmp.ne.s32.totalorder %s49_s20, %s19313_s0  ;;  %p19319_p9 = scmp.lt.s32.totalorder %s19313_s0, %s19313_s0 }
  0x53   :  { %p19320_p10 = por %p19319_p9, %p19318_p8 }
  0x55   :  { %p19321_p11 = pnand %p19320_p10, %p19314_p7 }
  0x57   :  { %19324 = shalt.err (!%p19321_p11)
}
  0x58   :  { %51 = dma.hbm_to_vmem [thread:$0]  %s20033_s2, 128, %s49_s20, [#allocation6]  }
  0x59   :  { %s19325_s12 = scalar_lea.hbm %s20035_s4, 32 }
  0x5a   :  { %p19326_p12 = scmp.ne.s32.totalorder %s20035_s4, %s19325_s12  ;;  %p19329_p13 = scmp.lt.u32.totalorder %s19325_s12, %s20035_s4 }
  0x5c   :  { %p19331_p0 = pnand %p19329_p13, %p19326_p12 }
  0x5e   :  { %19334 = shalt.err (!%p19331_p0)
}
  0x5f   :  { %s19335_s6 = scalar_lea.vmem %s71_s22, 32  ;;  %p19340_p2 = scmp.lt.s32.totalorder %s71_s22, %s71_s22 }
  0x60   :  { %p19336_p1 = scmp.ne.s32.totalorder %s71_s22, %s19335_s6  ;;  %p19341_p3 = scmp.lt.s32.totalorder %s19335_s6, %s19335_s6 }
  0x62   :  { %p19342_p4 = por %p19341_p3, %p19340_p2 }
  0x64   :  { %p19343_p5 = pnand %p19342_p4, %p19336_p1 }
  0x66   :  { %19346 = shalt.err (!%p19343_p5)
}
  0x67   :  { %73 = dma.hbm_to_vmem [thread:$0]  %s20035_s4, 32, %s71_s22, [#allocation9]  }
  0x68   :  { %s19435_s19 = smov [#allocation13]   ;;  %s19436_s21 = smov [#allocation14]  }
  0x69   :  { %s91_s20 = sshll.u32 %s19435_s19, 4  ;;  %s104_s23 = sshll.u32 %s19436_s21, 4  ;;  %s92_s20 = int_to_ptr.vmem [resolvable:$true] %s91_s20  ;;  %s105_s23 = int_to_ptr.vmem [resolvable:$true] %s104_s23 }
  0x6a   :  { %s19347_s3 = scalar_lea.hbm %s20038_s7, 1024 }
  0x6b   :  { %p19348_p6 = scmp.ne.s32.totalorder %s20038_s7, %s19347_s3  ;;  %p19351_p7 = scmp.lt.u32.totalorder %s19347_s3, %s20038_s7 }
  0x6d   :  { %p19353_p8 = pnand %p19351_p7, %p19348_p6 }
  0x6f   :  { %19356 = shalt.err (!%p19353_p8)
}
  0x70   :  { %s19357_s4 = scalar_lea.vmem %s92_s20, 1024  ;;  %p19362_p10 = scmp.lt.s32.totalorder %s92_s20, %s92_s20 }
  0x71   :  { %p19358_p9 = scmp.ne.s32.totalorder %s92_s20, %s19357_s4  ;;  %p19363_p11 = scmp.lt.s32.totalorder %s19357_s4, %s19357_s4 }
  0x73   :  { %p19364_p12 = por %p19363_p11, %p19362_p10 }
  0x75   :  { %p19365_p13 = pnand %p19364_p12, %p19358_p9 }
  0x77   :  { %19368 = shalt.err (!%p19365_p13)
}
  0x78   :  { %97 = dma.hbm_to_vmem [thread:$0]  %s20038_s7, 1024, %s92_s20, [#allocation12], %s19429_s1, %s19429_s1, %s19430_s10  }
  0x79   :  { %s19369_s11 = scalar_lea.hbm %s20039_s8, 16 }
  0x7a   :  { %p19370_p0 = scmp.ne.s32.totalorder %s20039_s8, %s19369_s11  ;;  %p19373_p1 = scmp.lt.u32.totalorder %s19369_s11, %s20039_s8 }
  0x7c   :  { %p19375_p2 = pnand %p19373_p1, %p19370_p0 }
  0x7e   :  { %19378 = shalt.err (!%p19375_p2)
}
  0x7f   :  { %s19379_s17 = scalar_lea.vmem %s105_s23, 16  ;;  %s19383_s6 = scalar_lea.vmem %s105_s23, 32 }
  0x80   :  { %p19380_p3 = scmp.ne.s32.totalorder %s105_s23, %s19379_s17  ;;  %p19384_p4 = scmp.lt.s32.totalorder %s105_s23, %s105_s23 }
  0x81   :  { %p19385_p5 = scmp.lt.s32.totalorder %s19383_s6, %s19379_s17 }
  0x83   :  { %p19386_p6 = por %p19385_p5, %p19384_p4 }
  0x85   :  { %p19387_p7 = pnand %p19386_p6, %p19380_p3 }
  0x87   :  { %19390 = shalt.err (!%p19387_p7)
}
  0x88   :  { %107 = dma.hbm_to_vmem [thread:$0]  %s20039_s8, 16, %s105_s23, [#allocation15]  }
  0x89   :  { %19413 = dma.done.wait [#allocation3], 2048  }
  0x8a   :  { %19414 = vsyncadd [#allocation3], 4294965248 }
  0x8b   :  { %19415 = dma.done.wait [#allocation6], 262272  }
  0x8c   :  { %19416 = vsyncadd [#allocation6], 4294705024 }
  0x8d   :  { %19417 = dma.done.wait [#allocation9], 16416  }
  0x8e   :  { %19418 = vsyncadd [#allocation9], 4294950880 }
  0x8f   :  { %19419 = dma.done.wait [#allocation12], 1040  }
  0x90   :  { %19420 = vsyncadd [#allocation12], 4294966256 }
  0x91   :  { %19421 = dma.done.wait [#allocation15], 16  }
  0x92   :  { %19422 = vsyncadd [#allocation15], 4294967280  ;;  %v148_v0 = vld [vmem:[#allocation5] sm:$0xff]  ;;  %v19599_v58 = vld [vmem:[#allocation2 + $0x10] sm:$0xff]  ;;  %vm19438_vm0 = vmmov 0   ;;  %vm16301_vm1 = vcmask 523264  }
  0x93   :  { %v152_v1 = vld [vmem:[#allocation5 + $0x20] sm:$0xff]  ;;  %v19603_v61 = vcombine.high %v19599_v58, %v19599_v58 }
  0x94   :  { %v404_v2 = vld [vmem:[#allocation5 + $0x800] sm:$0xff]  ;;  %v16428_v3 = vcombine.high %v148_v0, %v152_v1  ;;  %v16427_v5 = vcombine.low %v148_v0, %v152_v1 }
  0x95   :  { %v408_v4 = vld [vmem:[#allocation5 + $0x820] sm:$0xff]  ;;  %12704 = vmatprep.mubr.bf16.mxu0 %v19603_v61 }
  0x96   :  { %v156_v6 = vld [vmem:[#allocation5 + $0x40] sm:$0xff]  ;;  %v16684_v8 = vcombine.high %v404_v2, %v408_v4  ;;  %v16683_v9 = vcombine.low %v404_v2, %v408_v4  ;;  %12590 = vmatprep.subr.bf16.mxu1 %v16428_v3 }
  0x97   :  { %v160_v7 = vld [vmem:[#allocation5 + $0x60] sm:$0xff]  ;;  %12591 = vmatpush1.bf16.msra.mxu1 %v16427_v5 }
  0x98   :  { %v16436_v10 = vcombine.high %v156_v6, %v160_v7  ;;  %v412_v11 = vld [vmem:[#allocation5 + $0x840] sm:$0xff]  ;;  %12672 = vmatprep.subr.bf16.mxu0 %v16684_v8  ;;  %v16435_v18 = vcombine.low %v156_v6, %v160_v7 }
  0x99   :  { %v416_v12 = vld [vmem:[#allocation5 + $0x860] sm:$0xff]  ;;  %12673 = vmatpush1.bf16.msra.mxu0 %v16683_v9 }
  0x9a   :  { %v164_v13 = vld [vmem:[#allocation5 + $0x80] sm:$0xff]  ;;  %v16692_v14 = vcombine.high %v412_v11, %v416_v12  ;;  %12592 = vmatprep.subr.bf16.mxu1 %v16436_v10  ;;  %v16691_v19 = vcombine.low %v412_v11, %v416_v12 }
  0x9b   :  { %v168_v15 = vld [vmem:[#allocation5 + $0xa0] sm:$0xff]  ;;  %12593 = vmatpush1.bf16.msra.mxu1 %v16435_v18 }
  0x9c   :  { %v420_v16 = vld [vmem:[#allocation5 + $0x880] sm:$0xff]  ;;  %v16444_v20 = vcombine.high %v164_v13, %v168_v15  ;;  %12674 = vmatprep.subr.bf16.mxu0 %v16692_v14  ;;  %v16443_v26 = vcombine.low %v164_v13, %v168_v15 }
  0x9d   :  { %v424_v17 = vld [vmem:[#allocation5 + $0x8a0] sm:$0xff]  ;;  %12675 = vmatpush1.bf16.msra.mxu0 %v16691_v19 }
  0x9e   :  { %v16700_v21 = vcombine.high %v420_v16, %v424_v17  ;;  %v172_v22 = vld [vmem:[#allocation5 + $0xc0] sm:$0xff]  ;;  %12594 = vmatprep.subr.bf16.mxu1 %v16444_v20  ;;  %v16699_v27 = vcombine.low %v420_v16, %v424_v17 }
  0x9f   :  { %v176_v23 = vld [vmem:[#allocation5 + $0xe0] sm:$0xff]  ;;  %12595 = vmatpush1.bf16.msra.mxu1 %v16443_v26 }
  0xa0   :  { %v428_v24 = vld [vmem:[#allocation5 + $0x8c0] sm:$0xff]  ;;  %v16452_v28 = vcombine.high %v172_v22, %v176_v23  ;;  %12676 = vmatprep.subr.bf16.mxu0 %v16700_v21  ;;  %v16451_v34 = vcombine.low %v172_v22, %v176_v23 }
  0xa1   :  { %v432_v25 = vld [vmem:[#allocation5 + $0x8e0] sm:$0xff]  ;;  %12677 = vmatpush1.bf16.msra.mxu0 %v16699_v27 }
  0xa2   :  { %v16708_v29 = vcombine.high %v428_v24, %v432_v25  ;;  %v180_v30 = vld [vmem:[#allocation5 + $0x100] sm:$0xff]  ;;  %12596 = vmatprep.subr.bf16.mxu1 %v16452_v28  ;;  %v16707_v35 = vcombine.low %v428_v24, %v432_v25 }
  0xa3   :  { %v184_v31 = vld [vmem:[#allocation5 + $0x120] sm:$0xff]  ;;  %12597 = vmatpush1.bf16.msra.mxu1 %v16451_v34 }
  0xa4   :  { %v436_v32 = vld [vmem:[#allocation5 + $0x900] sm:$0xff]  ;;  %v16460_v36 = vcombine.high %v180_v30, %v184_v31  ;;  %12678 = vmatprep.subr.bf16.mxu0 %v16708_v29  ;;  %v16459_v42 = vcombine.low %v180_v30, %v184_v31 }
  0xa5   :  { %v440_v33 = vld [vmem:[#allocation5 + $0x920] sm:$0xff]  ;;  %12679 = vmatpush1.bf16.msra.mxu0 %v16707_v35 }
  0xa6   :  { %v16716_v37 = vcombine.high %v436_v32, %v440_v33  ;;  %v188_v38 = vld [vmem:[#allocation5 + $0x140] sm:$0xff]  ;;  %12598 = vmatprep.subr.bf16.mxu1 %v16460_v36  ;;  %v16715_v43 = vcombine.low %v436_v32, %v440_v33 }
  0xa7   :  { %v192_v39 = vld [vmem:[#allocation5 + $0x160] sm:$0xff]  ;;  %12599 = vmatpush1.bf16.msra.mxu1 %v16459_v42 }
  0xa8   :  { %v444_v40 = vld [vmem:[#allocation5 + $0x940] sm:$0xff]  ;;  %v16468_v44 = vcombine.high %v188_v38, %v192_v39  ;;  %12680 = vmatprep.subr.bf16.mxu0 %v16716_v37  ;;  %v16467_v50 = vcombine.low %v188_v38, %v192_v39 }
  0xa9   :  { %v448_v41 = vld [vmem:[#allocation5 + $0x960] sm:$0xff]  ;;  %12681 = vmatpush1.bf16.msra.mxu0 %v16715_v43 }
  0xaa   :  { %v16724_v45 = vcombine.high %v444_v40, %v448_v41  ;;  %v196_v46 = vld [vmem:[#allocation5 + $0x180] sm:$0xff]  ;;  %12600 = vmatprep.subr.bf16.mxu1 %v16468_v44  ;;  %v16723_v51 = vcombine.low %v444_v40, %v448_v41 }
  0xab   :  { %v200_v47 = vld [vmem:[#allocation5 + $0x1a0] sm:$0xff]  ;;  %12601 = vmatpush1.bf16.msra.mxu1 %v16467_v50 }
  0xac   :  { %v452_v48 = vld [vmem:[#allocation5 + $0x980] sm:$0xff]  ;;  %v16476_v52 = vcombine.high %v196_v46, %v200_v47  ;;  %12682 = vmatprep.subr.bf16.mxu0 %v16724_v45  ;;  %v16475_v62 = vcombine.low %v196_v46, %v200_v47 }
  0xad   :  { %v456_v49 = vld [vmem:[#allocation5 + $0x9a0] sm:$0xff]  ;;  %12683 = vmatpush1.bf16.msra.mxu0 %v16723_v51 }
  0xae   :  { %v19593_v53 = vld [vmem:[#allocation2] sm:$0xff]  ;;  %v16732_v54 = vcombine.high %v452_v48, %v456_v49  ;;  %12602 = vmatprep.subr.bf16.mxu1 %v16476_v52  ;;  %v16731_v63 = vcombine.low %v452_v48, %v456_v49 }
  0xaf   :  { %v204_v55 = vld [vmem:[#allocation5 + $0x1c0] sm:$0xff]  ;;  %v19597_v57 = vcombine.high %v19593_v53, %v19593_v53  ;;  %12603 = vmatpush1.bf16.msra.mxu1 %v16475_v62 }
  0xb0   :  { %v208_v56 = vld [vmem:[#allocation5 + $0x1e0] sm:$0xff]  ;;  %12684 = vmatprep.subr.bf16.mxu0 %v16732_v54 }
  0xb1   :  { %v460_v59 = vld [vmem:[#allocation5 + $0x9c0] sm:$0xff]  ;;  %12622 = vmatprep.mubr.bf16.mxu1 %v19597_v57  ;;  %v16484_v0 = vcombine.high %v204_v55, %v208_v56  ;;  %v16483_v6 = vcombine.low %v204_v55, %v208_v56  ;;  %12685 = vmatpush1.bf16.msra.mxu0 %v16731_v63 }
  0xb2   :  { %v464_v60 = vld [vmem:[#allocation5 + $0x9e0] sm:$0xff] }
  0xb3   :  { %v16740_v1 = vcombine.high %v460_v59, %v464_v60  ;;  %v212_v2 = vld [vmem:[#allocation5 + $0x200] sm:$0xff]  ;;  %12604 = vmatprep.subr.bf16.mxu1 %v16484_v0  ;;  %v16739_v7 = vcombine.low %v460_v59, %v464_v60 }
  0xb4   :  { %v216_v3 = vld [vmem:[#allocation5 + $0x220] sm:$0xff]  ;;  %12605 = vmatpush1.bf16.msra.mxu1 %v16483_v6 }
  0xb5   :  { %v468_v4 = vld [vmem:[#allocation5 + $0xa00] sm:$0xff]  ;;  %v16492_v8 = vcombine.high %v212_v2, %v216_v3  ;;  %12686 = vmatprep.subr.bf16.mxu0 %v16740_v1  ;;  %v16491_v14 = vcombine.low %v212_v2, %v216_v3 }
  0xb6   :  { %v472_v5 = vld [vmem:[#allocation5 + $0xa20] sm:$0xff]  ;;  %12687 = vmatpush1.bf16.msra.mxu0 %v16739_v7 }
  0xb7   :  { %v16748_v9 = vcombine.high %v468_v4, %v472_v5  ;;  %v220_v10 = vld [vmem:[#allocation5 + $0x240] sm:$0xff]  ;;  %12606 = vmatprep.subr.bf16.mxu1 %v16492_v8  ;;  %v16747_v15 = vcombine.low %v468_v4, %v472_v5 }
  0xb8   :  { %v224_v11 = vld [vmem:[#allocation5 + $0x260] sm:$0xff]  ;;  %12607 = vmatpush1.bf16.msra.mxu1 %v16491_v14 }
  0xb9   :  { %v476_v12 = vld [vmem:[#allocation5 + $0xa40] sm:$0xff]  ;;  %v16500_v16 = vcombine.high %v220_v10, %v224_v11  ;;  %12688 = vmatprep.subr.bf16.mxu0 %v16748_v9  ;;  %v16499_v22 = vcombine.low %v220_v10, %v224_v11 }
  0xba   :  { %v480_v13 = vld [vmem:[#allocation5 + $0xa60] sm:$0xff]  ;;  %12689 = vmatpush1.bf16.msra.mxu0 %v16747_v15 }
  0xbb   :  { %v16756_v17 = vcombine.high %v476_v12, %v480_v13  ;;  %v228_v18 = vld [vmem:[#allocation5 + $0x280] sm:$0xff]  ;;  %12608 = vmatprep.subr.bf16.mxu1 %v16500_v16  ;;  %v16755_v23 = vcombine.low %v476_v12, %v480_v13  ;;  %v19609_v16 = vcombine.low %v19593_v53, %v19593_v53 }
  0xbc   :  { %v232_v19 = vld [vmem:[#allocation5 + $0x2a0] sm:$0xff]  ;;  %12609 = vmatpush1.bf16.msra.mxu1 %v16499_v22  ;;  %v19617_v22 = vld [vmem:[#allocation2 + $0x18] sm:$0xff] }
  0xbd   :  { %v484_v20 = vld [vmem:[#allocation5 + $0xa80] sm:$0xff]  ;;  %v16508_v24 = vcombine.high %v228_v18, %v232_v19  ;;  %12690 = vmatprep.subr.bf16.mxu0 %v16756_v17  ;;  %v16507_v30 = vcombine.low %v228_v18, %v232_v19  ;;  %v19611_v19 = vld [vmem:[#allocation2 + $0x8] sm:$0xff] }
  0xbe   :  { %v488_v21 = vld [vmem:[#allocation5 + $0xaa0] sm:$0xff]  ;;  %12691 = vmatpush1.bf16.msra.mxu0 %v16755_v23 }
  0xbf   :  { %v16764_v25 = vcombine.high %v484_v20, %v488_v21  ;;  %v236_v26 = vld [vmem:[#allocation5 + $0x2c0] sm:$0xff]  ;;  %12610 = vmatprep.subr.bf16.mxu1 %v16508_v24  ;;  %v16763_v31 = vcombine.low %v484_v20, %v488_v21  ;;  %v19615_v21 = vcombine.low %v19599_v58, %v19599_v58  ;;  %v19626_v58 = vcombine.high %v19617_v22, %v19617_v22 }
  0xc0   :  { %v240_v27 = vld [vmem:[#allocation5 + $0x2e0] sm:$0xff]  ;;  %12611 = vmatpush1.bf16.msra.mxu1 %v16507_v30 }
  0xc1   :  { %v492_v28 = vld [vmem:[#allocation5 + $0xac0] sm:$0xff]  ;;  %v16516_v32 = vcombine.high %v236_v26, %v240_v27  ;;  %12692 = vmatprep.subr.bf16.mxu0 %v16764_v25  ;;  %v16515_v38 = vcombine.low %v236_v26, %v240_v27 }
  0xc2   :  { %v496_v29 = vld [vmem:[#allocation5 + $0xae0] sm:$0xff]  ;;  %12693 = vmatpush1.bf16.msra.mxu0 %v16763_v31 }
  0xc3   :  { %v16772_v33 = vcombine.high %v492_v28, %v496_v29  ;;  %v244_v34 = vld [vmem:[#allocation5 + $0x300] sm:$0xff]  ;;  %12612 = vmatprep.subr.bf16.mxu1 %v16516_v32  ;;  %v16771_v39 = vcombine.low %v492_v28, %v496_v29  ;;  %v19621_v29 = vcombine.high %v19611_v19, %v19611_v19 }
  0xc4   :  { %v248_v35 = vld [vmem:[#allocation5 + $0x320] sm:$0xff]  ;;  %12613 = vmatpush1.bf16.msra.mxu1 %v16515_v38 }
  0xc5   :  { %v500_v36 = vld [vmem:[#allocation5 + $0xb00] sm:$0xff]  ;;  %v16524_v40 = vcombine.high %v244_v34, %v248_v35  ;;  %12694 = vmatprep.subr.bf16.mxu0 %v16772_v33  ;;  %v16523_v46 = vcombine.low %v244_v34, %v248_v35 }
  0xc6   :  { %v504_v37 = vld [vmem:[#allocation5 + $0xb20] sm:$0xff]  ;;  %12695 = vmatpush1.bf16.msra.mxu0 %v16771_v39 }
  0xc7   :  { %v16780_v41 = vcombine.high %v500_v36, %v504_v37  ;;  %v252_v42 = vld [vmem:[#allocation5 + $0x340] sm:$0xff]  ;;  %12614 = vmatprep.subr.bf16.mxu1 %v16524_v40  ;;  %v16779_v47 = vcombine.low %v500_v36, %v504_v37 }
  0xc8   :  { %v256_v43 = vld [vmem:[#allocation5 + $0x360] sm:$0xff]  ;;  %12615 = vmatpush1.bf16.msra.mxu1 %v16523_v46 }
  0xc9   :  { %v508_v44 = vld [vmem:[#allocation5 + $0xb40] sm:$0xff]  ;;  %v16532_v48 = vcombine.high %v252_v42, %v256_v43  ;;  %12696 = vmatprep.subr.bf16.mxu0 %v16780_v41  ;;  %v16531_v55 = vcombine.low %v252_v42, %v256_v43 }
  0xca   :  { %v512_v45 = vld [vmem:[#allocation5 + $0xb60] sm:$0xff]  ;;  %12697 = vmatpush1.bf16.msra.mxu0 %v16779_v47 }
  0xcb   :  { %v16788_v49 = vcombine.high %v508_v44, %v512_v45  ;;  %v260_v50 = vld [vmem:[#allocation5 + $0x380] sm:$0xff]  ;;  %12616 = vmatprep.subr.bf16.mxu1 %v16532_v48  ;;  %v16787_v56 = vcombine.low %v508_v44, %v512_v45 }
  0xcc   :  { %v264_v51 = vld [vmem:[#allocation5 + $0x3a0] sm:$0xff]  ;;  %12617 = vmatpush1.bf16.msra.mxu1 %v16531_v55 }
  0xcd   :  { %v516_v52 = vld [vmem:[#allocation5 + $0xb80] sm:$0xff]  ;;  %v16540_v59 = vcombine.high %v260_v50, %v264_v51  ;;  %12698 = vmatprep.subr.bf16.mxu0 %v16788_v49  ;;  %v16539_v2 = vcombine.low %v260_v50, %v264_v51 }
  0xce   :  { %v520_v54 = vld [vmem:[#allocation5 + $0xba0] sm:$0xff]  ;;  %12699 = vmatpush1.bf16.msra.mxu0 %v16787_v56 }
  0xcf   :  { %v16796_v60 = vcombine.high %v516_v52, %v520_v54  ;;  %v268_v62 = vld [vmem:[#allocation5 + $0x3c0] sm:$0xff]  ;;  %12618 = vmatprep.subr.bf16.mxu1 %v16540_v59  ;;  %v16795_v3 = vcombine.low %v516_v52, %v520_v54 }
  0xd0   :  { %v272_v63 = vld [vmem:[#allocation5 + $0x3e0] sm:$0xff]  ;;  %12619 = vmatpush1.bf16.msra.mxu1 %v16539_v2 }
  0xd1   :  { %v524_v0 = vld [vmem:[#allocation5 + $0xbc0] sm:$0xff]  ;;  %v16548_v4 = vcombine.high %v268_v62, %v272_v63  ;;  %12700 = vmatprep.subr.bf16.mxu0 %v16796_v60  ;;  %v16547_v10 = vcombine.low %v268_v62, %v272_v63 }
  0xd2   :  { %v528_v1 = vld [vmem:[#allocation5 + $0xbe0] sm:$0xff]  ;;  %12701 = vmatpush1.bf16.msra.mxu0 %v16795_v3 }
  0xd3   :  { %v16804_v5 = vcombine.high %v524_v0, %v528_v1  ;;  %v276_v6 = vld [vmem:[#allocation5 + $0x400] sm:$0xff]  ;;  %12620 = vmatprep.subr.bf16.mxu1 %v16548_v4  ;;  %v16803_v11 = vcombine.low %v524_v0, %v528_v1 }
  0xd4   :  { %v280_v7 = vld [vmem:[#allocation5 + $0x420] sm:$0xff]  ;;  %12621 = vmatpush1.bf16.msra.mxu1 %v16547_v10 }
  0xd5   :  { %v532_v8 = vld [vmem:[#allocation5 + $0xc00] sm:$0xff]  ;;  %v16556_v12 = vcombine.high %v276_v6, %v280_v7  ;;  %12702 = vmatprep.subr.bf16.mxu0 %v16804_v5  ;;  %v16555_v20 = vcombine.low %v276_v6, %v280_v7 }
  0xd6   :  { %v536_v9 = vld [vmem:[#allocation5 + $0xc20] sm:$0xff]  ;;  %12703 = vmatpush1.bf16.msra.mxu0 %v16803_v11 }
  0xd7   :  { %v16812_v13 = vcombine.high %v532_v8, %v536_v9  ;;  %v284_v14 = vld [vmem:[#allocation5 + $0x440] sm:$0xff]  ;;  %12631 = vmatprep.subr.bf16.mxu1 %v16556_v12  ;;  %v16811_v23 = vcombine.low %v532_v8, %v536_v9  ;;  %12623 = vmatmul.mubr.bf16.vlgmr.msra.gmra.mrb[0].mxu1 %v19609_v16 }
  0xd8   :  { %v288_v15 = vld [vmem:[#allocation5 + $0x460] sm:$0xff]  ;;  %12632 = vmatpush1.bf16.msra.mxu1 %v16555_v20  ;;  %12663 = vmatprep.mubr.bf16.mxu1 %v19621_v29 }
  0xd9   :  { %v540_v17 = vld [vmem:[#allocation5 + $0xc40] sm:$0xff]  ;;  %v16564_v24 = vcombine.high %v284_v14, %v288_v15  ;;  %12713 = vmatprep.subr.bf16.mxu0 %v16812_v13  ;;  %12705 = vmatmul.mubr.bf16.vlgmr.msra.gmra.mrb[0].mxu0 %v19615_v21  ;;  %v16563_v30 = vcombine.low %v284_v14, %v288_v15 }
  0xda   :  { %v544_v18 = vld [vmem:[#allocation5 + $0xc60] sm:$0xff]  ;;  %12714 = vmatpush1.bf16.msra.mxu0 %v16811_v23  ;;  %12745 = vmatprep.mubr.bf16.mxu0 %v19626_v58 }
  0xdb   :  { %v292_v25 = vld [vmem:[#allocation5 + $0x480] sm:$0xff]  ;;  %v16820_v53 = vcombine.high %v540_v17, %v544_v18  ;;  %12633 = vmatprep.subr.bf16.mxu1 %v16564_v24  ;;  %v16819_v31 = vcombine.low %v540_v17, %v544_v18 }
  0xdc   :  { %v296_v26 = vld [vmem:[#allocation5 + $0x4a0] sm:$0xff]  ;;  %12634 = vmatpush1.bf16.msra.mxu1 %v16563_v30 }
  0xdd   :  { %v548_v27 = vld [vmem:[#allocation5 + $0xc80] sm:$0xff]  ;;  %v16572_v32 = vcombine.high %v292_v25, %v296_v26  ;;  %12715 = vmatprep.subr.bf16.mxu0 %v16820_v53  ;;  %v16571_v38 = vcombine.low %v292_v25, %v296_v26 }
  0xde   :  { %v552_v28 = vld [vmem:[#allocation5 + $0xca0] sm:$0xff]  ;;  %12716 = vmatpush1.bf16.msra.mxu0 %v16819_v31 }
  0xdf   :  { %v300_v33 = vld [vmem:[#allocation5 + $0x4c0] sm:$0xff]  ;;  %v16828_v36 = vcombine.high %v548_v27, %v552_v28  ;;  %12635 = vmatprep.subr.bf16.mxu1 %v16572_v32  ;;  %v16827_v39 = vcombine.low %v548_v27, %v552_v28 }
  0xe0   :  { %v304_v34 = vld [vmem:[#allocation5 + $0x4e0] sm:$0xff]  ;;  %12636 = vmatpush1.bf16.msra.mxu1 %v16571_v38 }
  0xe1   :  { %v556_v35 = vld [vmem:[#allocation5 + $0xcc0] sm:$0xff]  ;;  %v16580_v40 = vcombine.high %v300_v33, %v304_v34  ;;  %12717 = vmatprep.subr.bf16.mxu0 %v16828_v36  ;;  %v16579_v46 = vcombine.low %v300_v33, %v304_v34 }
  0xe2   :  { %v560_v37 = vld [vmem:[#allocation5 + $0xce0] sm:$0xff]  ;;  %12718 = vmatpush1.bf16.msra.mxu0 %v16827_v39 }
  0xe3   :  { %v308_v41 = vld [vmem:[#allocation5 + $0x500] sm:$0xff]  ;;  %v16836_v44 = vcombine.high %v556_v35, %v560_v37  ;;  %12637 = vmatprep.subr.bf16.mxu1 %v16580_v40  ;;  %v16835_v47 = vcombine.low %v556_v35, %v560_v37 }
  0xe4   :  { %v312_v42 = vld [vmem:[#allocation5 + $0x520] sm:$0xff]  ;;  %12638 = vmatpush1.bf16.msra.mxu1 %v16579_v46 }
  0xe5   :  { %v564_v43 = vld [vmem:[#allocation5 + $0xd00] sm:$0xff]  ;;  %v16588_v48 = vcombine.high %v308_v41, %v312_v42  ;;  %12719 = vmatprep.subr.bf16.mxu0 %v16836_v44  ;;  %v16587_v55 = vcombine.low %v308_v41, %v312_v42 }
  0xe6   :  { %v568_v45 = vld [vmem:[#allocation5 + $0xd20] sm:$0xff]  ;;  %12720 = vmatpush1.bf16.msra.mxu0 %v16835_v47 }
  0xe7   :  { %v316_v49 = vld [vmem:[#allocation5 + $0x540] sm:$0xff]  ;;  %v16844_v52 = vcombine.high %v564_v43, %v568_v45  ;;  %12639 = vmatprep.subr.bf16.mxu1 %v16588_v48  ;;  %v16843_v56 = vcombine.low %v564_v43, %v568_v45 }
  0xe8   :  { %v320_v50 = vld [vmem:[#allocation5 + $0x560] sm:$0xff]  ;;  %12640 = vmatpush1.bf16.msra.mxu1 %v16587_v55 }
  0xe9   :  { %v572_v51 = vld [vmem:[#allocation5 + $0xd40] sm:$0xff]  ;;  %v16596_v59 = vcombine.high %v316_v49, %v320_v50  ;;  %12721 = vmatprep.subr.bf16.mxu0 %v16844_v52  ;;  %v16595_v2 = vcombine.low %v316_v49, %v320_v50 }
  0xea   :  { %v576_v54 = vld [vmem:[#allocation5 + $0xd60] sm:$0xff]  ;;  %12722 = vmatpush1.bf16.msra.mxu0 %v16843_v56 }
  0xeb   :  { %v324_v60 = vld [vmem:[#allocation5 + $0x580] sm:$0xff]  ;;  %v16852_v0 = vcombine.high %v572_v51, %v576_v54  ;;  %12641 = vmatprep.subr.bf16.mxu1 %v16596_v59  ;;  %v16851_v3 = vcombine.low %v572_v51, %v576_v54 }
  0xec   :  { %v328_v62 = vld [vmem:[#allocation5 + $0x5a0] sm:$0xff]  ;;  %12642 = vmatpush1.bf16.msra.mxu1 %v16595_v2 }
  0xed   :  { %v580_v63 = vld [vmem:[#allocation5 + $0xd80] sm:$0xff]  ;;  %v16604_v4 = vcombine.high %v324_v60, %v328_v62  ;;  %12723 = vmatprep.subr.bf16.mxu0 %v16852_v0  ;;  %v16603_v10 = vcombine.low %v324_v60, %v328_v62 }
  0xee   :  { %v584_v1 = vld [vmem:[#allocation5 + $0xda0] sm:$0xff]  ;;  %12724 = vmatpush1.bf16.msra.mxu0 %v16851_v3 }
  0xef   :  { %v332_v5 = vld [vmem:[#allocation5 + $0x5c0] sm:$0xff]  ;;  %v16860_v8 = vcombine.high %v580_v63, %v584_v1  ;;  %12643 = vmatprep.subr.bf16.mxu1 %v16604_v4  ;;  %v16859_v11 = vcombine.low %v580_v63, %v584_v1 }
  0xf0   :  { %v336_v6 = vld [vmem:[#allocation5 + $0x5e0] sm:$0xff]  ;;  %12644 = vmatpush1.bf16.msra.mxu1 %v16603_v10 }
  0xf1   :  { %v588_v7 = vld [vmem:[#allocation5 + $0xdc0] sm:$0xff]  ;;  %v16612_v12 = vcombine.high %v332_v5, %v336_v6  ;;  %12725 = vmatprep.subr.bf16.mxu0 %v16860_v8  ;;  %v16611_v20 = vcombine.low %v332_v5, %v336_v6 }
  0xf2   :  { %v592_v9 = vld [vmem:[#allocation5 + $0xde0] sm:$0xff]  ;;  %12726 = vmatpush1.bf16.msra.mxu0 %v16859_v11 }
  0xf3   :  { %v340_v13 = vld [vmem:[#allocation5 + $0x600] sm:$0xff]  ;;  %v16868_v17 = vcombine.high %v588_v7, %v592_v9  ;;  %12645 = vmatprep.subr.bf16.mxu1 %v16612_v12  ;;  %v16867_v23 = vcombine.low %v588_v7, %v592_v9 }
  0xf4   :  { %v344_v14 = vld [vmem:[#allocation5 + $0x620] sm:$0xff]  ;;  %12646 = vmatpush1.bf16.msra.mxu1 %v16611_v20 }
  0xf5   :  { %v596_v15 = vld [vmem:[#allocation5 + $0xe00] sm:$0xff]  ;;  %v16620_v24 = vcombine.high %v340_v13, %v344_v14  ;;  %12727 = vmatprep.subr.bf16.mxu0 %v16868_v17  ;;  %v16619_v30 = vcombine.low %v340_v13, %v344_v14 }
  0xf6   :  { %v600_v18 = vld [vmem:[#allocation5 + $0xe20] sm:$0xff]  ;;  %12728 = vmatpush1.bf16.msra.mxu0 %v16867_v23 }
  0xf7   :  { %v348_v25 = vld [vmem:[#allocation5 + $0x640] sm:$0xff]  ;;  %v16876_v27 = vcombine.high %v596_v15, %v600_v18  ;;  %12647 = vmatprep.subr.bf16.mxu1 %v16620_v24  ;;  %v16875_v31 = vcombine.low %v596_v15, %v600_v18 }
  0xf8   :  { %v352_v53 = vld [vmem:[#allocation5 + $0x660] sm:$0xff]  ;;  %12648 = vmatpush1.bf16.msra.mxu1 %v16619_v30 }
  0xf9   :  { %v604_v26 = vld [vmem:[#allocation5 + $0xe40] sm:$0xff]  ;;  %v16628_v32 = vcombine.high %v348_v25, %v352_v53  ;;  %12729 = vmatprep.subr.bf16.mxu0 %v16876_v27  ;;  %v16627_v38 = vcombine.low %v348_v25, %v352_v53 }
  0xfa   :  { %v608_v28 = vld [vmem:[#allocation5 + $0xe60] sm:$0xff]  ;;  %12730 = vmatpush1.bf16.msra.mxu0 %v16875_v31 }
  0xfb   :  { %v356_v33 = vld [vmem:[#allocation5 + $0x680] sm:$0xff]  ;;  %v16884_v36 = vcombine.high %v604_v26, %v608_v28  ;;  %12649 = vmatprep.subr.bf16.mxu1 %v16628_v32  ;;  %v16883_v39 = vcombine.low %v604_v26, %v608_v28  ;;  %v149_v26 = vld [vmem:[#allocation5 + $0x8] sm:$0xff] }
  0xfc   :  { %v360_v34 = vld [vmem:[#allocation5 + $0x6a0] sm:$0xff]  ;;  %12650 = vmatpush1.bf16.msra.mxu1 %v16627_v38  ;;  %v153_v28 = vld [vmem:[#allocation5 + $0x28] sm:$0xff] }
  0xfd   :  { %v612_v35 = vld [vmem:[#allocation5 + $0xe80] sm:$0xff]  ;;  %v16636_v40 = vcombine.high %v356_v33, %v360_v34  ;;  %12731 = vmatprep.subr.bf16.mxu0 %v16884_v36  ;;  %v16635_v46 = vcombine.low %v356_v33, %v360_v34  ;;  %v16430_v32 = vcombine.high %v149_v26, %v153_v28  ;;  %v161_v36 = vld [vmem:[#allocation5 + $0x68] sm:$0xff] }
  0xfe   :  { %v616_v37 = vld [vmem:[#allocation5 + $0xea0] sm:$0xff]  ;;  %12732 = vmatpush1.bf16.msra.mxu0 %v16883_v39  ;;  %v19635_v39 = vcombine.low %v19611_v19, %v19611_v19 }
  0xff   :  { %v364_v41 = vld [vmem:[#allocation5 + $0x6c0] sm:$0xff]  ;;  %v16892_v44 = vcombine.high %v612_v35, %v616_v37  ;;  %12651 = vmatprep.subr.bf16.mxu1 %v16636_v40  ;;  %v16891_v47 = vcombine.low %v612_v35, %v616_v37  ;;  %v157_v35 = vld [vmem:[#allocation5 + $0x48] sm:$0xff]  ;;  %v16429_v40 = vcombine.low %v149_v26, %v153_v28 }
 0x100   :  { %v368_v42 = vld [vmem:[#allocation5 + $0x6e0] sm:$0xff]  ;;  %12652 = vmatpush1.bf16.msra.mxu1 %v16635_v46  ;;  %v169_v46 = vld [vmem:[#allocation5 + $0xa8] sm:$0xff] }
 0x101   :  { %v620_v43 = vld [vmem:[#allocation5 + $0xec0] sm:$0xff]  ;;  %v16644_v48 = vcombine.high %v364_v41, %v368_v42  ;;  %12733 = vmatprep.subr.bf16.mxu0 %v16892_v44  ;;  %v16643_v55 = vcombine.low %v364_v41, %v368_v42  ;;  %v19639_v41 = vcombine.low %v19617_v22, %v19617_v22  ;;  %v16437_v22 = vcombine.low %v157_v35, %v161_v36  ;;  %v209_v28 = vld [vmem:[#allocation5 + $0x1e8] sm:$0xff] }
 0x102   :  { %v624_v45 = vld [vmem:[#allocation5 + $0xee0] sm:$0xff]  ;;  %12734 = vmatpush1.bf16.msra.mxu0 %v16891_v47 }
 0x103   :  { %v372_v49 = vld [vmem:[#allocation5 + $0x700] sm:$0xff]  ;;  %v16900_v52 = vcombine.high %v620_v43, %v624_v45  ;;  %12653 = vmatprep.subr.bf16.mxu1 %v16644_v48  ;;  %v16899_v56 = vcombine.low %v620_v43, %v624_v45  ;;  %v16438_v43 = vcombine.high %v157_v35, %v161_v36  ;;  %v165_v45 = vld [vmem:[#allocation5 + $0x88] sm:$0xff] }
 0x104   :  { %v376_v50 = vld [vmem:[#allocation5 + $0x720] sm:$0xff]  ;;  %12654 = vmatpush1.bf16.msra.mxu1 %v16643_v55  ;;  %v213_v36 = vld [vmem:[#allocation5 + $0x208] sm:$0xff] }
 0x105   :  { %v628_v51 = vld [vmem:[#allocation5 + $0xf00] sm:$0xff]  ;;  %v16652_v59 = vcombine.high %v372_v49, %v376_v50  ;;  %12735 = vmatprep.subr.bf16.mxu0 %v16900_v52  ;;  %v16651_v2 = vcombine.low %v372_v49, %v376_v50  ;;  %v16446_v50 = vcombine.high %v165_v45, %v169_v46  ;;  %v173_v52 = vld [vmem:[#allocation5 + $0xc8] sm:$0xff] }
 0x106   :  { %v632_v54 = vld [vmem:[#allocation5 + $0xf20] sm:$0xff]  ;;  %12736 = vmatpush1.bf16.msra.mxu0 %v16899_v56 }
 0x107   :  { %v380_v60 = vld [vmem:[#allocation5 + $0x740] sm:$0xff]  ;;  %v16908_v0 = vcombine.high %v628_v51, %v632_v54  ;;  %12655 = vmatprep.subr.bf16.mxu1 %v16652_v59  ;;  %v16907_v3 = vcombine.low %v628_v51, %v632_v54  ;;  %v177_v54 = vld [vmem:[#allocation5 + $0xe8] sm:$0xff]  ;;  %v16445_v59 = vcombine.low %v165_v45, %v169_v46 }
 0x108   :  { %v384_v62 = vld [vmem:[#allocation5 + $0x760] sm:$0xff]  ;;  %12656 = vmatpush1.bf16.msra.mxu1 %v16651_v2 }
 0x109   :  { %v636_v63 = vld [vmem:[#allocation5 + $0xf40] sm:$0xff]  ;;  %v16660_v4 = vcombine.high %v380_v60, %v384_v62  ;;  %12737 = vmatprep.subr.bf16.mxu0 %v16908_v0  ;;  %v16659_v10 = vcombine.low %v380_v60, %v384_v62  ;;  %v16454_v62 = vcombine.high %v173_v52, %v177_v54  ;;  %v181_v0 = vld [vmem:[#allocation5 + $0x108] sm:$0xff] }
 0x10a   :  { %v640_v1 = vld [vmem:[#allocation5 + $0xf60] sm:$0xff]  ;;  %12738 = vmatpush1.bf16.msra.mxu0 %v16907_v3 }
 0x10b   :  { %v388_v5 = vld [vmem:[#allocation5 + $0x780] sm:$0xff]  ;;  %v16916_v8 = vcombine.high %v636_v63, %v640_v1  ;;  %12657 = vmatprep.subr.bf16.mxu1 %v16660_v4  ;;  %v16915_v11 = vcombine.low %v636_v63, %v640_v1  ;;  %v185_v1 = vld [vmem:[#allocation5 + $0x128] sm:$0xff]  ;;  %v16453_v4 = vcombine.low %v173_v52, %v177_v54 }
 0x10c   :  { %v392_v6 = vld [vmem:[#allocation5 + $0x7a0] sm:$0xff]  ;;  %12658 = vmatpush1.bf16.msra.mxu1 %v16659_v10 }
 0x10d   :  { %v644_v7 = vld [vmem:[#allocation5 + $0xf80] sm:$0xff]  ;;  %v16668_v12 = vcombine.high %v388_v5, %v392_v6  ;;  %12739 = vmatprep.subr.bf16.mxu0 %v16916_v8  ;;  %v16667_v20 = vcombine.low %v388_v5, %v392_v6  ;;  %v16462_v6 = vcombine.high %v181_v0, %v185_v1  ;;  %v189_v8 = vld [vmem:[#allocation5 + $0x148] sm:$0xff] }
 0x10e   :  { %v648_v9 = vld [vmem:[#allocation5 + $0xfa0] sm:$0xff]  ;;  %12740 = vmatpush1.bf16.msra.mxu0 %v16915_v11 }
 0x10f   :  { %v396_v13 = vld [vmem:[#allocation5 + $0x7c0] sm:$0xff]  ;;  %v16924_v17 = vcombine.high %v644_v7, %v648_v9  ;;  %12659 = vmatprep.subr.bf16.mxu1 %v16668_v12  ;;  %v16923_v23 = vcombine.low %v644_v7, %v648_v9  ;;  %v193_v9 = vld [vmem:[#allocation5 + $0x168] sm:$0xff]  ;;  %v16461_v12 = vcombine.low %v181_v0, %v185_v1 }
 0x110   :  { %v400_v14 = vld [vmem:[#allocation5 + $0x7e0] sm:$0xff]  ;;  %12660 = vmatpush1.bf16.msra.mxu1 %v16667_v20 }
 0x111   :  { %v652_v15 = vld [vmem:[#allocation5 + $0xfc0] sm:$0xff]  ;;  %v16676_v24 = vcombine.high %v396_v13, %v400_v14  ;;  %12741 = vmatprep.subr.bf16.mxu0 %v16924_v17  ;;  %v16675_v30 = vcombine.low %v396_v13, %v400_v14  ;;  %v16470_v14 = vcombine.high %v189_v8, %v193_v9  ;;  %v197_v17 = vld [vmem:[#allocation5 + $0x188] sm:$0xff] }
 0x112   :  { %v656_v18 = vld [vmem:[#allocation5 + $0xfe0] sm:$0xff]  ;;  %12742 = vmatpush1.bf16.msra.mxu0 %v16923_v23 }
 0x113   :  { %v660_v25 = vld [vmem:[#allocation5 + $0x1000] sm:$0xff]  ;;  %v16932_v27 = vcombine.high %v652_v15, %v656_v18  ;;  %12661 = vmatprep.subr.bf16.mxu1 %v16676_v24  ;;  %v16931_v31 = vcombine.low %v652_v15, %v656_v18  ;;  %v201_v18 = vld [vmem:[#allocation5 + $0x1a8] sm:$0xff]  ;;  %v16469_v24 = vcombine.low %v189_v8, %v193_v9 }
 0x114   :  { %v664_v53 = vld [vmem:[#allocation5 + $0x1020] sm:$0xff]  ;;  %12662 = vmatpush1.bf16.msra.mxu1 %v16675_v30 }
 0x115   :  { %v668_v33 = vld [vmem:[#allocation5 + $0x1040] sm:$0xff]  ;;  %12743 = vmatprep.subr.bf16.mxu0 %v16932_v27  ;;  %v16940_v37 = vcombine.high %v660_v25, %v664_v53  ;;  %v16939_v42 = vcombine.low %v660_v25, %v664_v53  ;;  %13246 = vmatprep.subr.bf16.mxu1 %v16430_v32  ;;  %v16478_v53 = vcombine.high %v197_v17, %v201_v18  ;;  %v205_v27 = vld [vmem:[#allocation5 + $0x1c8] sm:$0xff] }
 0x116   :  { %v672_v34 = vld [vmem:[#allocation5 + $0x1060] sm:$0xff]  ;;  %12744 = vmatpush1.bf16.msra.mxu0 %v16931_v31  ;;  %v16477_v32 = vcombine.low %v197_v17, %v201_v18 }
 0x117   :  { %v19631_v38 = vld [vmem:[#allocation2 + $0x20] sm:$0xff]  ;;  %12754 = vmatprep.subr.bf16.mxu0 %v16940_v37  ;;  %v16948_v44 = vcombine.high %v668_v33, %v672_v34  ;;  %12664 = vmatmul.mubr.bf16.vlgmr.msra.gmra.mrb[0].mxu1 %v19635_v39  ;;  %v16947_v49 = vcombine.low %v668_v33, %v672_v34  ;;  %v16486_v34 = vcombine.high %v205_v27, %v209_v28  ;;  %v217_v37 = vld [vmem:[#allocation5 + $0x228] sm:$0xff] }
 0x118   :  { %v19643_v47 = vcombine.high %v19631_v38, %v19631_v38  ;;  %v676_v19 = vld [vmem:[#allocation5 + $0x1080] sm:$0xff]  ;;  %13247 = vmatpush1.bf16.msra.mxu1 %v16429_v40  ;;  %13278 = vmatprep.mubr.bf16.mxu1 %v19597_v57  ;;  %v16494_v45 = vcombine.high %v213_v36, %v217_v37 }
 0x119   :  { %v680_v48 = vld [vmem:[#allocation5 + $0x10a0] sm:$0xff]  ;;  %12746 = vmatmul.mubr.bf16.vlgmr.msra.gmra.mrb[0].mxu0 %v19639_v41  ;;  %13248 = vmatprep.subr.bf16.mxu1 %v16438_v43  ;;  %v16485_v43 = vcombine.low %v205_v27, %v209_v28 }
 0x11a   :  { %12755 = vmatpush1.bf16.msra.mxu0 %v16939_v42  ;;  %v16956_v51 = vcombine.high %v676_v19, %v680_v48  ;;  %12786 = vmatprep.mubr.bf16.mxu0 %v19643_v47  ;;  %v684_v55 = vld [vmem:[#allocation5 + $0x10c0] sm:$0xff]  ;;  %v16955_v60 = vcombine.low %v676_v19, %v680_v48  ;;  %v221_v19 = vld [vmem:[#allocation5 + $0x248] sm:$0xff] }
 0x11b   :  { %12756 = vmatprep.subr.bf16.mxu0 %v16948_v44  ;;  %v688_v56 = vld [vmem:[#allocation5 + $0x10e0] sm:$0xff]  ;;  %v225_v48 = vld [vmem:[#allocation5 + $0x268] sm:$0xff] }
 0x11c   :  { %13249 = vmatpush1.bf16.msra.mxu1 %v16437_v22  ;;  %v16964_v63 = vcombine.high %v684_v55, %v688_v56  ;;  %v692_v2 = vld [vmem:[#allocation5 + $0x1100] sm:$0xff]  ;;  %v16963_v5 = vcombine.low %v684_v55, %v688_v56  ;;  %v16502_v52 = vcombine.high %v221_v19, %v225_v48  ;;  %v229_v55 = vld [vmem:[#allocation5 + $0x288] sm:$0xff] }
 0x11d   :  { %13250 = vmatprep.subr.bf16.mxu1 %v16446_v50  ;;  %v696_v3 = vld [vmem:[#allocation5 + $0x1120] sm:$0xff]  ;;  %v16493_v50 = vcombine.low %v213_v36, %v217_v37  ;;  %v233_v56 = vld [vmem:[#allocation5 + $0x2a8] sm:$0xff] }
 0x11e   :  { %12757 = vmatpush1.bf16.msra.mxu0 %v16947_v49  ;;  %v16972_v7 = vcombine.high %v692_v2, %v696_v3  ;;  %v700_v10 = vld [vmem:[#allocation5 + $0x1140] sm:$0xff]  ;;  %v16971_v13 = vcombine.low %v692_v2, %v696_v3  ;;  %v16510_v0 = vcombine.high %v229_v55, %v233_v56  ;;  %v237_v2 = vld [vmem:[#allocation5 + $0x2c8] sm:$0xff] }
 0x11f   :  { %12758 = vmatprep.subr.bf16.mxu0 %v16956_v51  ;;  %v704_v11 = vld [vmem:[#allocation5 + $0x1160] sm:$0xff]  ;;  %v241_v3 = vld [vmem:[#allocation5 + $0x2e8] sm:$0xff] }
 0x120   :  { %13251 = vmatpush1.bf16.msra.mxu1 %v16445_v59  ;;  %v16980_v15 = vcombine.high %v700_v10, %v704_v11  ;;  %v708_v20 = vld [vmem:[#allocation5 + $0x1180] sm:$0xff]  ;;  %v16979_v25 = vcombine.low %v700_v10, %v704_v11  ;;  %v16518_v8 = vcombine.high %v237_v2, %v241_v3  ;;  %v245_v10 = vld [vmem:[#allocation5 + $0x308] sm:$0xff] }
 0x121   :  { %13252 = vmatprep.subr.bf16.mxu1 %v16454_v62  ;;  %v712_v23 = vld [vmem:[#allocation5 + $0x11a0] sm:$0xff]  ;;  %v16501_v62 = vcombine.low %v221_v19, %v225_v48  ;;  %v249_v11 = vld [vmem:[#allocation5 + $0x328] sm:$0xff] }
 0x122   :  { %12759 = vmatpush1.bf16.msra.mxu0 %v16955_v60  ;;  %v16988_v26 = vcombine.high %v708_v20, %v712_v23  ;;  %v716_v30 = vld [vmem:[#allocation5 + $0x11c0] sm:$0xff]  ;;  %v16987_v33 = vcombine.low %v708_v20, %v712_v23  ;;  %v16526_v17 = vcombine.high %v245_v10, %v249_v11  ;;  %v253_v20 = vld [vmem:[#allocation5 + $0x348] sm:$0xff] }
 0x123   :  { %12760 = vmatprep.subr.bf16.mxu0 %v16964_v63  ;;  %v720_v31 = vld [vmem:[#allocation5 + $0x11e0] sm:$0xff]  ;;  %v257_v23 = vld [vmem:[#allocation5 + $0x368] sm:$0xff] }
 0x124   :  { %13253 = vmatpush1.bf16.msra.mxu1 %v16453_v4  ;;  %v16996_v35 = vcombine.high %v716_v30, %v720_v31  ;;  %v724_v40 = vld [vmem:[#allocation5 + $0x1200] sm:$0xff]  ;;  %v16995_v44 = vcombine.low %v716_v30, %v720_v31  ;;  %v16534_v27 = vcombine.high %v253_v20, %v257_v23  ;;  %v261_v30 = vld [vmem:[#allocation5 + $0x388] sm:$0xff] }
 0x125   :  { %13254 = vmatprep.subr.bf16.mxu1 %v16462_v6  ;;  %v728_v42 = vld [vmem:[#allocation5 + $0x1220] sm:$0xff]  ;;  %v16509_v6 = vcombine.low %v229_v55, %v233_v56  ;;  %v265_v31 = vld [vmem:[#allocation5 + $0x3a8] sm:$0xff] }
 0x126   :  { %12761 = vmatpush1.bf16.msra.mxu0 %v16963_v5  ;;  %v17004_v46 = vcombine.high %v724_v40, %v728_v42  ;;  %v732_v22 = vld [vmem:[#allocation5 + $0x1240] sm:$0xff]  ;;  %v17003_v51 = vcombine.low %v724_v40, %v728_v42  ;;  %v16542_v36 = vcombine.high %v261_v30, %v265_v31  ;;  %v269_v40 = vld [vmem:[#allocation5 + $0x3c8] sm:$0xff] }
 0x127   :  { %12762 = vmatprep.subr.bf16.mxu0 %v16972_v7  ;;  %v736_v49 = vld [vmem:[#allocation5 + $0x1260] sm:$0xff]  ;;  %v273_v42 = vld [vmem:[#allocation5 + $0x3e8] sm:$0xff] }
 0x128   :  { %13255 = vmatpush1.bf16.msra.mxu1 %v16461_v12  ;;  %v17012_v54 = vcombine.high %v732_v22, %v736_v49  ;;  %v740_v59 = vld [vmem:[#allocation5 + $0x1280] sm:$0xff]  ;;  %v17011_v63 = vcombine.low %v732_v22, %v736_v49  ;;  %v16550_v19 = vcombine.high %v269_v40, %v273_v42  ;;  %v277_v22 = vld [vmem:[#allocation5 + $0x408] sm:$0xff] }
 0x129   :  { %13256 = vmatprep.subr.bf16.mxu1 %v16470_v14  ;;  %v744_v60 = vld [vmem:[#allocation5 + $0x12a0] sm:$0xff]  ;;  %v16517_v14 = vcombine.low %v237_v2, %v241_v3  ;;  %v281_v49 = vld [vmem:[#allocation5 + $0x428] sm:$0xff]  ;;  %v19653_v2 = vcombine.low %v19631_v38, %v19631_v38 }
 0x12a   :  { %12763 = vmatpush1.bf16.msra.mxu0 %v16971_v13  ;;  %v17020_v1 = vcombine.high %v740_v59, %v744_v60  ;;  %v748_v4 = vld [vmem:[#allocation5 + $0x12c0] sm:$0xff]  ;;  %v17019_v7 = vcombine.low %v740_v59, %v744_v60  ;;  %v16558_v55 = vcombine.high %v277_v22, %v281_v49  ;;  %v285_v59 = vld [vmem:[#allocation5 + $0x448] sm:$0xff] }
 0x12b   :  { %12764 = vmatprep.subr.bf16.mxu0 %v16980_v15  ;;  %v752_v5 = vld [vmem:[#allocation5 + $0x12e0] sm:$0xff]  ;;  %v289_v60 = vld [vmem:[#allocation5 + $0x468] sm:$0xff] }
 0x12c   :  { %13257 = vmatpush1.bf16.msra.mxu1 %v16469_v24  ;;  %v17028_v9 = vcombine.high %v748_v4, %v752_v5  ;;  %v756_v12 = vld [vmem:[#allocation5 + $0x1300] sm:$0xff]  ;;  %v17027_v15 = vcombine.low %v748_v4, %v752_v5  ;;  %v16566_v4 = vcombine.high %v285_v59, %v289_v60  ;;  %v16565_v38 = vcombine.low %v285_v59, %v289_v60 }
 0x12d   :  { %13258 = vmatprep.subr.bf16.mxu1 %v16478_v53  ;;  %v760_v13 = vld [vmem:[#allocation5 + $0x1320] sm:$0xff]  ;;  %v16525_v53 = vcombine.low %v245_v10, %v249_v11 }
 0x12e   :  { %12765 = vmatpush1.bf16.msra.mxu0 %v16979_v25  ;;  %v17036_v18 = vcombine.high %v756_v12, %v760_v13  ;;  %v764_v24 = vld [vmem:[#allocation5 + $0x1340] sm:$0xff] }
 0x12f   :  { %12766 = vmatprep.subr.bf16.mxu0 %v16988_v26  ;;  %v768_v25 = vld [vmem:[#allocation5 + $0x1360] sm:$0xff]  ;;  %v17035_v26 = vcombine.low %v756_v12, %v760_v13 }
 0x130   :  { %13259 = vmatpush1.bf16.msra.mxu1 %v16477_v32  ;;  %v17044_v28 = vcombine.high %v764_v24, %v768_v25  ;;  %v772_v32 = vld [vmem:[#allocation5 + $0x1380] sm:$0xff] }
 0x131   :  { %13260 = vmatprep.subr.bf16.mxu1 %v16486_v34  ;;  %v16533_v34 = vcombine.low %v253_v20, %v257_v23  ;;  %v808_v10 = vld [vmem:[#allocation5 + $0x14a0] sm:$0xff] }
 0x132   :  { %12767 = vmatpush1.bf16.msra.mxu0 %v16987_v33  ;;  %v776_v33 = vld [vmem:[#allocation5 + $0x13a0] sm:$0xff] }
 0x133   :  { %12768 = vmatprep.subr.bf16.mxu0 %v16996_v35  ;;  %v17043_v35 = vcombine.low %v764_v24, %v768_v25  ;;  %v17052_v37 = vcombine.high %v772_v32, %v776_v33 }
 0x134   :  { %13261 = vmatpush1.bf16.msra.mxu1 %v16485_v43  ;;  %v780_v43 = vld [vmem:[#allocation5 + $0x13c0] sm:$0xff] }
 0x135   :  { %13262 = vmatprep.subr.bf16.mxu1 %v16494_v45  ;;  %v16541_v45 = vcombine.low %v261_v30, %v265_v31 }
 0x136   :  { %12769 = vmatpush1.bf16.msra.mxu0 %v16995_v44  ;;  %v784_v44 = vld [vmem:[#allocation5 + $0x13e0] sm:$0xff] }
 0x137   :  { %12770 = vmatprep.subr.bf16.mxu0 %v17004_v46  ;;  %v17051_v46 = vcombine.low %v772_v32, %v776_v33  ;;  %v17060_v48 = vcombine.high %v780_v43, %v784_v44 }
 0x138   :  { %13263 = vmatpush1.bf16.msra.mxu1 %v16493_v50  ;;  %v788_v50 = vld [vmem:[#allocation5 + $0x1400] sm:$0xff] }
 0x139   :  { %13264 = vmatprep.subr.bf16.mxu1 %v16502_v52  ;;  %v16549_v52 = vcombine.low %v269_v40, %v273_v42 }
 0x13a   :  { %12771 = vmatpush1.bf16.msra.mxu0 %v17003_v51  ;;  %v792_v51 = vld [vmem:[#allocation5 + $0x1420] sm:$0xff] }
 0x13b   :  { %12772 = vmatprep.subr.bf16.mxu0 %v17012_v54  ;;  %v17059_v54 = vcombine.low %v780_v43, %v784_v44  ;;  %v17068_v56 = vcombine.high %v788_v50, %v792_v51  ;;  %v17067_v3 = vcombine.low %v788_v50, %v792_v51 }
 0x13c   :  { %13265 = vmatpush1.bf16.msra.mxu1 %v16501_v62  ;;  %v796_v62 = vld [vmem:[#allocation5 + $0x1440] sm:$0xff] }
 0x13d   :  { %13266 = vmatprep.subr.bf16.mxu1 %v16510_v0  ;;  %v19649_v0 = vld [vmem:[#allocation2 + $0x28] sm:$0xff] }
 0x13e   :  { %12773 = vmatpush1.bf16.msra.mxu0 %v17011_v63  ;;  %v800_v63 = vld [vmem:[#allocation5 + $0x1460] sm:$0xff] }
 0x13f   :  { %12774 = vmatprep.subr.bf16.mxu0 %v17020_v1  ;;  %v16557_v1 = vcombine.low %v277_v22, %v281_v49  ;;  %v17076_v5 = vcombine.high %v796_v62, %v800_v63  ;;  %v17075_v11 = vcombine.low %v796_v62, %v800_v63 }
 0x140   :  { %13267 = vmatpush1.bf16.msra.mxu1 %v16509_v6  ;;  %v293_v6 = vld [vmem:[#allocation5 + $0x488] sm:$0xff] }
 0x141   :  { %13268 = vmatprep.subr.bf16.mxu1 %v16518_v8  ;;  %v19657_v8 = vcombine.high %v19649_v0, %v19649_v0 }
 0x142   :  { %12775 = vmatpush1.bf16.msra.mxu0 %v17019_v7  ;;  %v297_v7 = vld [vmem:[#allocation5 + $0x4a8] sm:$0xff] }
 0x143   :  { %12776 = vmatprep.subr.bf16.mxu0 %v17028_v9  ;;  %v804_v9 = vld [vmem:[#allocation5 + $0x1480] sm:$0xff]  ;;  %v16574_v12 = vcombine.high %v293_v6, %v297_v7  ;;  %v16573_v20 = vcombine.low %v293_v6, %v297_v7 }
 0x144   :  { %13269 = vmatpush1.bf16.msra.mxu1 %v16517_v14  ;;  %v17084_v13 = vcombine.high %v804_v9, %v808_v10  ;;  %v301_v14 = vld [vmem:[#allocation5 + $0x4c8] sm:$0xff]  ;;  %v17083_v23 = vcombine.low %v804_v9, %v808_v10 }
 0x145   :  { %13270 = vmatprep.subr.bf16.mxu1 %v16526_v17  ;;  %v812_v17 = vld [vmem:[#allocation5 + $0x14c0] sm:$0xff] }
 0x146   :  { %12777 = vmatpush1.bf16.msra.mxu0 %v17027_v15  ;;  %v305_v15 = vld [vmem:[#allocation5 + $0x4e8] sm:$0xff] }
 0x147   :  { %12778 = vmatprep.subr.bf16.mxu0 %v17036_v18  ;;  %v816_v18 = vld [vmem:[#allocation5 + $0x14e0] sm:$0xff]  ;;  %v16582_v24 = vcombine.high %v301_v14, %v305_v15  ;;  %v16581_v30 = vcombine.low %v301_v14, %v305_v15 }
 0x148   :  { %13271 = vmatpush1.bf16.msra.mxu1 %v16525_v53  ;;  %v17092_v25 = vcombine.high %v812_v17, %v816_v18  ;;  %v309_v53 = vld [vmem:[#allocation5 + $0x508] sm:$0xff]  ;;  %v17091_v31 = vcombine.low %v812_v17, %v816_v18 }
 0x149   :  { %13272 = vmatprep.subr.bf16.mxu1 %v16534_v27  ;;  %v820_v27 = vld [vmem:[#allocation5 + $0x1500] sm:$0xff] }
 0x14a   :  { %12779 = vmatpush1.bf16.msra.mxu0 %v17035_v26  ;;  %v313_v26 = vld [vmem:[#allocation5 + $0x528] sm:$0xff] }
 0x14b   :  { %12780 = vmatprep.subr.bf16.mxu0 %v17044_v28  ;;  %v824_v28 = vld [vmem:[#allocation5 + $0x1520] sm:$0xff]  ;;  %v16590_v32 = vcombine.high %v309_v53, %v313_v26  ;;  %v16589_v40 = vcombine.low %v309_v53, %v313_v26 }
 0x14c   :  { %13273 = vmatpush1.bf16.msra.mxu1 %v16533_v34  ;;  %v17100_v33 = vcombine.high %v820_v27, %v824_v28  ;;  %v317_v34 = vld [vmem:[#allocation5 + $0x548] sm:$0xff]  ;;  %v17099_v42 = vcombine.low %v820_v27, %v824_v28 }
 0x14d   :  { %13274 = vmatprep.subr.bf16.mxu1 %v16542_v36  ;;  %v828_v36 = vld [vmem:[#allocation5 + $0x1540] sm:$0xff] }
 0x14e   :  { %12781 = vmatpush1.bf16.msra.mxu0 %v17043_v35  ;;  %v321_v35 = vld [vmem:[#allocation5 + $0x568] sm:$0xff] }
 0x14f   :  { %12782 = vmatprep.subr.bf16.mxu0 %v17052_v37  ;;  %v832_v37 = vld [vmem:[#allocation5 + $0x1560] sm:$0xff]  ;;  %v16598_v43 = vcombine.high %v317_v34, %v321_v35  ;;  %v16597_v22 = vcombine.low %v317_v34, %v321_v35 }
 0x150   :  { %13275 = vmatpush1.bf16.msra.mxu1 %v16541_v45  ;;  %v17108_v44 = vcombine.high %v828_v36, %v832_v37  ;;  %v325_v45 = vld [vmem:[#allocation5 + $0x588] sm:$0xff]  ;;  %v17107_v49 = vcombine.low %v828_v36, %v832_v37 }
 0x151   :  { %13276 = vmatprep.subr.bf16.mxu1 %v16550_v19  ;;  %v836_v19 = vld [vmem:[#allocation5 + $0x1580] sm:$0xff] }
 0x152   :  { %12783 = vmatpush1.bf16.msra.mxu0 %v17051_v46  ;;  %v329_v46 = vld [vmem:[#allocation5 + $0x5a8] sm:$0xff] }
 0x153   :  { %12784 = vmatprep.subr.bf16.mxu0 %v17060_v48  ;;  %v840_v48 = vld [vmem:[#allocation5 + $0x15a0] sm:$0xff]  ;;  %v16606_v50 = vcombine.high %v325_v45, %v329_v46  ;;  %v16605_v59 = vcombine.low %v325_v45, %v329_v46 }
 0x154   :  { %13277 = vmatpush1.bf16.msra.mxu1 %v16549_v52  ;;  %v17116_v51 = vcombine.high %v836_v19, %v840_v48  ;;  %v333_v52 = vld [vmem:[#allocation5 + $0x5c8] sm:$0xff]  ;;  %v17115_v60 = vcombine.low %v836_v19, %v840_v48 }
 0x155   :  { %13287 = vmatprep.subr.bf16.mxu1 %v16558_v55  ;;  %v844_v55 = vld [vmem:[#allocation5 + $0x15c0] sm:$0xff] }
 0x156   :  { %12785 = vmatpush1.bf16.msra.mxu0 %v17059_v54  ;;  %v337_v54 = vld [vmem:[#allocation5 + $0x5e8] sm:$0xff] }
 0x157   :  { %12795 = vmatprep.subr.bf16.mxu0 %v17068_v56  ;;  %13279 = vmatmul.mubr.bf16.vlgmr.msra.gmra.mrb[4].mxu1 %v19609_v16  ;;  %v848_v56 = vld [vmem:[#allocation5 + $0x15e0] sm:$0xff]  ;;  %v16614_v62 = vcombine.high %v333_v52, %v337_v54  ;;  %v16613_v6 = vcombine.low %v333_v52, %v337_v54 }
 0x158   :  { %13288 = vmatpush1.bf16.msra.mxu1 %v16557_v1  ;;  %13319 = vmatprep.mubr.bf16.mxu1 %v19621_v29  ;;  %v17124_v63 = vcombine.high %v844_v55, %v848_v56  ;;  %v341_v1 = vld [vmem:[#allocation5 + $0x608] sm:$0xff]  ;;  %v17123_v7 = vcombine.low %v844_v55, %v848_v56 }
 0x159   :  { %12787 = vmatmul.mubr.bf16.vlgmr.msra.gmra.mrb[0].mxu0 %v19653_v2  ;;  %13289 = vmatprep.subr.bf16.mxu1 %v16566_v4  ;;  %v852_v4 = vld [vmem:[#allocation5 + $0x1600] sm:$0xff] }
 0x15a   :  { %12796 = vmatpush1.bf16.msra.mxu0 %v17067_v3  ;;  %12827 = vmatprep.mubr.bf16.mxu0 %v19657_v8  ;;  %v345_v3 = vld [vmem:[#allocation5 + $0x628] sm:$0xff] }
 0x15b   :  { %12797 = vmatprep.subr.bf16.mxu0 %v17076_v5  ;;  %v856_v5 = vld [vmem:[#allocation5 + $0x1620] sm:$0xff]  ;;  %v16622_v9 = vcombine.high %v341_v1, %v345_v3  ;;  %v16621_v14 = vcombine.low %v341_v1, %v345_v3 }
 0x15c   :  { %13290 = vmatpush1.bf16.msra.mxu1 %v16565_v38  ;;  %v17132_v10 = vcombine.high %v852_v4, %v856_v5  ;;  %v349_v38 = vld [vmem:[#allocation5 + $0x648] sm:$0xff]  ;;  %v17131_v15 = vcombine.low %v852_v4, %v856_v5 }
 0x15d   :  { %13291 = vmatprep.subr.bf16.mxu1 %v16574_v12  ;;  %v860_v12 = vld [vmem:[#allocation5 + $0x1640] sm:$0xff] }
 0x15e   :  { %12798 = vmatpush1.bf16.msra.mxu0 %v17075_v11  ;;  %v353_v11 = vld [vmem:[#allocation5 + $0x668] sm:$0xff] }
 0x15f   :  { %12799 = vmatprep.subr.bf16.mxu0 %v17084_v13  ;;  %v864_v13 = vld [vmem:[#allocation5 + $0x1660] sm:$0xff]  ;;  %v16630_v17 = vcombine.high %v349_v38, %v353_v11  ;;  %v16629_v53 = vcombine.low %v349_v38, %v353_v11 }
 0x160   :  { %13292 = vmatpush1.bf16.msra.mxu1 %v16573_v20  ;;  %v17140_v18 = vcombine.high %v860_v12, %v864_v13  ;;  %v357_v20 = vld [vmem:[#allocation5 + $0x688] sm:$0xff]  ;;  %v17139_v26 = vcombine.low %v860_v12, %v864_v13 }
 0x161   :  { %13293 = vmatprep.subr.bf16.mxu1 %v16582_v24  ;;  %v868_v24 = vld [vmem:[#allocation5 + $0x1680] sm:$0xff] }
 0x162   :  { %12800 = vmatpush1.bf16.msra.mxu0 %v17083_v23  ;;  %v361_v23 = vld [vmem:[#allocation5 + $0x6a8] sm:$0xff] }
 0x163   :  { %12801 = vmatprep.subr.bf16.mxu0 %v17092_v25  ;;  %v872_v25 = vld [vmem:[#allocation5 + $0x16a0] sm:$0xff]  ;;  %v16638_v27 = vcombine.high %v357_v20, %v361_v23  ;;  %v16637_v34 = vcombine.low %v357_v20, %v361_v23 }
 0x164   :  { %13294 = vmatpush1.bf16.msra.mxu1 %v16581_v30  ;;  %v17148_v28 = vcombine.high %v868_v24, %v872_v25  ;;  %v365_v30 = vld [vmem:[#allocation5 + $0x6c8] sm:$0xff]  ;;  %v17147_v35 = vcombine.low %v868_v24, %v872_v25 }
 0x165   :  { %13295 = vmatprep.subr.bf16.mxu1 %v16590_v32  ;;  %v876_v32 = vld [vmem:[#allocation5 + $0x16c0] sm:$0xff] }
 0x166   :  { %12802 = vmatpush1.bf16.msra.mxu0 %v17091_v31  ;;  %v369_v31 = vld [vmem:[#allocation5 + $0x6e8] sm:$0xff] }
 0x167   :  { %12803 = vmatprep.subr.bf16.mxu0 %v17100_v33  ;;  %v880_v33 = vld [vmem:[#allocation5 + $0x16e0] sm:$0xff]  ;;  %v16646_v36 = vcombine.high %v365_v30, %v369_v31  ;;  %v16645_v45 = vcombine.low %v365_v30, %v369_v31  ;;  %v19663_v30 = vld [vmem:[#allocation2 + $0x30] sm:$0xff] }
 0x168   :  { %13296 = vmatpush1.bf16.msra.mxu1 %v16589_v40  ;;  %v17156_v37 = vcombine.high %v876_v32, %v880_v33  ;;  %v373_v40 = vld [vmem:[#allocation5 + $0x708] sm:$0xff]  ;;  %v17155_v46 = vcombine.low %v876_v32, %v880_v33  ;;  %v19667_v32 = vcombine.low %v19649_v0, %v19649_v0 }
 0x169   :  { %13297 = vmatprep.subr.bf16.mxu1 %v16598_v43  ;;  %v884_v43 = vld [vmem:[#allocation5 + $0x1700] sm:$0xff] }
 0x16a   :  { %12804 = vmatpush1.bf16.msra.mxu0 %v17099_v42  ;;  %v377_v42 = vld [vmem:[#allocation5 + $0x728] sm:$0xff] }
 0x16b   :  { %12805 = vmatprep.subr.bf16.mxu0 %v17108_v44  ;;  %v888_v44 = vld [vmem:[#allocation5 + $0x1720] sm:$0xff]  ;;  %v16654_v19 = vcombine.high %v373_v40, %v377_v42  ;;  %v16653_v52 = vcombine.low %v373_v40, %v377_v42  ;;  %v19671_v40 = vcombine.high %v19663_v30, %v19663_v30 }
 0x16c   :  { %13298 = vmatpush1.bf16.msra.mxu1 %v16597_v22  ;;  %v17164_v48 = vcombine.high %v884_v43, %v888_v44  ;;  %v381_v22 = vld [vmem:[#allocation5 + $0x748] sm:$0xff]  ;;  %v17163_v54 = vcombine.low %v884_v43, %v888_v44  ;;  %v932_v42 = vld [vmem:[#allocation5 + $0x1880] sm:$0xff] }
 0x16d   :  { %13299 = vmatprep.subr.bf16.mxu1 %v16606_v50  ;;  %v892_v50 = vld [vmem:[#allocation5 + $0x1740] sm:$0xff] }
 0x16e   :  { %12806 = vmatpush1.bf16.msra.mxu0 %v17107_v49  ;;  %v385_v49 = vld [vmem:[#allocation5 + $0x768] sm:$0xff]  ;;  %v936_v43 = vld [vmem:[#allocation5 + $0x18a0] sm:$0xff] }
 0x16f   :  { %12807 = vmatprep.subr.bf16.mxu0 %v17116_v51  ;;  %v896_v51 = vld [vmem:[#allocation5 + $0x1760] sm:$0xff]  ;;  %v16662_v55 = vcombine.high %v381_v22, %v385_v49  ;;  %v16661_v1 = vcombine.low %v381_v22, %v385_v49 }
 0x170   :  { %13300 = vmatpush1.bf16.msra.mxu1 %v16605_v59  ;;  %v17172_v56 = vcombine.high %v892_v50, %v896_v51  ;;  %v389_v59 = vld [vmem:[#allocation5 + $0x788] sm:$0xff]  ;;  %v17171_v3 = vcombine.low %v892_v50, %v896_v51  ;;  %v940_v22 = vld [vmem:[#allocation5 + $0x18c0] sm:$0xff]  ;;  %v17211_v51 = vcombine.low %v932_v42, %v936_v43 }
 0x171   :  { %13301 = vmatprep.subr.bf16.mxu1 %v16614_v62  ;;  %v900_v62 = vld [vmem:[#allocation5 + $0x1780] sm:$0xff] }
 0x172   :  { %12808 = vmatpush1.bf16.msra.mxu0 %v17115_v60  ;;  %v393_v60 = vld [vmem:[#allocation5 + $0x7a8] sm:$0xff]  ;;  %v944_v49 = vld [vmem:[#allocation5 + $0x18e0] sm:$0xff] }
 0x173   :  { %12809 = vmatprep.subr.bf16.mxu0 %v17124_v63  ;;  %v904_v63 = vld [vmem:[#allocation5 + $0x17a0] sm:$0xff]  ;;  %v16670_v4 = vcombine.high %v389_v59, %v393_v60  ;;  %v16669_v38 = vcombine.low %v389_v59, %v393_v60 }
 0x174   :  { %13302 = vmatpush1.bf16.msra.mxu1 %v16613_v6  ;;  %v17180_v5 = vcombine.high %v900_v62, %v904_v63  ;;  %v397_v6 = vld [vmem:[#allocation5 + $0x7c8] sm:$0xff]  ;;  %v17179_v11 = vcombine.low %v900_v62, %v904_v63  ;;  %v948_v59 = vld [vmem:[#allocation5 + $0x1900] sm:$0xff]  ;;  %v17219_v63 = vcombine.low %v940_v22, %v944_v49 }
 0x175   :  { %13303 = vmatprep.subr.bf16.mxu1 %v16622_v9  ;;  %v908_v9 = vld [vmem:[#allocation5 + $0x17c0] sm:$0xff] }
 0x176   :  { %12810 = vmatpush1.bf16.msra.mxu0 %v17123_v7  ;;  %v401_v7 = vld [vmem:[#allocation5 + $0x7e8] sm:$0xff]  ;;  %v952_v60 = vld [vmem:[#allocation5 + $0x1920] sm:$0xff] }
 0x177   :  { %12811 = vmatprep.subr.bf16.mxu0 %v17132_v10  ;;  %v912_v10 = vld [vmem:[#allocation5 + $0x17e0] sm:$0xff]  ;;  %v16678_v12 = vcombine.high %v397_v6, %v401_v7  ;;  %v16677_v20 = vcombine.low %v397_v6, %v401_v7 }
 0x178   :  { %13304 = vmatpush1.bf16.msra.mxu1 %v16621_v14  ;;  %v17188_v13 = vcombine.high %v908_v9, %v912_v10  ;;  %v405_v14 = vld [vmem:[#allocation5 + $0x808] sm:$0xff]  ;;  %v17187_v23 = vcombine.low %v908_v9, %v912_v10  ;;  %v956_v6 = vld [vmem:[#allocation5 + $0x1940] sm:$0xff]  ;;  %v17227_v10 = vcombine.low %v948_v59, %v952_v60 }
 0x179   :  { %13305 = vmatprep.subr.bf16.mxu1 %v16630_v17  ;;  %v916_v17 = vld [vmem:[#allocation5 + $0x1800] sm:$0xff] }
 0x17a   :  { %12812 = vmatpush1.bf16.msra.mxu0 %v17131_v15  ;;  %v409_v15 = vld [vmem:[#allocation5 + $0x828] sm:$0xff]  ;;  %v960_v7 = vld [vmem:[#allocation5 + $0x1960] sm:$0xff] }
 0x17b   :  { %12813 = vmatprep.subr.bf16.mxu0 %v17140_v18  ;;  %v920_v18 = vld [vmem:[#allocation5 + $0x1820] sm:$0xff]  ;;  %v16686_v24 = vcombine.high %v405_v14, %v409_v15  ;;  %v16685_v31 = vcombine.low %v405_v14, %v409_v15 }
 0x17c   :  { %13306 = vmatpush1.bf16.msra.mxu1 %v16629_v53  ;;  %v17196_v25 = vcombine.high %v916_v17, %v920_v18  ;;  %v413_v53 = vld [vmem:[#allocation5 + $0x848] sm:$0xff]  ;;  %v17195_v33 = vcombine.low %v916_v17, %v920_v18  ;;  %v964_v14 = vld [vmem:[#allocation5 + $0x1980] sm:$0xff]  ;;  %v17235_v18 = vcombine.low %v956_v6, %v960_v7 }
 0x17d   :  { %13307 = vmatprep.subr.bf16.mxu1 %v16638_v27  ;;  %v924_v27 = vld [vmem:[#allocation5 + $0x1840] sm:$0xff] }
 0x17e   :  { %12814 = vmatpush1.bf16.msra.mxu0 %v17139_v26  ;;  %v417_v26 = vld [vmem:[#allocation5 + $0x868] sm:$0xff]  ;;  %v968_v15 = vld [vmem:[#allocation5 + $0x19a0] sm:$0xff] }
 0x17f   :  { %12815 = vmatprep.subr.bf16.mxu0 %v17148_v28  ;;  %v928_v28 = vld [vmem:[#allocation5 + $0x1860] sm:$0xff]  ;;  %v16693_v0 = vcombine.low %v413_v53, %v417_v26 }
 0x180   :  { %13308 = vmatpush1.bf16.msra.mxu1 %v16637_v34  ;;  %v16694_v34 = vcombine.high %v413_v53, %v417_v26  ;;  %v17203_v44 = vcombine.low %v924_v27, %v928_v28  ;;  %v972_v53 = vld [vmem:[#allocation5 + $0x19c0] sm:$0xff] }
 0x181   :  { %13309 = vmatprep.subr.bf16.mxu1 %v16646_v36  ;;  %v421_v36 = vld [vmem:[#allocation5 + $0x888] sm:$0xff]  ;;  %v976_v26 = vld [vmem:[#allocation5 + $0x19e0] sm:$0xff] }
 0x182   :  { %12816 = vmatpush1.bf16.msra.mxu0 %v17147_v35  ;;  %v17204_v35 = vcombine.high %v924_v27, %v928_v28  ;;  %v17243_v28 = vcombine.low %v964_v14, %v968_v15 }
 0x183   :  { %12817 = vmatprep.subr.bf16.mxu0 %v17156_v37  ;;  %v425_v37 = vld [vmem:[#allocation5 + $0x8a8] sm:$0xff] }
 0x184   :  { %13310 = vmatpush1.bf16.msra.mxu1 %v16645_v45  ;;  %v16702_v45 = vcombine.high %v421_v36, %v425_v37  ;;  %v16701_v50 = vcombine.low %v421_v36, %v425_v37  ;;  %v980_v36 = vld [vmem:[#allocation5 + $0x1a00] sm:$0xff] }
 0x185   :  { %13311 = vmatprep.subr.bf16.mxu1 %v16654_v19  ;;  %v429_v19 = vld [vmem:[#allocation5 + $0x8c8] sm:$0xff]  ;;  %v984_v37 = vld [vmem:[#allocation5 + $0x1a20] sm:$0xff] }
 0x186   :  { %12818 = vmatpush1.bf16.msra.mxu0 %v17155_v46  ;;  %v17212_v46 = vcombine.high %v932_v42, %v936_v43  ;;  %v17251_v43 = vcombine.low %v972_v53, %v976_v26 }
 0x187   :  { %12819 = vmatprep.subr.bf16.mxu0 %v17164_v48  ;;  %v433_v48 = vld [vmem:[#allocation5 + $0x8e8] sm:$0xff] }
 0x188   :  { %13312 = vmatpush1.bf16.msra.mxu1 %v16653_v52  ;;  %v16710_v52 = vcombine.high %v429_v19, %v433_v48  ;;  %v16709_v62 = vcombine.low %v429_v19, %v433_v48  ;;  %v988_v19 = vld [vmem:[#allocation5 + $0x1a40] sm:$0xff] }
 0x189   :  { %13313 = vmatprep.subr.bf16.mxu1 %v16662_v55  ;;  %v437_v55 = vld [vmem:[#allocation5 + $0x908] sm:$0xff]  ;;  %v992_v48 = vld [vmem:[#allocation5 + $0x1a60] sm:$0xff] }
 0x18a   :  { %12820 = vmatpush1.bf16.msra.mxu0 %v17163_v54  ;;  %v17220_v54 = vcombine.high %v940_v22, %v944_v49  ;;  %v17259_v49 = vcombine.low %v980_v36, %v984_v37 }
 0x18b   :  { %12821 = vmatprep.subr.bf16.mxu0 %v17172_v56  ;;  %v441_v56 = vld [vmem:[#allocation5 + $0x928] sm:$0xff] }
 0x18c   :  { %13314 = vmatpush1.bf16.msra.mxu1 %v16661_v1  ;;  %v16718_v1 = vcombine.high %v437_v55, %v441_v56  ;;  %v16717_v9 = vcombine.low %v437_v55, %v441_v56  ;;  %v996_v55 = vld [vmem:[#allocation5 + $0x1a80] sm:$0xff] }
 0x18d   :  { %13315 = vmatprep.subr.bf16.mxu1 %v16670_v4  ;;  %v445_v4 = vld [vmem:[#allocation5 + $0x948] sm:$0xff]  ;;  %v1000_v56 = vld [vmem:[#allocation5 + $0x1aa0] sm:$0xff] }
 0x18e   :  { %12822 = vmatpush1.bf16.msra.mxu0 %v17171_v3  ;;  %v17228_v3 = vcombine.high %v948_v59, %v952_v60  ;;  %v17267_v60 = vcombine.low %v988_v19, %v992_v48 }
 0x18f   :  { %12823 = vmatprep.subr.bf16.mxu0 %v17180_v5  ;;  %v449_v5 = vld [vmem:[#allocation5 + $0x968] sm:$0xff] }
 0x190   :  { %13316 = vmatpush1.bf16.msra.mxu1 %v16669_v38  ;;  %v16726_v38 = vcombine.high %v445_v4, %v449_v5  ;;  %v16725_v17 = vcombine.low %v445_v4, %v449_v5  ;;  %v1004_v4 = vld [vmem:[#allocation5 + $0x1ac0] sm:$0xff] }
 0x191   :  { %13317 = vmatprep.subr.bf16.mxu1 %v16678_v12  ;;  %v453_v12 = vld [vmem:[#allocation5 + $0x988] sm:$0xff]  ;;  %v1008_v5 = vld [vmem:[#allocation5 + $0x1ae0] sm:$0xff] }
 0x192   :  { %12824 = vmatpush1.bf16.msra.mxu0 %v17179_v11  ;;  %v17236_v11 = vcombine.high %v956_v6, %v960_v7  ;;  %v17275_v7 = vcombine.low %v996_v55, %v1000_v56 }
 0x193   :  { %12825 = vmatprep.subr.bf16.mxu0 %v17188_v13  ;;  %v457_v13 = vld [vmem:[#allocation5 + $0x9a8] sm:$0xff] }
 0x194   :  { %13318 = vmatpush1.bf16.msra.mxu1 %v16677_v20  ;;  %v16734_v20 = vcombine.high %v453_v12, %v457_v13  ;;  %v16733_v27 = vcombine.low %v453_v12, %v457_v13  ;;  %v1012_v12 = vld [vmem:[#allocation5 + $0x1b00] sm:$0xff] }
 0x195   :  { %13328 = vmatprep.subr.bf16.mxu1 %v16686_v24  ;;  %v461_v24 = vld [vmem:[#allocation5 + $0x9c8] sm:$0xff]  ;;  %v1016_v13 = vld [vmem:[#allocation5 + $0x1b20] sm:$0xff] }
 0x196   :  { %12826 = vmatpush1.bf16.msra.mxu0 %v17187_v23  ;;  %v17244_v23 = vcombine.high %v964_v14, %v968_v15  ;;  %v17283_v15 = vcombine.low %v1004_v4, %v1008_v5 }
 0x197   :  { %12836 = vmatprep.subr.bf16.mxu0 %v17196_v25  ;;  %13320 = vmatmul.mubr.bf16.vlgmr.msra.gmra.mrb[4].mxu1 %v19635_v39  ;;  %v465_v25 = vld [vmem:[#allocation5 + $0x9e8] sm:$0xff] }
 0x198   :  { %13329 = vmatpush1.bf16.msra.mxu1 %v16685_v31  ;;  %13360 = vmatprep.mubr.bf16.mxu1 %v19603_v61  ;;  %v16742_v31 = vcombine.high %v461_v24, %v465_v25  ;;  %v16741_v42 = vcombine.low %v461_v24, %v465_v25  ;;  %v1020_v24 = vld [vmem:[#allocation5 + $0x1b40] sm:$0xff] }
 0x199   :  { %12828 = vmatmul.mubr.bf16.vlgmr.msra.gmra.mrb[0].mxu0 %v19667_v32  ;;  %13330 = vmatprep.subr.bf16.mxu1 %v16694_v34  ;;  %v469_v34 = vld [vmem:[#allocation5 + $0xa08] sm:$0xff]  ;;  %v1024_v25 = vld [vmem:[#allocation5 + $0x1b60] sm:$0xff] }
 0x19a   :  { %12837 = vmatpush1.bf16.msra.mxu0 %v17195_v33  ;;  %12868 = vmatprep.mubr.bf16.mxu0 %v19671_v40  ;;  %v17252_v33 = vcombine.high %v972_v53, %v976_v26  ;;  %v17291_v26 = vcombine.low %v1012_v12, %v1016_v13 }
 0x19b   :  { %12838 = vmatprep.subr.bf16.mxu0 %v17204_v35  ;;  %v473_v35 = vld [vmem:[#allocation5 + $0xa28] sm:$0xff] }
 0x19c   :  { %13331 = vmatpush1.bf16.msra.mxu1 %v16693_v0  ;;  %v16750_v0 = vcombine.high %v469_v34, %v473_v35  ;;  %v16749_v22 = vcombine.low %v469_v34, %v473_v35  ;;  %v1028_v34 = vld [vmem:[#allocation5 + $0x1b80] sm:$0xff] }
 0x19d   :  { %13332 = vmatprep.subr.bf16.mxu1 %v16702_v45  ;;  %v477_v45 = vld [vmem:[#allocation5 + $0xa48] sm:$0xff]  ;;  %v1032_v35 = vld [vmem:[#allocation5 + $0x1ba0] sm:$0xff] }
 0x19e   :  { %12839 = vmatpush1.bf16.msra.mxu0 %v17203_v44  ;;  %v17260_v44 = vcombine.high %v980_v36, %v984_v37  ;;  %v17299_v37 = vcombine.low %v1020_v24, %v1024_v25 }
 0x19f   :  { %12840 = vmatprep.subr.bf16.mxu0 %v17212_v46  ;;  %v481_v46 = vld [vmem:[#allocation5 + $0xa68] sm:$0xff] }
 0x1a0   :  { %13333 = vmatpush1.bf16.msra.mxu1 %v16701_v50  ;;  %v16758_v50 = vcombine.high %v477_v45, %v481_v46  ;;  %v16757_v59 = vcombine.low %v477_v45, %v481_v46  ;;  %v1036_v45 = vld [vmem:[#allocation5 + $0x1bc0] sm:$0xff] }
 0x1a1   :  { %13334 = vmatprep.subr.bf16.mxu1 %v16710_v52  ;;  %v485_v52 = vld [vmem:[#allocation5 + $0xa88] sm:$0xff]  ;;  %v1040_v46 = vld [vmem:[#allocation5 + $0x1be0] sm:$0xff] }
 0x1a2   :  { %12841 = vmatpush1.bf16.msra.mxu0 %v17211_v51  ;;  %v17268_v51 = vcombine.high %v988_v19, %v992_v48  ;;  %v17307_v48 = vcombine.low %v1028_v34, %v1032_v35 }
 0x1a3   :  { %12842 = vmatprep.subr.bf16.mxu0 %v17220_v54  ;;  %v489_v54 = vld [vmem:[#allocation5 + $0xaa8] sm:$0xff] }
 0x1a4   :  { %13335 = vmatpush1.bf16.msra.mxu1 %v16709_v62  ;;  %v16766_v62 = vcombine.high %v485_v52, %v489_v54  ;;  %v16765_v6 = vcombine.low %v485_v52, %v489_v54  ;;  %v1044_v52 = vld [vmem:[#allocation5 + $0x1c00] sm:$0xff] }
 0x1a5   :  { %13336 = vmatprep.subr.bf16.mxu1 %v16718_v1  ;;  %v493_v1 = vld [vmem:[#allocation5 + $0xac8] sm:$0xff]  ;;  %v1048_v54 = vld [vmem:[#allocation5 + $0x1c20] sm:$0xff] }
 0x1a6   :  { %12843 = vmatpush1.bf16.msra.mxu0 %v17219_v63  ;;  %v17276_v63 = vcombine.high %v996_v55, %v1000_v56  ;;  %v17315_v56 = vcombine.low %v1036_v45, %v1040_v46 }
 0x1a7   :  { %12844 = vmatprep.subr.bf16.mxu0 %v17228_v3  ;;  %v497_v3 = vld [vmem:[#allocation5 + $0xae8] sm:$0xff] }
 0x1a8   :  { %13337 = vmatpush1.bf16.msra.mxu1 %v16717_v9  ;;  %v16774_v9 = vcombine.high %v493_v1, %v497_v3  ;;  %v16773_v14 = vcombine.low %v493_v1, %v497_v3  ;;  %v1052_v1 = vld [vmem:[#allocation5 + $0x1c40] sm:$0xff] }
 0x1a9   :  { %13338 = vmatprep.subr.bf16.mxu1 %v16726_v38  ;;  %v501_v38 = vld [vmem:[#allocation5 + $0xb08] sm:$0xff]  ;;  %v1056_v3 = vld [vmem:[#allocation5 + $0x1c60] sm:$0xff] }
 0x1aa   :  { %12845 = vmatpush1.bf16.msra.mxu0 %v17227_v10  ;;  %v17284_v10 = vcombine.high %v1004_v4, %v1008_v5  ;;  %v19677_v4 = vld [vmem:[#allocation2 + $0x38] sm:$0xff] }
 0x1ab   :  { %12846 = vmatprep.subr.bf16.mxu0 %v17236_v11  ;;  %v505_v11 = vld [vmem:[#allocation5 + $0xb28] sm:$0xff] }
 0x1ac   :  { %13339 = vmatpush1.bf16.msra.mxu1 %v16725_v17  ;;  %v16782_v17 = vcombine.high %v501_v38, %v505_v11  ;;  %v16781_v53 = vcombine.low %v501_v38, %v505_v11  ;;  %v549_v38 = vld [vmem:[#allocation5 + $0xc88] sm:$0xff] }
 0x1ad   :  { %13340 = vmatprep.subr.bf16.mxu1 %v16734_v20  ;;  %v509_v20 = vld [vmem:[#allocation5 + $0xb48] sm:$0xff] }
 0x1ae   :  { %12847 = vmatpush1.bf16.msra.mxu0 %v17235_v18  ;;  %v17292_v18 = vcombine.high %v1012_v12, %v1016_v13  ;;  %v553_v11 = vld [vmem:[#allocation5 + $0xca8] sm:$0xff]  ;;  %v19685_v12 = vcombine.high %v19677_v4, %v19677_v4  ;;  %v1060_v13 = vld [vmem:[#allocation5 + $0x1c80] sm:$0xff] }
 0x1af   :  { %12848 = vmatprep.subr.bf16.mxu0 %v17244_v23  ;;  %v513_v23 = vld [vmem:[#allocation5 + $0xb68] sm:$0xff] }
 0x1b0   :  { %13341 = vmatpush1.bf16.msra.mxu1 %v16733_v27  ;;  %v16790_v27 = vcombine.high %v509_v20, %v513_v23  ;;  %v16789_v36 = vcombine.low %v509_v20, %v513_v23  ;;  %v557_v20 = vld [vmem:[#allocation5 + $0xcc8] sm:$0xff] }
 0x1b1   :  { %13342 = vmatprep.subr.bf16.mxu1 %v16742_v31  ;;  %v517_v31 = vld [vmem:[#allocation5 + $0xb88] sm:$0xff] }
 0x1b2   :  { %12849 = vmatpush1.bf16.msra.mxu0 %v17243_v28  ;;  %v17300_v28 = vcombine.high %v1020_v24, %v1024_v25  ;;  %v561_v23 = vld [vmem:[#allocation5 + $0xce8] sm:$0xff]  ;;  %v1068_v24 = vld [vmem:[#allocation5 + $0x1cc0] sm:$0xff] }
 0x1b3   :  { %12850 = vmatprep.subr.bf16.mxu0 %v17252_v33  ;;  %v521_v33 = vld [vmem:[#allocation5 + $0xba8] sm:$0xff]  ;;  %v1072_v25 = vld [vmem:[#allocation5 + $0x1ce0] sm:$0xff] }
 0x1b4   :  { %13343 = vmatpush1.bf16.msra.mxu1 %v16741_v42  ;;  %v16798_v42 = vcombine.high %v517_v31, %v521_v33  ;;  %v16797_v19 = vcombine.low %v517_v31, %v521_v33  ;;  %v565_v31 = vld [vmem:[#allocation5 + $0xd08] sm:$0xff] }
 0x1b5   :  { %13344 = vmatprep.subr.bf16.mxu1 %v16750_v0  ;;  %v525_v0 = vld [vmem:[#allocation5 + $0xbc8] sm:$0xff] }
 0x1b6   :  { %12851 = vmatpush1.bf16.msra.mxu0 %v17251_v43  ;;  %v17308_v43 = vcombine.high %v1028_v34, %v1032_v35  ;;  %v569_v33 = vld [vmem:[#allocation5 + $0xd28] sm:$0xff]  ;;  %v1076_v34 = vld [vmem:[#allocation5 + $0x1d00] sm:$0xff] }
 0x1b7   :  { %12852 = vmatprep.subr.bf16.mxu0 %v17260_v44  ;;  %v529_v44 = vld [vmem:[#allocation5 + $0xbe8] sm:$0xff]  ;;  %v1080_v35 = vld [vmem:[#allocation5 + $0x1d20] sm:$0xff] }
 0x1b8   :  { %13345 = vmatpush1.bf16.msra.mxu1 %v16749_v22  ;;  %v16806_v22 = vcombine.high %v525_v0, %v529_v44  ;;  %v16805_v55 = vcombine.low %v525_v0, %v529_v44  ;;  %v573_v0 = vld [vmem:[#allocation5 + $0xd48] sm:$0xff] }
 0x1b9   :  { %13346 = vmatprep.subr.bf16.mxu1 %v16758_v50  ;;  %v533_v50 = vld [vmem:[#allocation5 + $0xc08] sm:$0xff] }
 0x1ba   :  { %12853 = vmatpush1.bf16.msra.mxu0 %v17259_v49  ;;  %v17316_v49 = vcombine.high %v1036_v45, %v1040_v46  ;;  %v577_v44 = vld [vmem:[#allocation5 + $0xd68] sm:$0xff]  ;;  %v1084_v45 = vld [vmem:[#allocation5 + $0x1d40] sm:$0xff] }
 0x1bb   :  { %12854 = vmatprep.subr.bf16.mxu0 %v17268_v51  ;;  %v537_v51 = vld [vmem:[#allocation5 + $0xc28] sm:$0xff]  ;;  %v1088_v46 = vld [vmem:[#allocation5 + $0x1d60] sm:$0xff] }
 0x1bc   :  { %13347 = vmatpush1.bf16.msra.mxu1 %v16757_v59  ;;  %v16814_v59 = vcombine.high %v533_v50, %v537_v51  ;;  %v16813_v5 = vcombine.low %v533_v50, %v537_v51  ;;  %v581_v50 = vld [vmem:[#allocation5 + $0xd88] sm:$0xff] }
 0x1bd   :  { %13348 = vmatprep.subr.bf16.mxu1 %v16766_v62  ;;  %v541_v62 = vld [vmem:[#allocation5 + $0xc48] sm:$0xff] }
 0x1be   :  { %12855 = vmatpush1.bf16.msra.mxu0 %v17267_v60  ;;  %v17324_v60 = vcombine.high %v1044_v52, %v1048_v54  ;;  %v585_v51 = vld [vmem:[#allocation5 + $0xda8] sm:$0xff] }
 0x1bf   :  { %12856 = vmatprep.subr.bf16.mxu0 %v17276_v63  ;;  %v545_v63 = vld [vmem:[#allocation5 + $0xc68] sm:$0xff] }
 0x1c0   :  { %13349 = vmatpush1.bf16.msra.mxu1 %v16765_v6  ;;  %v19681_v6 = vcombine.low %v19663_v30, %v19663_v30  ;;  %v16821_v30 = vcombine.low %v541_v62, %v545_v63 }
 0x1c1   :  { %13350 = vmatprep.subr.bf16.mxu1 %v16774_v9  ;;  %v16822_v9 = vcombine.high %v541_v62, %v545_v63  ;;  %v589_v63 = vld [vmem:[#allocation5 + $0xdc8] sm:$0xff] }
 0x1c2   :  { %12857 = vmatpush1.bf16.msra.mxu0 %v17275_v7  ;;  %v17323_v7 = vcombine.low %v1044_v52, %v1048_v54  ;;  %v1092_v52 = vld [vmem:[#allocation5 + $0x1d80] sm:$0xff] }
 0x1c3   :  { %12858 = vmatprep.subr.bf16.mxu0 %v17284_v10  ;;  %v17332_v10 = vcombine.high %v1052_v1, %v1056_v3  ;;  %v1096_v54 = vld [vmem:[#allocation5 + $0x1da0] sm:$0xff] }
 0x1c4   :  { %13351 = vmatpush1.bf16.msra.mxu1 %v16773_v14  ;;  %v1064_v14 = vld [vmem:[#allocation5 + $0x1ca0] sm:$0xff]  ;;  %v17372_v62 = vcombine.high %v1092_v52, %v1096_v54 }
 0x1c5   :  { %13352 = vmatprep.subr.bf16.mxu1 %v16782_v17  ;;  %v16830_v17 = vcombine.high %v549_v38, %v553_v11 }
 0x1c6   :  { %12859 = vmatpush1.bf16.msra.mxu0 %v17283_v15  ;;  %v17331_v15 = vcombine.low %v1052_v1, %v1056_v3  ;;  %v593_v1 = vld [vmem:[#allocation5 + $0xde8] sm:$0xff] }
 0x1c7   :  { %12860 = vmatprep.subr.bf16.mxu0 %v17292_v18  ;;  %v17340_v18 = vcombine.high %v1060_v13, %v1064_v14 }
 0x1c8   :  { %13353 = vmatpush1.bf16.msra.mxu1 %v16781_v53  ;;  %v16829_v53 = vcombine.low %v549_v38, %v553_v11  ;;  %v17371_v11 = vcombine.low %v1092_v52, %v1096_v54 }
 0x1c9   :  { %13354 = vmatprep.subr.bf16.mxu1 %v16790_v27  ;;  %v16838_v27 = vcombine.high %v557_v20, %v561_v23 }
 0x1ca   :  { %12861 = vmatpush1.bf16.msra.mxu0 %v17291_v26  ;;  %v17339_v26 = vcombine.low %v1060_v13, %v1064_v14  ;;  %v16870_v13 = vcombine.high %v589_v63, %v593_v1 }
 0x1cb   :  { %12862 = vmatprep.subr.bf16.mxu0 %v17300_v28  ;;  %v17348_v28 = vcombine.high %v1068_v24, %v1072_v25 }
 0x1cc   :  { %13355 = vmatpush1.bf16.msra.mxu1 %v16789_v36  ;;  %v16837_v36 = vcombine.low %v557_v20, %v561_v23  ;;  %v16869_v20 = vcombine.low %v589_v63, %v593_v1 }
 0x1cd   :  { %13356 = vmatprep.subr.bf16.mxu1 %v16798_v42  ;;  %v16846_v42 = vcombine.high %v565_v31, %v569_v33 }
 0x1ce   :  { %12863 = vmatpush1.bf16.msra.mxu0 %v17299_v37  ;;  %v17347_v37 = vcombine.low %v1068_v24, %v1072_v25 }
 0x1cf   :  { %12864 = vmatprep.subr.bf16.mxu0 %v17308_v43  ;;  %v17356_v43 = vcombine.high %v1076_v34, %v1080_v35 }
 0x1d0   :  { %13357 = vmatpush1.bf16.msra.mxu1 %v16797_v19  ;;  %v16845_v19 = vcombine.low %v565_v31, %v569_v33 }
 0x1d1   :  { %13358 = vmatprep.subr.bf16.mxu1 %v16806_v22  ;;  %v16854_v22 = vcombine.high %v573_v0, %v577_v44 }
 0x1d2   :  { %12865 = vmatpush1.bf16.msra.mxu0 %v17307_v48  ;;  %v17355_v48 = vcombine.low %v1076_v34, %v1080_v35 }
 0x1d3   :  { %12866 = vmatprep.subr.bf16.mxu0 %v17316_v49  ;;  %v17364_v49 = vcombine.high %v1084_v45, %v1088_v46 }
 0x1d4   :  { %13359 = vmatpush1.bf16.msra.mxu1 %v16805_v55  ;;  %v16853_v55 = vcombine.low %v573_v0, %v577_v44 }
 0x1d5   :  { %13369 = vmatprep.subr.bf16.mxu1 %v16814_v59  ;;  %v16862_v59 = vcombine.high %v581_v50, %v585_v51 }
 0x1d6   :  { %12867 = vmatpush1.bf16.msra.mxu0 %v17315_v56  ;;  %v17363_v56 = vcombine.low %v1084_v45, %v1088_v46 }
 0x1d7   :  { %12877 = vmatprep.subr.bf16.mxu0 %v17324_v60  ;;  %13361 = vmatmul.mubr.bf16.vlgmr.msra.gmra.mrb[4].mxu1 %v19615_v21 }
 0x1d8   :  { %13370 = vmatpush1.bf16.msra.mxu1 %v16813_v5  ;;  %13401 = vmatprep.mubr.bf16.mxu1 %v19626_v58  ;;  %v1100_v5 = vld [vmem:[#allocation5 + $0x1dc0] sm:$0xff] }
 0x1d9   :  { %12869 = vmatmul.mubr.bf16.vlgmr.msra.gmra.mrb[0].mxu0 %v19681_v6  ;;  %13371 = vmatprep.subr.bf16.mxu1 %v16822_v9 }
 0x1da   :  { %12878 = vmatpush1.bf16.msra.mxu0 %v17323_v7  ;;  %12909 = vmatprep.mubr.bf16.mxu0 %v19685_v12  ;;  %v1104_v7 = vld [vmem:[#allocation5 + $0x1de0] sm:$0xff] }
 0x1db   :  { %12879 = vmatprep.subr.bf16.mxu0 %v17332_v10  ;;  %v16861_v10 = vcombine.low %v581_v50, %v585_v51  ;;  %v17380_v14 = vcombine.high %v1100_v5, %v1104_v7  ;;  %v17379_v23 = vcombine.low %v1100_v5, %v1104_v7 }
 0x1dc   :  { %13372 = vmatpush1.bf16.msra.mxu1 %v16821_v30  ;;  %v597_v30 = vld [vmem:[#allocation5 + $0xe08] sm:$0xff] }
 0x1dd   :  { %13373 = vmatprep.subr.bf16.mxu1 %v16830_v17  ;;  %v1108_v17 = vld [vmem:[#allocation5 + $0x1e00] sm:$0xff] }
 0x1de   :  { %12880 = vmatpush1.bf16.msra.mxu0 %v17331_v15  ;;  %v601_v15 = vld [vmem:[#allocation5 + $0xe28] sm:$0xff] }
 0x1df   :  { %12881 = vmatprep.subr.bf16.mxu0 %v17340_v18  ;;  %v1112_v18 = vld [vmem:[#allocation5 + $0x1e20] sm:$0xff]  ;;  %v16878_v24 = vcombine.high %v597_v30, %v601_v15  ;;  %v16877_v31 = vcombine.low %v597_v30, %v601_v15 }
 0x1e0   :  { %13374 = vmatpush1.bf16.msra.mxu1 %v16829_v53  ;;  %v17388_v25 = vcombine.high %v1108_v17, %v1112_v18  ;;  %v605_v53 = vld [vmem:[#allocation5 + $0xe48] sm:$0xff]  ;;  %v17387_v33 = vcombine.low %v1108_v17, %v1112_v18 }
 0x1e1   :  { %13375 = vmatprep.subr.bf16.mxu1 %v16838_v27  ;;  %v1116_v27 = vld [vmem:[#allocation5 + $0x1e40] sm:$0xff]  ;;  %v645_v17 = vld [vmem:[#allocation5 + $0xf88] sm:$0xff] }
 0x1e2   :  { %12882 = vmatpush1.bf16.msra.mxu0 %v17339_v26  ;;  %v609_v26 = vld [vmem:[#allocation5 + $0xe68] sm:$0xff] }
 0x1e3   :  { %12883 = vmatprep.subr.bf16.mxu0 %v17348_v28  ;;  %v1120_v28 = vld [vmem:[#allocation5 + $0x1e60] sm:$0xff]  ;;  %v16886_v34 = vcombine.high %v605_v53, %v609_v26  ;;  %v16885_v0 = vcombine.low %v605_v53, %v609_v26  ;;  %v649_v18 = vld [vmem:[#allocation5 + $0xfa8] sm:$0xff] }
 0x1e4   :  { %13376 = vmatpush1.bf16.msra.mxu1 %v16837_v36  ;;  %v17396_v35 = vcombine.high %v1116_v27, %v1120_v28  ;;  %v613_v36 = vld [vmem:[#allocation5 + $0xe88] sm:$0xff]  ;;  %v17395_v44 = vcombine.low %v1116_v27, %v1120_v28  ;;  %v16926_v53 = vcombine.high %v645_v17, %v649_v18 }
 0x1e5   :  { %13377 = vmatprep.subr.bf16.mxu1 %v16846_v42  ;;  %v1124_v42 = vld [vmem:[#allocation5 + $0x1e80] sm:$0xff]  ;;  %v653_v27 = vld [vmem:[#allocation5 + $0xfc8] sm:$0xff] }
 0x1e6   :  { %12884 = vmatpush1.bf16.msra.mxu0 %v17347_v37  ;;  %v617_v37 = vld [vmem:[#allocation5 + $0xea8] sm:$0xff] }
 0x1e7   :  { %12885 = vmatprep.subr.bf16.mxu0 %v17356_v43  ;;  %v1128_v43 = vld [vmem:[#allocation5 + $0x1ea0] sm:$0xff]  ;;  %v16894_v45 = vcombine.high %v613_v36, %v617_v37  ;;  %v16893_v50 = vcombine.low %v613_v36, %v617_v37  ;;  %v657_v28 = vld [vmem:[#allocation5 + $0xfe8] sm:$0xff] }
 0x1e8   :  { %13378 = vmatpush1.bf16.msra.mxu1 %v16845_v19  ;;  %v17404_v46 = vcombine.high %v1124_v42, %v1128_v43  ;;  %v621_v19 = vld [vmem:[#allocation5 + $0xec8] sm:$0xff]  ;;  %v17403_v51 = vcombine.low %v1124_v42, %v1128_v43  ;;  %v16934_v36 = vcombine.high %v653_v27, %v657_v28 }
 0x1e9   :  { %13379 = vmatprep.subr.bf16.mxu1 %v16854_v22  ;;  %v1132_v22 = vld [vmem:[#allocation5 + $0x1ec0] sm:$0xff]  ;;  %v661_v42 = vld [vmem:[#allocation5 + $0x1008] sm:$0xff] }
 0x1ea   :  { %12886 = vmatpush1.bf16.msra.mxu0 %v17355_v48  ;;  %v19691_v60 = vpop.f32.mrb[0].mxu1  ;;  %v625_v48 = vld [vmem:[#allocation5 + $0xee8] sm:$0xff] }
 0x1eb   :  { %12887 = vmatprep.subr.bf16.mxu0 %v17364_v49  ;;  %v19693_v3 = vpop.f32.mrb[1].mxu1  ;;  %v1136_v49 = vld [vmem:[#allocation5 + $0x1ee0] sm:$0xff]  ;;  %v16902_v52 = vcombine.high %v621_v19, %v625_v48  ;;  %v16901_v63 = vcombine.low %v621_v19, %v625_v48  ;;  %v665_v43 = vld [vmem:[#allocation5 + $0x1028] sm:$0xff] }
 0x1ec   :  { %v12669_v9 = vpop.f32.mrb[2].mxu1  ;;  %13380 = vmatpush1.bf16.msra.mxu1 %v16853_v55  ;;  %v17412_v54 = vcombine.high %v1132_v22, %v1136_v49  ;;  %v629_v55 = vld [vmem:[#allocation5 + $0xf08] sm:$0xff]  ;;  %v17411_v1 = vcombine.low %v1132_v22, %v1136_v49  ;;  %v16942_v19 = vcombine.high %v661_v42, %v665_v43 }
 0x1ed   :  { %v12670_v38 = vpop.f32.mrb[3].mxu1  ;;  %13381 = vmatprep.subr.bf16.mxu1 %v16862_v59  ;;  %v1140_v59 = vld [vmem:[#allocation5 + $0x1f00] sm:$0xff]  ;;  %v637_v9 = vld [vmem:[#allocation5 + $0xf48] sm:$0xff] }
 0x1ee   :  { %12888 = vmatpush1.bf16.msra.mxu0 %v17363_v56  ;;  %v633_v56 = vld [vmem:[#allocation5 + $0xf28] sm:$0xff]  ;;  %v1148_v38 = vld [vmem:[#allocation5 + $0x1f40] sm:$0xff] }
 0x1ef   :  { %12889 = vmatprep.subr.bf16.mxu0 %v17372_v62  ;;  %v1144_v62 = vld [vmem:[#allocation5 + $0x1f20] sm:$0xff]  ;;  %v16910_v5 = vcombine.high %v629_v55, %v633_v56  ;;  %v669_v22 = vld [vmem:[#allocation5 + $0x1048] sm:$0xff] }
 0x1f0   :  { %13382 = vmatpush1.bf16.msra.mxu1 %v16861_v10  ;;  %v17420_v7 = vcombine.high %v1140_v59, %v1144_v62  ;;  %v641_v10 = vld [vmem:[#allocation5 + $0xf68] sm:$0xff] }
 0x1f1   :  { %13383 = vmatprep.subr.bf16.mxu1 %v16870_v13  ;;  %v16909_v13 = vcombine.low %v629_v55, %v633_v56  ;;  %v16918_v30 = vcombine.high %v637_v9, %v641_v10  ;;  %v673_v49 = vld [vmem:[#allocation5 + $0x1068] sm:$0xff]  ;;  %v19699_v55 = vcombine.low %v19677_v4, %v19677_v4 }
 0x1f2   :  { %12890 = vmatpush1.bf16.msra.mxu0 %v17371_v11  ;;  %v1152_v11 = vld [vmem:[#allocation5 + $0x1f60] sm:$0xff]  ;;  %v16949_v4 = vcombine.low %v669_v22, %v673_v49 }
 0x1f3   :  { %12891 = vmatprep.subr.bf16.mxu0 %v17380_v14  ;;  %v17419_v14 = vcombine.low %v1140_v59, %v1144_v62  ;;  %v17428_v15 = vcombine.high %v1148_v38, %v1152_v11  ;;  %v16950_v59 = vcombine.high %v669_v22, %v673_v49 }
 0x1f4   :  { %13384 = vmatpush1.bf16.msra.mxu1 %v16869_v20  ;;  %v1156_v20 = vld [vmem:[#allocation5 + $0x1f80] sm:$0xff] }
 0x1f5   :  { %13385 = vmatprep.subr.bf16.mxu1 %v16878_v24  ;;  %v16917_v24 = vcombine.low %v637_v9, %v641_v10  ;;  %v1192_v9 = vld [vmem:[#allocation5 + $0x20a0] sm:$0xff] }
 0x1f6   :  { %12892 = vmatpush1.bf16.msra.mxu0 %v17379_v23  ;;  %v1160_v23 = vld [vmem:[#allocation5 + $0x1fa0] sm:$0xff] }
 0x1f7   :  { %12893 = vmatprep.subr.bf16.mxu0 %v17388_v25  ;;  %v17427_v25 = vcombine.low %v1148_v38, %v1152_v11  ;;  %v17436_v26 = vcombine.high %v1156_v20, %v1160_v23 }
 0x1f8   :  { %13386 = vmatpush1.bf16.msra.mxu1 %v16877_v31  ;;  %v1164_v31 = vld [vmem:[#allocation5 + $0x1fc0] sm:$0xff] }
 0x1f9   :  { %13387 = vmatprep.subr.bf16.mxu1 %v16886_v34  ;;  %v16925_v34 = vcombine.low %v645_v17, %v649_v18 }
 0x1fa   :  { %12894 = vmatpush1.bf16.msra.mxu0 %v17387_v33  ;;  %v1168_v33 = vld [vmem:[#allocation5 + $0x1fe0] sm:$0xff] }
 0x1fb   :  { %12895 = vmatprep.subr.bf16.mxu0 %v17396_v35  ;;  %v17435_v35 = vcombine.low %v1156_v20, %v1160_v23  ;;  %v17444_v37 = vcombine.high %v1164_v31, %v1168_v33 }
 0x1fc   :  { %13388 = vmatpush1.bf16.msra.mxu1 %v16885_v0  ;;  %v1172_v0 = vld [vmem:[#allocation5 + $0x2000] sm:$0xff] }
 0x1fd   :  { %13389 = vmatprep.subr.bf16.mxu1 %v16894_v45  ;;  %v16933_v45 = vcombine.low %v653_v27, %v657_v28 }
 0x1fe   :  { %12896 = vmatpush1.bf16.msra.mxu0 %v17395_v44  ;;  %v1176_v44 = vld [vmem:[#allocation5 + $0x2020] sm:$0xff] }
 0x1ff   :  { %12897 = vmatprep.subr.bf16.mxu0 %v17404_v46  ;;  %v17443_v46 = vcombine.low %v1164_v31, %v1168_v33  ;;  %v17452_v48 = vcombine.high %v1172_v0, %v1176_v44  ;;  %v17451_v56 = vcombine.low %v1172_v0, %v1176_v44 }
 0x200   :  { %13390 = vmatpush1.bf16.msra.mxu1 %v16893_v50  ;;  %v1180_v50 = vld [vmem:[#allocation5 + $0x2040] sm:$0xff] }
 0x201   :  { %13391 = vmatprep.subr.bf16.mxu1 %v16902_v52  ;;  %v19695_v52 = vld [vmem:[#allocation2 + $0x40] sm:$0xff] }
 0x202   :  { %12898 = vmatpush1.bf16.msra.mxu0 %v17403_v51  ;;  %v1184_v51 = vld [vmem:[#allocation5 + $0x2060] sm:$0xff] }
 0x203   :  { %12899 = vmatprep.subr.bf16.mxu0 %v17412_v54  ;;  %v16941_v54 = vcombine.low %v661_v42, %v665_v43  ;;  %v17460_v62 = vcombine.high %v1180_v50, %v1184_v51  ;;  %v17459_v10 = vcombine.low %v1180_v50, %v1184_v51 }
 0x204   :  { %13392 = vmatpush1.bf16.msra.mxu1 %v16901_v63  ;;  %v677_v63 = vld [vmem:[#allocation5 + $0x1088] sm:$0xff] }
 0x205   :  { %13393 = vmatprep.subr.bf16.mxu1 %v16910_v5  ;;  %v19703_v5 = vcombine.high %v19695_v52, %v19695_v52 }
 0x206   :  { %12900 = vmatpush1.bf16.msra.mxu0 %v17411_v1  ;;  %v681_v1 = vld [vmem:[#allocation5 + $0x10a8] sm:$0xff] }
 0x207   :  { %12901 = vmatprep.subr.bf16.mxu0 %v17420_v7  ;;  %v1188_v7 = vld [vmem:[#allocation5 + $0x2080] sm:$0xff]  ;;  %v16958_v38 = vcombine.high %v677_v63, %v681_v1  ;;  %v16957_v17 = vcombine.low %v677_v63, %v681_v1 }
 0x208   :  { %13394 = vmatpush1.bf16.msra.mxu1 %v16909_v13  ;;  %v17468_v11 = vcombine.high %v1188_v7, %v1192_v9  ;;  %v685_v13 = vld [vmem:[#allocation5 + $0x10c8] sm:$0xff]  ;;  %v17467_v18 = vcombine.low %v1188_v7, %v1192_v9 }
 0x209   :  { %13395 = vmatprep.subr.bf16.mxu1 %v16918_v30  ;;  %v1196_v30 = vld [vmem:[#allocation5 + $0x20c0] sm:$0xff] }
 0x20a   :  { %12902 = vmatpush1.bf16.msra.mxu0 %v17419_v14  ;;  %v689_v14 = vld [vmem:[#allocation5 + $0x10e8] sm:$0xff] }
 0x20b   :  { %12903 = vmatprep.subr.bf16.mxu0 %v17428_v15  ;;  %v1200_v15 = vld [vmem:[#allocation5 + $0x20e0] sm:$0xff]  ;;  %v16966_v20 = vcombine.high %v685_v13, %v689_v14  ;;  %v16965_v27 = vcombine.low %v685_v13, %v689_v14 }
 0x20c   :  { %13396 = vmatpush1.bf16.msra.mxu1 %v16917_v24  ;;  %v17476_v23 = vcombine.high %v1196_v30, %v1200_v15  ;;  %v693_v24 = vld [vmem:[#allocation5 + $0x1108] sm:$0xff]  ;;  %v17475_v28 = vcombine.low %v1196_v30, %v1200_v15 }
 0x20d   :  { %13397 = vmatprep.subr.bf16.mxu1 %v16926_v53  ;;  %v1204_v53 = vld [vmem:[#allocation5 + $0x2100] sm:$0xff] }
 0x20e   :  { %12904 = vmatpush1.bf16.msra.mxu0 %v17427_v25  ;;  %v697_v25 = vld [vmem:[#allocation5 + $0x1128] sm:$0xff] }
 0x20f   :  { %12905 = vmatprep.subr.bf16.mxu0 %v17436_v26  ;;  %v1208_v26 = vld [vmem:[#allocation5 + $0x2120] sm:$0xff]  ;;  %v16974_v31 = vcombine.high %v693_v24, %v697_v25  ;;  %v16973_v42 = vcombine.low %v693_v24, %v697_v25 }
 0x210   :  { %13398 = vmatpush1.bf16.msra.mxu1 %v16925_v34  ;;  %v17484_v33 = vcombine.high %v1204_v53, %v1208_v26  ;;  %v701_v34 = vld [vmem:[#allocation5 + $0x1148] sm:$0xff]  ;;  %v17483_v43 = vcombine.low %v1204_v53, %v1208_v26 }
 0x211   :  { %13399 = vmatprep.subr.bf16.mxu1 %v16934_v36  ;;  %v1212_v36 = vld [vmem:[#allocation5 + $0x2140] sm:$0xff] }
 0x212   :  { %12906 = vmatpush1.bf16.msra.mxu0 %v17435_v35  ;;  %v705_v35 = vld [vmem:[#allocation5 + $0x1168] sm:$0xff] }
 0x213   :  { %12907 = vmatprep.subr.bf16.mxu0 %v17444_v37  ;;  %v1216_v37 = vld [vmem:[#allocation5 + $0x2160] sm:$0xff]  ;;  %v16982_v0 = vcombine.high %v701_v34, %v705_v35  ;;  %v16981_v22 = vcombine.low %v701_v34, %v705_v35 }
 0x214   :  { %13400 = vmatpush1.bf16.msra.mxu1 %v16933_v45  ;;  %v17492_v44 = vcombine.high %v1212_v36, %v1216_v37  ;;  %v709_v45 = vld [vmem:[#allocation5 + $0x1188] sm:$0xff]  ;;  %v17491_v49 = vcombine.low %v1212_v36, %v1216_v37 }
 0x215   :  { %13410 = vmatprep.subr.bf16.mxu1 %v16942_v19  ;;  %v1220_v19 = vld [vmem:[#allocation5 + $0x2180] sm:$0xff] }
 0x216   :  { %12908 = vmatpush1.bf16.msra.mxu0 %v17443_v46  ;;  %v713_v46 = vld [vmem:[#allocation5 + $0x11a8] sm:$0xff] }
 0x217   :  { %12918 = vmatprep.subr.bf16.mxu0 %v17452_v48  ;;  %13402 = vmatmul.mubr.bf16.vlgmr.msra.gmra.mrb[4].mxu1 %v19639_v41  ;;  %v1224_v48 = vld [vmem:[#allocation5 + $0x21a0] sm:$0xff]  ;;  %v16990_v50 = vcombine.high %v709_v45, %v713_v46  ;;  %v16989_v63 = vcombine.low %v709_v45, %v713_v46 }
 0x218   :  { %13411 = vmatpush1.bf16.msra.mxu1 %v16941_v54  ;;  %13442 = vmatprep.mubr.bf16.mxu1 %v19643_v47  ;;  %v17500_v51 = vcombine.high %v1220_v19, %v1224_v48  ;;  %v717_v54 = vld [vmem:[#allocation5 + $0x11c8] sm:$0xff]  ;;  %v17499_v1 = vcombine.low %v1220_v19, %v1224_v48 }
 0x219   :  { %12910 = vmatmul.mubr.bf16.vlgmr.msra.gmra.mrb[0].mxu0 %v19699_v55  ;;  %13412 = vmatprep.subr.bf16.mxu1 %v16950_v59  ;;  %v1228_v59 = vld [vmem:[#allocation5 + $0x21c0] sm:$0xff] }
 0x21a   :  { %12919 = vmatpush1.bf16.msra.mxu0 %v17451_v56  ;;  %12950 = vmatprep.mubr.bf16.mxu0 %v19703_v5  ;;  %v721_v56 = vld [vmem:[#allocation5 + $0x11e8] sm:$0xff] }
 0x21b   :  { %12920 = vmatprep.subr.bf16.mxu0 %v17460_v62  ;;  %v1232_v62 = vld [vmem:[#allocation5 + $0x21e0] sm:$0xff]  ;;  %v16998_v7 = vcombine.high %v717_v54, %v721_v56  ;;  %v16997_v13 = vcombine.low %v717_v54, %v721_v56 }
 0x21c   :  { %13413 = vmatpush1.bf16.msra.mxu1 %v16949_v4  ;;  %v17508_v9 = vcombine.high %v1228_v59, %v1232_v62  ;;  %v725_v4 = vld [vmem:[#allocation5 + $0x1208] sm:$0xff]  ;;  %v17507_v14 = vcombine.low %v1228_v59, %v1232_v62 }
 0x21d   :  { %13414 = vmatprep.subr.bf16.mxu1 %v16958_v38  ;;  %v1236_v38 = vld [vmem:[#allocation5 + $0x2200] sm:$0xff] }
 0x21e   :  { %12921 = vmatpush1.bf16.msra.mxu0 %v17459_v10  ;;  %v729_v10 = vld [vmem:[#allocation5 + $0x1228] sm:$0xff] }
 0x21f   :  { %12922 = vmatprep.subr.bf16.mxu0 %v17468_v11  ;;  %v1240_v11 = vld [vmem:[#allocation5 + $0x2220] sm:$0xff]  ;;  %v17006_v30 = vcombine.high %v725_v4, %v729_v10  ;;  %v17005_v24 = vcombine.low %v725_v4, %v729_v10 }
 0x220   :  { %13415 = vmatpush1.bf16.msra.mxu1 %v16957_v17  ;;  %v17516_v15 = vcombine.high %v1236_v38, %v1240_v11  ;;  %v733_v17 = vld [vmem:[#allocation5 + $0x1248] sm:$0xff]  ;;  %v17515_v25 = vcombine.low %v1236_v38, %v1240_v11 }
 0x221   :  { %13416 = vmatprep.subr.bf16.mxu1 %v16966_v20  ;;  %v1244_v20 = vld [vmem:[#allocation5 + $0x2240] sm:$0xff] }
 0x222   :  { %12923 = vmatpush1.bf16.msra.mxu0 %v17467_v18  ;;  %v737_v18 = vld [vmem:[#allocation5 + $0x1268] sm:$0xff] }
 0x223   :  { %12924 = vmatprep.subr.bf16.mxu0 %v17476_v23  ;;  %v1248_v23 = vld [vmem:[#allocation5 + $0x2260] sm:$0xff]  ;;  %v17014_v53 = vcombine.high %v733_v17, %v737_v18  ;;  %v17013_v34 = vcombine.low %v733_v17, %v737_v18 }
 0x224   :  { %13417 = vmatpush1.bf16.msra.mxu1 %v16965_v27  ;;  %v17524_v26 = vcombine.high %v1244_v20, %v1248_v23  ;;  %v741_v27 = vld [vmem:[#allocation5 + $0x1288] sm:$0xff]  ;;  %v17523_v35 = vcombine.low %v1244_v20, %v1248_v23 }
 0x225   :  { %13418 = vmatprep.subr.bf16.mxu1 %v16974_v31  ;;  %v1252_v31 = vld [vmem:[#allocation5 + $0x2280] sm:$0xff] }
 0x226   :  { %12925 = vmatpush1.bf16.msra.mxu0 %v17475_v28  ;;  %v745_v28 = vld [vmem:[#allocation5 + $0x12a8] sm:$0xff] }
 0x227   :  { %12926 = vmatprep.subr.bf16.mxu0 %v17484_v33  ;;  %v1256_v33 = vld [vmem:[#allocation5 + $0x22a0] sm:$0xff]  ;;  %v17022_v36 = vcombine.high %v741_v27, %v745_v28  ;;  %v17021_v45 = vcombine.low %v741_v27, %v745_v28 }
 0x228   :  { %13419 = vmatpush1.bf16.msra.mxu1 %v16973_v42  ;;  %v17532_v37 = vcombine.high %v1252_v31, %v1256_v33  ;;  %v749_v42 = vld [vmem:[#allocation5 + $0x12c8] sm:$0xff]  ;;  %v17531_v46 = vcombine.low %v1252_v31, %v1256_v33 }
 0x229   :  { %13420 = vmatprep.subr.bf16.mxu1 %v16982_v0  ;;  %v1260_v0 = vld [vmem:[#allocation5 + $0x22c0] sm:$0xff] }
 0x22a   :  { %12927 = vmatpush1.bf16.msra.mxu0 %v17483_v43  ;;  %v753_v43 = vld [vmem:[#allocation5 + $0x12e8] sm:$0xff] }
 0x22b   :  { %12928 = vmatprep.subr.bf16.mxu0 %v17492_v44  ;;  %v1264_v44 = vld [vmem:[#allocation5 + $0x22e0] sm:$0xff]  ;;  %v17030_v19 = vcombine.high %v749_v42, %v753_v43  ;;  %v17029_v54 = vcombine.low %v749_v42, %v753_v43 }
 0x22c   :  { %13421 = vmatpush1.bf16.msra.mxu1 %v16981_v22  ;;  %v17540_v48 = vcombine.high %v1260_v0, %v1264_v44  ;;  %v757_v22 = vld [vmem:[#allocation5 + $0x1308] sm:$0xff]  ;;  %v17539_v56 = vcombine.low %v1260_v0, %v1264_v44 }
 0x22d   :  { %13422 = vmatprep.subr.bf16.mxu1 %v16990_v50  ;;  %v1268_v50 = vld [vmem:[#allocation5 + $0x2300] sm:$0xff] }
 0x22e   :  { %12929 = vmatpush1.bf16.msra.mxu0 %v17491_v49  ;;  %v761_v49 = vld [vmem:[#allocation5 + $0x1328] sm:$0xff] }
 0x22f   :  { %12930 = vmatprep.subr.bf16.mxu0 %v17500_v51  ;;  %v1272_v51 = vld [vmem:[#allocation5 + $0x2320] sm:$0xff]  ;;  %v17038_v59 = vcombine.high %v757_v22, %v761_v49  ;;  %v17037_v4 = vcombine.low %v757_v22, %v761_v49  ;;  %v19709_v22 = vld [vmem:[#allocation2 + $0x48] sm:$0xff] }
 0x230   :  { %13423 = vmatpush1.bf16.msra.mxu1 %v16989_v63  ;;  %v17548_v62 = vcombine.high %v1268_v50, %v1272_v51  ;;  %v765_v63 = vld [vmem:[#allocation5 + $0x1348] sm:$0xff]  ;;  %v17547_v10 = vcombine.low %v1268_v50, %v1272_v51  ;;  %v19713_v50 = vcombine.low %v19695_v52, %v19695_v52 }
 0x231   :  { %13424 = vmatprep.subr.bf16.mxu1 %v16998_v7  ;;  %v1276_v7 = vld [vmem:[#allocation5 + $0x2340] sm:$0xff] }
 0x232   :  { %12931 = vmatpush1.bf16.msra.mxu0 %v17499_v1  ;;  %v769_v1 = vld [vmem:[#allocation5 + $0x1368] sm:$0xff] }
 0x233   :  { %12932 = vmatprep.subr.bf16.mxu0 %v17508_v9  ;;  %v1280_v9 = vld [vmem:[#allocation5 + $0x2360] sm:$0xff]  ;;  %v17046_v38 = vcombine.high %v765_v63, %v769_v1  ;;  %v17045_v17 = vcombine.low %v765_v63, %v769_v1  ;;  %v19717_v63 = vcombine.high %v19709_v22, %v19709_v22 }
 0x234   :  { %13425 = vmatpush1.bf16.msra.mxu1 %v16997_v13  ;;  %v17556_v11 = vcombine.high %v1276_v7, %v1280_v9  ;;  %v773_v13 = vld [vmem:[#allocation5 + $0x1388] sm:$0xff]  ;;  %v17555_v18 = vcombine.low %v1276_v7, %v1280_v9  ;;  %v1316_v1 = vld [vmem:[#allocation5 + $0x2480] sm:$0xff] }
 0x235   :  { %13426 = vmatprep.subr.bf16.mxu1 %v17006_v30  ;;  %v1284_v30 = vld [vmem:[#allocation5 + $0x2380] sm:$0xff] }
 0x236   :  { %12933 = vmatpush1.bf16.msra.mxu0 %v17507_v14  ;;  %v777_v14 = vld [vmem:[#allocation5 + $0x13a8] sm:$0xff]  ;;  %v1320_v7 = vld [vmem:[#allocation5 + $0x24a0] sm:$0xff] }
 0x237   :  { %12934 = vmatprep.subr.bf16.mxu0 %v17516_v15  ;;  %v1288_v15 = vld [vmem:[#allocation5 + $0x23a0] sm:$0xff]  ;;  %v17054_v20 = vcombine.high %v773_v13, %v777_v14  ;;  %v17053_v27 = vcombine.low %v773_v13, %v777_v14 }
 0x238   :  { %13427 = vmatpush1.bf16.msra.mxu1 %v17005_v24  ;;  %v17564_v23 = vcombine.high %v1284_v30, %v1288_v15  ;;  %v781_v24 = vld [vmem:[#allocation5 + $0x13c8] sm:$0xff]  ;;  %v17563_v28 = vcombine.low %v1284_v30, %v1288_v15  ;;  %v1324_v13 = vld [vmem:[#allocation5 + $0x24c0] sm:$0xff]  ;;  %v17595_v15 = vcombine.low %v1316_v1, %v1320_v7 }
 0x239   :  { %13428 = vmatprep.subr.bf16.mxu1 %v17014_v53  ;;  %v1292_v53 = vld [vmem:[#allocation5 + $0x23c0] sm:$0xff] }
 0x23a   :  { %12935 = vmatpush1.bf16.msra.mxu0 %v17515_v25  ;;  %v785_v25 = vld [vmem:[#allocation5 + $0x13e8] sm:$0xff]  ;;  %v1328_v14 = vld [vmem:[#allocation5 + $0x24e0] sm:$0xff] }
 0x23b   :  { %12936 = vmatprep.subr.bf16.mxu0 %v17524_v26  ;;  %v1296_v26 = vld [vmem:[#allocation5 + $0x23e0] sm:$0xff]  ;;  %v17062_v31 = vcombine.high %v781_v24, %v785_v25  ;;  %v17061_v42 = vcombine.low %v781_v24, %v785_v25 }
 0x23c   :  { %13429 = vmatpush1.bf16.msra.mxu1 %v17013_v34  ;;  %v17572_v33 = vcombine.high %v1292_v53, %v1296_v26  ;;  %v789_v34 = vld [vmem:[#allocation5 + $0x1408] sm:$0xff]  ;;  %v17571_v43 = vcombine.low %v1292_v53, %v1296_v26  ;;  %v1332_v24 = vld [vmem:[#allocation5 + $0x2500] sm:$0xff]  ;;  %v17603_v26 = vcombine.low %v1324_v13, %v1328_v14 }
 0x23d   :  { %13430 = vmatprep.subr.bf16.mxu1 %v17022_v36  ;;  %v1300_v36 = vld [vmem:[#allocation5 + $0x2400] sm:$0xff] }
 0x23e   :  { %12937 = vmatpush1.bf16.msra.mxu0 %v17523_v35  ;;  %v793_v35 = vld [vmem:[#allocation5 + $0x1428] sm:$0xff]  ;;  %v1336_v25 = vld [vmem:[#allocation5 + $0x2520] sm:$0xff] }
 0x23f   :  { %12938 = vmatprep.subr.bf16.mxu0 %v17532_v37  ;;  %v1304_v37 = vld [vmem:[#allocation5 + $0x2420] sm:$0xff]  ;;  %v17070_v0 = vcombine.high %v789_v34, %v793_v35  ;;  %v17069_v49 = vcombine.low %v789_v34, %v793_v35 }
 0x240   :  { %13431 = vmatpush1.bf16.msra.mxu1 %v17021_v45  ;;  %v17580_v44 = vcombine.high %v1300_v36, %v1304_v37  ;;  %v797_v45 = vld [vmem:[#allocation5 + $0x1448] sm:$0xff]  ;;  %v17579_v51 = vcombine.low %v1300_v36, %v1304_v37  ;;  %v1340_v34 = vld [vmem:[#allocation5 + $0x2540] sm:$0xff]  ;;  %v17611_v37 = vcombine.low %v1332_v24, %v1336_v25 }
 0x241   :  { %13432 = vmatprep.subr.bf16.mxu1 %v17030_v19  ;;  %v1308_v19 = vld [vmem:[#allocation5 + $0x2440] sm:$0xff] }
 0x242   :  { %12939 = vmatpush1.bf16.msra.mxu0 %v17531_v46  ;;  %v801_v46 = vld [vmem:[#allocation5 + $0x1468] sm:$0xff]  ;;  %v1344_v35 = vld [vmem:[#allocation5 + $0x2560] sm:$0xff] }
 0x243   :  { %12940 = vmatprep.subr.bf16.mxu0 %v17540_v48  ;;  %v1312_v48 = vld [vmem:[#allocation5 + $0x2460] sm:$0xff]  ;;  %v17077_v52 = vcombine.low %v797_v45, %v801_v46 }
 0x244   :  { %13433 = vmatpush1.bf16.msra.mxu1 %v17029_v54  ;;  %v17078_v54 = vcombine.high %v797_v45, %v801_v46  ;;  %v17587_v9 = vcombine.low %v1308_v19, %v1312_v48  ;;  %v1348_v45 = vld [vmem:[#allocation5 + $0x2580] sm:$0xff] }
 0x245   :  { %13434 = vmatprep.subr.bf16.mxu1 %v17038_v59  ;;  %v805_v59 = vld [vmem:[#allocation5 + $0x1488] sm:$0xff]  ;;  %v1352_v46 = vld [vmem:[#allocation5 + $0x25a0] sm:$0xff] }
 0x246   :  { %12941 = vmatpush1.bf16.msra.mxu0 %v17539_v56  ;;  %v17588_v56 = vcombine.high %v1308_v19, %v1312_v48  ;;  %v17619_v48 = vcombine.low %v1340_v34, %v1344_v35 }
 0x247   :  { %12942 = vmatprep.subr.bf16.mxu0 %v17548_v62  ;;  %v809_v62 = vld [vmem:[#allocation5 + $0x14a8] sm:$0xff] }
 0x248   :  { %13435 = vmatpush1.bf16.msra.mxu1 %v17037_v4  ;;  %v17086_v4 = vcombine.high %v805_v59, %v809_v62  ;;  %v17085_v30 = vcombine.low %v805_v59, %v809_v62  ;;  %v1356_v59 = vld [vmem:[#allocation5 + $0x25c0] sm:$0xff] }
 0x249   :  { %13436 = vmatprep.subr.bf16.mxu1 %v17046_v38  ;;  %v813_v38 = vld [vmem:[#allocation5 + $0x14c8] sm:$0xff]  ;;  %v1360_v62 = vld [vmem:[#allocation5 + $0x25e0] sm:$0xff] }
 0x24a   :  { %12943 = vmatpush1.bf16.msra.mxu0 %v17547_v10  ;;  %v17596_v10 = vcombine.high %v1316_v1, %v1320_v7  ;;  %v17627_v7 = vcombine.low %v1348_v45, %v1352_v46 }
 0x24b   :  { %12944 = vmatprep.subr.bf16.mxu0 %v17556_v11  ;;  %v817_v11 = vld [vmem:[#allocation5 + $0x14e8] sm:$0xff] }
 0x24c   :  { %13437 = vmatpush1.bf16.msra.mxu1 %v17045_v17  ;;  %v17094_v17 = vcombine.high %v813_v38, %v817_v11  ;;  %v17093_v53 = vcombine.low %v813_v38, %v817_v11  ;;  %v1364_v38 = vld [vmem:[#allocation5 + $0x2600] sm:$0xff] }
 0x24d   :  { %13438 = vmatprep.subr.bf16.mxu1 %v17054_v20  ;;  %v821_v20 = vld [vmem:[#allocation5 + $0x1508] sm:$0xff]  ;;  %v1368_v11 = vld [vmem:[#allocation5 + $0x2620] sm:$0xff] }
 0x24e   :  { %12945 = vmatpush1.bf16.msra.mxu0 %v17555_v18  ;;  %v17604_v18 = vcombine.high %v1324_v13, %v1328_v14  ;;  %v17635_v14 = vcombine.low %v1356_v59, %v1360_v62 }
 0x24f   :  { %12946 = vmatprep.subr.bf16.mxu0 %v17564_v23  ;;  %v825_v23 = vld [vmem:[#allocation5 + $0x1528] sm:$0xff] }
 0x250   :  { %13439 = vmatpush1.bf16.msra.mxu1 %v17053_v27  ;;  %v17102_v27 = vcombine.high %v821_v20, %v825_v23  ;;  %v17101_v36 = vcombine.low %v821_v20, %v825_v23  ;;  %v1372_v20 = vld [vmem:[#allocation5 + $0x2640] sm:$0xff] }
 0x251   :  { %13440 = vmatprep.subr.bf16.mxu1 %v17062_v31  ;;  %v829_v31 = vld [vmem:[#allocation5 + $0x1548] sm:$0xff]  ;;  %v1376_v23 = vld [vmem:[#allocation5 + $0x2660] sm:$0xff] }
 0x252   :  { %12947 = vmatpush1.bf16.msra.mxu0 %v17563_v28  ;;  %v17612_v28 = vcombine.high %v1332_v24, %v1336_v25  ;;  %v17643_v25 = vcombine.low %v1364_v38, %v1368_v11 }
 0x253   :  { %12948 = vmatprep.subr.bf16.mxu0 %v17572_v33  ;;  %v833_v33 = vld [vmem:[#allocation5 + $0x1568] sm:$0xff] }
 0x254   :  { %13441 = vmatpush1.bf16.msra.mxu1 %v17061_v42  ;;  %v17110_v42 = vcombine.high %v829_v31, %v833_v33  ;;  %v17109_v19 = vcombine.low %v829_v31, %v833_v33  ;;  %v1380_v31 = vld [vmem:[#allocation5 + $0x2680] sm:$0xff] }
 0x255   :  { %13451 = vmatprep.subr.bf16.mxu1 %v17070_v0  ;;  %v837_v0 = vld [vmem:[#allocation5 + $0x1588] sm:$0xff]  ;;  %v1384_v33 = vld [vmem:[#allocation5 + $0x26a0] sm:$0xff] }
 0x256   :  { %12949 = vmatpush1.bf16.msra.mxu0 %v17571_v43  ;;  %v17620_v43 = vcombine.high %v1340_v34, %v1344_v35  ;;  %v17651_v35 = vcombine.low %v1372_v20, %v1376_v23 }
 0x257   :  { %12959 = vmatprep.subr.bf16.mxu0 %v17580_v44  ;;  %13443 = vmatmul.mubr.bf16.vlgmr.msra.gmra.mrb[4].mxu1 %v19653_v2  ;;  %v841_v44 = vld [vmem:[#allocation5 + $0x15a8] sm:$0xff] }
 0x258   :  { %13452 = vmatpush1.bf16.msra.mxu1 %v17069_v49  ;;  %13483 = vmatprep.mubr.bf16.mxu1 %v19657_v8  ;;  %v17118_v49 = vcombine.high %v837_v0, %v841_v44  ;;  %v17117_v1 = vcombine.low %v837_v0, %v841_v44  ;;  %v1388_v0 = vld [vmem:[#allocation5 + $0x26c0] sm:$0xff] }
 0x259   :  { %12951 = vmatmul.mubr.bf16.vlgmr.msra.gmra.mrb[0].mxu0 %v19713_v50  ;;  %13453 = vmatprep.subr.bf16.mxu1 %v17078_v54  ;;  %v845_v54 = vld [vmem:[#allocation5 + $0x15c8] sm:$0xff]  ;;  %v1392_v44 = vld [vmem:[#allocation5 + $0x26e0] sm:$0xff] }
 0x25a   :  { %12960 = vmatpush1.bf16.msra.mxu0 %v17579_v51  ;;  %12991 = vmatprep.mubr.bf16.mxu0 %v19717_v63  ;;  %v17628_v51 = vcombine.high %v1348_v45, %v1352_v46  ;;  %v17659_v46 = vcombine.low %v1380_v31, %v1384_v33 }
 0x25b   :  { %12961 = vmatprep.subr.bf16.mxu0 %v17588_v56  ;;  %v849_v56 = vld [vmem:[#allocation5 + $0x15e8] sm:$0xff] }
 0x25c   :  { %13454 = vmatpush1.bf16.msra.mxu1 %v17077_v52  ;;  %v17126_v52 = vcombine.high %v845_v54, %v849_v56  ;;  %v17125_v13 = vcombine.low %v845_v54, %v849_v56  ;;  %v1396_v54 = vld [vmem:[#allocation5 + $0x2700] sm:$0xff] }
 0x25d   :  { %13455 = vmatprep.subr.bf16.mxu1 %v17086_v4  ;;  %v853_v4 = vld [vmem:[#allocation5 + $0x1608] sm:$0xff]  ;;  %v1400_v56 = vld [vmem:[#allocation5 + $0x2720] sm:$0xff] }
 0x25e   :  { %12962 = vmatpush1.bf16.msra.mxu0 %v17587_v9  ;;  %v17636_v9 = vcombine.high %v1356_v59, %v1360_v62  ;;  %v17667_v62 = vcombine.low %v1388_v0, %v1392_v44 }
 0x25f   :  { %12963 = vmatprep.subr.bf16.mxu0 %v17596_v10  ;;  %v857_v10 = vld [vmem:[#allocation5 + $0x1628] sm:$0xff] }
 0x260   :  { %13456 = vmatpush1.bf16.msra.mxu1 %v17085_v30  ;;  %v17134_v30 = vcombine.high %v853_v4, %v857_v10  ;;  %v17133_v24 = vcombine.low %v853_v4, %v857_v10  ;;  %v1404_v4 = vld [vmem:[#allocation5 + $0x2740] sm:$0xff] }
 0x261   :  { %13457 = vmatprep.subr.bf16.mxu1 %v17094_v17  ;;  %v861_v17 = vld [vmem:[#allocation5 + $0x1648] sm:$0xff]  ;;  %v1408_v10 = vld [vmem:[#allocation5 + $0x2760] sm:$0xff] }
 0x262   :  { %12964 = vmatpush1.bf16.msra.mxu0 %v17595_v15  ;;  %v17644_v15 = vcombine.high %v1364_v38, %v1368_v11  ;;  %v17675_v11 = vcombine.low %v1396_v54, %v1400_v56 }
 0x263   :  { %12965 = vmatprep.subr.bf16.mxu0 %v17604_v18  ;;  %v865_v18 = vld [vmem:[#allocation5 + $0x1668] sm:$0xff] }
 0x264   :  { %13458 = vmatpush1.bf16.msra.mxu1 %v17093_v53  ;;  %v17142_v53 = vcombine.high %v861_v17, %v865_v18  ;;  %v17141_v34 = vcombine.low %v861_v17, %v865_v18  ;;  %v1412_v17 = vld [vmem:[#allocation5 + $0x2780] sm:$0xff] }
 0x265   :  { %13459 = vmatprep.subr.bf16.mxu1 %v17102_v27  ;;  %v869_v27 = vld [vmem:[#allocation5 + $0x1688] sm:$0xff]  ;;  %v1416_v18 = vld [vmem:[#allocation5 + $0x27a0] sm:$0xff] }
 0x266   :  { %12966 = vmatpush1.bf16.msra.mxu0 %v17603_v26  ;;  %v17652_v26 = vcombine.high %v1372_v20, %v1376_v23  ;;  %v17683_v23 = vcombine.low %v1404_v4, %v1408_v10 }
 0x267   :  { %12967 = vmatprep.subr.bf16.mxu0 %v17612_v28  ;;  %v873_v28 = vld [vmem:[#allocation5 + $0x16a8] sm:$0xff] }
 0x268   :  { %13460 = vmatpush1.bf16.msra.mxu1 %v17101_v36  ;;  %v17150_v36 = vcombine.high %v869_v27, %v873_v28  ;;  %v17149_v45 = vcombine.low %v869_v27, %v873_v28  ;;  %v1420_v27 = vld [vmem:[#allocation5 + $0x27c0] sm:$0xff] }
 0x269   :  { %13461 = vmatprep.subr.bf16.mxu1 %v17110_v42  ;;  %v877_v42 = vld [vmem:[#allocation5 + $0x16c8] sm:$0xff]  ;;  %v1424_v28 = vld [vmem:[#allocation5 + $0x27e0] sm:$0xff] }
 0x26a   :  { %12968 = vmatpush1.bf16.msra.mxu0 %v17611_v37  ;;  %v17660_v37 = vcombine.high %v1380_v31, %v1384_v33  ;;  %v17691_v33 = vcombine.low %v1412_v17, %v1416_v18 }
 0x26b   :  { %12969 = vmatprep.subr.bf16.mxu0 %v17620_v43  ;;  %v881_v43 = vld [vmem:[#allocation5 + $0x16e8] sm:$0xff] }
 0x26c   :  { %13462 = vmatpush1.bf16.msra.mxu1 %v17109_v19  ;;  %v17158_v19 = vcombine.high %v877_v42, %v881_v43  ;;  %v17157_v59 = vcombine.low %v877_v42, %v881_v43  ;;  %v1428_v42 = vld [vmem:[#allocation5 + $0x2800] sm:$0xff] }
 0x26d   :  { %13463 = vmatprep.subr.bf16.mxu1 %v17118_v49  ;;  %v885_v49 = vld [vmem:[#allocation5 + $0x1708] sm:$0xff]  ;;  %v1432_v43 = vld [vmem:[#allocation5 + $0x2820] sm:$0xff] }
 0x26e   :  { %12970 = vmatpush1.bf16.msra.mxu0 %v17619_v48  ;;  %v17668_v48 = vcombine.high %v1388_v0, %v1392_v44  ;;  %v17699_v44 = vcombine.low %v1420_v27, %v1424_v28 }
 0x26f   :  { %12971 = vmatprep.subr.bf16.mxu0 %v17628_v51  ;;  %v889_v51 = vld [vmem:[#allocation5 + $0x1728] sm:$0xff] }
 0x270   :  { %13464 = vmatpush1.bf16.msra.mxu1 %v17117_v1  ;;  %v17166_v1 = vcombine.high %v885_v49, %v889_v51  ;;  %v17165_v38 = vcombine.low %v885_v49, %v889_v51  ;;  %v1436_v49 = vld [vmem:[#allocation5 + $0x2840] sm:$0xff] }
 0x271   :  { %13465 = vmatprep.subr.bf16.mxu1 %v17126_v52  ;;  %v893_v52 = vld [vmem:[#allocation5 + $0x1748] sm:$0xff]  ;;  %v1440_v51 = vld [vmem:[#allocation5 + $0x2860] sm:$0xff] }
 0x272   :  { %12972 = vmatpush1.bf16.msra.mxu0 %v17627_v7  ;;  %v17676_v7 = vcombine.high %v1396_v54, %v1400_v56  ;;  %v19723_v54 = vld [vmem:[#allocation2 + $0x50] sm:$0xff] }
 0x273   :  { %12973 = vmatprep.subr.bf16.mxu0 %v17636_v9  ;;  %v897_v9 = vld [vmem:[#allocation5 + $0x1768] sm:$0xff] }
 0x274   :  { %13466 = vmatpush1.bf16.msra.mxu1 %v17125_v13  ;;  %v17174_v13 = vcombine.high %v893_v52, %v897_v9  ;;  %v17173_v20 = vcombine.low %v893_v52, %v897_v9  ;;  %v933_v52 = vld [vmem:[#allocation5 + $0x1888] sm:$0xff] }
 0x275   :  { %13467 = vmatprep.subr.bf16.mxu1 %v17134_v30  ;;  %v901_v30 = vld [vmem:[#allocation5 + $0x1788] sm:$0xff] }
 0x276   :  { %12974 = vmatpush1.bf16.msra.mxu0 %v17635_v14  ;;  %v17684_v14 = vcombine.high %v1404_v4, %v1408_v10  ;;  %v937_v9 = vld [vmem:[#allocation5 + $0x18a8] sm:$0xff]  ;;  %v19731_v4 = vcombine.high %v19723_v54, %v19723_v54  ;;  %v1444_v10 = vld [vmem:[#allocation5 + $0x2880] sm:$0xff] }
 0x277   :  { %12975 = vmatprep.subr.bf16.mxu0 %v17644_v15  ;;  %v905_v15 = vld [vmem:[#allocation5 + $0x17a8] sm:$0xff] }
 0x278   :  { %13468 = vmatpush1.bf16.msra.mxu1 %v17133_v24  ;;  %v17182_v24 = vcombine.high %v901_v30, %v905_v15  ;;  %v17181_v31 = vcombine.low %v901_v30, %v905_v15  ;;  %v941_v30 = vld [vmem:[#allocation5 + $0x18c8] sm:$0xff] }
 0x279   :  { %13469 = vmatprep.subr.bf16.mxu1 %v17142_v53  ;;  %v909_v53 = vld [vmem:[#allocation5 + $0x17c8] sm:$0xff] }
 0x27a   :  { %12976 = vmatpush1.bf16.msra.mxu0 %v17643_v25  ;;  %v17692_v25 = vcombine.high %v1412_v17, %v1416_v18  ;;  %v945_v15 = vld [vmem:[#allocation5 + $0x18e8] sm:$0xff]  ;;  %v1452_v17 = vld [vmem:[#allocation5 + $0x28c0] sm:$0xff] }
 0x27b   :  { %12977 = vmatprep.subr.bf16.mxu0 %v17652_v26  ;;  %v913_v26 = vld [vmem:[#allocation5 + $0x17e8] sm:$0xff]  ;;  %v1456_v18 = vld [vmem:[#allocation5 + $0x28e0] sm:$0xff] }
 0x27c   :  { %13470 = vmatpush1.bf16.msra.mxu1 %v17141_v34  ;;  %v17190_v34 = vcombine.high %v909_v53, %v913_v26  ;;  %v17189_v0 = vcombine.low %v909_v53, %v913_v26  ;;  %v949_v53 = vld [vmem:[#allocation5 + $0x1908] sm:$0xff] }
 0x27d   :  { %13471 = vmatprep.subr.bf16.mxu1 %v17150_v36  ;;  %v917_v36 = vld [vmem:[#allocation5 + $0x1808] sm:$0xff] }
 0x27e   :  { %12978 = vmatpush1.bf16.msra.mxu0 %v17651_v35  ;;  %v17700_v35 = vcombine.high %v1420_v27, %v1424_v28  ;;  %v953_v26 = vld [vmem:[#allocation5 + $0x1928] sm:$0xff]  ;;  %v1460_v27 = vld [vmem:[#allocation5 + $0x2900] sm:$0xff] }
 0x27f   :  { %12979 = vmatprep.subr.bf16.mxu0 %v17660_v37  ;;  %v921_v37 = vld [vmem:[#allocation5 + $0x1828] sm:$0xff]  ;;  %v1464_v28 = vld [vmem:[#allocation5 + $0x2920] sm:$0xff] }
 0x280   :  { %13472 = vmatpush1.bf16.msra.mxu1 %v17149_v45  ;;  %v17198_v45 = vcombine.high %v917_v36, %v921_v37  ;;  %v17197_v56 = vcombine.low %v917_v36, %v921_v37  ;;  %v957_v36 = vld [vmem:[#allocation5 + $0x1948] sm:$0xff] }
 0x281   :  { %13473 = vmatprep.subr.bf16.mxu1 %v17158_v19  ;;  %v925_v19 = vld [vmem:[#allocation5 + $0x1848] sm:$0xff] }
 0x282   :  { %12980 = vmatpush1.bf16.msra.mxu0 %v17659_v46  ;;  %v17708_v46 = vcombine.high %v1428_v42, %v1432_v43  ;;  %v961_v37 = vld [vmem:[#allocation5 + $0x1968] sm:$0xff] }
 0x283   :  { %12981 = vmatprep.subr.bf16.mxu0 %v17668_v48  ;;  %v929_v48 = vld [vmem:[#allocation5 + $0x1868] sm:$0xff] }
 0x284   :  { %13474 = vmatpush1.bf16.msra.mxu1 %v17157_v59  ;;  %v19727_v59 = vcombine.low %v19709_v22, %v19709_v22  ;;  %v17205_v22 = vcombine.low %v925_v19, %v929_v48 }
 0x285   :  { %13475 = vmatprep.subr.bf16.mxu1 %v17166_v1  ;;  %v17206_v1 = vcombine.high %v925_v19, %v929_v48  ;;  %v965_v19 = vld [vmem:[#allocation5 + $0x1988] sm:$0xff] }
 0x286   :  { %12982 = vmatpush1.bf16.msra.mxu0 %v17667_v62  ;;  %v17707_v62 = vcombine.low %v1428_v42, %v1432_v43  ;;  %v1468_v42 = vld [vmem:[#allocation5 + $0x2940] sm:$0xff]  ;;  %v969_v48 = vld [vmem:[#allocation5 + $0x19a8] sm:$0xff] }
 0x287   :  { %12983 = vmatprep.subr.bf16.mxu0 %v17676_v7  ;;  %v17716_v7 = vcombine.high %v1436_v49, %v1440_v51  ;;  %v1472_v43 = vld [vmem:[#allocation5 + $0x2960] sm:$0xff] }
 0x288   :  { %13476 = vmatpush1.bf16.msra.mxu1 %v17165_v38  ;;  %v1448_v38 = vld [vmem:[#allocation5 + $0x28a0] sm:$0xff] }
 0x289   :  { %13477 = vmatprep.subr.bf16.mxu1 %v17174_v13  ;;  %v17214_v13 = vcombine.high %v933_v52, %v937_v9 }
 0x28a   :  { %12984 = vmatpush1.bf16.msra.mxu0 %v17675_v11  ;;  %v17715_v11 = vcombine.low %v1436_v49, %v1440_v51  ;;  %v1476_v49 = vld [vmem:[#allocation5 + $0x2980] sm:$0xff] }
 0x28b   :  { %12985 = vmatprep.subr.bf16.mxu0 %v17684_v14  ;;  %v17724_v14 = vcombine.high %v1444_v10, %v1448_v38  ;;  %v1480_v51 = vld [vmem:[#allocation5 + $0x29a0] sm:$0xff] }
 0x28c   :  { %13478 = vmatpush1.bf16.msra.mxu1 %v17173_v20  ;;  %v17213_v20 = vcombine.low %v933_v52, %v937_v9  ;;  %v973_v52 = vld [vmem:[#allocation5 + $0x19c8] sm:$0xff] }
 0x28d   :  { %13479 = vmatprep.subr.bf16.mxu1 %v17182_v24  ;;  %v17222_v24 = vcombine.high %v941_v30, %v945_v15  ;;  %v977_v9 = vld [vmem:[#allocation5 + $0x19e8] sm:$0xff] }
 0x28e   :  { %12986 = vmatpush1.bf16.msra.mxu0 %v17683_v23  ;;  %v17723_v23 = vcombine.low %v1444_v10, %v1448_v38  ;;  %v1484_v10 = vld [vmem:[#allocation5 + $0x29c0] sm:$0xff] }
 0x28f   :  { %12987 = vmatprep.subr.bf16.mxu0 %v17692_v25  ;;  %v17732_v25 = vcombine.high %v1452_v17, %v1456_v18  ;;  %v1488_v38 = vld [vmem:[#allocation5 + $0x29e0] sm:$0xff] }
 0x290   :  { %13480 = vmatpush1.bf16.msra.mxu1 %v17181_v31  ;;  %v17221_v31 = vcombine.low %v941_v30, %v945_v15  ;;  %v981_v30 = vld [vmem:[#allocation5 + $0x1a08] sm:$0xff] }
 0x291   :  { %13481 = vmatprep.subr.bf16.mxu1 %v17190_v34  ;;  %v17230_v34 = vcombine.high %v949_v53, %v953_v26  ;;  %v985_v15 = vld [vmem:[#allocation5 + $0x1a28] sm:$0xff] }
 0x292   :  { %12988 = vmatpush1.bf16.msra.mxu0 %v17691_v33  ;;  %v17731_v33 = vcombine.low %v1452_v17, %v1456_v18  ;;  %v1492_v17 = vld [vmem:[#allocation5 + $0x2a00] sm:$0xff] }
 0x293   :  { %12989 = vmatprep.subr.bf16.mxu0 %v17700_v35  ;;  %v17740_v35 = vcombine.high %v1460_v27, %v1464_v28  ;;  %v1496_v18 = vld [vmem:[#allocation5 + $0x2a20] sm:$0xff] }
 0x294   :  { %13482 = vmatpush1.bf16.msra.mxu1 %v17189_v0  ;;  %v17229_v0 = vcombine.low %v949_v53, %v953_v26  ;;  %v989_v53 = vld [vmem:[#allocation5 + $0x1a48] sm:$0xff] }
 0x295   :  { %13492 = vmatprep.subr.bf16.mxu1 %v17198_v45  ;;  %v17238_v45 = vcombine.high %v957_v36, %v961_v37  ;;  %v993_v26 = vld [vmem:[#allocation5 + $0x1a68] sm:$0xff] }
 0x296   :  { %12990 = vmatpush1.bf16.msra.mxu0 %v17699_v44  ;;  %v17739_v44 = vcombine.low %v1460_v27, %v1464_v28  ;;  %v1500_v27 = vld [vmem:[#allocation5 + $0x2a40] sm:$0xff] }
 0x297   :  { %13000 = vmatprep.subr.bf16.mxu0 %v17708_v46  ;;  %13484 = vmatmul.mubr.bf16.vlgmr.msra.gmra.mrb[4].mxu1 %v19667_v32  ;;  %v17748_v46 = vcombine.high %v1468_v42, %v1472_v43  ;;  %v1504_v28 = vld [vmem:[#allocation5 + $0x2a60] sm:$0xff] }
 0x298   :  { %13493 = vmatpush1.bf16.msra.mxu1 %v17197_v56  ;;  %13524 = vmatprep.mubr.bf16.mxu1 %v19671_v40  ;;  %v17237_v56 = vcombine.low %v957_v36, %v961_v37  ;;  %v997_v36 = vld [vmem:[#allocation5 + $0x1a88] sm:$0xff] }
 0x299   :  { %12992 = vmatmul.mubr.bf16.vlgmr.msra.gmra.mrb[0].mxu0 %v19727_v59  ;;  %13494 = vmatprep.subr.bf16.mxu1 %v17206_v1  ;;  %v17246_v1 = vcombine.high %v965_v19, %v969_v48  ;;  %v1001_v37 = vld [vmem:[#allocation5 + $0x1aa8] sm:$0xff] }
 0x29a   :  { %13001 = vmatpush1.bf16.msra.mxu0 %v17707_v62  ;;  %13032 = vmatprep.mubr.bf16.mxu0 %v19731_v4  ;;  %v17747_v62 = vcombine.low %v1468_v42, %v1472_v43  ;;  %v1508_v42 = vld [vmem:[#allocation5 + $0x2a80] sm:$0xff] }
 0x29b   :  { %13002 = vmatprep.subr.bf16.mxu0 %v17716_v7  ;;  %v17756_v7 = vcombine.high %v1476_v49, %v1480_v51  ;;  %v1512_v43 = vld [vmem:[#allocation5 + $0x2aa0] sm:$0xff] }
 0x29c   :  { %13495 = vmatpush1.bf16.msra.mxu1 %v17205_v22  ;;  %v17245_v22 = vcombine.low %v965_v19, %v969_v48  ;;  %v1005_v19 = vld [vmem:[#allocation5 + $0x1ac8] sm:$0xff] }
 0x29d   :  { %13496 = vmatprep.subr.bf16.mxu1 %v17214_v13  ;;  %v17254_v13 = vcombine.high %v973_v52, %v977_v9  ;;  %v1009_v48 = vld [vmem:[#allocation5 + $0x1ae8] sm:$0xff] }
 0x29e   :  { %13003 = vmatpush1.bf16.msra.mxu0 %v17715_v11  ;;  %v17755_v11 = vcombine.low %v1476_v49, %v1480_v51  ;;  %v1516_v49 = vld [vmem:[#allocation5 + $0x2ac0] sm:$0xff] }
 0x29f   :  { %13004 = vmatprep.subr.bf16.mxu0 %v17724_v14  ;;  %v17764_v14 = vcombine.high %v1484_v10, %v1488_v38  ;;  %v1520_v51 = vld [vmem:[#allocation5 + $0x2ae0] sm:$0xff] }
 0x2a0   :  { %13497 = vmatpush1.bf16.msra.mxu1 %v17213_v20  ;;  %v17253_v20 = vcombine.low %v973_v52, %v977_v9  ;;  %v1013_v52 = vld [vmem:[#allocation5 + $0x1b08] sm:$0xff] }
 0x2a1   :  { %13498 = vmatprep.subr.bf16.mxu1 %v17222_v24  ;;  %v17262_v24 = vcombine.high %v981_v30, %v985_v15  ;;  %v1017_v9 = vld [vmem:[#allocation5 + $0x1b28] sm:$0xff] }
 0x2a2   :  { %13005 = vmatpush1.bf16.msra.mxu0 %v17723_v23  ;;  %v17763_v23 = vcombine.low %v1484_v10, %v1488_v38  ;;  %v1524_v10 = vld [vmem:[#allocation5 + $0x2b00] sm:$0xff] }
 0x2a3   :  { %13006 = vmatprep.subr.bf16.mxu0 %v17732_v25  ;;  %v17772_v25 = vcombine.high %v1492_v17, %v1496_v18  ;;  %v1528_v38 = vld [vmem:[#allocation5 + $0x2b20] sm:$0xff] }
 0x2a4   :  { %13499 = vmatpush1.bf16.msra.mxu1 %v17221_v31  ;;  %v17261_v31 = vcombine.low %v981_v30, %v985_v15  ;;  %v1021_v30 = vld [vmem:[#allocation5 + $0x1b48] sm:$0xff] }
 0x2a5   :  { %13500 = vmatprep.subr.bf16.mxu1 %v17230_v34  ;;  %v17270_v34 = vcombine.high %v989_v53, %v993_v26  ;;  %v1025_v15 = vld [vmem:[#allocation5 + $0x1b68] sm:$0xff] }
 0x2a6   :  { %13007 = vmatpush1.bf16.msra.mxu0 %v17731_v33  ;;  %v17771_v33 = vcombine.low %v1492_v17, %v1496_v18  ;;  %v1532_v17 = vld [vmem:[#allocation5 + $0x2b40] sm:$0xff] }
 0x2a7   :  { %13008 = vmatprep.subr.bf16.mxu0 %v17740_v35  ;;  %v17780_v35 = vcombine.high %v1500_v27, %v1504_v28  ;;  %v1536_v18 = vld [vmem:[#allocation5 + $0x2b60] sm:$0xff] }
 0x2a8   :  { %13501 = vmatpush1.bf16.msra.mxu1 %v17229_v0  ;;  %v17269_v0 = vcombine.low %v989_v53, %v993_v26  ;;  %v1029_v53 = vld [vmem:[#allocation5 + $0x1b88] sm:$0xff] }
 0x2a9   :  { %13502 = vmatprep.subr.bf16.mxu1 %v17238_v45  ;;  %v17278_v45 = vcombine.high %v997_v36, %v1001_v37  ;;  %v1033_v26 = vld [vmem:[#allocation5 + $0x1ba8] sm:$0xff] }
 0x2aa   :  { %13009 = vmatpush1.bf16.msra.mxu0 %v17739_v44  ;;  %v17779_v44 = vcombine.low %v1500_v27, %v1504_v28  ;;  %v1540_v27 = vld [vmem:[#allocation5 + $0x2b80] sm:$0xff] }
 0x2ab   :  { %13010 = vmatprep.subr.bf16.mxu0 %v17748_v46  ;;  %v17788_v46 = vcombine.high %v1508_v42, %v1512_v43  ;;  %v1544_v28 = vld [vmem:[#allocation5 + $0x2ba0] sm:$0xff] }
 0x2ac   :  { %13503 = vmatpush1.bf16.msra.mxu1 %v17237_v56  ;;  %v17277_v56 = vcombine.low %v997_v36, %v1001_v37  ;;  %v1037_v36 = vld [vmem:[#allocation5 + $0x1bc8] sm:$0xff] }
 0x2ad   :  { %13504 = vmatprep.subr.bf16.mxu1 %v17246_v1  ;;  %v17286_v1 = vcombine.high %v1005_v19, %v1009_v48  ;;  %v1041_v37 = vld [vmem:[#allocation5 + $0x1be8] sm:$0xff] }
 0x2ae   :  { %13011 = vmatpush1.bf16.msra.mxu0 %v17747_v62  ;;  %v17787_v62 = vcombine.low %v1508_v42, %v1512_v43  ;;  %v1548_v42 = vld [vmem:[#allocation5 + $0x2bc0] sm:$0xff] }
 0x2af   :  { %13012 = vmatprep.subr.bf16.mxu0 %v17756_v7  ;;  %v17796_v7 = vcombine.high %v1516_v49, %v1520_v51  ;;  %v1552_v43 = vld [vmem:[#allocation5 + $0x2be0] sm:$0xff] }
 0x2b0   :  { %13505 = vmatpush1.bf16.msra.mxu1 %v17245_v22  ;;  %v17285_v22 = vcombine.low %v1005_v19, %v1009_v48  ;;  %v1045_v19 = vld [vmem:[#allocation5 + $0x1c08] sm:$0xff] }
 0x2b1   :  { %13506 = vmatprep.subr.bf16.mxu1 %v17254_v13  ;;  %v17294_v13 = vcombine.high %v1013_v52, %v1017_v9  ;;  %v1049_v48 = vld [vmem:[#allocation5 + $0x1c28] sm:$0xff] }
 0x2b2   :  { %13013 = vmatpush1.bf16.msra.mxu0 %v17755_v11  ;;  %v17795_v11 = vcombine.low %v1516_v49, %v1520_v51  ;;  %v1556_v49 = vld [vmem:[#allocation5 + $0x2c00] sm:$0xff] }
 0x2b3   :  { %13014 = vmatprep.subr.bf16.mxu0 %v17764_v14  ;;  %v17804_v14 = vcombine.high %v1524_v10, %v1528_v38  ;;  %v1560_v51 = vld [vmem:[#allocation5 + $0x2c20] sm:$0xff] }
 0x2b4   :  { %13507 = vmatpush1.bf16.msra.mxu1 %v17253_v20  ;;  %v17293_v20 = vcombine.low %v1013_v52, %v1017_v9  ;;  %v1053_v52 = vld [vmem:[#allocation5 + $0x1c48] sm:$0xff] }
 0x2b5   :  { %13508 = vmatprep.subr.bf16.mxu1 %v17262_v24  ;;  %v17302_v24 = vcombine.high %v1021_v30, %v1025_v15  ;;  %v1057_v9 = vld [vmem:[#allocation5 + $0x1c68] sm:$0xff] }
 0x2b6   :  { %13015 = vmatpush1.bf16.msra.mxu0 %v17763_v23  ;;  %v17803_v23 = vcombine.low %v1524_v10, %v1528_v38  ;;  %v1564_v10 = vld [vmem:[#allocation5 + $0x2c40] sm:$0xff] }
 0x2b7   :  { %13016 = vmatprep.subr.bf16.mxu0 %v17772_v25  ;;  %v17812_v25 = vcombine.high %v1532_v17, %v1536_v18  ;;  %v1568_v38 = vld [vmem:[#allocation5 + $0x2c60] sm:$0xff] }
 0x2b8   :  { %13509 = vmatpush1.bf16.msra.mxu1 %v17261_v31  ;;  %v17301_v31 = vcombine.low %v1021_v30, %v1025_v15  ;;  %v17334_v30 = vcombine.high %v1053_v52, %v1057_v9  ;;  %v17844_v15 = vcombine.high %v1564_v10, %v1568_v38 }
 0x2b9   :  { %13510 = vmatprep.subr.bf16.mxu1 %v17270_v34  ;;  %v17310_v34 = vcombine.high %v1029_v53, %v1033_v26 }
 0x2ba   :  { %13017 = vmatpush1.bf16.msra.mxu0 %v17771_v33  ;;  %v17811_v33 = vcombine.low %v1532_v17, %v1536_v18  ;;  %v1061_v17 = vld [vmem:[#allocation5 + $0x1c88] sm:$0xff] }
 0x2bb   :  { %13018 = vmatprep.subr.bf16.mxu0 %v17780_v35  ;;  %v17820_v35 = vcombine.high %v1540_v27, %v1544_v28  ;;  %v1065_v18 = vld [vmem:[#allocation5 + $0x1ca8] sm:$0xff] }
 0x2bc   :  { %13511 = vmatpush1.bf16.msra.mxu1 %v17269_v0  ;;  %v17309_v0 = vcombine.low %v1029_v53, %v1033_v26  ;;  %v17342_v53 = vcombine.high %v1061_v17, %v1065_v18 }
 0x2bd   :  { %13512 = vmatprep.subr.bf16.mxu1 %v17278_v45  ;;  %v17318_v45 = vcombine.high %v1037_v36, %v1041_v37 }
 0x2be   :  { %13019 = vmatpush1.bf16.msra.mxu0 %v17779_v44  ;;  %v17819_v44 = vcombine.low %v1540_v27, %v1544_v28  ;;  %v1069_v27 = vld [vmem:[#allocation5 + $0x1cc8] sm:$0xff] }
 0x2bf   :  { %13020 = vmatprep.subr.bf16.mxu0 %v17788_v46  ;;  %v17828_v46 = vcombine.high %v1548_v42, %v1552_v43  ;;  %v1073_v28 = vld [vmem:[#allocation5 + $0x1ce8] sm:$0xff] }
 0x2c0   :  { %13513 = vmatpush1.bf16.msra.mxu1 %v17277_v56  ;;  %v17317_v56 = vcombine.low %v1037_v36, %v1041_v37  ;;  %v17350_v36 = vcombine.high %v1069_v27, %v1073_v28 }
 0x2c1   :  { %13514 = vmatprep.subr.bf16.mxu1 %v17286_v1  ;;  %v17326_v1 = vcombine.high %v1045_v19, %v1049_v48 }
 0x2c2   :  { %13021 = vmatpush1.bf16.msra.mxu0 %v17787_v62  ;;  %v17827_v62 = vcombine.low %v1548_v42, %v1552_v43  ;;  %v1077_v42 = vld [vmem:[#allocation5 + $0x1d08] sm:$0xff] }
 0x2c3   :  { %13022 = vmatprep.subr.bf16.mxu0 %v17796_v7  ;;  %v17836_v7 = vcombine.high %v1556_v49, %v1560_v51  ;;  %v1081_v43 = vld [vmem:[#allocation5 + $0x1d28] sm:$0xff] }
 0x2c4   :  { %13515 = vmatpush1.bf16.msra.mxu1 %v17285_v22  ;;  %v19737_v22 = vld [vmem:[#allocation2 + $0x58] sm:$0xff] }
 0x2c5   :  { %13516 = vmatprep.subr.bf16.mxu1 %v17294_v13  ;;  %v19741_v13 = vcombine.low %v19723_v54, %v19723_v54  ;;  %v17333_v54 = vcombine.low %v1053_v52, %v1057_v9 }
 0x2c6   :  { %13023 = vmatpush1.bf16.msra.mxu0 %v17795_v11  ;;  %v17325_v11 = vcombine.low %v1045_v19, %v1049_v48  ;;  %v17358_v19 = vcombine.high %v1077_v42, %v1081_v43 }
 0x2c7   :  { %13024 = vmatprep.subr.bf16.mxu0 %v17804_v14  ;;  %v17835_v14 = vcombine.low %v1556_v49, %v1560_v51  ;;  %v1085_v49 = vld [vmem:[#allocation5 + $0x1d48] sm:$0xff] }
 0x2c8   :  { %13517 = vmatpush1.bf16.msra.mxu1 %v17293_v20  ;;  %v19745_v20 = vcombine.high %v19737_v22, %v19737_v22  ;;  %v1089_v51 = vld [vmem:[#allocation5 + $0x1d68] sm:$0xff] }
 0x2c9   :  { %13518 = vmatprep.subr.bf16.mxu1 %v17302_v24  ;;  %v1576_v24 = vld [vmem:[#allocation5 + $0x2ca0] sm:$0xff]  ;;  %v17366_v52 = vcombine.high %v1085_v49, %v1089_v51 }
 0x2ca   :  { %13025 = vmatpush1.bf16.msra.mxu0 %v17803_v23  ;;  %v1572_v23 = vld [vmem:[#allocation5 + $0x2c80] sm:$0xff] }
 0x2cb   :  { %13026 = vmatprep.subr.bf16.mxu0 %v17812_v25  ;;  %v17843_v25 = vcombine.low %v1564_v10, %v1568_v38  ;;  %v17852_v26 = vcombine.high %v1572_v23, %v1576_v24  ;;  %v1093_v10 = vld [vmem:[#allocation5 + $0x1d88] sm:$0xff] }
 0x2cc   :  { %13519 = vmatpush1.bf16.msra.mxu1 %v17301_v31  ;;  %v1580_v31 = vld [vmem:[#allocation5 + $0x2cc0] sm:$0xff]  ;;  %v1097_v38 = vld [vmem:[#allocation5 + $0x1da8] sm:$0xff] }
 0x2cd   :  { %13520 = vmatprep.subr.bf16.mxu1 %v17310_v34  ;;  %v17341_v34 = vcombine.low %v1061_v17, %v1065_v18  ;;  %v17374_v17 = vcombine.high %v1093_v10, %v1097_v38 }
 0x2ce   :  { %13027 = vmatpush1.bf16.msra.mxu0 %v17811_v33  ;;  %v1584_v33 = vld [vmem:[#allocation5 + $0x2ce0] sm:$0xff] }
 0x2cf   :  { %13028 = vmatprep.subr.bf16.mxu0 %v17820_v35  ;;  %v17851_v35 = vcombine.low %v1572_v23, %v1576_v24  ;;  %v17860_v37 = vcombine.high %v1580_v31, %v1584_v33  ;;  %v1101_v23 = vld [vmem:[#allocation5 + $0x1dc8] sm:$0xff] }
 0x2d0   :  { %13521 = vmatpush1.bf16.msra.mxu1 %v17309_v0  ;;  %v1588_v0 = vld [vmem:[#allocation5 + $0x2d00] sm:$0xff]  ;;  %v1105_v24 = vld [vmem:[#allocation5 + $0x1de8] sm:$0xff] }
 0x2d1   :  { %13522 = vmatprep.subr.bf16.mxu1 %v17318_v45  ;;  %v17349_v45 = vcombine.low %v1069_v27, %v1073_v28  ;;  %v17382_v27 = vcombine.high %v1101_v23, %v1105_v24 }
 0x2d2   :  { %13029 = vmatpush1.bf16.msra.mxu0 %v17819_v44  ;;  %v1592_v44 = vld [vmem:[#allocation5 + $0x2d20] sm:$0xff] }
 0x2d3   :  { %13030 = vmatprep.subr.bf16.mxu0 %v17828_v46  ;;  %v17859_v46 = vcombine.low %v1580_v31, %v1584_v33  ;;  %v17868_v48 = vcombine.high %v1588_v0, %v1592_v44  ;;  %v1109_v31 = vld [vmem:[#allocation5 + $0x1e08] sm:$0xff] }
 0x2d4   :  { %13523 = vmatpush1.bf16.msra.mxu1 %v17317_v56  ;;  %v1596_v56 = vld [vmem:[#allocation5 + $0x2d40] sm:$0xff]  ;;  %v1113_v33 = vld [vmem:[#allocation5 + $0x1e28] sm:$0xff] }
 0x2d5   :  { %13533 = vmatprep.subr.bf16.mxu1 %v17326_v1  ;;  %v17357_v1 = vcombine.low %v1077_v42, %v1081_v43  ;;  %v17390_v42 = vcombine.high %v1109_v31, %v1113_v33 }
 0x2d6   :  { %13031 = vmatpush1.bf16.msra.mxu0 %v17827_v62  ;;  %v1600_v62 = vld [vmem:[#allocation5 + $0x2d60] sm:$0xff] }
 0x2d7   :  { %13041 = vmatprep.subr.bf16.mxu0 %v17836_v7  ;;  %13525 = vmatmul.mubr.bf16.vlgmr.msra.gmra.mrb[4].mxu1 %v19681_v6  ;;  %v17867_v7 = vcombine.low %v1588_v0, %v1592_v44  ;;  %v17876_v9 = vcombine.high %v1596_v56, %v1600_v62  ;;  %v1117_v0 = vld [vmem:[#allocation5 + $0x1e48] sm:$0xff] }
 0x2d8   :  { %13534 = vmatpush1.bf16.msra.mxu1 %v17325_v11  ;;  %13565 = vmatprep.mubr.bf16.mxu1 %v19685_v12  ;;  %v1604_v11 = vld [vmem:[#allocation5 + $0x2d80] sm:$0xff]  ;;  %v1121_v44 = vld [vmem:[#allocation5 + $0x1e68] sm:$0xff] }
 0x2d9   :  { %13033 = vmatmul.mubr.bf16.vlgmr.msra.gmra.mrb[0].mxu0 %v19741_v13  ;;  %13535 = vmatprep.subr.bf16.mxu1 %v17334_v30  ;;  %v17365_v30 = vcombine.low %v1085_v49, %v1089_v51  ;;  %v17398_v49 = vcombine.high %v1117_v0, %v1121_v44 }
 0x2da   :  { %13042 = vmatpush1.bf16.msra.mxu0 %v17835_v14  ;;  %13073 = vmatprep.mubr.bf16.mxu0 %v19745_v20  ;;  %v1608_v14 = vld [vmem:[#allocation5 + $0x2da0] sm:$0xff] }
 0x2db   :  { %13043 = vmatprep.subr.bf16.mxu0 %v17844_v15  ;;  %v17875_v15 = vcombine.low %v1596_v56, %v1600_v62  ;;  %v17884_v18 = vcombine.high %v1604_v11, %v1608_v14  ;;  %v1125_v56 = vld [vmem:[#allocation5 + $0x1e88] sm:$0xff] }
 0x2dc   :  { %13536 = vmatpush1.bf16.msra.mxu1 %v17333_v54  ;;  %v1612_v54 = vld [vmem:[#allocation5 + $0x2dc0] sm:$0xff]  ;;  %v1129_v62 = vld [vmem:[#allocation5 + $0x1ea8] sm:$0xff] }
 0x2dd   :  { %13537 = vmatprep.subr.bf16.mxu1 %v17342_v53  ;;  %v17373_v53 = vcombine.low %v1093_v10, %v1097_v38  ;;  %v17406_v10 = vcombine.high %v1125_v56, %v1129_v62 }
 0x2de   :  { %13044 = vmatpush1.bf16.msra.mxu0 %v17843_v25  ;;  %v1616_v25 = vld [vmem:[#allocation5 + $0x2de0] sm:$0xff] }
 0x2df   :  { %13045 = vmatprep.subr.bf16.mxu0 %v17852_v26  ;;  %v17883_v26 = vcombine.low %v1604_v11, %v1608_v14  ;;  %v17892_v28 = vcombine.high %v1612_v54, %v1616_v25  ;;  %v1133_v11 = vld [vmem:[#allocation5 + $0x1ec8] sm:$0xff] }
 0x2e0   :  { %13538 = vmatpush1.bf16.msra.mxu1 %v17341_v34  ;;  %v1620_v34 = vld [vmem:[#allocation5 + $0x2e00] sm:$0xff]  ;;  %v1137_v14 = vld [vmem:[#allocation5 + $0x1ee8] sm:$0xff] }
 0x2e1   :  { %13539 = vmatprep.subr.bf16.mxu1 %v17350_v36  ;;  %v17381_v36 = vcombine.low %v1101_v23, %v1105_v24  ;;  %v17414_v23 = vcombine.high %v1133_v11, %v1137_v14 }
 0x2e2   :  { %13046 = vmatpush1.bf16.msra.mxu0 %v17851_v35  ;;  %v1624_v35 = vld [vmem:[#allocation5 + $0x2e20] sm:$0xff] }
 0x2e3   :  { %13047 = vmatprep.subr.bf16.mxu0 %v17860_v37  ;;  %v17891_v37 = vcombine.low %v1612_v54, %v1616_v25  ;;  %v17900_v43 = vcombine.high %v1620_v34, %v1624_v35  ;;  %v1141_v54 = vld [vmem:[#allocation5 + $0x1f08] sm:$0xff] }
 0x2e4   :  { %13540 = vmatpush1.bf16.msra.mxu1 %v17349_v45  ;;  %v1628_v45 = vld [vmem:[#allocation5 + $0x2e40] sm:$0xff]  ;;  %v1145_v25 = vld [vmem:[#allocation5 + $0x1f28] sm:$0xff] }
 0x2e5   :  { %13541 = vmatprep.subr.bf16.mxu1 %v17358_v19  ;;  %v17389_v19 = vcombine.low %v1109_v31, %v1113_v33  ;;  %v17422_v31 = vcombine.high %v1141_v54, %v1145_v25 }
 0x2e6   :  { %13048 = vmatpush1.bf16.msra.mxu0 %v17859_v46  ;;  %v1632_v46 = vld [vmem:[#allocation5 + $0x2e60] sm:$0xff] }
 0x2e7   :  { %13049 = vmatprep.subr.bf16.mxu0 %v17868_v48  ;;  %v17899_v48 = vcombine.low %v1620_v34, %v1624_v35  ;;  %v17908_v51 = vcombine.high %v1628_v45, %v1632_v46  ;;  %v1149_v34 = vld [vmem:[#allocation5 + $0x1f48] sm:$0xff] }
 0x2e8   :  { %13542 = vmatpush1.bf16.msra.mxu1 %v17357_v1  ;;  %v1636_v1 = vld [vmem:[#allocation5 + $0x2e80] sm:$0xff]  ;;  %v1153_v35 = vld [vmem:[#allocation5 + $0x1f68] sm:$0xff] }
 0x2e9   :  { %13543 = vmatprep.subr.bf16.mxu1 %v17366_v52  ;;  %v17397_v52 = vcombine.low %v1117_v0, %v1121_v44  ;;  %v17430_v0 = vcombine.high %v1149_v34, %v1153_v35 }
 0x2ea   :  { %13050 = vmatpush1.bf16.msra.mxu0 %v17867_v7  ;;  %v1640_v7 = vld [vmem:[#allocation5 + $0x2ea0] sm:$0xff] }
 0x2eb   :  { %13051 = vmatprep.subr.bf16.mxu0 %v17876_v9  ;;  %v17907_v9 = vcombine.low %v1628_v45, %v1632_v46  ;;  %v17916_v38 = vcombine.high %v1636_v1, %v1640_v7  ;;  %v1157_v45 = vld [vmem:[#allocation5 + $0x1f88] sm:$0xff] }
 0x2ec   :  { %13544 = vmatpush1.bf16.msra.mxu1 %v17365_v30  ;;  %v1644_v30 = vld [vmem:[#allocation5 + $0x2ec0] sm:$0xff]  ;;  %v1161_v46 = vld [vmem:[#allocation5 + $0x1fa8] sm:$0xff] }
 0x2ed   :  { %13545 = vmatprep.subr.bf16.mxu1 %v17374_v17  ;;  %v17405_v17 = vcombine.low %v1125_v56, %v1129_v62  ;;  %v17438_v56 = vcombine.high %v1157_v45, %v1161_v46 }
 0x2ee   :  { %13052 = vmatpush1.bf16.msra.mxu0 %v17875_v15  ;;  %v1648_v15 = vld [vmem:[#allocation5 + $0x2ee0] sm:$0xff] }
 0x2ef   :  { %13053 = vmatprep.subr.bf16.mxu0 %v17884_v18  ;;  %v17915_v18 = vcombine.low %v1636_v1, %v1640_v7  ;;  %v17924_v24 = vcombine.high %v1644_v30, %v1648_v15  ;;  %v1165_v1 = vld [vmem:[#allocation5 + $0x1fc8] sm:$0xff] }
 0x2f0   :  { %13546 = vmatpush1.bf16.msra.mxu1 %v17373_v53  ;;  %v1652_v53 = vld [vmem:[#allocation5 + $0x2f00] sm:$0xff]  ;;  %v1169_v7 = vld [vmem:[#allocation5 + $0x1fe8] sm:$0xff] }
 0x2f1   :  { %13547 = vmatprep.subr.bf16.mxu1 %v17382_v27  ;;  %v17413_v27 = vcombine.low %v1133_v11, %v1137_v14  ;;  %v17446_v11 = vcombine.high %v1165_v1, %v1169_v7 }
 0x2f2   :  { %13054 = vmatpush1.bf16.msra.mxu0 %v17883_v26  ;;  %v1656_v26 = vld [vmem:[#allocation5 + $0x2f20] sm:$0xff] }
 0x2f3   :  { %13055 = vmatprep.subr.bf16.mxu0 %v17892_v28  ;;  %v17923_v28 = vcombine.low %v1644_v30, %v1648_v15  ;;  %v17932_v33 = vcombine.high %v1652_v53, %v1656_v26  ;;  %v1173_v30 = vld [vmem:[#allocation5 + $0x2008] sm:$0xff] }
 0x2f4   :  { %13548 = vmatpush1.bf16.msra.mxu1 %v17381_v36  ;;  %v1660_v36 = vld [vmem:[#allocation5 + $0x2f40] sm:$0xff]  ;;  %v1177_v15 = vld [vmem:[#allocation5 + $0x2028] sm:$0xff] }
 0x2f5   :  { %13549 = vmatprep.subr.bf16.mxu1 %v17390_v42  ;;  %v17421_v42 = vcombine.low %v1141_v54, %v1145_v25  ;;  %v17454_v54 = vcombine.high %v1173_v30, %v1177_v15 }
 0x2f6   :  { %13056 = vmatpush1.bf16.msra.mxu0 %v17891_v37  ;;  %v1664_v37 = vld [vmem:[#allocation5 + $0x2f60] sm:$0xff] }
 0x2f7   :  { %13057 = vmatprep.subr.bf16.mxu0 %v17900_v43  ;;  %v17931_v43 = vcombine.low %v1652_v53, %v1656_v26  ;;  %v17940_v44 = vcombine.high %v1660_v36, %v1664_v37  ;;  %v1181_v53 = vld [vmem:[#allocation5 + $0x2048] sm:$0xff] }
 0x2f8   :  { %13550 = vmatpush1.bf16.msra.mxu1 %v17389_v19  ;;  %v1668_v19 = vld [vmem:[#allocation5 + $0x2f80] sm:$0xff]  ;;  %v1185_v26 = vld [vmem:[#allocation5 + $0x2068] sm:$0xff] }
 0x2f9   :  { %13551 = vmatprep.subr.bf16.mxu1 %v17398_v49  ;;  %v17429_v49 = vcombine.low %v1149_v34, %v1153_v35  ;;  %v19755_v34 = vcombine.low %v19737_v22, %v19737_v22  ;;  %v17461_v22 = vcombine.low %v1181_v53, %v1185_v26 }
 0x2fa   :  { %13058 = vmatpush1.bf16.msra.mxu0 %v17899_v48  ;;  %v1672_v48 = vld [vmem:[#allocation5 + $0x2fa0] sm:$0xff] }
 0x2fb   :  { %13059 = vmatprep.subr.bf16.mxu0 %v17908_v51  ;;  %v17939_v51 = vcombine.low %v1660_v36, %v1664_v37  ;;  %v17948_v62 = vcombine.high %v1668_v19, %v1672_v48  ;;  %v17462_v36 = vcombine.high %v1181_v53, %v1185_v26 }
 0x2fc   :  { %13552 = vmatpush1.bf16.msra.mxu1 %v17397_v52  ;;  %v1676_v52 = vld [vmem:[#allocation5 + $0x2fc0] sm:$0xff] }
 0x2fd   :  { %13553 = vmatprep.subr.bf16.mxu1 %v17406_v10  ;;  %v17437_v10 = vcombine.low %v1157_v45, %v1161_v46  ;;  %v1704_v45 = vld [vmem:[#allocation5 + $0x30a0] sm:$0xff] }
 0x2fe   :  { %13060 = vmatpush1.bf16.msra.mxu0 %v17907_v9  ;;  %v1680_v9 = vld [vmem:[#allocation5 + $0x2fe0] sm:$0xff] }
 0x2ff   :  { %13061 = vmatprep.subr.bf16.mxu0 %v17916_v38  ;;  %v17947_v38 = vcombine.low %v1668_v19, %v1672_v48  ;;  %v17956_v14 = vcombine.high %v1676_v52, %v1680_v9 }
 0x300   :  { %13554 = vmatpush1.bf16.msra.mxu1 %v17405_v17  ;;  %v1684_v17 = vld [vmem:[#allocation5 + $0x3000] sm:$0xff] }
 0x301   :  { %13555 = vmatprep.subr.bf16.mxu1 %v17414_v23  ;;  %v17445_v23 = vcombine.low %v1165_v1, %v1169_v7 }
 0x302   :  { %13062 = vmatpush1.bf16.msra.mxu0 %v17915_v18  ;;  %v1688_v18 = vld [vmem:[#allocation5 + $0x3020] sm:$0xff] }
 0x303   :  { %13063 = vmatprep.subr.bf16.mxu0 %v17924_v24  ;;  %v17955_v24 = vcombine.low %v1676_v52, %v1680_v9  ;;  %v17964_v25 = vcombine.high %v1684_v17, %v1688_v18  ;;  %v17963_v35 = vcombine.low %v1684_v17, %v1688_v18 }
 0x304   :  { %13556 = vmatpush1.bf16.msra.mxu1 %v17413_v27  ;;  %v1692_v27 = vld [vmem:[#allocation5 + $0x3040] sm:$0xff] }
 0x305   :  { %13557 = vmatprep.subr.bf16.mxu1 %v17422_v31  ;;  %v19751_v31 = vld [vmem:[#allocation2 + $0x60] sm:$0xff] }
 0x306   :  { %13064 = vmatpush1.bf16.msra.mxu0 %v17923_v28  ;;  %v1696_v28 = vld [vmem:[#allocation5 + $0x3060] sm:$0xff] }
 0x307   :  { %13065 = vmatprep.subr.bf16.mxu0 %v17932_v33  ;;  %v17453_v33 = vcombine.low %v1173_v30, %v1177_v15  ;;  %v17972_v37 = vcombine.high %v1692_v27, %v1696_v28  ;;  %v17971_v46 = vcombine.low %v1692_v27, %v1696_v28 }
 0x308   :  { %13558 = vmatpush1.bf16.msra.mxu1 %v17421_v42  ;;  %v1189_v42 = vld [vmem:[#allocation5 + $0x2088] sm:$0xff] }
 0x309   :  { %13559 = vmatprep.subr.bf16.mxu1 %v17430_v0  ;;  %v19759_v0 = vcombine.high %v19751_v31, %v19751_v31 }
 0x30a   :  { %13066 = vmatpush1.bf16.msra.mxu0 %v17931_v43  ;;  %v1193_v43 = vld [vmem:[#allocation5 + $0x20a8] sm:$0xff] }
 0x30b   :  { %13067 = vmatprep.subr.bf16.mxu0 %v17940_v44  ;;  %v1700_v44 = vld [vmem:[#allocation5 + $0x3080] sm:$0xff]  ;;  %v17470_v19 = vcombine.high %v1189_v42, %v1193_v43  ;;  %v17469_v1 = vcombine.low %v1189_v42, %v1193_v43 }
 0x30c   :  { %13560 = vmatpush1.bf16.msra.mxu1 %v17429_v49  ;;  %v17980_v48 = vcombine.high %v1700_v44, %v1704_v45  ;;  %v1197_v49 = vld [vmem:[#allocation5 + $0x20c8] sm:$0xff]  ;;  %v17979_v7 = vcombine.low %v1700_v44, %v1704_v45 }
 0x30d   :  { %13561 = vmatprep.subr.bf16.mxu1 %v17438_v56  ;;  %v1708_v56 = vld [vmem:[#allocation5 + $0x30c0] sm:$0xff] }
 0x30e   :  { %13068 = vmatpush1.bf16.msra.mxu0 %v17939_v51  ;;  %v1201_v51 = vld [vmem:[#allocation5 + $0x20e8] sm:$0xff] }
 0x30f   :  { %13069 = vmatprep.subr.bf16.mxu0 %v17948_v62  ;;  %v1712_v62 = vld [vmem:[#allocation5 + $0x30e0] sm:$0xff]  ;;  %v17478_v52 = vcombine.high %v1197_v49, %v1201_v51  ;;  %v17477_v30 = vcombine.low %v1197_v49, %v1201_v51 }
 0x310   :  { %13562 = vmatpush1.bf16.msra.mxu1 %v17437_v10  ;;  %v17988_v9 = vcombine.high %v1708_v56, %v1712_v62  ;;  %v1205_v10 = vld [vmem:[#allocation5 + $0x2108] sm:$0xff]  ;;  %v17987_v15 = vcombine.low %v1708_v56, %v1712_v62 }
 0x311   :  { %13563 = vmatprep.subr.bf16.mxu1 %v17446_v11  ;;  %v1716_v11 = vld [vmem:[#allocation5 + $0x3100] sm:$0xff] }
 0x312   :  { %13070 = vmatpush1.bf16.msra.mxu0 %v17947_v38  ;;  %v1209_v38 = vld [vmem:[#allocation5 + $0x2128] sm:$0xff] }
 0x313   :  { %13071 = vmatprep.subr.bf16.mxu0 %v17956_v14  ;;  %v1720_v14 = vld [vmem:[#allocation5 + $0x3120] sm:$0xff]  ;;  %v17486_v17 = vcombine.high %v1205_v10, %v1209_v38  ;;  %v17485_v53 = vcombine.low %v1205_v10, %v1209_v38 }
 0x314   :  { %13564 = vmatpush1.bf16.msra.mxu1 %v17445_v23  ;;  %v17996_v18 = vcombine.high %v1716_v11, %v1720_v14  ;;  %v1213_v23 = vld [vmem:[#allocation5 + $0x2148] sm:$0xff]  ;;  %v17995_v26 = vcombine.low %v1716_v11, %v1720_v14 }
 0x315   :  { %13574 = vmatprep.subr.bf16.mxu1 %v17454_v54  ;;  %v1724_v54 = vld [vmem:[#allocation5 + $0x3140] sm:$0xff] }
 0x316   :  { %13072 = vmatpush1.bf16.msra.mxu0 %v17955_v24  ;;  %v1217_v24 = vld [vmem:[#allocation5 + $0x2168] sm:$0xff] }
 0x317   :  { %13082 = vmatprep.subr.bf16.mxu0 %v17964_v25  ;;  %13566 = vmatmul.mubr.bf16.vlgmr.msra.gmra.mrb[4].mxu1 %v19699_v55  ;;  %v1728_v25 = vld [vmem:[#allocation5 + $0x3160] sm:$0xff]  ;;  %v17494_v27 = vcombine.high %v1213_v23, %v1217_v24  ;;  %v17493_v42 = vcombine.low %v1213_v23, %v1217_v24 }
 0x318   :  { %13575 = vmatpush1.bf16.msra.mxu1 %v17453_v33  ;;  %13606 = vmatprep.mubr.bf16.mxu1 %v19703_v5  ;;  %v18004_v28 = vcombine.high %v1724_v54, %v1728_v25  ;;  %v1221_v33 = vld [vmem:[#allocation5 + $0x2188] sm:$0xff]  ;;  %v18003_v43 = vcombine.low %v1724_v54, %v1728_v25 }
 0x319   :  { %13074 = vmatmul.mubr.bf16.vlgmr.msra.gmra.mrb[0].mxu0 %v19755_v34  ;;  %13576 = vmatprep.subr.bf16.mxu1 %v17462_v36  ;;  %v1732_v36 = vld [vmem:[#allocation5 + $0x3180] sm:$0xff] }
 0x31a   :  { %13083 = vmatpush1.bf16.msra.mxu0 %v17963_v35  ;;  %13114 = vmatprep.mubr.bf16.mxu0 %v19759_v0  ;;  %v1225_v35 = vld [vmem:[#allocation5 + $0x21a8] sm:$0xff] }
 0x31b   :  { %13084 = vmatprep.subr.bf16.mxu0 %v17972_v37  ;;  %v1736_v37 = vld [vmem:[#allocation5 + $0x31a0] sm:$0xff]  ;;  %v17502_v44 = vcombine.high %v1221_v33, %v1225_v35  ;;  %v17501_v49 = vcombine.low %v1221_v33, %v1225_v35 }
 0x31c   :  { %13577 = vmatpush1.bf16.msra.mxu1 %v17461_v22  ;;  %v18012_v45 = vcombine.high %v1732_v36, %v1736_v37  ;;  %v1229_v22 = vld [vmem:[#allocation5 + $0x21c8] sm:$0xff]  ;;  %v18011_v51 = vcombine.low %v1732_v36, %v1736_v37 }
 0x31d   :  { %13578 = vmatprep.subr.bf16.mxu1 %v17470_v19  ;;  %v1740_v19 = vld [vmem:[#allocation5 + $0x31c0] sm:$0xff] }
 0x31e   :  { %13085 = vmatpush1.bf16.msra.mxu0 %v17971_v46  ;;  %v1233_v46 = vld [vmem:[#allocation5 + $0x21e8] sm:$0xff] }
 0x31f   :  { %13086 = vmatprep.subr.bf16.mxu0 %v17980_v48  ;;  %v1744_v48 = vld [vmem:[#allocation5 + $0x31e0] sm:$0xff]  ;;  %v17510_v56 = vcombine.high %v1229_v22, %v1233_v46  ;;  %v17509_v10 = vcombine.low %v1229_v22, %v1233_v46 }
 0x320   :  { %13579 = vmatpush1.bf16.msra.mxu1 %v17469_v1  ;;  %v18020_v62 = vcombine.high %v1740_v19, %v1744_v48  ;;  %v1237_v1 = vld [vmem:[#allocation5 + $0x2208] sm:$0xff]  ;;  %v18019_v38 = vcombine.low %v1740_v19, %v1744_v48 }
 0x321   :  { %13580 = vmatprep.subr.bf16.mxu1 %v17478_v52  ;;  %v1748_v52 = vld [vmem:[#allocation5 + $0x3200] sm:$0xff] }
 0x322   :  { %13087 = vmatpush1.bf16.msra.mxu0 %v17979_v7  ;;  %v1241_v7 = vld [vmem:[#allocation5 + $0x2228] sm:$0xff] }
 0x323   :  { %13088 = vmatprep.subr.bf16.mxu0 %v17988_v9  ;;  %v1752_v9 = vld [vmem:[#allocation5 + $0x3220] sm:$0xff]  ;;  %v17518_v11 = vcombine.high %v1237_v1, %v1241_v7  ;;  %v17517_v23 = vcombine.low %v1237_v1, %v1241_v7 }
 0x324   :  { %13581 = vmatpush1.bf16.msra.mxu1 %v17477_v30  ;;  %v18028_v14 = vcombine.high %v1748_v52, %v1752_v9  ;;  %v1245_v30 = vld [vmem:[#allocation5 + $0x2248] sm:$0xff]  ;;  %v18027_v24 = vcombine.low %v1748_v52, %v1752_v9 }
 0x325   :  { %13582 = vmatprep.subr.bf16.mxu1 %v17486_v17  ;;  %v1756_v17 = vld [vmem:[#allocation5 + $0x3240] sm:$0xff] }
 0x326   :  { %13089 = vmatpush1.bf16.msra.mxu0 %v17987_v15  ;;  %v1249_v15 = vld [vmem:[#allocation5 + $0x2268] sm:$0xff] }
 0x327   :  { %13090 = vmatprep.subr.bf16.mxu0 %v17996_v18  ;;  %v1760_v18 = vld [vmem:[#allocation5 + $0x3260] sm:$0xff]  ;;  %v17526_v54 = vcombine.high %v1245_v30, %v1249_v15  ;;  %v17525_v33 = vcombine.low %v1245_v30, %v1249_v15 }
 0x328   :  { %13583 = vmatpush1.bf16.msra.mxu1 %v17485_v53  ;;  %v18036_v25 = vcombine.high %v1756_v17, %v1760_v18  ;;  %v1253_v53 = vld [vmem:[#allocation5 + $0x2288] sm:$0xff]  ;;  %v18035_v35 = vcombine.low %v1756_v17, %v1760_v18 }
 0x329   :  { %13584 = vmatprep.subr.bf16.mxu1 %v17494_v27  ;;  %v1764_v27 = vld [vmem:[#allocation5 + $0x3280] sm:$0xff] }
 0x32a   :  { %13091 = vmatpush1.bf16.msra.mxu0 %v17995_v26  ;;  %v1257_v26 = vld [vmem:[#allocation5 + $0x22a8] sm:$0xff] }
 0x32b   :  { %13092 = vmatprep.subr.bf16.mxu0 %v18004_v28  ;;  %v1768_v28 = vld [vmem:[#allocation5 + $0x32a0] sm:$0xff]  ;;  %v17534_v36 = vcombine.high %v1253_v53, %v1257_v26  ;;  %v17533_v22 = vcombine.low %v1253_v53, %v1257_v26 }
 0x32c   :  { %13585 = vmatpush1.bf16.msra.mxu1 %v17493_v42  ;;  %v18044_v37 = vcombine.high %v1764_v27, %v1768_v28  ;;  %v1261_v42 = vld [vmem:[#allocation5 + $0x22c8] sm:$0xff]  ;;  %v18043_v46 = vcombine.low %v1764_v27, %v1768_v28 }
 0x32d   :  { %13586 = vmatprep.subr.bf16.mxu1 %v17502_v44  ;;  %v1772_v44 = vld [vmem:[#allocation5 + $0x32c0] sm:$0xff] }
 0x32e   :  { %13093 = vmatpush1.bf16.msra.mxu0 %v18003_v43  ;;  %v1265_v43 = vld [vmem:[#allocation5 + $0x22e8] sm:$0xff] }
 0x32f   :  { %13094 = vmatprep.subr.bf16.mxu0 %v18012_v45  ;;  %v1776_v45 = vld [vmem:[#allocation5 + $0x32e0] sm:$0xff]  ;;  %v17542_v19 = vcombine.high %v1261_v42, %v1265_v43  ;;  %v17541_v1 = vcombine.low %v1261_v42, %v1265_v43 }
 0x330   :  { %13587 = vmatpush1.bf16.msra.mxu1 %v17501_v49  ;;  %v18052_v48 = vcombine.high %v1772_v44, %v1776_v45  ;;  %v1269_v49 = vld [vmem:[#allocation5 + $0x2308] sm:$0xff]  ;;  %v18051_v7 = vcombine.low %v1772_v44, %v1776_v45 }
 0x331   :  { %13588 = vmatprep.subr.bf16.mxu1 %v17510_v56  ;;  %v1780_v56 = vld [vmem:[#allocation5 + $0x3300] sm:$0xff] }
 0x332   :  { %13095 = vmatpush1.bf16.msra.mxu0 %v18011_v51  ;;  %v1273_v51 = vld [vmem:[#allocation5 + $0x2328] sm:$0xff] }
 0x333   :  { %13096 = vmatprep.subr.bf16.mxu0 %v18020_v62  ;;  %v1784_v62 = vld [vmem:[#allocation5 + $0x3320] sm:$0xff]  ;;  %v17550_v52 = vcombine.high %v1269_v49, %v1273_v51  ;;  %v17549_v30 = vcombine.low %v1269_v49, %v1273_v51 }
 0x334   :  { %13589 = vmatpush1.bf16.msra.mxu1 %v17509_v10  ;;  %v18060_v9 = vcombine.high %v1780_v56, %v1784_v62  ;;  %v1277_v10 = vld [vmem:[#allocation5 + $0x2348] sm:$0xff]  ;;  %v18059_v15 = vcombine.low %v1780_v56, %v1784_v62 }
 0x335   :  { %13590 = vmatprep.subr.bf16.mxu1 %v17518_v11  ;;  %v1788_v11 = vld [vmem:[#allocation5 + $0x3340] sm:$0xff] }
 0x336   :  { %13097 = vmatpush1.bf16.msra.mxu0 %v18019_v38  ;;  %v1281_v38 = vld [vmem:[#allocation5 + $0x2368] sm:$0xff] }
 0x337   :  { %13098 = vmatprep.subr.bf16.mxu0 %v18028_v14  ;;  %v1792_v14 = vld [vmem:[#allocation5 + $0x3360] sm:$0xff]  ;;  %v17558_v17 = vcombine.high %v1277_v10, %v1281_v38  ;;  %v17557_v53 = vcombine.low %v1277_v10, %v1281_v38  ;;  %v19765_v10 = vld [vmem:[#allocation2 + $0x68] sm:$0xff] }
 0x338   :  { %13591 = vmatpush1.bf16.msra.mxu1 %v17517_v23  ;;  %v18068_v18 = vcombine.high %v1788_v11, %v1792_v14  ;;  %v1285_v23 = vld [vmem:[#allocation5 + $0x2388] sm:$0xff]  ;;  %v18067_v26 = vcombine.low %v1788_v11, %v1792_v14  ;;  %v19769_v11 = vcombine.low %v19751_v31, %v19751_v31 }
 0x339   :  { %13592 = vmatprep.subr.bf16.mxu1 %v17526_v54  ;;  %v1796_v54 = vld [vmem:[#allocation5 + $0x3380] sm:$0xff] }
 0x33a   :  { %13099 = vmatpush1.bf16.msra.mxu0 %v18027_v24  ;;  %v1289_v24 = vld [vmem:[#allocation5 + $0x23a8] sm:$0xff] }
 0x33b   :  { %13100 = vmatprep.subr.bf16.mxu0 %v18036_v25  ;;  %v1800_v25 = vld [vmem:[#allocation5 + $0x33a0] sm:$0xff]  ;;  %v17566_v27 = vcombine.high %v1285_v23, %v1289_v24  ;;  %v17565_v42 = vcombine.low %v1285_v23, %v1289_v24  ;;  %v19773_v23 = vcombine.high %v19765_v10, %v19765_v10 }
 0x33c   :  { %13593 = vmatpush1.bf16.msra.mxu1 %v17525_v33  ;;  %v18076_v28 = vcombine.high %v1796_v54, %v1800_v25  ;;  %v1293_v33 = vld [vmem:[#allocation5 + $0x23c8] sm:$0xff]  ;;  %v18075_v43 = vcombine.low %v1796_v54, %v1800_v25  ;;  %v1828_v24 = vld [vmem:[#allocation5 + $0x3480] sm:$0xff] }
 0x33d   :  { %13594 = vmatprep.subr.bf16.mxu1 %v17534_v36  ;;  %v1804_v36 = vld [vmem:[#allocation5 + $0x33c0] sm:$0xff] }
 0x33e   :  { %13101 = vmatpush1.bf16.msra.mxu0 %v18035_v35  ;;  %v1297_v35 = vld [vmem:[#allocation5 + $0x23e8] sm:$0xff]  ;;  %v1832_v54 = vld [vmem:[#allocation5 + $0x34a0] sm:$0xff] }
 0x33f   :  { %13102 = vmatprep.subr.bf16.mxu0 %v18044_v37  ;;  %v1808_v37 = vld [vmem:[#allocation5 + $0x33e0] sm:$0xff]  ;;  %v17574_v44 = vcombine.high %v1293_v33, %v1297_v35  ;;  %v17573_v49 = vcombine.low %v1293_v33, %v1297_v35 }
 0x340   :  { %13595 = vmatpush1.bf16.msra.mxu1 %v17533_v22  ;;  %v18084_v45 = vcombine.high %v1804_v36, %v1808_v37  ;;  %v1301_v22 = vld [vmem:[#allocation5 + $0x2408] sm:$0xff]  ;;  %v18083_v51 = vcombine.low %v1804_v36, %v1808_v37  ;;  %v1836_v33 = vld [vmem:[#allocation5 + $0x34c0] sm:$0xff]  ;;  %v18107_v37 = vcombine.low %v1828_v24, %v1832_v54 }
 0x341   :  { %13596 = vmatprep.subr.bf16.mxu1 %v17542_v19  ;;  %v1812_v19 = vld [vmem:[#allocation5 + $0x3400] sm:$0xff] }
 0x342   :  { %13103 = vmatpush1.bf16.msra.mxu0 %v18043_v46  ;;  %v1305_v46 = vld [vmem:[#allocation5 + $0x2428] sm:$0xff]  ;;  %v1840_v35 = vld [vmem:[#allocation5 + $0x34e0] sm:$0xff] }
 0x343   :  { %13104 = vmatprep.subr.bf16.mxu0 %v18052_v48  ;;  %v1816_v48 = vld [vmem:[#allocation5 + $0x3420] sm:$0xff]  ;;  %v17582_v56 = vcombine.high %v1301_v22, %v1305_v46  ;;  %v17581_v38 = vcombine.low %v1301_v22, %v1305_v46 }
 0x344   :  { %13597 = vmatpush1.bf16.msra.mxu1 %v17541_v1  ;;  %v18092_v62 = vcombine.high %v1812_v19, %v1816_v48  ;;  %v1309_v1 = vld [vmem:[#allocation5 + $0x2448] sm:$0xff]  ;;  %v18091_v14 = vcombine.low %v1812_v19, %v1816_v48  ;;  %v1844_v22 = vld [vmem:[#allocation5 + $0x3500] sm:$0xff]  ;;  %v18115_v48 = vcombine.low %v1836_v33, %v1840_v35 }
 0x345   :  { %13598 = vmatprep.subr.bf16.mxu1 %v17550_v52  ;;  %v1820_v52 = vld [vmem:[#allocation5 + $0x3440] sm:$0xff] }
 0x346   :  { %13105 = vmatpush1.bf16.msra.mxu0 %v18051_v7  ;;  %v1313_v7 = vld [vmem:[#allocation5 + $0x2468] sm:$0xff]  ;;  %v1848_v46 = vld [vmem:[#allocation5 + $0x3520] sm:$0xff] }
 0x347   :  { %13106 = vmatprep.subr.bf16.mxu0 %v18060_v9  ;;  %v1824_v9 = vld [vmem:[#allocation5 + $0x3460] sm:$0xff]  ;;  %v17589_v31 = vcombine.low %v1309_v1, %v1313_v7 }
 0x348   :  { %13599 = vmatpush1.bf16.msra.mxu1 %v17549_v30  ;;  %v17590_v30 = vcombine.high %v1309_v1, %v1313_v7  ;;  %v18099_v25 = vcombine.low %v1820_v52, %v1824_v9  ;;  %v1852_v1 = vld [vmem:[#allocation5 + $0x3540] sm:$0xff] }
 0x349   :  { %13600 = vmatprep.subr.bf16.mxu1 %v17558_v17  ;;  %v1317_v17 = vld [vmem:[#allocation5 + $0x2488] sm:$0xff]  ;;  %v1856_v7 = vld [vmem:[#allocation5 + $0x3560] sm:$0xff] }
 0x34a   :  { %13107 = vmatpush1.bf16.msra.mxu0 %v18059_v15  ;;  %v18100_v15 = vcombine.high %v1820_v52, %v1824_v9  ;;  %v18123_v9 = vcombine.low %v1844_v22, %v1848_v46 }
 0x34b   :  { %13108 = vmatprep.subr.bf16.mxu0 %v18068_v18  ;;  %v1321_v18 = vld [vmem:[#allocation5 + $0x24a8] sm:$0xff] }
 0x34c   :  { %13601 = vmatpush1.bf16.msra.mxu1 %v17557_v53  ;;  %v17598_v53 = vcombine.high %v1317_v17, %v1321_v18  ;;  %v17597_v36 = vcombine.low %v1317_v17, %v1321_v18  ;;  %v1860_v17 = vld [vmem:[#allocation5 + $0x3580] sm:$0xff] }
 0x34d   :  { %13602 = vmatprep.subr.bf16.mxu1 %v17566_v27  ;;  %v1325_v27 = vld [vmem:[#allocation5 + $0x24c8] sm:$0xff]  ;;  %v1864_v18 = vld [vmem:[#allocation5 + $0x35a0] sm:$0xff] }
 0x34e   :  { %13109 = vmatpush1.bf16.msra.mxu0 %v18067_v26  ;;  %v18108_v26 = vcombine.high %v1828_v24, %v1832_v54  ;;  %v18131_v54 = vcombine.low %v1852_v1, %v1856_v7 }
 0x34f   :  { %13110 = vmatprep.subr.bf16.mxu0 %v18076_v28  ;;  %v1329_v28 = vld [vmem:[#allocation5 + $0x24e8] sm:$0xff] }
 0x350   :  { %13603 = vmatpush1.bf16.msra.mxu1 %v17565_v42  ;;  %v17606_v42 = vcombine.high %v1325_v27, %v1329_v28  ;;  %v17605_v19 = vcombine.low %v1325_v27, %v1329_v28  ;;  %v1868_v27 = vld [vmem:[#allocation5 + $0x35c0] sm:$0xff] }
 0x351   :  { %13604 = vmatprep.subr.bf16.mxu1 %v17574_v44  ;;  %v1333_v44 = vld [vmem:[#allocation5 + $0x2508] sm:$0xff]  ;;  %v1872_v28 = vld [vmem:[#allocation5 + $0x35e0] sm:$0xff] }
 0x352   :  { %13111 = vmatpush1.bf16.msra.mxu0 %v18075_v43  ;;  %v18116_v43 = vcombine.high %v1836_v33, %v1840_v35  ;;  %v18139_v35 = vcombine.low %v1860_v17, %v1864_v18 }
 0x353   :  { %13112 = vmatprep.subr.bf16.mxu0 %v18084_v45  ;;  %v1337_v45 = vld [vmem:[#allocation5 + $0x2528] sm:$0xff] }
 0x354   :  { %13605 = vmatpush1.bf16.msra.mxu1 %v17573_v49  ;;  %v17614_v49 = vcombine.high %v1333_v44, %v1337_v45  ;;  %v17613_v52 = vcombine.low %v1333_v44, %v1337_v45  ;;  %v1876_v44 = vld [vmem:[#allocation5 + $0x3600] sm:$0xff] }
 0x355   :  { %13615 = vmatprep.subr.bf16.mxu1 %v17582_v56  ;;  %v1341_v56 = vld [vmem:[#allocation5 + $0x2548] sm:$0xff]  ;;  %v1880_v45 = vld [vmem:[#allocation5 + $0x3620] sm:$0xff] }
 0x356   :  { %13113 = vmatpush1.bf16.msra.mxu0 %v18083_v51  ;;  %v18124_v51 = vcombine.high %v1844_v22, %v1848_v46  ;;  %v18147_v46 = vcombine.low %v1868_v27, %v1872_v28 }
 0x357   :  { %13123 = vmatprep.subr.bf16.mxu0 %v18092_v62  ;;  %13607 = vmatmul.mubr.bf16.vlgmr.msra.gmra.mrb[4].mxu1 %v19713_v50  ;;  %v1345_v62 = vld [vmem:[#allocation5 + $0x2568] sm:$0xff] }
 0x358   :  { %13616 = vmatpush1.bf16.msra.mxu1 %v17581_v38  ;;  %13647 = vmatprep.mubr.bf16.mxu1 %v19717_v63  ;;  %v17622_v38 = vcombine.high %v1341_v56, %v1345_v62  ;;  %v17621_v24 = vcombine.low %v1341_v56, %v1345_v62  ;;  %v1884_v56 = vld [vmem:[#allocation5 + $0x3640] sm:$0xff] }
 0x359   :  { %13115 = vmatmul.mubr.bf16.vlgmr.msra.gmra.mrb[0].mxu0 %v19769_v11  ;;  %13617 = vmatprep.subr.bf16.mxu1 %v17590_v30  ;;  %v1349_v30 = vld [vmem:[#allocation5 + $0x2588] sm:$0xff]  ;;  %v1888_v62 = vld [vmem:[#allocation5 + $0x3660] sm:$0xff] }
 0x35a   :  { %13124 = vmatpush1.bf16.msra.mxu0 %v18091_v14  ;;  %13155 = vmatprep.mubr.bf16.mxu0 %v19773_v23  ;;  %v18132_v14 = vcombine.high %v1852_v1, %v1856_v7  ;;  %v18155_v7 = vcombine.low %v1876_v44, %v1880_v45 }
 0x35b   :  { %13125 = vmatprep.subr.bf16.mxu0 %v18100_v15  ;;  %v1353_v15 = vld [vmem:[#allocation5 + $0x25a8] sm:$0xff] }
 0x35c   :  { %13618 = vmatpush1.bf16.msra.mxu1 %v17589_v31  ;;  %v17630_v31 = vcombine.high %v1349_v30, %v1353_v15  ;;  %v17629_v33 = vcombine.low %v1349_v30, %v1353_v15  ;;  %v1892_v30 = vld [vmem:[#allocation5 + $0x3680] sm:$0xff] }
 0x35d   :  { %13619 = vmatprep.subr.bf16.mxu1 %v17598_v53  ;;  %v1357_v53 = vld [vmem:[#allocation5 + $0x25c8] sm:$0xff]  ;;  %v1896_v15 = vld [vmem:[#allocation5 + $0x36a0] sm:$0xff] }
 0x35e   :  { %13126 = vmatpush1.bf16.msra.mxu0 %v18099_v25  ;;  %v18140_v25 = vcombine.high %v1860_v17, %v1864_v18  ;;  %v18163_v18 = vcombine.low %v1884_v56, %v1888_v62 }
 0x35f   :  { %13127 = vmatprep.subr.bf16.mxu0 %v18108_v26  ;;  %v1361_v26 = vld [vmem:[#allocation5 + $0x25e8] sm:$0xff] }
 0x360   :  { %13620 = vmatpush1.bf16.msra.mxu1 %v17597_v36  ;;  %v17638_v36 = vcombine.high %v1357_v53, %v1361_v26  ;;  %v17637_v22 = vcombine.low %v1357_v53, %v1361_v26  ;;  %v1900_v53 = vld [vmem:[#allocation5 + $0x36c0] sm:$0xff] }
 0x361   :  { %13621 = vmatprep.subr.bf16.mxu1 %v17606_v42  ;;  %v1365_v42 = vld [vmem:[#allocation5 + $0x2608] sm:$0xff]  ;;  %v1904_v26 = vld [vmem:[#allocation5 + $0x36e0] sm:$0xff] }
 0x362   :  { %13128 = vmatpush1.bf16.msra.mxu0 %v18107_v37  ;;  %v18148_v37 = vcombine.high %v1868_v27, %v1872_v28  ;;  %v18171_v28 = vcombine.low %v1892_v30, %v1896_v15 }
 0x363   :  { %13129 = vmatprep.subr.bf16.mxu0 %v18116_v43  ;;  %v1369_v43 = vld [vmem:[#allocation5 + $0x2628] sm:$0xff] }
 0x364   :  { %13622 = vmatpush1.bf16.msra.mxu1 %v17605_v19  ;;  %v17646_v19 = vcombine.high %v1365_v42, %v1369_v43  ;;  %v17645_v1 = vcombine.low %v1365_v42, %v1369_v43  ;;  %v1908_v42 = vld [vmem:[#allocation5 + $0x3700] sm:$0xff] }
 0x365   :  { %13623 = vmatprep.subr.bf16.mxu1 %v17614_v49  ;;  %v1373_v49 = vld [vmem:[#allocation5 + $0x2648] sm:$0xff]  ;;  %v1912_v43 = vld [vmem:[#allocation5 + $0x3720] sm:$0xff] }
 0x366   :  { %13130 = vmatpush1.bf16.msra.mxu0 %v18115_v48  ;;  %v18156_v48 = vcombine.high %v1876_v44, %v1880_v45  ;;  %v18179_v45 = vcombine.low %v1900_v53, %v1904_v26 }
 0x367   :  { %13131 = vmatprep.subr.bf16.mxu0 %v18124_v51  ;;  %v1377_v51 = vld [vmem:[#allocation5 + $0x2668] sm:$0xff] }
 0x368   :  { %13624 = vmatpush1.bf16.msra.mxu1 %v17613_v52  ;;  %v17654_v52 = vcombine.high %v1373_v49, %v1377_v51  ;;  %v17653_v17 = vcombine.low %v1373_v49, %v1377_v51  ;;  %v1916_v49 = vld [vmem:[#allocation5 + $0x3740] sm:$0xff] }
 0x369   :  { %13625 = vmatprep.subr.bf16.mxu1 %v17622_v38  ;;  %v1381_v38 = vld [vmem:[#allocation5 + $0x2688] sm:$0xff]  ;;  %v1920_v51 = vld [vmem:[#allocation5 + $0x3760] sm:$0xff] }
 0x36a   :  { %13132 = vmatpush1.bf16.msra.mxu0 %v18123_v9  ;;  %v18164_v9 = vcombine.high %v1884_v56, %v1888_v62  ;;  %v18187_v62 = vcombine.low %v1908_v42, %v1912_v43 }
 0x36b   :  { %13133 = vmatprep.subr.bf16.mxu0 %v18132_v14  ;;  %v1385_v14 = vld [vmem:[#allocation5 + $0x26a8] sm:$0xff] }
 0x36c   :  { %13626 = vmatpush1.bf16.msra.mxu1 %v17621_v24  ;;  %v17662_v24 = vcombine.high %v1381_v38, %v1385_v14  ;;  %v17661_v27 = vcombine.low %v1381_v38, %v1385_v14  ;;  %v1924_v38 = vld [vmem:[#allocation5 + $0x3780] sm:$0xff] }
 0x36d   :  { %13627 = vmatprep.subr.bf16.mxu1 %v17630_v31  ;;  %v1389_v31 = vld [vmem:[#allocation5 + $0x26c8] sm:$0xff]  ;;  %v1928_v14 = vld [vmem:[#allocation5 + $0x37a0] sm:$0xff] }
 0x36e   :  { %13134 = vmatpush1.bf16.msra.mxu0 %v18131_v54  ;;  %v18172_v54 = vcombine.high %v1892_v30, %v1896_v15  ;;  %v18195_v15 = vcombine.low %v1916_v49, %v1920_v51 }
 0x36f   :  { %13135 = vmatprep.subr.bf16.mxu0 %v18140_v25  ;;  %v1393_v25 = vld [vmem:[#allocation5 + $0x26e8] sm:$0xff] }
 0x370   :  { %13628 = vmatpush1.bf16.msra.mxu1 %v17629_v33  ;;  %v17670_v33 = vcombine.high %v1389_v31, %v1393_v25  ;;  %v17669_v44 = vcombine.low %v1389_v31, %v1393_v25  ;;  %v1932_v31 = vld [vmem:[#allocation5 + $0x37c0] sm:$0xff] }
 0x371   :  { %13629 = vmatprep.subr.bf16.mxu1 %v17638_v36  ;;  %v1397_v36 = vld [vmem:[#allocation5 + $0x2708] sm:$0xff]  ;;  %v1936_v25 = vld [vmem:[#allocation5 + $0x37e0] sm:$0xff] }
 0x372   :  { %13136 = vmatpush1.bf16.msra.mxu0 %v18139_v35  ;;  %v18180_v35 = vcombine.high %v1900_v53, %v1904_v26  ;;  %v18203_v26 = vcombine.low %v1924_v38, %v1928_v14 }
 0x373   :  { %13137 = vmatprep.subr.bf16.mxu0 %v18148_v37  ;;  %v1401_v37 = vld [vmem:[#allocation5 + $0x2728] sm:$0xff] }
 0x374   :  { %13630 = vmatpush1.bf16.msra.mxu1 %v17637_v22  ;;  %v17678_v22 = vcombine.high %v1397_v36, %v1401_v37  ;;  %v17677_v56 = vcombine.low %v1397_v36, %v1401_v37  ;;  %v1940_v36 = vld [vmem:[#allocation5 + $0x3800] sm:$0xff] }
 0x375   :  { %13631 = vmatprep.subr.bf16.mxu1 %v17646_v19  ;;  %v1405_v19 = vld [vmem:[#allocation5 + $0x2748] sm:$0xff]  ;;  %v1944_v37 = vld [vmem:[#allocation5 + $0x3820] sm:$0xff] }
 0x376   :  { %13138 = vmatpush1.bf16.msra.mxu0 %v18147_v46  ;;  %v18188_v46 = vcombine.high %v1908_v42, %v1912_v43  ;;  %v18211_v43 = vcombine.low %v1932_v31, %v1936_v25 }
 0x377   :  { %13139 = vmatprep.subr.bf16.mxu0 %v18156_v48  ;;  %v1409_v48 = vld [vmem:[#allocation5 + $0x2768] sm:$0xff] }
 0x378   :  { %13632 = vmatpush1.bf16.msra.mxu1 %v17645_v1  ;;  %v17686_v1 = vcombine.high %v1405_v19, %v1409_v48  ;;  %v17685_v30 = vcombine.low %v1405_v19, %v1409_v48  ;;  %v1948_v19 = vld [vmem:[#allocation5 + $0x3840] sm:$0xff] }
 0x379   :  { %13633 = vmatprep.subr.bf16.mxu1 %v17654_v52  ;;  %v1413_v52 = vld [vmem:[#allocation5 + $0x2788] sm:$0xff]  ;;  %v1952_v48 = vld [vmem:[#allocation5 + $0x3860] sm:$0xff] }
 0x37a   :  { %13140 = vmatpush1.bf16.msra.mxu0 %v18155_v7  ;;  %v18196_v7 = vcombine.high %v1916_v49, %v1920_v51  ;;  %v19779_v49 = vld [vmem:[#allocation2 + $0x70] sm:$0xff] }
 0x37b   :  { %13141 = vmatprep.subr.bf16.mxu0 %v18164_v9  ;;  %v1417_v9 = vld [vmem:[#allocation5 + $0x27a8] sm:$0xff] }
 0x37c   :  { %13634 = vmatpush1.bf16.msra.mxu1 %v17653_v17  ;;  %v17694_v17 = vcombine.high %v1413_v52, %v1417_v9  ;;  %v17693_v53 = vcombine.low %v1413_v52, %v1417_v9  ;;  %v1445_v52 = vld [vmem:[#allocation5 + $0x2888] sm:$0xff] }
 0x37d   :  { %13635 = vmatprep.subr.bf16.mxu1 %v17662_v24  ;;  %v1421_v24 = vld [vmem:[#allocation5 + $0x27c8] sm:$0xff] }
 0x37e   :  { %13142 = vmatpush1.bf16.msra.mxu0 %v18163_v18  ;;  %v18204_v18 = vcombine.high %v1924_v38, %v1928_v14  ;;  %v1449_v9 = vld [vmem:[#allocation5 + $0x28a8] sm:$0xff]  ;;  %v19787_v38 = vcombine.high %v19779_v49, %v19779_v49  ;;  %v1956_v14 = vld [vmem:[#allocation5 + $0x3880] sm:$0xff] }
 0x37f   :  { %13143 = vmatprep.subr.bf16.mxu0 %v18172_v54  ;;  %v1425_v54 = vld [vmem:[#allocation5 + $0x27e8] sm:$0xff] }
 0x380   :  { %13636 = vmatpush1.bf16.msra.mxu1 %v17661_v27  ;;  %v17702_v27 = vcombine.high %v1421_v24, %v1425_v54  ;;  %v17701_v42 = vcombine.low %v1421_v24, %v1425_v54  ;;  %v1453_v24 = vld [vmem:[#allocation5 + $0x28c8] sm:$0xff] }
 0x381   :  { %13637 = vmatprep.subr.bf16.mxu1 %v17670_v33  ;;  %v1429_v33 = vld [vmem:[#allocation5 + $0x2808] sm:$0xff] }
 0x382   :  { %13144 = vmatpush1.bf16.msra.mxu0 %v18171_v28  ;;  %v18212_v28 = vcombine.high %v1932_v31, %v1936_v25  ;;  %v1457_v54 = vld [vmem:[#allocation5 + $0x28e8] sm:$0xff]  ;;  %v1964_v31 = vld [vmem:[#allocation5 + $0x38c0] sm:$0xff] }
 0x383   :  { %13145 = vmatprep.subr.bf16.mxu0 %v18180_v35  ;;  %v1433_v35 = vld [vmem:[#allocation5 + $0x2828] sm:$0xff]  ;;  %v1968_v25 = vld [vmem:[#allocation5 + $0x38e0] sm:$0xff] }
 0x384   :  { %13638 = vmatpush1.bf16.msra.mxu1 %v17669_v44  ;;  %v17710_v44 = vcombine.high %v1429_v33, %v1433_v35  ;;  %v17709_v51 = vcombine.low %v1429_v33, %v1433_v35  ;;  %v1461_v33 = vld [vmem:[#allocation5 + $0x2908] sm:$0xff] }
 0x385   :  { %13639 = vmatprep.subr.bf16.mxu1 %v17678_v22  ;;  %v1437_v22 = vld [vmem:[#allocation5 + $0x2848] sm:$0xff] }
 0x386   :  { %13146 = vmatpush1.bf16.msra.mxu0 %v18179_v45  ;;  %v18220_v45 = vcombine.high %v1940_v36, %v1944_v37  ;;  %v1465_v35 = vld [vmem:[#allocation5 + $0x2928] sm:$0xff] }
 0x387   :  { %13147 = vmatprep.subr.bf16.mxu0 %v18188_v46  ;;  %v1441_v46 = vld [vmem:[#allocation5 + $0x2868] sm:$0xff] }
 0x388   :  { %13640 = vmatpush1.bf16.msra.mxu1 %v17677_v56  ;;  %v19783_v56 = vcombine.low %v19765_v10, %v19765_v10  ;;  %v17717_v10 = vcombine.low %v1437_v22, %v1441_v46 }
 0x389   :  { %13641 = vmatprep.subr.bf16.mxu1 %v17686_v1  ;;  %v17718_v1 = vcombine.high %v1437_v22, %v1441_v46  ;;  %v1469_v22 = vld [vmem:[#allocation5 + $0x2948] sm:$0xff] }
 0x38a   :  { %13148 = vmatpush1.bf16.msra.mxu0 %v18187_v62  ;;  %v18219_v62 = vcombine.low %v1940_v36, %v1944_v37  ;;  %v1972_v36 = vld [vmem:[#allocation5 + $0x3900] sm:$0xff]  ;;  %v1473_v46 = vld [vmem:[#allocation5 + $0x2968] sm:$0xff] }
 0x38b   :  { %13149 = vmatprep.subr.bf16.mxu0 %v18196_v7  ;;  %v18228_v7 = vcombine.high %v1948_v19, %v1952_v48  ;;  %v1976_v37 = vld [vmem:[#allocation5 + $0x3920] sm:$0xff] }
 0x38c   :  { %13642 = vmatpush1.bf16.msra.mxu1 %v17685_v30  ;;  %v1960_v30 = vld [vmem:[#allocation5 + $0x38a0] sm:$0xff] }
 0x38d   :  { %13643 = vmatprep.subr.bf16.mxu1 %v17694_v17  ;;  %v17726_v17 = vcombine.high %v1445_v52, %v1449_v9 }
 0x38e   :  { %13150 = vmatpush1.bf16.msra.mxu0 %v18195_v15  ;;  %v18227_v15 = vcombine.low %v1948_v19, %v1952_v48  ;;  %v1980_v19 = vld [vmem:[#allocation5 + $0x3940] sm:$0xff] }
 0x38f   :  { %13151 = vmatprep.subr.bf16.mxu0 %v18204_v18  ;;  %v18236_v18 = vcombine.high %v1956_v14, %v1960_v30  ;;  %v1984_v48 = vld [vmem:[#allocation5 + $0x3960] sm:$0xff] }
 0x390   :  { %13644 = vmatpush1.bf16.msra.mxu1 %v17693_v53  ;;  %v17725_v53 = vcombine.low %v1445_v52, %v1449_v9  ;;  %v1477_v52 = vld [vmem:[#allocation5 + $0x2988] sm:$0xff] }
 0x391   :  { %13645 = vmatprep.subr.bf16.mxu1 %v17702_v27  ;;  %v17734_v27 = vcombine.high %v1453_v24, %v1457_v54  ;;  %v1481_v9 = vld [vmem:[#allocation5 + $0x29a8] sm:$0xff] }
 0x392   :  { %13152 = vmatpush1.bf16.msra.mxu0 %v18203_v26  ;;  %v18235_v26 = vcombine.low %v1956_v14, %v1960_v30  ;;  %v1988_v14 = vld [vmem:[#allocation5 + $0x3980] sm:$0xff] }
 0x393   :  { %13153 = vmatprep.subr.bf16.mxu0 %v18212_v28  ;;  %v18244_v28 = vcombine.high %v1964_v31, %v1968_v25  ;;  %v1992_v30 = vld [vmem:[#allocation5 + $0x39a0] sm:$0xff] }
 0x394   :  { %13646 = vmatpush1.bf16.msra.mxu1 %v17701_v42  ;;  %v17733_v42 = vcombine.low %v1453_v24, %v1457_v54  ;;  %v1485_v24 = vld [vmem:[#allocation5 + $0x29c8] sm:$0xff] }
 0x395   :  { %13656 = vmatprep.subr.bf16.mxu1 %v17710_v44  ;;  %v17742_v44 = vcombine.high %v1461_v33, %v1465_v35  ;;  %v1489_v54 = vld [vmem:[#allocation5 + $0x29e8] sm:$0xff] }
 0x396   :  { %13154 = vmatpush1.bf16.msra.mxu0 %v18211_v43  ;;  %v18243_v43 = vcombine.low %v1964_v31, %v1968_v25  ;;  %v1996_v31 = vld [vmem:[#allocation5 + $0x39c0] sm:$0xff] }
 0x397   :  { %13164 = vmatprep.subr.bf16.mxu0 %v18220_v45  ;;  %13648 = vmatmul.mubr.bf16.vlgmr.msra.gmra.mrb[4].mxu1 %v19727_v59  ;;  %v18252_v45 = vcombine.high %v1972_v36, %v1976_v37  ;;  %v2000_v25 = vld [vmem:[#allocation5 + $0x39e0] sm:$0xff] }
 0x398   :  { %13657 = vmatpush1.bf16.msra.mxu1 %v17709_v51  ;;  %13688 = vmatprep.mubr.bf16.mxu1 %v19731_v4  ;;  %v17741_v51 = vcombine.low %v1461_v33, %v1465_v35  ;;  %v1493_v33 = vld [vmem:[#allocation5 + $0x2a08] sm:$0xff] }
 0x399   :  { %13156 = vmatmul.mubr.bf16.vlgmr.msra.gmra.mrb[0].mxu0 %v19783_v56  ;;  %13658 = vmatprep.subr.bf16.mxu1 %v17718_v1  ;;  %v17750_v1 = vcombine.high %v1469_v22, %v1473_v46  ;;  %v1497_v35 = vld [vmem:[#allocation5 + $0x2a28] sm:$0xff] }
 0x39a   :  { %13165 = vmatpush1.bf16.msra.mxu0 %v18219_v62  ;;  %13196 = vmatprep.mubr.bf16.mxu0 %v19787_v38  ;;  %v18251_v62 = vcombine.low %v1972_v36, %v1976_v37  ;;  %v2004_v36 = vld [vmem:[#allocation5 + $0x3a00] sm:$0xff] }
 0x39b   :  { %13166 = vmatprep.subr.bf16.mxu0 %v18228_v7  ;;  %v18260_v7 = vcombine.high %v1980_v19, %v1984_v48  ;;  %v2008_v37 = vld [vmem:[#allocation5 + $0x3a20] sm:$0xff] }
 0x39c   :  { %13659 = vmatpush1.bf16.msra.mxu1 %v17717_v10  ;;  %v17749_v10 = vcombine.low %v1469_v22, %v1473_v46  ;;  %v1501_v22 = vld [vmem:[#allocation5 + $0x2a48] sm:$0xff] }
 0x39d   :  { %13660 = vmatprep.subr.bf16.mxu1 %v17726_v17  ;;  %v17758_v17 = vcombine.high %v1477_v52, %v1481_v9  ;;  %v1505_v46 = vld [vmem:[#allocation5 + $0x2a68] sm:$0xff] }
 0x39e   :  { %13167 = vmatpush1.bf16.msra.mxu0 %v18227_v15  ;;  %v18259_v15 = vcombine.low %v1980_v19, %v1984_v48  ;;  %v2012_v19 = vld [vmem:[#allocation5 + $0x3a40] sm:$0xff] }
 0x39f   :  { %13168 = vmatprep.subr.bf16.mxu0 %v18236_v18  ;;  %v18268_v18 = vcombine.high %v1988_v14, %v1992_v30  ;;  %v2016_v48 = vld [vmem:[#allocation5 + $0x3a60] sm:$0xff] }
 0x3a0   :  { %13661 = vmatpush1.bf16.msra.mxu1 %v17725_v53  ;;  %v17757_v53 = vcombine.low %v1477_v52, %v1481_v9  ;;  %v1509_v52 = vld [vmem:[#allocation5 + $0x2a88] sm:$0xff] }
 0x3a1   :  { %13662 = vmatprep.subr.bf16.mxu1 %v17734_v27  ;;  %v17766_v27 = vcombine.high %v1485_v24, %v1489_v54  ;;  %v1513_v9 = vld [vmem:[#allocation5 + $0x2aa8] sm:$0xff] }
 0x3a2   :  { %13169 = vmatpush1.bf16.msra.mxu0 %v18235_v26  ;;  %v18267_v26 = vcombine.low %v1988_v14, %v1992_v30  ;;  %v2020_v14 = vld [vmem:[#allocation5 + $0x3a80] sm:$0xff] }
 0x3a3   :  { %13170 = vmatprep.subr.bf16.mxu0 %v18244_v28  ;;  %v18276_v28 = vcombine.high %v1996_v31, %v2000_v25  ;;  %v2024_v30 = vld [vmem:[#allocation5 + $0x3aa0] sm:$0xff] }
 0x3a4   :  { %13663 = vmatpush1.bf16.msra.mxu1 %v17733_v42  ;;  %v17765_v42 = vcombine.low %v1485_v24, %v1489_v54  ;;  %v1517_v24 = vld [vmem:[#allocation5 + $0x2ac8] sm:$0xff] }
 0x3a5   :  { %13664 = vmatprep.subr.bf16.mxu1 %v17742_v44  ;;  %v17774_v44 = vcombine.high %v1493_v33, %v1497_v35  ;;  %v1521_v54 = vld [vmem:[#allocation5 + $0x2ae8] sm:$0xff] }
 0x3a6   :  { %13171 = vmatpush1.bf16.msra.mxu0 %v18243_v43  ;;  %v18275_v43 = vcombine.low %v1996_v31, %v2000_v25  ;;  %v2028_v31 = vld [vmem:[#allocation5 + $0x3ac0] sm:$0xff] }
 0x3a7   :  { %13172 = vmatprep.subr.bf16.mxu0 %v18252_v45  ;;  %v18284_v45 = vcombine.high %v2004_v36, %v2008_v37  ;;  %v2032_v25 = vld [vmem:[#allocation5 + $0x3ae0] sm:$0xff] }
 0x3a8   :  { %13665 = vmatpush1.bf16.msra.mxu1 %v17741_v51  ;;  %v17773_v51 = vcombine.low %v1493_v33, %v1497_v35  ;;  %v1525_v33 = vld [vmem:[#allocation5 + $0x2b08] sm:$0xff] }
 0x3a9   :  { %13666 = vmatprep.subr.bf16.mxu1 %v17750_v1  ;;  %v17782_v1 = vcombine.high %v1501_v22, %v1505_v46  ;;  %v1529_v35 = vld [vmem:[#allocation5 + $0x2b28] sm:$0xff] }
 0x3aa   :  { %13173 = vmatpush1.bf16.msra.mxu0 %v18251_v62  ;;  %v18283_v62 = vcombine.low %v2004_v36, %v2008_v37  ;;  %v2036_v36 = vld [vmem:[#allocation5 + $0x3b00] sm:$0xff] }
 0x3ab   :  { %13174 = vmatprep.subr.bf16.mxu0 %v18260_v7  ;;  %v18292_v7 = vcombine.high %v2012_v19, %v2016_v48  ;;  %v2040_v37 = vld [vmem:[#allocation5 + $0x3b20] sm:$0xff] }
 0x3ac   :  { %13667 = vmatpush1.bf16.msra.mxu1 %v17749_v10  ;;  %v17781_v10 = vcombine.low %v1501_v22, %v1505_v46  ;;  %v1533_v22 = vld [vmem:[#allocation5 + $0x2b48] sm:$0xff] }
 0x3ad   :  { %13668 = vmatprep.subr.bf16.mxu1 %v17758_v17  ;;  %v17790_v17 = vcombine.high %v1509_v52, %v1513_v9  ;;  %v1537_v46 = vld [vmem:[#allocation5 + $0x2b68] sm:$0xff] }
 0x3ae   :  { %13175 = vmatpush1.bf16.msra.mxu0 %v18259_v15  ;;  %v18291_v15 = vcombine.low %v2012_v19, %v2016_v48  ;;  %v2044_v19 = vld [vmem:[#allocation5 + $0x3b40] sm:$0xff] }
 0x3af   :  { %13176 = vmatprep.subr.bf16.mxu0 %v18268_v18  ;;  %v18300_v18 = vcombine.high %v2020_v14, %v2024_v30  ;;  %v2048_v48 = vld [vmem:[#allocation5 + $0x3b60] sm:$0xff] }
 0x3b0   :  { %13669 = vmatpush1.bf16.msra.mxu1 %v17757_v53  ;;  %v17789_v53 = vcombine.low %v1509_v52, %v1513_v9  ;;  %v1541_v52 = vld [vmem:[#allocation5 + $0x2b88] sm:$0xff] }
 0x3b1   :  { %13670 = vmatprep.subr.bf16.mxu1 %v17766_v27  ;;  %v17798_v27 = vcombine.high %v1517_v24, %v1521_v54  ;;  %v1545_v9 = vld [vmem:[#allocation5 + $0x2ba8] sm:$0xff] }
 0x3b2   :  { %13177 = vmatpush1.bf16.msra.mxu0 %v18267_v26  ;;  %v18299_v26 = vcombine.low %v2020_v14, %v2024_v30  ;;  %v2052_v14 = vld [vmem:[#allocation5 + $0x3b80] sm:$0xff] }
 0x3b3   :  { %13178 = vmatprep.subr.bf16.mxu0 %v18276_v28  ;;  %v18308_v28 = vcombine.high %v2028_v31, %v2032_v25  ;;  %v2056_v30 = vld [vmem:[#allocation5 + $0x3ba0] sm:$0xff] }
 0x3b4   :  { %13671 = vmatpush1.bf16.msra.mxu1 %v17765_v42  ;;  %v17797_v42 = vcombine.low %v1517_v24, %v1521_v54  ;;  %v1549_v24 = vld [vmem:[#allocation5 + $0x2bc8] sm:$0xff] }
 0x3b5   :  { %13672 = vmatprep.subr.bf16.mxu1 %v17774_v44  ;;  %v17806_v44 = vcombine.high %v1525_v33, %v1529_v35  ;;  %v1553_v54 = vld [vmem:[#allocation5 + $0x2be8] sm:$0xff] }
 0x3b6   :  { %13179 = vmatpush1.bf16.msra.mxu0 %v18275_v43  ;;  %v18307_v43 = vcombine.low %v2028_v31, %v2032_v25  ;;  %v2060_v31 = vld [vmem:[#allocation5 + $0x3bc0] sm:$0xff] }
 0x3b7   :  { %13180 = vmatprep.subr.bf16.mxu0 %v18284_v45  ;;  %v18316_v45 = vcombine.high %v2036_v36, %v2040_v37  ;;  %v2064_v25 = vld [vmem:[#allocation5 + $0x3be0] sm:$0xff] }
 0x3b8   :  { %13673 = vmatpush1.bf16.msra.mxu1 %v17773_v51  ;;  %v17805_v51 = vcombine.low %v1525_v33, %v1529_v35  ;;  %v1557_v33 = vld [vmem:[#allocation5 + $0x2c08] sm:$0xff] }
 0x3b9   :  { %13674 = vmatprep.subr.bf16.mxu1 %v17782_v1  ;;  %v17814_v1 = vcombine.high %v1533_v22, %v1537_v46  ;;  %v1561_v35 = vld [vmem:[#allocation5 + $0x2c28] sm:$0xff] }
 0x3ba   :  { %13181 = vmatpush1.bf16.msra.mxu0 %v18283_v62  ;;  %v18315_v62 = vcombine.low %v2036_v36, %v2040_v37  ;;  %v2068_v36 = vld [vmem:[#allocation5 + $0x3c00] sm:$0xff] }
 0x3bb   :  { %13182 = vmatprep.subr.bf16.mxu0 %v18292_v7  ;;  %v18324_v7 = vcombine.high %v2044_v19, %v2048_v48  ;;  %v2072_v37 = vld [vmem:[#allocation5 + $0x3c20] sm:$0xff] }
 0x3bc   :  { %13675 = vmatpush1.bf16.msra.mxu1 %v17781_v10  ;;  %v17813_v10 = vcombine.low %v1533_v22, %v1537_v46  ;;  %v1565_v22 = vld [vmem:[#allocation5 + $0x2c48] sm:$0xff] }
 0x3bd   :  { %13676 = vmatprep.subr.bf16.mxu1 %v17790_v17  ;;  %v17822_v17 = vcombine.high %v1541_v52, %v1545_v9  ;;  %v1569_v46 = vld [vmem:[#allocation5 + $0x2c68] sm:$0xff] }
 0x3be   :  { %13183 = vmatpush1.bf16.msra.mxu0 %v18291_v15  ;;  %v18323_v15 = vcombine.low %v2044_v19, %v2048_v48  ;;  %v2076_v19 = vld [vmem:[#allocation5 + $0x3c40] sm:$0xff] }
 0x3bf   :  { %13184 = vmatprep.subr.bf16.mxu0 %v18300_v18  ;;  %v18332_v18 = vcombine.high %v2052_v14, %v2056_v30  ;;  %v2080_v48 = vld [vmem:[#allocation5 + $0x3c60] sm:$0xff] }
 0x3c0   :  { %13677 = vmatpush1.bf16.msra.mxu1 %v17789_v53  ;;  %v17821_v53 = vcombine.low %v1541_v52, %v1545_v9  ;;  %v17846_v52 = vcombine.high %v1565_v22, %v1569_v46  ;;  %v18356_v9 = vcombine.high %v2076_v19, %v2080_v48 }
 0x3c1   :  { %13678 = vmatprep.subr.bf16.mxu1 %v17798_v27  ;;  %v17830_v27 = vcombine.high %v1549_v24, %v1553_v54 }
 0x3c2   :  { %13185 = vmatpush1.bf16.msra.mxu0 %v18299_v26  ;;  %v18331_v26 = vcombine.low %v2052_v14, %v2056_v30  ;;  %v1573_v14 = vld [vmem:[#allocation5 + $0x2c88] sm:$0xff] }
 0x3c3   :  { %13186 = vmatprep.subr.bf16.mxu0 %v18308_v28  ;;  %v18340_v28 = vcombine.high %v2060_v31, %v2064_v25  ;;  %v1577_v30 = vld [vmem:[#allocation5 + $0x2ca8] sm:$0xff] }
 0x3c4   :  { %13679 = vmatpush1.bf16.msra.mxu1 %v17797_v42  ;;  %v17829_v42 = vcombine.low %v1549_v24, %v1553_v54  ;;  %v17854_v24 = vcombine.high %v1573_v14, %v1577_v30 }
 0x3c5   :  { %13680 = vmatprep.subr.bf16.mxu1 %v17806_v44  ;;  %v17838_v44 = vcombine.high %v1557_v33, %v1561_v35 }
 0x3c6   :  { %13187 = vmatpush1.bf16.msra.mxu0 %v18307_v43  ;;  %v18339_v43 = vcombine.low %v2060_v31, %v2064_v25  ;;  %v1581_v31 = vld [vmem:[#allocation5 + $0x2cc8] sm:$0xff] }
 0x3c7   :  { %13188 = vmatprep.subr.bf16.mxu0 %v18316_v45  ;;  %v18348_v45 = vcombine.high %v2068_v36, %v2072_v37  ;;  %v1585_v25 = vld [vmem:[#allocation5 + $0x2ce8] sm:$0xff] }
 0x3c8   :  { %13681 = vmatpush1.bf16.msra.mxu1 %v17805_v51  ;;  %v19793_v51 = vld [vmem:[#allocation2 + $0x78] sm:$0xff] }
 0x3c9   :  { %13682 = vmatprep.subr.bf16.mxu1 %v17814_v1  ;;  %v19797_v1 = vcombine.low %v19779_v49, %v19779_v49  ;;  %v17845_v49 = vcombine.low %v1565_v22, %v1569_v46 }
 0x3ca   :  { %13189 = vmatpush1.bf16.msra.mxu0 %v18315_v62  ;;  %v17837_v62 = vcombine.low %v1557_v33, %v1561_v35  ;;  %v17862_v33 = vcombine.high %v1581_v31, %v1585_v25 }
 0x3cb   :  { %13190 = vmatprep.subr.bf16.mxu0 %v18324_v7  ;;  %v18347_v7 = vcombine.low %v2068_v36, %v2072_v37  ;;  %v1589_v36 = vld [vmem:[#allocation5 + $0x2d08] sm:$0xff] }
 0x3cc   :  { %13683 = vmatpush1.bf16.msra.mxu1 %v17813_v10  ;;  %v19801_v10 = vcombine.high %v19793_v51, %v19793_v51  ;;  %v1593_v37 = vld [vmem:[#allocation5 + $0x2d28] sm:$0xff] }
 0x3cd   :  { %13684 = vmatprep.subr.bf16.mxu1 %v17822_v17  ;;  %v2088_v17 = vld [vmem:[#allocation5 + $0x3ca0] sm:$0xff]  ;;  %v17870_v22 = vcombine.high %v1589_v36, %v1593_v37 }
 0x3ce   :  { %13191 = vmatpush1.bf16.msra.mxu0 %v18323_v15  ;;  %v2084_v15 = vld [vmem:[#allocation5 + $0x3c80] sm:$0xff] }
 0x3cf   :  { %13192 = vmatprep.subr.bf16.mxu0 %v18332_v18  ;;  %v18355_v18 = vcombine.low %v2076_v19, %v2080_v48  ;;  %v18364_v54 = vcombine.high %v2084_v15, %v2088_v17  ;;  %v1597_v19 = vld [vmem:[#allocation5 + $0x2d48] sm:$0xff] }
 0x3d0   :  { %13685 = vmatpush1.bf16.msra.mxu1 %v17821_v53  ;;  %v2092_v53 = vld [vmem:[#allocation5 + $0x3cc0] sm:$0xff]  ;;  %v1601_v48 = vld [vmem:[#allocation5 + $0x2d68] sm:$0xff] }
 0x3d1   :  { %13686 = vmatprep.subr.bf16.mxu1 %v17830_v27  ;;  %v17853_v27 = vcombine.low %v1573_v14, %v1577_v30  ;;  %v17878_v14 = vcombine.high %v1597_v19, %v1601_v48 }
 0x3d2   :  { %13193 = vmatpush1.bf16.msra.mxu0 %v18331_v26  ;;  %v2096_v26 = vld [vmem:[#allocation5 + $0x3ce0] sm:$0xff] }
 0x3d3   :  { %13194 = vmatprep.subr.bf16.mxu0 %v18340_v28  ;;  %v18363_v28 = vcombine.low %v2084_v15, %v2088_v17  ;;  %v18372_v35 = vcombine.high %v2092_v53, %v2096_v26  ;;  %v1605_v15 = vld [vmem:[#allocation5 + $0x2d88] sm:$0xff] }
 0x3d4   :  { %13687 = vmatpush1.bf16.msra.mxu1 %v17829_v42  ;;  %v2100_v42 = vld [vmem:[#allocation5 + $0x3d00] sm:$0xff]  ;;  %v1609_v17 = vld [vmem:[#allocation5 + $0x2da8] sm:$0xff] }
 0x3d5   :  { %13697 = vmatprep.subr.bf16.mxu1 %v17838_v44  ;;  %v17861_v44 = vcombine.low %v1581_v31, %v1585_v25  ;;  %v17886_v31 = vcombine.high %v1605_v15, %v1609_v17 }
 0x3d6   :  { %13195 = vmatpush1.bf16.msra.mxu0 %v18339_v43  ;;  %v2104_v43 = vld [vmem:[#allocation5 + $0x3d20] sm:$0xff] }
 0x3d7   :  { %13205 = vmatprep.subr.bf16.mxu0 %v18348_v45  ;;  %13689 = vmatmul.mubr.bf16.vlgmr.msra.gmra.mrb[4].mxu1 %v19741_v13  ;;  %v18371_v45 = vcombine.low %v2092_v53, %v2096_v26  ;;  %v18380_v46 = vcombine.high %v2100_v42, %v2104_v43  ;;  %v1613_v53 = vld [vmem:[#allocation5 + $0x2dc8] sm:$0xff] }
 0x3d8   :  { %13698 = vmatpush1.bf16.msra.mxu1 %v17837_v62  ;;  %13729 = vmatprep.mubr.bf16.mxu1 %v19745_v20  ;;  %v2108_v62 = vld [vmem:[#allocation5 + $0x3d40] sm:$0xff]  ;;  %v1617_v26 = vld [vmem:[#allocation5 + $0x2de8] sm:$0xff] }
 0x3d9   :  { %13197 = vmatmul.mubr.bf16.vlgmr.msra.gmra.mrb[0].mxu0 %v19797_v1  ;;  %13699 = vmatprep.subr.bf16.mxu1 %v17846_v52  ;;  %v17869_v52 = vcombine.low %v1589_v36, %v1593_v37  ;;  %v17894_v36 = vcombine.high %v1613_v53, %v1617_v26 }
 0x3da   :  { %13206 = vmatpush1.bf16.msra.mxu0 %v18347_v7  ;;  %13237 = vmatprep.mubr.bf16.mxu0 %v19801_v10  ;;  %v2112_v7 = vld [vmem:[#allocation5 + $0x3d60] sm:$0xff] }
 0x3db   :  { %13207 = vmatprep.subr.bf16.mxu0 %v18356_v9  ;;  %v18379_v9 = vcombine.low %v2100_v42, %v2104_v43  ;;  %v18388_v30 = vcombine.high %v2108_v62, %v2112_v7  ;;  %v1621_v42 = vld [vmem:[#allocation5 + $0x2e08] sm:$0xff] }
 0x3dc   :  { %13700 = vmatpush1.bf16.msra.mxu1 %v17845_v49  ;;  %v2116_v49 = vld [vmem:[#allocation5 + $0x3d80] sm:$0xff]  ;;  %v1625_v43 = vld [vmem:[#allocation5 + $0x2e28] sm:$0xff] }
 0x3dd   :  { %13701 = vmatprep.subr.bf16.mxu1 %v17854_v24  ;;  %v17877_v24 = vcombine.low %v1597_v19, %v1601_v48  ;;  %v17902_v19 = vcombine.high %v1621_v42, %v1625_v43 }
 0x3de   :  { %13208 = vmatpush1.bf16.msra.mxu0 %v18355_v18  ;;  %v2120_v18 = vld [vmem:[#allocation5 + $0x3da0] sm:$0xff] }
 0x3df   :  { %13209 = vmatprep.subr.bf16.mxu0 %v18364_v54  ;;  %v18387_v54 = vcombine.low %v2108_v62, %v2112_v7  ;;  %v18396_v25 = vcombine.high %v2116_v49, %v2120_v18  ;;  %v1629_v62 = vld [vmem:[#allocation5 + $0x2e48] sm:$0xff] }
 0x3e0   :  { %13702 = vmatpush1.bf16.msra.mxu1 %v17853_v27  ;;  %v2124_v27 = vld [vmem:[#allocation5 + $0x3dc0] sm:$0xff]  ;;  %v1633_v7 = vld [vmem:[#allocation5 + $0x2e68] sm:$0xff] }
 0x3e1   :  { %13703 = vmatprep.subr.bf16.mxu1 %v17862_v33  ;;  %v17885_v33 = vcombine.low %v1605_v15, %v1609_v17  ;;  %v17910_v15 = vcombine.high %v1629_v62, %v1633_v7 }
 0x3e2   :  { %13210 = vmatpush1.bf16.msra.mxu0 %v18363_v28  ;;  %v2128_v28 = vld [vmem:[#allocation5 + $0x3de0] sm:$0xff] }
 0x3e3   :  { %13211 = vmatprep.subr.bf16.mxu0 %v18372_v35  ;;  %v18395_v35 = vcombine.low %v2116_v49, %v2120_v18  ;;  %v18404_v37 = vcombine.high %v2124_v27, %v2128_v28  ;;  %v1637_v49 = vld [vmem:[#allocation5 + $0x2e88] sm:$0xff] }
 0x3e4   :  { %13704 = vmatpush1.bf16.msra.mxu1 %v17861_v44  ;;  %v2132_v44 = vld [vmem:[#allocation5 + $0x3e00] sm:$0xff]  ;;  %v1641_v18 = vld [vmem:[#allocation5 + $0x2ea8] sm:$0xff] }
 0x3e5   :  { %13705 = vmatprep.subr.bf16.mxu1 %v17870_v22  ;;  %v17893_v22 = vcombine.low %v1613_v53, %v1617_v26  ;;  %v17918_v53 = vcombine.high %v1637_v49, %v1641_v18 }
 0x3e6   :  { %13212 = vmatpush1.bf16.msra.mxu0 %v18371_v45  ;;  %v2136_v45 = vld [vmem:[#allocation5 + $0x3e20] sm:$0xff] }
 0x3e7   :  { %13213 = vmatprep.subr.bf16.mxu0 %v18380_v46  ;;  %v18403_v46 = vcombine.low %v2124_v27, %v2128_v28  ;;  %v18412_v48 = vcombine.high %v2132_v44, %v2136_v45  ;;  %v1645_v27 = vld [vmem:[#allocation5 + $0x2ec8] sm:$0xff] }
 0x3e8   :  { %13706 = vmatpush1.bf16.msra.mxu1 %v17869_v52  ;;  %v2140_v52 = vld [vmem:[#allocation5 + $0x3e40] sm:$0xff]  ;;  %v1649_v28 = vld [vmem:[#allocation5 + $0x2ee8] sm:$0xff] }
 0x3e9   :  { %13707 = vmatprep.subr.bf16.mxu1 %v17878_v14  ;;  %v17901_v14 = vcombine.low %v1621_v42, %v1625_v43  ;;  %v17926_v42 = vcombine.high %v1645_v27, %v1649_v28 }
 0x3ea   :  { %13214 = vmatpush1.bf16.msra.mxu0 %v18379_v9  ;;  %v2144_v9 = vld [vmem:[#allocation5 + $0x3e60] sm:$0xff] }
 0x3eb   :  { %13215 = vmatprep.subr.bf16.mxu0 %v18388_v30  ;;  %v18411_v30 = vcombine.low %v2132_v44, %v2136_v45  ;;  %v18420_v17 = vcombine.high %v2140_v52, %v2144_v9  ;;  %v1653_v44 = vld [vmem:[#allocation5 + $0x2f08] sm:$0xff] }
 0x3ec   :  { %13708 = vmatpush1.bf16.msra.mxu1 %v17877_v24  ;;  %v2148_v24 = vld [vmem:[#allocation5 + $0x3e80] sm:$0xff]  ;;  %v1657_v45 = vld [vmem:[#allocation5 + $0x2f28] sm:$0xff] }
 0x3ed   :  { %13709 = vmatprep.subr.bf16.mxu1 %v17886_v31  ;;  %v17909_v31 = vcombine.low %v1629_v62, %v1633_v7  ;;  %v17934_v62 = vcombine.high %v1653_v44, %v1657_v45 }
 0x3ee   :  { %13216 = vmatpush1.bf16.msra.mxu0 %v18387_v54  ;;  %v2152_v54 = vld [vmem:[#allocation5 + $0x3ea0] sm:$0xff] }
 0x3ef   :  { %13217 = vmatprep.subr.bf16.mxu0 %v18396_v25  ;;  %v18419_v25 = vcombine.low %v2140_v52, %v2144_v9  ;;  %v18428_v26 = vcombine.high %v2148_v24, %v2152_v54  ;;  %v1661_v52 = vld [vmem:[#allocation5 + $0x2f48] sm:$0xff] }
 0x3f0   :  { %13710 = vmatpush1.bf16.msra.mxu1 %v17885_v33  ;;  %v2156_v33 = vld [vmem:[#allocation5 + $0x3ec0] sm:$0xff]  ;;  %v1665_v9 = vld [vmem:[#allocation5 + $0x2f68] sm:$0xff] }
 0x3f1   :  { %13711 = vmatprep.subr.bf16.mxu1 %v17894_v36  ;;  %v17917_v36 = vcombine.low %v1637_v49, %v1641_v18  ;;  %v17942_v49 = vcombine.high %v1661_v52, %v1665_v9 }
 0x3f2   :  { %13218 = vmatpush1.bf16.msra.mxu0 %v18395_v35  ;;  %v2160_v35 = vld [vmem:[#allocation5 + $0x3ee0] sm:$0xff] }
 0x3f3   :  { %13219 = vmatprep.subr.bf16.mxu0 %v18404_v37  ;;  %v18427_v37 = vcombine.low %v2148_v24, %v2152_v54  ;;  %v18436_v43 = vcombine.high %v2156_v33, %v2160_v35  ;;  %v1669_v24 = vld [vmem:[#allocation5 + $0x2f88] sm:$0xff] }
 0x3f4   :  { %13712 = vmatpush1.bf16.msra.mxu1 %v17893_v22  ;;  %v2164_v22 = vld [vmem:[#allocation5 + $0x3f00] sm:$0xff]  ;;  %v1673_v54 = vld [vmem:[#allocation5 + $0x2fa8] sm:$0xff] }
 0x3f5   :  { %13713 = vmatprep.subr.bf16.mxu1 %v17902_v19  ;;  %v17925_v19 = vcombine.low %v1645_v27, %v1649_v28  ;;  %v17950_v27 = vcombine.high %v1669_v24, %v1673_v54 }
 0x3f6   :  { %13220 = vmatpush1.bf16.msra.mxu0 %v18403_v46  ;;  %v2168_v46 = vld [vmem:[#allocation5 + $0x3f20] sm:$0xff] }
 0x3f7   :  { %13221 = vmatprep.subr.bf16.mxu0 %v18412_v48  ;;  %v18435_v48 = vcombine.low %v2156_v33, %v2160_v35  ;;  %v18444_v7 = vcombine.high %v2164_v22, %v2168_v46  ;;  %v1677_v33 = vld [vmem:[#allocation5 + $0x2fc8] sm:$0xff] }
 0x3f8   :  { %13714 = vmatpush1.bf16.msra.mxu1 %v17901_v14  ;;  %v2172_v14 = vld [vmem:[#allocation5 + $0x3f40] sm:$0xff]  ;;  %v1681_v35 = vld [vmem:[#allocation5 + $0x2fe8] sm:$0xff] }
 0x3f9   :  { %13715 = vmatprep.subr.bf16.mxu1 %v17910_v15  ;;  %v17933_v15 = vcombine.low %v1653_v44, %v1657_v45  ;;  %v17958_v44 = vcombine.high %v1677_v33, %v1681_v35 }
 0x3fa   :  { %13222 = vmatpush1.bf16.msra.mxu0 %v18411_v30  ;;  %v2176_v30 = vld [vmem:[#allocation5 + $0x3f60] sm:$0xff] }
 0x3fb   :  { %13223 = vmatprep.subr.bf16.mxu0 %v18420_v17  ;;  %v18443_v17 = vcombine.low %v2164_v22, %v2168_v46  ;;  %v18452_v18 = vcombine.high %v2172_v14, %v2176_v30  ;;  %v1685_v22 = vld [vmem:[#allocation5 + $0x3008] sm:$0xff] }
 0x3fc   :  { %13716 = vmatpush1.bf16.msra.mxu1 %v17909_v31  ;;  %v2180_v31 = vld [vmem:[#allocation5 + $0x3f80] sm:$0xff]  ;;  %v1689_v46 = vld [vmem:[#allocation5 + $0x3028] sm:$0xff] }
 0x3fd   :  { %13717 = vmatprep.subr.bf16.mxu1 %v17918_v53  ;;  %v17941_v53 = vcombine.low %v1661_v52, %v1665_v9  ;;  %v17966_v52 = vcombine.high %v1685_v22, %v1689_v46 }
 0x3fe   :  { %13224 = vmatpush1.bf16.msra.mxu0 %v18419_v25  ;;  %v2184_v25 = vld [vmem:[#allocation5 + $0x3fa0] sm:$0xff] }
 0x3ff   :  { %13225 = vmatprep.subr.bf16.mxu0 %v18428_v26  ;;  %v18451_v26 = vcombine.low %v2172_v14, %v2176_v30  ;;  %v18460_v28 = vcombine.high %v2180_v31, %v2184_v25  ;;  %v1693_v14 = vld [vmem:[#allocation5 + $0x3048] sm:$0xff] }
 0x400   :  { %13718 = vmatpush1.bf16.msra.mxu1 %v17917_v36  ;;  %v2188_v36 = vld [vmem:[#allocation5 + $0x3fc0] sm:$0xff]  ;;  %v1697_v30 = vld [vmem:[#allocation5 + $0x3068] sm:$0xff] }
 0x401   :  { %13719 = vmatprep.subr.bf16.mxu1 %v17926_v42  ;;  %v17949_v42 = vcombine.low %v1669_v24, %v1673_v54  ;;  %v17974_v54 = vcombine.high %v1693_v14, %v1697_v30 }
 0x402   :  { %13226 = vmatpush1.bf16.msra.mxu0 %v18427_v37  ;;  %v2192_v37 = vld [vmem:[#allocation5 + $0x3fe0] sm:$0xff] }
 0x403   :  { %13227 = vmatprep.subr.bf16.mxu0 %v18436_v43  ;;  %v18459_v43 = vcombine.low %v2180_v31, %v2184_v25  ;;  %v18468_v45 = vcombine.high %v2188_v36, %v2192_v37  ;;  %v1701_v25 = vld [vmem:[#allocation5 + $0x3088] sm:$0xff] }
 0x404   :  { %13720 = vmatpush1.bf16.msra.mxu1 %v17925_v19  ;;  %v150_v19 = vld [vmem:[#allocation5 + $0x10] sm:$0xff] }
 0x405   :  { %13721 = vmatprep.subr.bf16.mxu1 %v17934_v62  ;;  %v17957_v62 = vcombine.low %v1677_v33, %v1681_v35 }
 0x406   :  { %13228 = vmatpush1.bf16.msra.mxu0 %v18435_v48  ;;  %v154_v48 = vld [vmem:[#allocation5 + $0x30] sm:$0xff] }
 0x407   :  { %13229 = vmatprep.subr.bf16.mxu0 %v18444_v7  ;;  %v18467_v7 = vcombine.low %v2188_v36, %v2192_v37  ;;  %v16432_v9 = vcombine.high %v150_v19, %v154_v48  ;;  %v16431_v24 = vcombine.low %v150_v19, %v154_v48  ;;  %v1709_v36 = vld [vmem:[#allocation5 + $0x30c8] sm:$0xff] }
 0x408   :  { %13722 = vmatpush1.bf16.msra.mxu1 %v17933_v15  ;;  %v158_v15 = vld [vmem:[#allocation5 + $0x50] sm:$0xff]  ;;  %v1713_v37 = vld [vmem:[#allocation5 + $0x30e8] sm:$0xff] }
 0x409   :  { %13723 = vmatprep.subr.bf16.mxu1 %v17942_v49  ;;  %v19809_v49 = vcombine.low %v19793_v51, %v19793_v51  ;;  %v1717_v19 = vld [vmem:[#allocation5 + $0x3108] sm:$0xff] }
 0x40a   :  { %13230 = vmatpush1.bf16.msra.mxu0 %v18443_v17  ;;  %v162_v17 = vld [vmem:[#allocation5 + $0x70] sm:$0xff]  ;;  %v1721_v48 = vld [vmem:[#allocation5 + $0x3128] sm:$0xff] }
 0x40b   :  { %13231 = vmatprep.subr.bf16.mxu0 %v18452_v18  ;;  %v17965_v18 = vcombine.low %v1685_v22, %v1689_v46  ;;  %v16440_v31 = vcombine.high %v158_v15, %v162_v17  ;;  %v16439_v51 = vcombine.low %v158_v15, %v162_v17  ;;  %v17990_v22 = vcombine.high %v1709_v36, %v1713_v37  ;;  %v1725_v15 = vld [vmem:[#allocation5 + $0x3148] sm:$0xff] }
 0x40c   :  { %13724 = vmatpush1.bf16.msra.mxu1 %v17941_v53  ;;  %v1705_v53 = vld [vmem:[#allocation5 + $0x30a8] sm:$0xff] }
 0x40d   :  { %13725 = vmatprep.subr.bf16.mxu1 %v17950_v27  ;;  %v170_v27 = vld [vmem:[#allocation5 + $0xb0] sm:$0xff]  ;;  %v17982_v33 = vcombine.high %v1701_v25, %v1705_v53  ;;  %v1729_v17 = vld [vmem:[#allocation5 + $0x3168] sm:$0xff] }
 0x40e   :  { %13232 = vmatpush1.bf16.msra.mxu0 %v18451_v26  ;;  %v166_v26 = vld [vmem:[#allocation5 + $0x90] sm:$0xff] }
 0x40f   :  { %13233 = vmatprep.subr.bf16.mxu0 %v18460_v28  ;;  %v17973_v28 = vcombine.low %v1693_v14, %v1697_v30  ;;  %v16448_v35 = vcombine.high %v166_v26, %v170_v27  ;;  %v17998_v14 = vcombine.high %v1717_v19, %v1721_v48 }
 0x410   :  { %13726 = vmatpush1.bf16.msra.mxu1 %v17949_v42  ;;  %v174_v42 = vld [vmem:[#allocation5 + $0xd0] sm:$0xff] }
 0x411   :  { %13727 = vmatprep.subr.bf16.mxu1 %v17958_v44  ;;  %v17981_v44 = vcombine.low %v1701_v25, %v1705_v53  ;;  %v18006_v25 = vcombine.high %v1725_v15, %v1729_v17 }
 0x412   :  { %13234 = vmatpush1.bf16.msra.mxu0 %v18459_v43  ;;  %v178_v43 = vld [vmem:[#allocation5 + $0xf0] sm:$0xff] }
 0x413   :  { %13235 = vmatprep.subr.bf16.mxu0 %v18468_v45  ;;  %v16447_v45 = vcombine.low %v166_v26, %v170_v27  ;;  %v16456_v46 = vcombine.high %v174_v42, %v178_v43  ;;  %v1733_v26 = vld [vmem:[#allocation5 + $0x3188] sm:$0xff] }
 0x414   :  { %13728 = vmatpush1.bf16.msra.mxu1 %v17957_v62  ;;  %v182_v62 = vld [vmem:[#allocation5 + $0x110] sm:$0xff]  ;;  %v1737_v27 = vld [vmem:[#allocation5 + $0x31a8] sm:$0xff] }
 0x415   :  { %13738 = vmatprep.subr.bf16.mxu1 %v17966_v52  ;;  %v17989_v52 = vcombine.low %v1709_v36, %v1713_v37  ;;  %v18014_v36 = vcombine.high %v1733_v26, %v1737_v27 }
 0x416   :  { %13236 = vmatpush1.bf16.msra.mxu0 %v18467_v7  ;;  %v186_v7 = vld [vmem:[#allocation5 + $0x130] sm:$0xff] }
 0x417   :  { %13902 = vmatprep.subr.bf16.mxu0 %v16432_v9  ;;  %13730 = vmatmul.mubr.bf16.vlgmr.msra.gmra.mrb[4].mxu1 %v19755_v34  ;;  %v16455_v9 = vcombine.low %v174_v42, %v178_v43  ;;  %v16464_v30 = vcombine.high %v182_v62, %v186_v7  ;;  %v1741_v42 = vld [vmem:[#allocation5 + $0x31c8] sm:$0xff] }
 0x418   :  { %13739 = vmatpush1.bf16.msra.mxu1 %v17965_v18  ;;  %13770 = vmatprep.mubr.bf16.mxu1 %v19759_v0  ;;  %v190_v18 = vld [vmem:[#allocation5 + $0x150] sm:$0xff]  ;;  %v1745_v43 = vld [vmem:[#allocation5 + $0x31e8] sm:$0xff] }
 0x419   :  { %13238 = vmatmul.mubr.bf16.vlgmr.msra.gmra.mrb[0].mxu0 %v19809_v49  ;;  %13740 = vmatprep.subr.bf16.mxu1 %v17974_v54  ;;  %v17997_v54 = vcombine.low %v1717_v19, %v1721_v48  ;;  %v18022_v19 = vcombine.high %v1741_v42, %v1745_v43 }
 0x41a   :  { %13903 = vmatpush1.bf16.msra.mxu0 %v16431_v24  ;;  %13934 = vmatprep.mubr.bf16.mxu0 %v19597_v57  ;;  %v194_v24 = vld [vmem:[#allocation5 + $0x170] sm:$0xff] }
 0x41b   :  { %13904 = vmatprep.subr.bf16.mxu0 %v16440_v31  ;;  %v16463_v31 = vcombine.low %v182_v62, %v186_v7  ;;  %v16472_v53 = vcombine.high %v190_v18, %v194_v24  ;;  %v1749_v62 = vld [vmem:[#allocation5 + $0x3208] sm:$0xff] }
 0x41c   :  { %13741 = vmatpush1.bf16.msra.mxu1 %v17973_v28  ;;  %v198_v28 = vld [vmem:[#allocation5 + $0x190] sm:$0xff]  ;;  %v1753_v7 = vld [vmem:[#allocation5 + $0x3228] sm:$0xff] }
 0x41d   :  { %13742 = vmatprep.subr.bf16.mxu1 %v17982_v33  ;;  %v18005_v33 = vcombine.low %v1725_v15, %v1729_v17  ;;  %v18030_v15 = vcombine.high %v1749_v62, %v1753_v7 }
 0x41e   :  { %13905 = vmatpush1.bf16.msra.mxu0 %v16439_v51  ;;  %v202_v51 = vld [vmem:[#allocation5 + $0x1b0] sm:$0xff] }
 0x41f   :  { %13906 = vmatprep.subr.bf16.mxu0 %v16448_v35  ;;  %v16471_v35 = vcombine.low %v190_v18, %v194_v24  ;;  %v16480_v37 = vcombine.high %v198_v28, %v202_v51  ;;  %v1757_v18 = vld [vmem:[#allocation5 + $0x3248] sm:$0xff] }
 0x420   :  { %13743 = vmatpush1.bf16.msra.mxu1 %v17981_v44  ;;  %v206_v44 = vld [vmem:[#allocation5 + $0x1d0] sm:$0xff]  ;;  %v1761_v24 = vld [vmem:[#allocation5 + $0x3268] sm:$0xff] }
 0x421   :  { %13744 = vmatprep.subr.bf16.mxu1 %v17990_v22  ;;  %v18013_v22 = vcombine.low %v1733_v26, %v1737_v27  ;;  %v18038_v26 = vcombine.high %v1757_v18, %v1761_v24 }
 0x422   :  { %13907 = vmatpush1.bf16.msra.mxu0 %v16447_v45  ;;  %v210_v45 = vld [vmem:[#allocation5 + $0x1f0] sm:$0xff] }
 0x423   :  { %13908 = vmatprep.subr.bf16.mxu0 %v16456_v46  ;;  %v16479_v46 = vcombine.low %v198_v28, %v202_v51  ;;  %v16488_v48 = vcombine.high %v206_v44, %v210_v45  ;;  %v1765_v28 = vld [vmem:[#allocation5 + $0x3288] sm:$0xff] }
 0x424   :  { %13745 = vmatpush1.bf16.msra.mxu1 %v17989_v52  ;;  %v214_v52 = vld [vmem:[#allocation5 + $0x210] sm:$0xff]  ;;  %v1769_v51 = vld [vmem:[#allocation5 + $0x32a8] sm:$0xff] }
 0x425   :  { %13746 = vmatprep.subr.bf16.mxu1 %v17998_v14  ;;  %v18021_v14 = vcombine.low %v1741_v42, %v1745_v43  ;;  %v18046_v42 = vcombine.high %v1765_v28, %v1769_v51 }
 0x426   :  { %13909 = vmatpush1.bf16.msra.mxu0 %v16455_v9  ;;  %v218_v9 = vld [vmem:[#allocation5 + $0x230] sm:$0xff] }
 0x427   :  { %13910 = vmatprep.subr.bf16.mxu0 %v16464_v30  ;;  %v16487_v30 = vcombine.low %v206_v44, %v210_v45  ;;  %v16496_v17 = vcombine.high %v214_v52, %v218_v9  ;;  %v1773_v44 = vld [vmem:[#allocation5 + $0x32c8] sm:$0xff] }
 0x428   :  { %13747 = vmatpush1.bf16.msra.mxu1 %v17997_v54  ;;  %v222_v54 = vld [vmem:[#allocation5 + $0x250] sm:$0xff]  ;;  %v1777_v45 = vld [vmem:[#allocation5 + $0x32e8] sm:$0xff] }
 0x429   :  { %13748 = vmatprep.subr.bf16.mxu1 %v18006_v25  ;;  %v18029_v25 = vcombine.low %v1749_v62, %v1753_v7  ;;  %v18054_v62 = vcombine.high %v1773_v44, %v1777_v45 }
 0x42a   :  { %13911 = vmatpush1.bf16.msra.mxu0 %v16463_v31  ;;  %v226_v31 = vld [vmem:[#allocation5 + $0x270] sm:$0xff] }
 0x42b   :  { %13912 = vmatprep.subr.bf16.mxu0 %v16472_v53  ;;  %v16495_v53 = vcombine.low %v214_v52, %v218_v9  ;;  %v16504_v27 = vcombine.high %v222_v54, %v226_v31  ;;  %v1781_v52 = vld [vmem:[#allocation5 + $0x3308] sm:$0xff] }
 0x42c   :  { %13749 = vmatpush1.bf16.msra.mxu1 %v18005_v33  ;;  %v230_v33 = vld [vmem:[#allocation5 + $0x290] sm:$0xff]  ;;  %v1785_v9 = vld [vmem:[#allocation5 + $0x3328] sm:$0xff] }
 0x42d   :  { %13750 = vmatprep.subr.bf16.mxu1 %v18014_v36  ;;  %v18037_v36 = vcombine.low %v1757_v18, %v1761_v24  ;;  %v18062_v18 = vcombine.high %v1781_v52, %v1785_v9 }
 0x42e   :  { %13913 = vmatpush1.bf16.msra.mxu0 %v16471_v35  ;;  %v234_v35 = vld [vmem:[#allocation5 + $0x2b0] sm:$0xff] }
 0x42f   :  { %13914 = vmatprep.subr.bf16.mxu0 %v16480_v37  ;;  %v16503_v37 = vcombine.low %v222_v54, %v226_v31  ;;  %v16512_v43 = vcombine.high %v230_v33, %v234_v35  ;;  %v1789_v54 = vld [vmem:[#allocation5 + $0x3348] sm:$0xff] }
 0x430   :  { %13751 = vmatpush1.bf16.msra.mxu1 %v18013_v22  ;;  %v238_v22 = vld [vmem:[#allocation5 + $0x2d0] sm:$0xff]  ;;  %v1793_v31 = vld [vmem:[#allocation5 + $0x3368] sm:$0xff] }
 0x431   :  { %13752 = vmatprep.subr.bf16.mxu1 %v18022_v19  ;;  %v18045_v19 = vcombine.low %v1765_v28, %v1769_v51  ;;  %v18070_v28 = vcombine.high %v1789_v54, %v1793_v31 }
 0x432   :  { %13915 = vmatpush1.bf16.msra.mxu0 %v16479_v46  ;;  %v242_v46 = vld [vmem:[#allocation5 + $0x2f0] sm:$0xff] }
 0x433   :  { %13916 = vmatprep.subr.bf16.mxu0 %v16488_v48  ;;  %v16511_v48 = vcombine.low %v230_v33, %v234_v35  ;;  %v16520_v7 = vcombine.high %v238_v22, %v242_v46  ;;  %v1797_v33 = vld [vmem:[#allocation5 + $0x3388] sm:$0xff] }
 0x434   :  { %13753 = vmatpush1.bf16.msra.mxu1 %v18021_v14  ;;  %v246_v14 = vld [vmem:[#allocation5 + $0x310] sm:$0xff]  ;;  %v1801_v35 = vld [vmem:[#allocation5 + $0x33a8] sm:$0xff] }
 0x435   :  { %13754 = vmatprep.subr.bf16.mxu1 %v18030_v15  ;;  %v18053_v15 = vcombine.low %v1773_v44, %v1777_v45  ;;  %v18078_v44 = vcombine.high %v1797_v33, %v1801_v35 }
 0x436   :  { %13917 = vmatpush1.bf16.msra.mxu0 %v16487_v30  ;;  %v250_v30 = vld [vmem:[#allocation5 + $0x330] sm:$0xff] }
 0x437   :  { %13918 = vmatprep.subr.bf16.mxu0 %v16496_v17  ;;  %v16519_v17 = vcombine.low %v238_v22, %v242_v46  ;;  %v16528_v24 = vcombine.high %v246_v14, %v250_v30  ;;  %v1805_v22 = vld [vmem:[#allocation5 + $0x33c8] sm:$0xff] }
 0x438   :  { %13755 = vmatpush1.bf16.msra.mxu1 %v18029_v25  ;;  %v254_v25 = vld [vmem:[#allocation5 + $0x350] sm:$0xff]  ;;  %v1809_v46 = vld [vmem:[#allocation5 + $0x33e8] sm:$0xff] }
 0x439   :  { %13756 = vmatprep.subr.bf16.mxu1 %v18038_v26  ;;  %v18061_v26 = vcombine.low %v1781_v52, %v1785_v9  ;;  %v18086_v52 = vcombine.high %v1805_v22, %v1809_v46 }
 0x43a   :  { %13919 = vmatpush1.bf16.msra.mxu0 %v16495_v53  ;;  %v258_v53 = vld [vmem:[#allocation5 + $0x370] sm:$0xff] }
 0x43b   :  { %13920 = vmatprep.subr.bf16.mxu0 %v16504_v27  ;;  %v16527_v27 = vcombine.low %v246_v14, %v250_v30  ;;  %v16536_v51 = vcombine.high %v254_v25, %v258_v53  ;;  %v1813_v14 = vld [vmem:[#allocation5 + $0x3408] sm:$0xff] }
 0x43c   :  { %13757 = vmatpush1.bf16.msra.mxu1 %v18037_v36  ;;  %v262_v36 = vld [vmem:[#allocation5 + $0x390] sm:$0xff]  ;;  %v1817_v30 = vld [vmem:[#allocation5 + $0x3428] sm:$0xff] }
 0x43d   :  { %13758 = vmatprep.subr.bf16.mxu1 %v18046_v42  ;;  %v18069_v42 = vcombine.low %v1789_v54, %v1793_v31  ;;  %v18094_v54 = vcombine.high %v1813_v14, %v1817_v30 }
 0x43e   :  { %13921 = vmatpush1.bf16.msra.mxu0 %v16503_v37  ;;  %v266_v37 = vld [vmem:[#allocation5 + $0x3b0] sm:$0xff] }
 0x43f   :  { %13922 = vmatprep.subr.bf16.mxu0 %v16512_v43  ;;  %v16535_v43 = vcombine.low %v254_v25, %v258_v53  ;;  %v16544_v45 = vcombine.high %v262_v36, %v266_v37  ;;  %v1821_v25 = vld [vmem:[#allocation5 + $0x3448] sm:$0xff] }
 0x440   :  { %13759 = vmatpush1.bf16.msra.mxu1 %v18045_v19  ;;  %v270_v19 = vld [vmem:[#allocation5 + $0x3d0] sm:$0xff]  ;;  %v1825_v53 = vld [vmem:[#allocation5 + $0x3468] sm:$0xff] }
 0x441   :  { %13760 = vmatprep.subr.bf16.mxu1 %v18054_v62  ;;  %v18077_v62 = vcombine.low %v1797_v33, %v1801_v35  ;;  %v18102_v33 = vcombine.high %v1821_v25, %v1825_v53 }
 0x442   :  { %13923 = vmatpush1.bf16.msra.mxu0 %v16511_v48  ;;  %v274_v48 = vld [vmem:[#allocation5 + $0x3f0] sm:$0xff] }
 0x443   :  { %13924 = vmatprep.subr.bf16.mxu0 %v16520_v7  ;;  %v16543_v7 = vcombine.low %v262_v36, %v266_v37  ;;  %v16552_v9 = vcombine.high %v270_v19, %v274_v48  ;;  %v1829_v36 = vld [vmem:[#allocation5 + $0x3488] sm:$0xff] }
 0x444   :  { %13761 = vmatpush1.bf16.msra.mxu1 %v18053_v15  ;;  %v278_v15 = vld [vmem:[#allocation5 + $0x410] sm:$0xff]  ;;  %v1833_v37 = vld [vmem:[#allocation5 + $0x34a8] sm:$0xff] }
 0x445   :  { %13762 = vmatprep.subr.bf16.mxu1 %v18062_v18  ;;  %v18085_v18 = vcombine.low %v1805_v22, %v1809_v46  ;;  %v18110_v22 = vcombine.high %v1829_v36, %v1833_v37 }
 0x446   :  { %13925 = vmatpush1.bf16.msra.mxu0 %v16519_v17  ;;  %v282_v17 = vld [vmem:[#allocation5 + $0x430] sm:$0xff] }
 0x447   :  { %13926 = vmatprep.subr.bf16.mxu0 %v16528_v24  ;;  %v16551_v24 = vcombine.low %v270_v19, %v274_v48  ;;  %v16560_v31 = vcombine.high %v278_v15, %v282_v17  ;;  %v1837_v19 = vld [vmem:[#allocation5 + $0x34c8] sm:$0xff] }
 0x448   :  { %13763 = vmatpush1.bf16.msra.mxu1 %v18061_v26  ;;  %v286_v26 = vld [vmem:[#allocation5 + $0x450] sm:$0xff]  ;;  %v1841_v48 = vld [vmem:[#allocation5 + $0x34e8] sm:$0xff] }
 0x449   :  { %13764 = vmatprep.subr.bf16.mxu1 %v18070_v28  ;;  %v18093_v28 = vcombine.low %v1813_v14, %v1817_v30  ;;  %v18118_v14 = vcombine.high %v1837_v19, %v1841_v48 }
 0x44a   :  { %13927 = vmatpush1.bf16.msra.mxu0 %v16527_v27  ;;  %v290_v27 = vld [vmem:[#allocation5 + $0x470] sm:$0xff] }
 0x44b   :  { %13928 = vmatprep.subr.bf16.mxu0 %v16536_v51  ;;  %v16559_v51 = vcombine.low %v278_v15, %v282_v17  ;;  %v16568_v35 = vcombine.high %v286_v26, %v290_v27  ;;  %v1845_v15 = vld [vmem:[#allocation5 + $0x3508] sm:$0xff] }
 0x44c   :  { %13765 = vmatpush1.bf16.msra.mxu1 %v18069_v42  ;;  %v294_v42 = vld [vmem:[#allocation5 + $0x490] sm:$0xff]  ;;  %v1849_v17 = vld [vmem:[#allocation5 + $0x3528] sm:$0xff] }
 0x44d   :  { %13766 = vmatprep.subr.bf16.mxu1 %v18078_v44  ;;  %v18101_v44 = vcombine.low %v1821_v25, %v1825_v53  ;;  %v18126_v25 = vcombine.high %v1845_v15, %v1849_v17 }
 0x44e   :  { %13929 = vmatpush1.bf16.msra.mxu0 %v16535_v43  ;;  %v298_v43 = vld [vmem:[#allocation5 + $0x4b0] sm:$0xff] }
 0x44f   :  { %13930 = vmatprep.subr.bf16.mxu0 %v16544_v45  ;;  %v16567_v45 = vcombine.low %v286_v26, %v290_v27  ;;  %v16576_v46 = vcombine.high %v294_v42, %v298_v43  ;;  %v1853_v26 = vld [vmem:[#allocation5 + $0x3548] sm:$0xff] }
 0x450   :  { %13767 = vmatpush1.bf16.msra.mxu1 %v18077_v62  ;;  %v302_v62 = vld [vmem:[#allocation5 + $0x4d0] sm:$0xff]  ;;  %v1857_v27 = vld [vmem:[#allocation5 + $0x3568] sm:$0xff] }
 0x451   :  { %13768 = vmatprep.subr.bf16.mxu1 %v18086_v52  ;;  %v18109_v52 = vcombine.low %v1829_v36, %v1833_v37  ;;  %v18134_v36 = vcombine.high %v1853_v26, %v1857_v27 }
 0x452   :  { %13931 = vmatpush1.bf16.msra.mxu0 %v16543_v7  ;;  %v306_v7 = vld [vmem:[#allocation5 + $0x4f0] sm:$0xff] }
 0x453   :  { %13932 = vmatprep.subr.bf16.mxu0 %v16552_v9  ;;  %v16575_v9 = vcombine.low %v294_v42, %v298_v43  ;;  %v16584_v30 = vcombine.high %v302_v62, %v306_v7  ;;  %v1861_v42 = vld [vmem:[#allocation5 + $0x3588] sm:$0xff] }
 0x454   :  { %13769 = vmatpush1.bf16.msra.mxu1 %v18085_v18  ;;  %v310_v18 = vld [vmem:[#allocation5 + $0x510] sm:$0xff]  ;;  %v1865_v43 = vld [vmem:[#allocation5 + $0x35a8] sm:$0xff] }
 0x455   :  { %13779 = vmatprep.subr.bf16.mxu1 %v18094_v54  ;;  %v18117_v54 = vcombine.low %v1837_v19, %v1841_v48  ;;  %v18142_v19 = vcombine.high %v1861_v42, %v1865_v43 }
 0x456   :  { %13933 = vmatpush1.bf16.msra.mxu0 %v16551_v24  ;;  %v314_v24 = vld [vmem:[#allocation5 + $0x530] sm:$0xff] }
 0x457   :  { %13943 = vmatprep.subr.bf16.mxu0 %v16560_v31  ;;  %13771 = vmatmul.mubr.bf16.vlgmr.msra.gmra.mrb[4].mxu1 %v19769_v11  ;;  %v16583_v31 = vcombine.low %v302_v62, %v306_v7  ;;  %v16592_v53 = vcombine.high %v310_v18, %v314_v24  ;;  %v1869_v62 = vld [vmem:[#allocation5 + $0x35c8] sm:$0xff] }
 0x458   :  { %13780 = vmatpush1.bf16.msra.mxu1 %v18093_v28  ;;  %13811 = vmatprep.mubr.bf16.mxu1 %v19773_v23  ;;  %v318_v28 = vld [vmem:[#allocation5 + $0x550] sm:$0xff]  ;;  %v1873_v7 = vld [vmem:[#allocation5 + $0x35e8] sm:$0xff] }
 0x459   :  { %13935 = vmatmul.mubr.bf16.vlgmr.msra.gmra.mrb[4].mxu0 %v19609_v16  ;;  %13781 = vmatprep.subr.bf16.mxu1 %v18102_v33  ;;  %v18125_v33 = vcombine.low %v1845_v15, %v1849_v17  ;;  %v18150_v15 = vcombine.high %v1869_v62, %v1873_v7 }
 0x45a   :  { %13944 = vmatpush1.bf16.msra.mxu0 %v16559_v51  ;;  %13975 = vmatprep.mubr.bf16.mxu0 %v19621_v29  ;;  %v322_v51 = vld [vmem:[#allocation5 + $0x570] sm:$0xff] }
 0x45b   :  { %13945 = vmatprep.subr.bf16.mxu0 %v16568_v35  ;;  %v16591_v35 = vcombine.low %v310_v18, %v314_v24  ;;  %v16600_v37 = vcombine.high %v318_v28, %v322_v51  ;;  %v1877_v18 = vld [vmem:[#allocation5 + $0x3608] sm:$0xff] }
 0x45c   :  { %13782 = vmatpush1.bf16.msra.mxu1 %v18101_v44  ;;  %v326_v44 = vld [vmem:[#allocation5 + $0x590] sm:$0xff]  ;;  %v1881_v24 = vld [vmem:[#allocation5 + $0x3628] sm:$0xff] }
 0x45d   :  { %13783 = vmatprep.subr.bf16.mxu1 %v18110_v22  ;;  %v18133_v22 = vcombine.low %v1853_v26, %v1857_v27  ;;  %v18158_v26 = vcombine.high %v1877_v18, %v1881_v24 }
 0x45e   :  { %13946 = vmatpush1.bf16.msra.mxu0 %v16567_v45  ;;  %v330_v45 = vld [vmem:[#allocation5 + $0x5b0] sm:$0xff] }
 0x45f   :  { %13947 = vmatprep.subr.bf16.mxu0 %v16576_v46  ;;  %v16599_v46 = vcombine.low %v318_v28, %v322_v51  ;;  %v16608_v48 = vcombine.high %v326_v44, %v330_v45  ;;  %v1885_v28 = vld [vmem:[#allocation5 + $0x3648] sm:$0xff] }
 0x460   :  { %13784 = vmatpush1.bf16.msra.mxu1 %v18109_v52  ;;  %v334_v52 = vld [vmem:[#allocation5 + $0x5d0] sm:$0xff]  ;;  %v1889_v51 = vld [vmem:[#allocation5 + $0x3668] sm:$0xff] }
 0x461   :  { %13785 = vmatprep.subr.bf16.mxu1 %v18118_v14  ;;  %v18141_v14 = vcombine.low %v1861_v42, %v1865_v43  ;;  %v18166_v42 = vcombine.high %v1885_v28, %v1889_v51 }
 0x462   :  { %13948 = vmatpush1.bf16.msra.mxu0 %v16575_v9  ;;  %v338_v9 = vld [vmem:[#allocation5 + $0x5f0] sm:$0xff] }
 0x463   :  { %13949 = vmatprep.subr.bf16.mxu0 %v16584_v30  ;;  %v16607_v30 = vcombine.low %v326_v44, %v330_v45  ;;  %v16616_v17 = vcombine.high %v334_v52, %v338_v9  ;;  %v1893_v44 = vld [vmem:[#allocation5 + $0x3688] sm:$0xff] }
 0x464   :  { %13786 = vmatpush1.bf16.msra.mxu1 %v18117_v54  ;;  %v342_v54 = vld [vmem:[#allocation5 + $0x610] sm:$0xff]  ;;  %v1897_v45 = vld [vmem:[#allocation5 + $0x36a8] sm:$0xff] }
 0x465   :  { %13787 = vmatprep.subr.bf16.mxu1 %v18126_v25  ;;  %v18149_v25 = vcombine.low %v1869_v62, %v1873_v7  ;;  %v18174_v62 = vcombine.high %v1893_v44, %v1897_v45 }
 0x466   :  { %13950 = vmatpush1.bf16.msra.mxu0 %v16583_v31  ;;  %v346_v31 = vld [vmem:[#allocation5 + $0x630] sm:$0xff] }
 0x467   :  { %13951 = vmatprep.subr.bf16.mxu0 %v16592_v53  ;;  %v16615_v53 = vcombine.low %v334_v52, %v338_v9  ;;  %v16624_v27 = vcombine.high %v342_v54, %v346_v31  ;;  %v1901_v52 = vld [vmem:[#allocation5 + $0x36c8] sm:$0xff] }
 0x468   :  { %13788 = vmatpush1.bf16.msra.mxu1 %v18125_v33  ;;  %v350_v33 = vld [vmem:[#allocation5 + $0x650] sm:$0xff]  ;;  %v1905_v9 = vld [vmem:[#allocation5 + $0x36e8] sm:$0xff] }
 0x469   :  { %13789 = vmatprep.subr.bf16.mxu1 %v18134_v36  ;;  %v18157_v36 = vcombine.low %v1877_v18, %v1881_v24  ;;  %v18182_v18 = vcombine.high %v1901_v52, %v1905_v9 }
 0x46a   :  { %13952 = vmatpush1.bf16.msra.mxu0 %v16591_v35  ;;  %v354_v35 = vld [vmem:[#allocation5 + $0x670] sm:$0xff] }
 0x46b   :  { %13953 = vmatprep.subr.bf16.mxu0 %v16600_v37  ;;  %v16623_v37 = vcombine.low %v342_v54, %v346_v31  ;;  %v16632_v43 = vcombine.high %v350_v33, %v354_v35  ;;  %v1909_v54 = vld [vmem:[#allocation5 + $0x3708] sm:$0xff] }
 0x46c   :  { %13790 = vmatpush1.bf16.msra.mxu1 %v18133_v22  ;;  %v358_v22 = vld [vmem:[#allocation5 + $0x690] sm:$0xff]  ;;  %v1913_v31 = vld [vmem:[#allocation5 + $0x3728] sm:$0xff] }
 0x46d   :  { %13791 = vmatprep.subr.bf16.mxu1 %v18142_v19  ;;  %v18165_v19 = vcombine.low %v1885_v28, %v1889_v51  ;;  %v18190_v28 = vcombine.high %v1909_v54, %v1913_v31 }
 0x46e   :  { %13954 = vmatpush1.bf16.msra.mxu0 %v16599_v46  ;;  %v362_v46 = vld [vmem:[#allocation5 + $0x6b0] sm:$0xff] }
 0x46f   :  { %13955 = vmatprep.subr.bf16.mxu0 %v16608_v48  ;;  %v16631_v48 = vcombine.low %v350_v33, %v354_v35  ;;  %v16640_v7 = vcombine.high %v358_v22, %v362_v46  ;;  %v1917_v33 = vld [vmem:[#allocation5 + $0x3748] sm:$0xff] }
 0x470   :  { %13792 = vmatpush1.bf16.msra.mxu1 %v18141_v14  ;;  %v366_v14 = vld [vmem:[#allocation5 + $0x6d0] sm:$0xff]  ;;  %v1921_v35 = vld [vmem:[#allocation5 + $0x3768] sm:$0xff] }
 0x471   :  { %13793 = vmatprep.subr.bf16.mxu1 %v18150_v15  ;;  %v18173_v15 = vcombine.low %v1893_v44, %v1897_v45  ;;  %v18198_v44 = vcombine.high %v1917_v33, %v1921_v35 }
 0x472   :  { %13956 = vmatpush1.bf16.msra.mxu0 %v16607_v30  ;;  %v370_v30 = vld [vmem:[#allocation5 + $0x6f0] sm:$0xff] }
 0x473   :  { %13957 = vmatprep.subr.bf16.mxu0 %v16616_v17  ;;  %v16639_v17 = vcombine.low %v358_v22, %v362_v46  ;;  %v16648_v24 = vcombine.high %v366_v14, %v370_v30  ;;  %v1925_v22 = vld [vmem:[#allocation5 + $0x3788] sm:$0xff] }
 0x474   :  { %13794 = vmatpush1.bf16.msra.mxu1 %v18149_v25  ;;  %v374_v25 = vld [vmem:[#allocation5 + $0x710] sm:$0xff]  ;;  %v1929_v46 = vld [vmem:[#allocation5 + $0x37a8] sm:$0xff] }
 0x475   :  { %13795 = vmatprep.subr.bf16.mxu1 %v18158_v26  ;;  %v18181_v26 = vcombine.low %v1901_v52, %v1905_v9  ;;  %v18206_v52 = vcombine.high %v1925_v22, %v1929_v46 }
 0x476   :  { %13958 = vmatpush1.bf16.msra.mxu0 %v16615_v53  ;;  %v378_v53 = vld [vmem:[#allocation5 + $0x730] sm:$0xff] }
 0x477   :  { %13959 = vmatprep.subr.bf16.mxu0 %v16624_v27  ;;  %v16647_v27 = vcombine.low %v366_v14, %v370_v30  ;;  %v16656_v51 = vcombine.high %v374_v25, %v378_v53  ;;  %v1933_v14 = vld [vmem:[#allocation5 + $0x37c8] sm:$0xff] }
 0x478   :  { %13796 = vmatpush1.bf16.msra.mxu1 %v18157_v36  ;;  %v382_v36 = vld [vmem:[#allocation5 + $0x750] sm:$0xff]  ;;  %v1937_v30 = vld [vmem:[#allocation5 + $0x37e8] sm:$0xff] }
 0x479   :  { %13797 = vmatprep.subr.bf16.mxu1 %v18166_v42  ;;  %v18189_v42 = vcombine.low %v1909_v54, %v1913_v31  ;;  %v18214_v54 = vcombine.high %v1933_v14, %v1937_v30 }
 0x47a   :  { %13960 = vmatpush1.bf16.msra.mxu0 %v16623_v37  ;;  %v386_v37 = vld [vmem:[#allocation5 + $0x770] sm:$0xff] }
 0x47b   :  { %13961 = vmatprep.subr.bf16.mxu0 %v16632_v43  ;;  %v16655_v43 = vcombine.low %v374_v25, %v378_v53  ;;  %v16664_v45 = vcombine.high %v382_v36, %v386_v37  ;;  %v1941_v25 = vld [vmem:[#allocation5 + $0x3808] sm:$0xff] }
 0x47c   :  { %13798 = vmatpush1.bf16.msra.mxu1 %v18165_v19  ;;  %v390_v19 = vld [vmem:[#allocation5 + $0x790] sm:$0xff]  ;;  %v1945_v53 = vld [vmem:[#allocation5 + $0x3828] sm:$0xff] }
 0x47d   :  { %13799 = vmatprep.subr.bf16.mxu1 %v18174_v62  ;;  %v18197_v62 = vcombine.low %v1917_v33, %v1921_v35  ;;  %v18222_v33 = vcombine.high %v1941_v25, %v1945_v53 }
 0x47e   :  { %13962 = vmatpush1.bf16.msra.mxu0 %v16631_v48  ;;  %v394_v48 = vld [vmem:[#allocation5 + $0x7b0] sm:$0xff] }
 0x47f   :  { %13963 = vmatprep.subr.bf16.mxu0 %v16640_v7  ;;  %v16663_v7 = vcombine.low %v382_v36, %v386_v37  ;;  %v16672_v9 = vcombine.high %v390_v19, %v394_v48  ;;  %v1949_v36 = vld [vmem:[#allocation5 + $0x3848] sm:$0xff] }
 0x480   :  { %13800 = vmatpush1.bf16.msra.mxu1 %v18173_v15  ;;  %v398_v15 = vld [vmem:[#allocation5 + $0x7d0] sm:$0xff]  ;;  %v1953_v37 = vld [vmem:[#allocation5 + $0x3868] sm:$0xff] }
 0x481   :  { %13801 = vmatprep.subr.bf16.mxu1 %v18182_v18  ;;  %v18205_v18 = vcombine.low %v1925_v22, %v1929_v46  ;;  %v18230_v22 = vcombine.high %v1949_v36, %v1953_v37 }
 0x482   :  { %13964 = vmatpush1.bf16.msra.mxu0 %v16639_v17  ;;  %v402_v17 = vld [vmem:[#allocation5 + $0x7f0] sm:$0xff] }
 0x483   :  { %13965 = vmatprep.subr.bf16.mxu0 %v16648_v24  ;;  %v16671_v24 = vcombine.low %v390_v19, %v394_v48  ;;  %v16680_v31 = vcombine.high %v398_v15, %v402_v17  ;;  %v1957_v19 = vld [vmem:[#allocation5 + $0x3888] sm:$0xff] }
 0x484   :  { %13802 = vmatpush1.bf16.msra.mxu1 %v18181_v26  ;;  %v406_v26 = vld [vmem:[#allocation5 + $0x810] sm:$0xff]  ;;  %v1961_v48 = vld [vmem:[#allocation5 + $0x38a8] sm:$0xff] }
 0x485   :  { %13803 = vmatprep.subr.bf16.mxu1 %v18190_v28  ;;  %v18213_v28 = vcombine.low %v1933_v14, %v1937_v30  ;;  %v18238_v14 = vcombine.high %v1957_v19, %v1961_v48 }
 0x486   :  { %13966 = vmatpush1.bf16.msra.mxu0 %v16647_v27  ;;  %v410_v27 = vld [vmem:[#allocation5 + $0x830] sm:$0xff] }
 0x487   :  { %13967 = vmatprep.subr.bf16.mxu0 %v16656_v51  ;;  %v16679_v51 = vcombine.low %v398_v15, %v402_v17  ;;  %v16688_v35 = vcombine.high %v406_v26, %v410_v27  ;;  %v1965_v15 = vld [vmem:[#allocation5 + $0x38c8] sm:$0xff] }
 0x488   :  { %13804 = vmatpush1.bf16.msra.mxu1 %v18189_v42  ;;  %v414_v42 = vld [vmem:[#allocation5 + $0x850] sm:$0xff]  ;;  %v1969_v17 = vld [vmem:[#allocation5 + $0x38e8] sm:$0xff] }
 0x489   :  { %13805 = vmatprep.subr.bf16.mxu1 %v18198_v44  ;;  %v18221_v44 = vcombine.low %v1941_v25, %v1945_v53  ;;  %v18246_v25 = vcombine.high %v1965_v15, %v1969_v17 }
 0x48a   :  { %13968 = vmatpush1.bf16.msra.mxu0 %v16655_v43  ;;  %v418_v43 = vld [vmem:[#allocation5 + $0x870] sm:$0xff] }
 0x48b   :  { %13969 = vmatprep.subr.bf16.mxu0 %v16664_v45  ;;  %v16687_v45 = vcombine.low %v406_v26, %v410_v27  ;;  %v16696_v46 = vcombine.high %v414_v42, %v418_v43  ;;  %v1973_v26 = vld [vmem:[#allocation5 + $0x3908] sm:$0xff] }
 0x48c   :  { %13806 = vmatpush1.bf16.msra.mxu1 %v18197_v62  ;;  %v422_v62 = vld [vmem:[#allocation5 + $0x890] sm:$0xff]  ;;  %v1977_v27 = vld [vmem:[#allocation5 + $0x3928] sm:$0xff] }
 0x48d   :  { %13807 = vmatprep.subr.bf16.mxu1 %v18206_v52  ;;  %v18229_v52 = vcombine.low %v1949_v36, %v1953_v37  ;;  %v18254_v36 = vcombine.high %v1973_v26, %v1977_v27 }
 0x48e   :  { %13970 = vmatpush1.bf16.msra.mxu0 %v16663_v7  ;;  %v426_v7 = vld [vmem:[#allocation5 + $0x8b0] sm:$0xff] }
 0x48f   :  { %13971 = vmatprep.subr.bf16.mxu0 %v16672_v9  ;;  %v16695_v9 = vcombine.low %v414_v42, %v418_v43  ;;  %v16704_v30 = vcombine.high %v422_v62, %v426_v7  ;;  %v1981_v42 = vld [vmem:[#allocation5 + $0x3948] sm:$0xff] }
 0x490   :  { %13808 = vmatpush1.bf16.msra.mxu1 %v18205_v18  ;;  %v430_v18 = vld [vmem:[#allocation5 + $0x8d0] sm:$0xff]  ;;  %v1985_v43 = vld [vmem:[#allocation5 + $0x3968] sm:$0xff] }
 0x491   :  { %13809 = vmatprep.subr.bf16.mxu1 %v18214_v54  ;;  %v18237_v54 = vcombine.low %v1957_v19, %v1961_v48  ;;  %v18262_v19 = vcombine.high %v1981_v42, %v1985_v43 }
 0x492   :  { %13972 = vmatpush1.bf16.msra.mxu0 %v16671_v24  ;;  %v434_v24 = vld [vmem:[#allocation5 + $0x8f0] sm:$0xff] }
 0x493   :  { %13973 = vmatprep.subr.bf16.mxu0 %v16680_v31  ;;  %v16703_v31 = vcombine.low %v422_v62, %v426_v7  ;;  %v16712_v53 = vcombine.high %v430_v18, %v434_v24  ;;  %v1989_v62 = vld [vmem:[#allocation5 + $0x3988] sm:$0xff] }
 0x494   :  { %13810 = vmatpush1.bf16.msra.mxu1 %v18213_v28  ;;  %v438_v28 = vld [vmem:[#allocation5 + $0x910] sm:$0xff]  ;;  %v1993_v7 = vld [vmem:[#allocation5 + $0x39a8] sm:$0xff] }
 0x495   :  { %13820 = vmatprep.subr.bf16.mxu1 %v18222_v33  ;;  %v18245_v33 = vcombine.low %v1965_v15, %v1969_v17  ;;  %v18270_v15 = vcombine.high %v1989_v62, %v1993_v7 }
 0x496   :  { %13974 = vmatpush1.bf16.msra.mxu0 %v16679_v51  ;;  %v442_v51 = vld [vmem:[#allocation5 + $0x930] sm:$0xff] }
 0x497   :  { %13984 = vmatprep.subr.bf16.mxu0 %v16688_v35  ;;  %13812 = vmatmul.mubr.bf16.vlgmr.msra.gmra.mrb[4].mxu1 %v19783_v56  ;;  %v16711_v35 = vcombine.low %v430_v18, %v434_v24  ;;  %v16720_v37 = vcombine.high %v438_v28, %v442_v51  ;;  %v1997_v18 = vld [vmem:[#allocation5 + $0x39c8] sm:$0xff] }
 0x498   :  { %13821 = vmatpush1.bf16.msra.mxu1 %v18221_v44  ;;  %13852 = vmatprep.mubr.bf16.mxu1 %v19787_v38  ;;  %v446_v44 = vld [vmem:[#allocation5 + $0x950] sm:$0xff]  ;;  %v2001_v24 = vld [vmem:[#allocation5 + $0x39e8] sm:$0xff] }
 0x499   :  { %13976 = vmatmul.mubr.bf16.vlgmr.msra.gmra.mrb[4].mxu0 %v19635_v39  ;;  %13822 = vmatprep.subr.bf16.mxu1 %v18230_v22  ;;  %v18253_v22 = vcombine.low %v1973_v26, %v1977_v27  ;;  %v18278_v26 = vcombine.high %v1997_v18, %v2001_v24 }
 0x49a   :  { %13985 = vmatpush1.bf16.msra.mxu0 %v16687_v45  ;;  %14016 = vmatprep.mubr.bf16.mxu0 %v19603_v61  ;;  %v450_v45 = vld [vmem:[#allocation5 + $0x970] sm:$0xff] }
 0x49b   :  { %13986 = vmatprep.subr.bf16.mxu0 %v16696_v46  ;;  %v16719_v46 = vcombine.low %v438_v28, %v442_v51  ;;  %v16728_v48 = vcombine.high %v446_v44, %v450_v45  ;;  %v2005_v28 = vld [vmem:[#allocation5 + $0x3a08] sm:$0xff] }
 0x49c   :  { %13823 = vmatpush1.bf16.msra.mxu1 %v18229_v52  ;;  %v454_v52 = vld [vmem:[#allocation5 + $0x990] sm:$0xff]  ;;  %v2009_v51 = vld [vmem:[#allocation5 + $0x3a28] sm:$0xff] }
 0x49d   :  { %13824 = vmatprep.subr.bf16.mxu1 %v18238_v14  ;;  %v18261_v14 = vcombine.low %v1981_v42, %v1985_v43  ;;  %v18286_v42 = vcombine.high %v2005_v28, %v2009_v51 }
 0x49e   :  { %13987 = vmatpush1.bf16.msra.mxu0 %v16695_v9  ;;  %v458_v9 = vld [vmem:[#allocation5 + $0x9b0] sm:$0xff] }
 0x49f   :  { %13988 = vmatprep.subr.bf16.mxu0 %v16704_v30  ;;  %v16727_v30 = vcombine.low %v446_v44, %v450_v45  ;;  %v16736_v17 = vcombine.high %v454_v52, %v458_v9  ;;  %v2013_v44 = vld [vmem:[#allocation5 + $0x3a48] sm:$0xff] }
 0x4a0   :  { %13825 = vmatpush1.bf16.msra.mxu1 %v18237_v54  ;;  %v462_v54 = vld [vmem:[#allocation5 + $0x9d0] sm:$0xff]  ;;  %v2017_v45 = vld [vmem:[#allocation5 + $0x3a68] sm:$0xff] }
 0x4a1   :  { %13826 = vmatprep.subr.bf16.mxu1 %v18246_v25  ;;  %v18269_v25 = vcombine.low %v1989_v62, %v1993_v7  ;;  %v18294_v62 = vcombine.high %v2013_v44, %v2017_v45 }
 0x4a2   :  { %13989 = vmatpush1.bf16.msra.mxu0 %v16703_v31  ;;  %v466_v31 = vld [vmem:[#allocation5 + $0x9f0] sm:$0xff] }
 0x4a3   :  { %13990 = vmatprep.subr.bf16.mxu0 %v16712_v53  ;;  %v16735_v53 = vcombine.low %v454_v52, %v458_v9  ;;  %v16744_v27 = vcombine.high %v462_v54, %v466_v31  ;;  %v2021_v52 = vld [vmem:[#allocation5 + $0x3a88] sm:$0xff] }
 0x4a4   :  { %13827 = vmatpush1.bf16.msra.mxu1 %v18245_v33  ;;  %v470_v33 = vld [vmem:[#allocation5 + $0xa10] sm:$0xff]  ;;  %v2025_v9 = vld [vmem:[#allocation5 + $0x3aa8] sm:$0xff] }
 0x4a5   :  { %13828 = vmatprep.subr.bf16.mxu1 %v18254_v36  ;;  %v18277_v36 = vcombine.low %v1997_v18, %v2001_v24  ;;  %v18302_v18 = vcombine.high %v2021_v52, %v2025_v9 }
 0x4a6   :  { %13991 = vmatpush1.bf16.msra.mxu0 %v16711_v35  ;;  %v474_v35 = vld [vmem:[#allocation5 + $0xa30] sm:$0xff] }
 0x4a7   :  { %13992 = vmatprep.subr.bf16.mxu0 %v16720_v37  ;;  %v16743_v37 = vcombine.low %v462_v54, %v466_v31  ;;  %v16752_v43 = vcombine.high %v470_v33, %v474_v35  ;;  %v2029_v54 = vld [vmem:[#allocation5 + $0x3ac8] sm:$0xff] }
 0x4a8   :  { %13829 = vmatpush1.bf16.msra.mxu1 %v18253_v22  ;;  %v478_v22 = vld [vmem:[#allocation5 + $0xa50] sm:$0xff]  ;;  %v2033_v31 = vld [vmem:[#allocation5 + $0x3ae8] sm:$0xff] }
 0x4a9   :  { %13830 = vmatprep.subr.bf16.mxu1 %v18262_v19  ;;  %v18285_v19 = vcombine.low %v2005_v28, %v2009_v51  ;;  %v18310_v28 = vcombine.high %v2029_v54, %v2033_v31 }
 0x4aa   :  { %13993 = vmatpush1.bf16.msra.mxu0 %v16719_v46  ;;  %v482_v46 = vld [vmem:[#allocation5 + $0xa70] sm:$0xff] }
 0x4ab   :  { %13994 = vmatprep.subr.bf16.mxu0 %v16728_v48  ;;  %v16751_v48 = vcombine.low %v470_v33, %v474_v35  ;;  %v16760_v7 = vcombine.high %v478_v22, %v482_v46  ;;  %v2037_v33 = vld [vmem:[#allocation5 + $0x3b08] sm:$0xff] }
 0x4ac   :  { %13831 = vmatpush1.bf16.msra.mxu1 %v18261_v14  ;;  %v486_v14 = vld [vmem:[#allocation5 + $0xa90] sm:$0xff]  ;;  %v2041_v35 = vld [vmem:[#allocation5 + $0x3b28] sm:$0xff] }
 0x4ad   :  { %13832 = vmatprep.subr.bf16.mxu1 %v18270_v15  ;;  %v18293_v15 = vcombine.low %v2013_v44, %v2017_v45  ;;  %v18318_v44 = vcombine.high %v2037_v33, %v2041_v35 }
 0x4ae   :  { %13995 = vmatpush1.bf16.msra.mxu0 %v16727_v30  ;;  %v490_v30 = vld [vmem:[#allocation5 + $0xab0] sm:$0xff] }
 0x4af   :  { %13996 = vmatprep.subr.bf16.mxu0 %v16736_v17  ;;  %v16759_v17 = vcombine.low %v478_v22, %v482_v46  ;;  %v16768_v24 = vcombine.high %v486_v14, %v490_v30  ;;  %v2045_v22 = vld [vmem:[#allocation5 + $0x3b48] sm:$0xff] }
 0x4b0   :  { %13833 = vmatpush1.bf16.msra.mxu1 %v18269_v25  ;;  %v494_v25 = vld [vmem:[#allocation5 + $0xad0] sm:$0xff]  ;;  %v2049_v46 = vld [vmem:[#allocation5 + $0x3b68] sm:$0xff] }
 0x4b1   :  { %13834 = vmatprep.subr.bf16.mxu1 %v18278_v26  ;;  %v18301_v26 = vcombine.low %v2021_v52, %v2025_v9  ;;  %v18326_v52 = vcombine.high %v2045_v22, %v2049_v46 }
 0x4b2   :  { %13997 = vmatpush1.bf16.msra.mxu0 %v16735_v53  ;;  %v498_v53 = vld [vmem:[#allocation5 + $0xaf0] sm:$0xff] }
 0x4b3   :  { %13998 = vmatprep.subr.bf16.mxu0 %v16744_v27  ;;  %v16767_v27 = vcombine.low %v486_v14, %v490_v30  ;;  %v16776_v51 = vcombine.high %v494_v25, %v498_v53  ;;  %v2053_v14 = vld [vmem:[#allocation5 + $0x3b88] sm:$0xff] }
 0x4b4   :  { %13835 = vmatpush1.bf16.msra.mxu1 %v18277_v36  ;;  %v502_v36 = vld [vmem:[#allocation5 + $0xb10] sm:$0xff]  ;;  %v2057_v30 = vld [vmem:[#allocation5 + $0x3ba8] sm:$0xff] }
 0x4b5   :  { %13836 = vmatprep.subr.bf16.mxu1 %v18286_v42  ;;  %v18309_v42 = vcombine.low %v2029_v54, %v2033_v31  ;;  %v18334_v54 = vcombine.high %v2053_v14, %v2057_v30 }
 0x4b6   :  { %13999 = vmatpush1.bf16.msra.mxu0 %v16743_v37  ;;  %v506_v37 = vld [vmem:[#allocation5 + $0xb30] sm:$0xff] }
 0x4b7   :  { %14000 = vmatprep.subr.bf16.mxu0 %v16752_v43  ;;  %v16775_v43 = vcombine.low %v494_v25, %v498_v53  ;;  %v16784_v45 = vcombine.high %v502_v36, %v506_v37  ;;  %v2061_v25 = vld [vmem:[#allocation5 + $0x3bc8] sm:$0xff] }
 0x4b8   :  { %13837 = vmatpush1.bf16.msra.mxu1 %v18285_v19  ;;  %v510_v19 = vld [vmem:[#allocation5 + $0xb50] sm:$0xff]  ;;  %v2065_v53 = vld [vmem:[#allocation5 + $0x3be8] sm:$0xff] }
 0x4b9   :  { %13838 = vmatprep.subr.bf16.mxu1 %v18294_v62  ;;  %v18317_v62 = vcombine.low %v2037_v33, %v2041_v35  ;;  %v18342_v33 = vcombine.high %v2061_v25, %v2065_v53 }
 0x4ba   :  { %14001 = vmatpush1.bf16.msra.mxu0 %v16751_v48  ;;  %v514_v48 = vld [vmem:[#allocation5 + $0xb70] sm:$0xff] }
 0x4bb   :  { %14002 = vmatprep.subr.bf16.mxu0 %v16760_v7  ;;  %v16783_v7 = vcombine.low %v502_v36, %v506_v37  ;;  %v16792_v9 = vcombine.high %v510_v19, %v514_v48  ;;  %v2069_v36 = vld [vmem:[#allocation5 + $0x3c08] sm:$0xff] }
 0x4bc   :  { %13839 = vmatpush1.bf16.msra.mxu1 %v18293_v15  ;;  %v518_v15 = vld [vmem:[#allocation5 + $0xb90] sm:$0xff]  ;;  %v2073_v37 = vld [vmem:[#allocation5 + $0x3c28] sm:$0xff] }
 0x4bd   :  { %13840 = vmatprep.subr.bf16.mxu1 %v18302_v18  ;;  %v18325_v18 = vcombine.low %v2045_v22, %v2049_v46  ;;  %v18350_v22 = vcombine.high %v2069_v36, %v2073_v37 }
 0x4be   :  { %14003 = vmatpush1.bf16.msra.mxu0 %v16759_v17  ;;  %v522_v17 = vld [vmem:[#allocation5 + $0xbb0] sm:$0xff] }
 0x4bf   :  { %14004 = vmatprep.subr.bf16.mxu0 %v16768_v24  ;;  %v16791_v24 = vcombine.low %v510_v19, %v514_v48  ;;  %v16800_v31 = vcombine.high %v518_v15, %v522_v17  ;;  %v2077_v19 = vld [vmem:[#allocation5 + $0x3c48] sm:$0xff] }
 0x4c0   :  { %13841 = vmatpush1.bf16.msra.mxu1 %v18301_v26  ;;  %v526_v26 = vld [vmem:[#allocation5 + $0xbd0] sm:$0xff]  ;;  %v2081_v48 = vld [vmem:[#allocation5 + $0x3c68] sm:$0xff] }
 0x4c1   :  { %13842 = vmatprep.subr.bf16.mxu1 %v18310_v28  ;;  %v18333_v28 = vcombine.low %v2053_v14, %v2057_v30  ;;  %v18358_v14 = vcombine.high %v2077_v19, %v2081_v48 }
 0x4c2   :  { %14005 = vmatpush1.bf16.msra.mxu0 %v16767_v27  ;;  %v530_v27 = vld [vmem:[#allocation5 + $0xbf0] sm:$0xff] }
 0x4c3   :  { %14006 = vmatprep.subr.bf16.mxu0 %v16776_v51  ;;  %v16799_v51 = vcombine.low %v518_v15, %v522_v17  ;;  %v16808_v35 = vcombine.high %v526_v26, %v530_v27  ;;  %v2085_v15 = vld [vmem:[#allocation5 + $0x3c88] sm:$0xff] }
 0x4c4   :  { %13843 = vmatpush1.bf16.msra.mxu1 %v18309_v42  ;;  %v534_v42 = vld [vmem:[#allocation5 + $0xc10] sm:$0xff]  ;;  %v2089_v17 = vld [vmem:[#allocation5 + $0x3ca8] sm:$0xff] }
 0x4c5   :  { %13844 = vmatprep.subr.bf16.mxu1 %v18318_v44  ;;  %v18341_v44 = vcombine.low %v2061_v25, %v2065_v53  ;;  %v18366_v25 = vcombine.high %v2085_v15, %v2089_v17  ;;  %v2198_v53 = vlaneseq }
 0x4c6   :  { %14007 = vmatpush1.bf16.msra.mxu0 %v16775_v43  ;;  %v538_v43 = vld [vmem:[#allocation5 + $0xc30] sm:$0xff] }
 0x4c7   :  { %14008 = vmatprep.subr.bf16.mxu0 %v16784_v45  ;;  %v16807_v45 = vcombine.low %v526_v26, %v530_v27  ;;  %v16816_v46 = vcombine.high %v534_v42, %v538_v43  ;;  %v2093_v27 = vld [vmem:[#allocation5 + $0x3cc8] sm:$0xff] }
 0x4c8   :  { %13845 = vmatpush1.bf16.msra.mxu1 %v18317_v62  ;;  %v542_v62 = vld [vmem:[#allocation5 + $0xc50] sm:$0xff] }
 0x4c9   :  { %13846 = vmatprep.subr.bf16.mxu1 %v18326_v52  ;;  %v18349_v52 = vcombine.low %v2069_v36, %v2073_v37 }
 0x4ca   :  { %14009 = vmatpush1.bf16.msra.mxu0 %v16783_v7  ;;  %v546_v7 = vld [vmem:[#allocation5 + $0xc70] sm:$0xff] }
 0x4cb   :  { %14010 = vmatprep.subr.bf16.mxu0 %v16792_v9  ;;  %v16815_v9 = vcombine.low %v534_v42, %v538_v43  ;;  %v16824_v30 = vcombine.high %v542_v62, %v546_v7  ;;  %v19827_v42 = vshrl.u32 %v2198_v53, 7 }
 0x4cc   :  { %13847 = vmatpush1.bf16.msra.mxu1 %v18325_v18  ;;  %v550_v18 = vld [vmem:[#allocation5 + $0xc90] sm:$0xff] }
 0x4cd   :  { %13848 = vmatprep.subr.bf16.mxu1 %v18334_v54  ;;  %v18357_v54 = vcombine.low %v2077_v19, %v2081_v48 }
 0x4ce   :  { %14011 = vmatpush1.bf16.msra.mxu0 %v16791_v24  ;;  %v554_v24 = vld [vmem:[#allocation5 + $0xcb0] sm:$0xff] }
 0x4cf   :  { %14012 = vmatprep.subr.bf16.mxu0 %v16800_v31  ;;  %v16823_v31 = vcombine.low %v542_v62, %v546_v7  ;;  %v16832_v26 = vcombine.high %v550_v18, %v554_v24  ;;  %v16831_v36 = vcombine.low %v550_v18, %v554_v24  ;;  %v2200_v7 = vsub.s32 0, %v19827_v42  ;;  %v578_v18 = vld [vmem:[#allocation5 + $0xd70] sm:$0xff] }
 0x4d0   :  { %13849 = vmatpush1.bf16.msra.mxu1 %v18333_v28  ;;  %v2097_v28 = vld [vmem:[#allocation5 + $0x3ce8] sm:$0xff] }
 0x4d1   :  { %13850 = vmatprep.subr.bf16.mxu1 %v18342_v33  ;;  %v562_v33 = vld [vmem:[#allocation5 + $0xcf0] sm:$0xff]  ;;  %v18374_v37 = vcombine.high %v2093_v27, %v2097_v28  ;;  %v18373_v19 = vcombine.low %v2093_v27, %v2097_v28  ;;  %v2121_v27 = vld [vmem:[#allocation5 + $0x3da8] sm:$0xff] }
 0x4d2   :  { %14013 = vmatpush1.bf16.msra.mxu0 %v16799_v51  ;;  %v558_v51 = vld [vmem:[#allocation5 + $0xcd0] sm:$0xff] }
 0x4d3   :  { %14014 = vmatprep.subr.bf16.mxu0 %v16808_v35  ;;  %v18365_v35 = vcombine.low %v2085_v15, %v2089_v17  ;;  %v16840_v43 = vcombine.high %v558_v51, %v562_v33  ;;  %v16839_v48 = vcombine.low %v558_v51, %v562_v33  ;;  %v2204_v15 = vsub.s32 1, %v19827_v42  ;;  %v574_v17 = vld [vmem:[#allocation5 + $0xd50] sm:$0xff] }
 0x4d4   :  { %13851 = vmatpush1.bf16.msra.mxu1 %v18341_v44  ;;  %v2101_v44 = vld [vmem:[#allocation5 + $0x3d08] sm:$0xff]  ;;  %v16856_v53 = vcombine.high %v574_v17, %v578_v18  ;;  %v582_v51 = vld [vmem:[#allocation5 + $0xd90] sm:$0xff] }
 0x4d5   :  { %13861 = vmatprep.subr.bf16.mxu1 %v18350_v22  ;;  %v566_v22 = vld [vmem:[#allocation5 + $0xd10] sm:$0xff] }
 0x4d6   :  { %14015 = vmatpush1.bf16.msra.mxu0 %v16807_v45  ;;  %v2105_v45 = vld [vmem:[#allocation5 + $0x3d28] sm:$0xff]  ;;  %v586_v33 = vld [vmem:[#allocation5 + $0xdb0] sm:$0xff] }
 0x4d7   :  { %14025 = vmatprep.subr.bf16.mxu0 %v16816_v46  ;;  %13853 = vmatmul.mubr.bf16.vlgmr.msra.gmra.mrb[4].mxu1 %v19797_v1  ;;  %v570_v46 = vld [vmem:[#allocation5 + $0xd30] sm:$0xff]  ;;  %v18382_v62 = vcombine.high %v2101_v44, %v2105_v45  ;;  %v18381_v24 = vcombine.low %v2101_v44, %v2105_v45  ;;  %v16864_v44 = vcombine.high %v582_v51, %v586_v33  ;;  %v2125_v45 = vld [vmem:[#allocation5 + $0x3dc8] sm:$0xff] }
 0x4d8   :  { %13862 = vmatpush1.bf16.msra.mxu1 %v18349_v52  ;;  %13893 = vmatprep.mubr.bf16.mxu1 %v19801_v10  ;;  %v16848_v52 = vcombine.high %v566_v22, %v570_v46 }
 0x4d9   :  { %14017 = vmatmul.mubr.bf16.vlgmr.msra.gmra.mrb[4].mxu0 %v19615_v21  ;;  %13863 = vmatprep.subr.bf16.mxu1 %v18358_v14  ;;  %v2113_v14 = vld [vmem:[#allocation5 + $0x3d68] sm:$0xff] }
 0x4da   :  { %14026 = vmatpush1.bf16.msra.mxu0 %v16815_v9  ;;  %14057 = vmatprep.mubr.bf16.mxu0 %v19626_v58  ;;  %v2109_v9 = vld [vmem:[#allocation5 + $0x3d48] sm:$0xff] }
 0x4db   :  { %14027 = vmatprep.subr.bf16.mxu0 %v16824_v30  ;;  %v2196_v30 = vld [vmem:[#allocation7] sm:$0xff] }
 0x4dc   :  { %13864 = vmatpush1.bf16.msra.mxu1 %v18357_v54  ;;  %v16847_v54 = vcombine.low %v566_v22, %v570_v46  ;;  %v2205_v28 = vrot.slane %v2196_v30, %v2204_v15  ;;  %v2129_v22 = vld [vmem:[#allocation5 + $0x3de8] sm:$0xff] }
 0x4dd   :  { %13865 = vmatprep.subr.bf16.mxu1 %v18366_v25  ;;  %v2201_v25 = vrot.slane %v2196_v30, %v2200_v7 }
 0x4de   :  { %14028 = vmatpush1.bf16.msra.mxu0 %v16823_v31  ;;  %v18390_v31 = vcombine.high %v2109_v9, %v2113_v14  ;;  %v18715_v46 = vadd.f32 %v19693_v3, %v2205_v28  ;;  %v2137_v3 = vld [vmem:[#allocation5 + $0x3e28] sm:$0xff]  ;;  %v18405_v28 = vcombine.low %v2125_v45, %v2129_v22 }
 0x4df   :  { %14029 = vmatprep.subr.bf16.mxu0 %v16832_v26  ;;  %v2117_v26 = vld [vmem:[#allocation5 + $0x3d88] sm:$0xff] }
 0x4e0   :  { %13866 = vmatpush1.bf16.msra.mxu1 %v18365_v35  ;;  %v18389_v35 = vcombine.low %v2109_v9, %v2113_v14  ;;  %v18397_v9 = vcombine.low %v2117_v26, %v2121_v27 }
 0x4e1   :  { %13867 = vmatprep.subr.bf16.mxu1 %v18374_v37  ;;  %v18398_v37 = vcombine.high %v2117_v26, %v2121_v27 }
 0x4e2   :  { %14030 = vmatpush1.bf16.msra.mxu0 %v16831_v36  ;;  %v16855_v36 = vcombine.low %v574_v17, %v578_v18  ;;  %v18406_v18 = vcombine.high %v2125_v45, %v2129_v22  ;;  %v2153_v45 = vld [vmem:[#allocation5 + $0x3ea8] sm:$0xff]  ;;  %v614_v22 = vld [vmem:[#allocation5 + $0xe90] sm:$0xff] }
 0x4e3   :  { %14031 = vmatprep.subr.bf16.mxu0 %v16840_v43  ;;  %v18713_v43 = vadd.f32 %v19691_v60, %v2201_v25  ;;  %v16863_v60 = vcombine.low %v582_v51, %v586_v33  ;;  %v598_v25 = vld [vmem:[#allocation5 + $0xe10] sm:$0xff] }
 0x4e4   :  { %13868 = vmatpush1.bf16.msra.mxu1 %v18373_v19  ;;  %v610_v51 = vld [vmem:[#allocation5 + $0xe70] sm:$0xff] }
 0x4e5   :  { %13869 = vmatprep.subr.bf16.mxu1 %v18382_v62  ;;  %v594_v62 = vld [vmem:[#allocation5 + $0xdf0] sm:$0xff] }
 0x4e6   :  { %14032 = vmatpush1.bf16.msra.mxu0 %v16839_v48  ;;  %v590_v48 = vld [vmem:[#allocation5 + $0xdd0] sm:$0xff] }
 0x4e7   :  { %14033 = vmatprep.subr.bf16.mxu0 %v16848_v52 }
 0x4e8   :  { %13870 = vmatpush1.bf16.msra.mxu1 %v18381_v24 }
 0x4e9   :  { %13871 = vmatprep.subr.bf16.mxu1 %v18390_v31  ;;  %v2133_v31 = vld [vmem:[#allocation5 + $0x3e08] sm:$0xff] }
 0x4ea   :  { %14034 = vmatpush1.bf16.msra.mxu0 %v16847_v54  ;;  %v16872_v54 = vcombine.high %v590_v48, %v594_v62  ;;  %v18414_v26 = vcombine.high %v2133_v31, %v2137_v3  ;;  %v18413_v33 = vcombine.low %v2133_v31, %v2137_v3  ;;  %v626_v31 = vld [vmem:[#allocation5 + $0xef0] sm:$0xff] }
 0x4eb   :  { %14035 = vmatprep.subr.bf16.mxu0 %v16856_v53  ;;  %v602_v53 = vld [vmem:[#allocation5 + $0xe30] sm:$0xff] }
 0x4ec   :  { %v13239_v19 = vpop.f32.mrb[0].mxu0  ;;  %13872 = vmatpush1.bf16.msra.mxu1 %v18389_v35  ;;  %v16871_v35 = vcombine.low %v590_v48, %v594_v62  ;;  %v16880_v27 = vcombine.high %v598_v25, %v602_v53 }
 0x4ed   :  { %v19837_v52 = vadd.f32 %v18713_v43, %v13239_v19  ;;  %v13241_v30 = vpop.f32.mrb[1].mxu0  ;;  %13873 = vmatprep.subr.bf16.mxu1 %v18398_v37  ;;  %v2141_v43 = vld [vmem:[#allocation5 + $0x3e48] sm:$0xff]  ;;  %v606_v37 = vld [vmem:[#allocation5 + $0xe50] sm:$0xff] }
 0x4ee   :  { %v19839_v14 = vadd.f32 %v18715_v46, %v13241_v30  ;;  %v13243_v17 = vpop.f32.mrb[2].mxu0  ;;  %14036 = vmatpush1.bf16.msra.mxu0 %v16855_v36  ;;  %v2145_v36 = vld [vmem:[#allocation5 + $0x3e68] sm:$0xff]  ;;  %v16888_v19 = vcombine.high %v606_v37, %v610_v51  ;;  %v16887_v62 = vcombine.low %v606_v37, %v610_v51 }
 0x4ef   :  { %v13244_v24 = vpop.f32.mrb[3].mxu0  ;;  %14037 = vmatprep.subr.bf16.mxu0 %v16864_v44  ;;  %v16879_v44 = vcombine.low %v598_v25, %v602_v53  ;;  %v18422_v46 = vcombine.high %v2141_v43, %v2145_v36  ;;  %v2149_v30 = vld [vmem:[#allocation5 + $0x3e88] sm:$0xff]  ;;  %v18421_v48 = vcombine.low %v2141_v43, %v2145_v36  ;;  %v634_v43 = vld [vmem:[#allocation5 + $0xf30] sm:$0xff] }
 0x4f0   :  { %13874 = vmatpush1.bf16.msra.mxu1 %v18397_v9  ;;  %v618_v9 = vld [vmem:[#allocation5 + $0xeb0] sm:$0xff]  ;;  %v18430_v17 = vcombine.high %v2149_v30, %v2153_v45  ;;  %v2161_v24 = vld [vmem:[#allocation5 + $0x3ee8] sm:$0xff]  ;;  %v18429_v3 = vcombine.low %v2149_v30, %v2153_v45 }
 0x4f1   :  { %13875 = vmatprep.subr.bf16.mxu1 %v18406_v18  ;;  %v2157_v18 = vld [vmem:[#allocation5 + $0x3ec8] sm:$0xff]  ;;  %v16895_v25 = vcombine.low %v614_v22, %v618_v9  ;;  %v642_v30 = vld [vmem:[#allocation5 + $0xf70] sm:$0xff] }
 0x4f2   :  { %14038 = vmatpush1.bf16.msra.mxu0 %v16863_v60  ;;  %v16896_v60 = vcombine.high %v614_v22, %v618_v9  ;;  %v18438_v53 = vcombine.high %v2157_v18, %v2161_v24  ;;  %v18437_v36 = vcombine.low %v2157_v18, %v2161_v24  ;;  %v650_v18 = vld [vmem:[#allocation5 + $0xfb0] sm:$0xff] }
 0x4f3   :  { %14039 = vmatprep.subr.bf16.mxu0 %v16872_v54  ;;  %v622_v54 = vld [vmem:[#allocation5 + $0xed0] sm:$0xff] }
 0x4f4   :  { %13876 = vmatpush1.bf16.msra.mxu1 %v18405_v28  ;;  %v16904_v28 = vcombine.high %v622_v54, %v626_v31  ;;  %v16903_v37 = vcombine.low %v622_v54, %v626_v31 }
 0x4f5   :  { %13877 = vmatprep.subr.bf16.mxu1 %v18414_v26  ;;  %v2169_v26 = vld [vmem:[#allocation5 + $0x3f28] sm:$0xff] }
 0x4f6   :  { %14040 = vmatpush1.bf16.msra.mxu0 %v16871_v35  ;;  %v2165_v35 = vld [vmem:[#allocation5 + $0x3f08] sm:$0xff] }
 0x4f7   :  { %14041 = vmatprep.subr.bf16.mxu0 %v16880_v27  ;;  %v630_v27 = vld [vmem:[#allocation5 + $0xf10] sm:$0xff]  ;;  %v18446_v51 = vcombine.high %v2165_v35, %v2169_v26  ;;  %v18445_v45 = vcombine.low %v2165_v35, %v2169_v26 }
 0x4f8   :  { %13878 = vmatpush1.bf16.msra.mxu1 %v18413_v33  ;;  %v16912_v33 = vcombine.high %v630_v27, %v634_v43  ;;  %v16911_v22 = vcombine.low %v630_v27, %v634_v43  ;;  %v658_v35 = vld [vmem:[#allocation5 + $0xff0] sm:$0xff] }
 0x4f9   :  { %13879 = vmatprep.subr.bf16.mxu1 %v18422_v46  ;;  %v2177_v46 = vld [vmem:[#allocation5 + $0x3f68] sm:$0xff] }
 0x4fa   :  { %14042 = vmatpush1.bf16.msra.mxu0 %v16879_v44  ;;  %v2173_v44 = vld [vmem:[#allocation5 + $0x3f48] sm:$0xff] }
 0x4fb   :  { %14043 = vmatprep.subr.bf16.mxu0 %v16888_v19  ;;  %v638_v19 = vld [vmem:[#allocation5 + $0xf50] sm:$0xff]  ;;  %v18454_v9 = vcombine.high %v2173_v44, %v2177_v46  ;;  %v18453_v24 = vcombine.low %v2173_v44, %v2177_v46 }
 0x4fc   :  { %13880 = vmatpush1.bf16.msra.mxu1 %v18421_v48  ;;  %v16920_v48 = vcombine.high %v638_v19, %v642_v30  ;;  %v16919_v54 = vcombine.low %v638_v19, %v642_v30  ;;  %v666_v44 = vld [vmem:[#allocation5 + $0x1030] sm:$0xff] }
 0x4fd   :  { %13881 = vmatprep.subr.bf16.mxu1 %v18430_v17  ;;  %v2185_v17 = vld [vmem:[#allocation5 + $0x3fa8] sm:$0xff] }
 0x4fe   :  { %14044 = vmatpush1.bf16.msra.mxu0 %v16887_v62  ;;  %v2181_v62 = vld [vmem:[#allocation5 + $0x3f88] sm:$0xff] }
 0x4ff   :  { %14045 = vmatprep.subr.bf16.mxu0 %v16896_v60  ;;  %v646_v60 = vld [vmem:[#allocation5 + $0xf90] sm:$0xff]  ;;  %v18462_v31 = vcombine.high %v2181_v62, %v2185_v17  ;;  %v18461_v26 = vcombine.low %v2181_v62, %v2185_v17 }
 0x500   :  { %13882 = vmatpush1.bf16.msra.mxu1 %v18429_v3  ;;  %v16928_v3 = vcombine.high %v646_v60, %v650_v18  ;;  %v16927_v27 = vcombine.low %v646_v60, %v650_v18  ;;  %v674_v62 = vld [vmem:[#allocation5 + $0x1070] sm:$0xff] }
 0x501   :  { %13883 = vmatprep.subr.bf16.mxu1 %v18438_v53  ;;  %v2193_v53 = vld [vmem:[#allocation5 + $0x3fe8] sm:$0xff] }
 0x502   :  { %14046 = vmatpush1.bf16.msra.mxu0 %v16895_v25  ;;  %v2189_v25 = vld [vmem:[#allocation5 + $0x3fc8] sm:$0xff] }
 0x503   :  { %14047 = vmatprep.subr.bf16.mxu0 %v16904_v28  ;;  %v654_v28 = vld [vmem:[#allocation5 + $0xfd0] sm:$0xff]  ;;  %v18470_v43 = vcombine.high %v2189_v25, %v2193_v53  ;;  %v18469_v46 = vcombine.low %v2189_v25, %v2193_v53 }
 0x504   :  { %13884 = vmatpush1.bf16.msra.mxu1 %v18437_v36  ;;  %v16936_v36 = vcombine.high %v654_v28, %v658_v35  ;;  %v16935_v19 = vcombine.low %v654_v28, %v658_v35  ;;  %v682_v25 = vld [vmem:[#allocation5 + $0x10b0] sm:$0xff] }
 0x505   :  { %13885 = vmatprep.subr.bf16.mxu1 %v18446_v51  ;;  %v155_v51 = vld [vmem:[#allocation5 + $0x38] sm:$0xff] }
 0x506   :  { %14048 = vmatpush1.bf16.msra.mxu0 %v16903_v37  ;;  %v151_v37 = vld [vmem:[#allocation5 + $0x18] sm:$0xff] }
 0x507   :  { %14049 = vmatprep.subr.bf16.mxu0 %v16912_v33  ;;  %v662_v33 = vld [vmem:[#allocation5 + $0x1010] sm:$0xff]  ;;  %v16434_v30 = vcombine.high %v151_v37, %v155_v51  ;;  %v16433_v17 = vcombine.low %v151_v37, %v155_v51 }
 0x508   :  { %13886 = vmatpush1.bf16.msra.mxu1 %v18445_v45  ;;  %v16944_v45 = vcombine.high %v662_v33, %v666_v44  ;;  %v16943_v60 = vcombine.low %v662_v33, %v666_v44  ;;  %v690_v37 = vld [vmem:[#allocation5 + $0x10f0] sm:$0xff] }
 0x509   :  { %13887 = vmatprep.subr.bf16.mxu1 %v18454_v9  ;;  %v163_v9 = vld [vmem:[#allocation5 + $0x78] sm:$0xff] }
 0x50a   :  { %14050 = vmatpush1.bf16.msra.mxu0 %v16911_v22  ;;  %v159_v22 = vld [vmem:[#allocation5 + $0x58] sm:$0xff] }
 0x50b   :  { %14051 = vmatprep.subr.bf16.mxu0 %v16920_v48  ;;  %v670_v48 = vld [vmem:[#allocation5 + $0x1050] sm:$0xff]  ;;  %v16442_v18 = vcombine.high %v159_v22, %v163_v9  ;;  %v16441_v53 = vcombine.low %v159_v22, %v163_v9 }
 0x50c   :  { %13888 = vmatpush1.bf16.msra.mxu1 %v18453_v24  ;;  %v16952_v24 = vcombine.high %v670_v48, %v674_v62  ;;  %v16951_v28 = vcombine.low %v670_v48, %v674_v62  ;;  %v698_v22 = vld [vmem:[#allocation5 + $0x1130] sm:$0xff] }
 0x50d   :  { %13889 = vmatprep.subr.bf16.mxu1 %v18462_v31  ;;  %v171_v31 = vld [vmem:[#allocation5 + $0xb8] sm:$0xff] }
 0x50e   :  { %14052 = vmatpush1.bf16.msra.mxu0 %v16919_v54  ;;  %v167_v54 = vld [vmem:[#allocation5 + $0x98] sm:$0xff] }
 0x50f   :  { %14053 = vmatprep.subr.bf16.mxu0 %v16928_v3  ;;  %v678_v3 = vld [vmem:[#allocation5 + $0x1090] sm:$0xff]  ;;  %v16450_v35 = vcombine.high %v167_v54, %v171_v31  ;;  %v16449_v51 = vcombine.low %v167_v54, %v171_v31 }
 0x510   :  { %13890 = vmatpush1.bf16.msra.mxu1 %v18461_v26  ;;  %v16960_v26 = vcombine.high %v678_v3, %v682_v25  ;;  %v16959_v33 = vcombine.low %v678_v3, %v682_v25 }
 0x511   :  { %13891 = vmatprep.subr.bf16.mxu1 %v18470_v43  ;;  %v179_v43 = vld [vmem:[#allocation5 + $0xf8] sm:$0xff] }
 0x512   :  { %14054 = vmatpush1.bf16.msra.mxu0 %v16927_v27  ;;  %v175_v27 = vld [vmem:[#allocation5 + $0xd8] sm:$0xff] }
 0x513   :  { %14055 = vmatprep.subr.bf16.mxu0 %v16936_v36  ;;  %v686_v36 = vld [vmem:[#allocation5 + $0x10d0] sm:$0xff]  ;;  %v16458_v44 = vcombine.high %v175_v27, %v179_v43  ;;  %v16457_v9 = vcombine.low %v175_v27, %v179_v43 }
 0x514   :  { %13892 = vmatpush1.bf16.msra.mxu1 %v18469_v46  ;;  %v16968_v46 = vcombine.high %v686_v36, %v690_v37  ;;  %v16967_v48 = vcombine.low %v686_v36, %v690_v37 }
 0x515   :  { %14558 = vmatprep.subr.bf16.mxu1 %v16434_v30  ;;  %v187_v30 = vld [vmem:[#allocation5 + $0x138] sm:$0xff] }
 0x516   :  { %14056 = vmatpush1.bf16.msra.mxu0 %v16935_v19  ;;  %v183_v19 = vld [vmem:[#allocation5 + $0x118] sm:$0xff] }
 0x517   :  { %14066 = vmatprep.subr.bf16.mxu0 %v16944_v45  ;;  %13894 = vmatmul.mubr.bf16.vlgmr.msra.gmra.mrb[4].mxu1 %v19809_v49  ;;  %v694_v45 = vld [vmem:[#allocation5 + $0x1110] sm:$0xff]  ;;  %v16466_v62 = vcombine.high %v183_v19, %v187_v30  ;;  %v16465_v54 = vcombine.low %v183_v19, %v187_v30 }
 0x518   :  { %14559 = vmatpush1.bf16.msra.mxu1 %v16433_v17  ;;  %14590 = vmatprep.mubr.bf16.mxu1 %v19597_v57  ;;  %v16976_v57 = vcombine.high %v694_v45, %v698_v22  ;;  %v191_v17 = vld [vmem:[#allocation5 + $0x158] sm:$0xff]  ;;  %v16975_v31 = vcombine.low %v694_v45, %v698_v22 }
 0x519   :  { %14058 = vmatmul.mubr.bf16.vlgmr.msra.gmra.mrb[4].mxu0 %v19639_v41  ;;  %14560 = vmatprep.subr.bf16.mxu1 %v16442_v18  ;;  %v702_v18 = vld [vmem:[#allocation5 + $0x1150] sm:$0xff] }
 0x51a   :  { %14067 = vmatpush1.bf16.msra.mxu0 %v16943_v60  ;;  %14098 = vmatprep.mubr.bf16.mxu0 %v19643_v47  ;;  %v195_v60 = vld [vmem:[#allocation5 + $0x178] sm:$0xff] }
 0x51b   :  { %14068 = vmatprep.subr.bf16.mxu0 %v16952_v24  ;;  %v706_v24 = vld [vmem:[#allocation5 + $0x1170] sm:$0xff]  ;;  %v16474_v3 = vcombine.high %v191_v17, %v195_v60  ;;  %v16473_v27 = vcombine.low %v191_v17, %v195_v60 }
 0x51c   :  { %14561 = vmatpush1.bf16.msra.mxu1 %v16441_v53  ;;  %v16984_v25 = vcombine.high %v702_v18, %v706_v24  ;;  %v199_v53 = vld [vmem:[#allocation5 + $0x198] sm:$0xff]  ;;  %v16983_v43 = vcombine.low %v702_v18, %v706_v24 }
 0x51d   :  { %14562 = vmatprep.subr.bf16.mxu1 %v16450_v35  ;;  %v710_v35 = vld [vmem:[#allocation5 + $0x1190] sm:$0xff] }
 0x51e   :  { %14069 = vmatpush1.bf16.msra.mxu0 %v16951_v28  ;;  %v203_v28 = vld [vmem:[#allocation5 + $0x1b8] sm:$0xff] }
 0x51f   :  { %14070 = vmatprep.subr.bf16.mxu0 %v16960_v26  ;;  %v714_v26 = vld [vmem:[#allocation5 + $0x11b0] sm:$0xff]  ;;  %v16482_v36 = vcombine.high %v199_v53, %v203_v28  ;;  %v16481_v19 = vcombine.low %v199_v53, %v203_v28 }
 0x520   :  { %14563 = vmatpush1.bf16.msra.mxu1 %v16449_v51  ;;  %v16992_v37 = vcombine.high %v710_v35, %v714_v26  ;;  %v207_v51 = vld [vmem:[#allocation5 + $0x1d8] sm:$0xff]  ;;  %v16991_v30 = vcombine.low %v710_v35, %v714_v26 }
 0x521   :  { %14564 = vmatprep.subr.bf16.mxu1 %v16458_v44  ;;  %v718_v44 = vld [vmem:[#allocation5 + $0x11d0] sm:$0xff] }
 0x522   :  { %14071 = vmatpush1.bf16.msra.mxu0 %v16959_v33  ;;  %v211_v33 = vld [vmem:[#allocation5 + $0x1f8] sm:$0xff] }
 0x523   :  { %14072 = vmatprep.subr.bf16.mxu0 %v16968_v46  ;;  %v722_v46 = vld [vmem:[#allocation5 + $0x11f0] sm:$0xff]  ;;  %v16490_v45 = vcombine.high %v207_v51, %v211_v33  ;;  %v16489_v17 = vcombine.low %v207_v51, %v211_v33 }
 0x524   :  { %14565 = vmatpush1.bf16.msra.mxu1 %v16457_v9  ;;  %v17000_v22 = vcombine.high %v718_v44, %v722_v46  ;;  %v215_v9 = vld [vmem:[#allocation5 + $0x218] sm:$0xff]  ;;  %v16999_v60 = vcombine.low %v718_v44, %v722_v46 }
 0x525   :  { %14566 = vmatprep.subr.bf16.mxu1 %v16466_v62  ;;  %v726_v62 = vld [vmem:[#allocation5 + $0x1210] sm:$0xff] }
 0x526   :  { %14073 = vmatpush1.bf16.msra.mxu0 %v16967_v48  ;;  %v219_v48 = vld [vmem:[#allocation5 + $0x238] sm:$0xff] }
 0x527   :  { %14074 = vmatprep.subr.bf16.mxu0 %v16976_v57  ;;  %v730_v57 = vld [vmem:[#allocation5 + $0x1230] sm:$0xff]  ;;  %v16498_v18 = vcombine.high %v215_v9, %v219_v48  ;;  %v16497_v53 = vcombine.low %v215_v9, %v219_v48 }
 0x528   :  { %14567 = vmatpush1.bf16.msra.mxu1 %v16465_v54  ;;  %v17008_v24 = vcombine.high %v726_v62, %v730_v57  ;;  %v223_v54 = vld [vmem:[#allocation5 + $0x258] sm:$0xff]  ;;  %v17007_v28 = vcombine.low %v726_v62, %v730_v57 }
 0x529   :  { %14568 = vmatprep.subr.bf16.mxu1 %v16474_v3  ;;  %v734_v3 = vld [vmem:[#allocation5 + $0x1250] sm:$0xff] }
 0x52a   :  { %14075 = vmatpush1.bf16.msra.mxu0 %v16975_v31  ;;  %v227_v31 = vld [vmem:[#allocation5 + $0x278] sm:$0xff] }
 0x52b   :  { %14076 = vmatprep.subr.bf16.mxu0 %v16984_v25  ;;  %v738_v25 = vld [vmem:[#allocation5 + $0x1270] sm:$0xff]  ;;  %v16506_v35 = vcombine.high %v223_v54, %v227_v31  ;;  %v16505_v51 = vcombine.low %v223_v54, %v227_v31 }
 0x52c   :  { %14569 = vmatpush1.bf16.msra.mxu1 %v16473_v27  ;;  %v17016_v26 = vcombine.high %v734_v3, %v738_v25  ;;  %v231_v27 = vld [vmem:[#allocation5 + $0x298] sm:$0xff]  ;;  %v17015_v33 = vcombine.low %v734_v3, %v738_v25 }
 0x52d   :  { %14570 = vmatprep.subr.bf16.mxu1 %v16482_v36  ;;  %v742_v36 = vld [vmem:[#allocation5 + $0x1290] sm:$0xff] }
 0x52e   :  { %14077 = vmatpush1.bf16.msra.mxu0 %v16983_v43  ;;  %v235_v43 = vld [vmem:[#allocation5 + $0x2b8] sm:$0xff] }
 0x52f   :  { %14078 = vmatprep.subr.bf16.mxu0 %v16992_v37  ;;  %v746_v37 = vld [vmem:[#allocation5 + $0x12b0] sm:$0xff]  ;;  %v16514_v44 = vcombine.high %v231_v27, %v235_v43  ;;  %v16513_v9 = vcombine.low %v231_v27, %v235_v43 }
 0x530   :  { %14571 = vmatpush1.bf16.msra.mxu1 %v16481_v19  ;;  %v17024_v46 = vcombine.high %v742_v36, %v746_v37  ;;  %v239_v19 = vld [vmem:[#allocation5 + $0x2d8] sm:$0xff]  ;;  %v17023_v48 = vcombine.low %v742_v36, %v746_v37 }
 0x531   :  { %14572 = vmatprep.subr.bf16.mxu1 %v16490_v45  ;;  %v750_v45 = vld [vmem:[#allocation5 + $0x12d0] sm:$0xff] }
 0x532   :  { %14079 = vmatpush1.bf16.msra.mxu0 %v16991_v30  ;;  %v243_v30 = vld [vmem:[#allocation5 + $0x2f8] sm:$0xff] }
 0x533   :  { %14080 = vmatprep.subr.bf16.mxu0 %v17000_v22  ;;  %v754_v22 = vld [vmem:[#allocation5 + $0x12f0] sm:$0xff]  ;;  %v16522_v62 = vcombine.high %v239_v19, %v243_v30  ;;  %v16521_v54 = vcombine.low %v239_v19, %v243_v30 }
 0x534   :  { %14573 = vmatpush1.bf16.msra.mxu1 %v16489_v17  ;;  %v17032_v57 = vcombine.high %v750_v45, %v754_v22  ;;  %v247_v17 = vld [vmem:[#allocation5 + $0x318] sm:$0xff]  ;;  %v17031_v31 = vcombine.low %v750_v45, %v754_v22 }
 0x535   :  { %14574 = vmatprep.subr.bf16.mxu1 %v16498_v18  ;;  %v758_v18 = vld [vmem:[#allocation5 + $0x1310] sm:$0xff] }
 0x536   :  { %14081 = vmatpush1.bf16.msra.mxu0 %v16999_v60  ;;  %v251_v60 = vld [vmem:[#allocation5 + $0x338] sm:$0xff] }
 0x537   :  { %14082 = vmatprep.subr.bf16.mxu0 %v17008_v24  ;;  %v762_v24 = vld [vmem:[#allocation5 + $0x1330] sm:$0xff]  ;;  %v16530_v3 = vcombine.high %v247_v17, %v251_v60  ;;  %v16529_v27 = vcombine.low %v247_v17, %v251_v60 }
 0x538   :  { %14575 = vmatpush1.bf16.msra.mxu1 %v16497_v53  ;;  %v17040_v25 = vcombine.high %v758_v18, %v762_v24  ;;  %v255_v53 = vld [vmem:[#allocation5 + $0x358] sm:$0xff]  ;;  %v17039_v43 = vcombine.low %v758_v18, %v762_v24 }
 0x539   :  { %14576 = vmatprep.subr.bf16.mxu1 %v16506_v35  ;;  %v766_v35 = vld [vmem:[#allocation5 + $0x1350] sm:$0xff] }
 0x53a   :  { %14083 = vmatpush1.bf16.msra.mxu0 %v17007_v28  ;;  %v259_v28 = vld [vmem:[#allocation5 + $0x378] sm:$0xff] }
 0x53b   :  { %14084 = vmatprep.subr.bf16.mxu0 %v17016_v26  ;;  %v770_v26 = vld [vmem:[#allocation5 + $0x1370] sm:$0xff]  ;;  %v16538_v36 = vcombine.high %v255_v53, %v259_v28  ;;  %v16537_v19 = vcombine.low %v255_v53, %v259_v28 }
 0x53c   :  { %14577 = vmatpush1.bf16.msra.mxu1 %v16505_v51  ;;  %v17048_v37 = vcombine.high %v766_v35, %v770_v26  ;;  %v263_v51 = vld [vmem:[#allocation5 + $0x398] sm:$0xff]  ;;  %v17047_v30 = vcombine.low %v766_v35, %v770_v26 }
 0x53d   :  { %14578 = vmatprep.subr.bf16.mxu1 %v16514_v44  ;;  %v774_v44 = vld [vmem:[#allocation5 + $0x1390] sm:$0xff] }
 0x53e   :  { %14085 = vmatpush1.bf16.msra.mxu0 %v17015_v33  ;;  %v267_v33 = vld [vmem:[#allocation5 + $0x3b8] sm:$0xff] }
 0x53f   :  { %14086 = vmatprep.subr.bf16.mxu0 %v17024_v46  ;;  %v778_v46 = vld [vmem:[#allocation5 + $0x13b0] sm:$0xff]  ;;  %v16546_v45 = vcombine.high %v263_v51, %v267_v33  ;;  %v16545_v17 = vcombine.low %v263_v51, %v267_v33 }
 0x540   :  { %14579 = vmatpush1.bf16.msra.mxu1 %v16513_v9  ;;  %v17056_v22 = vcombine.high %v774_v44, %v778_v46  ;;  %v271_v9 = vld [vmem:[#allocation5 + $0x3d8] sm:$0xff]  ;;  %v17055_v60 = vcombine.low %v774_v44, %v778_v46 }
 0x541   :  { %14580 = vmatprep.subr.bf16.mxu1 %v16522_v62  ;;  %v782_v62 = vld [vmem:[#allocation5 + $0x13d0] sm:$0xff] }
 0x542   :  { %14087 = vmatpush1.bf16.msra.mxu0 %v17023_v48  ;;  %v275_v48 = vld [vmem:[#allocation5 + $0x3f8] sm:$0xff] }
 0x543   :  { %14088 = vmatprep.subr.bf16.mxu0 %v17032_v57  ;;  %v786_v57 = vld [vmem:[#allocation5 + $0x13f0] sm:$0xff]  ;;  %v16554_v18 = vcombine.high %v271_v9, %v275_v48  ;;  %v16553_v53 = vcombine.low %v271_v9, %v275_v48 }
 0x544   :  { %14581 = vmatpush1.bf16.msra.mxu1 %v16521_v54  ;;  %v17064_v24 = vcombine.high %v782_v62, %v786_v57  ;;  %v279_v54 = vld [vmem:[#allocation5 + $0x418] sm:$0xff]  ;;  %v17063_v28 = vcombine.low %v782_v62, %v786_v57 }
 0x545   :  { %14582 = vmatprep.subr.bf16.mxu1 %v16530_v3  ;;  %v790_v3 = vld [vmem:[#allocation5 + $0x1410] sm:$0xff] }
 0x546   :  { %14089 = vmatpush1.bf16.msra.mxu0 %v17031_v31  ;;  %v283_v31 = vld [vmem:[#allocation5 + $0x438] sm:$0xff] }
 0x547   :  { %14090 = vmatprep.subr.bf16.mxu0 %v17040_v25  ;;  %v794_v25 = vld [vmem:[#allocation5 + $0x1430] sm:$0xff]  ;;  %v16562_v35 = vcombine.high %v279_v54, %v283_v31  ;;  %v16561_v51 = vcombine.low %v279_v54, %v283_v31 }
 0x548   :  { %14583 = vmatpush1.bf16.msra.mxu1 %v16529_v27  ;;  %v17072_v26 = vcombine.high %v790_v3, %v794_v25  ;;  %v287_v27 = vld [vmem:[#allocation5 + $0x458] sm:$0xff]  ;;  %v17071_v33 = vcombine.low %v790_v3, %v794_v25 }
 0x549   :  { %14584 = vmatprep.subr.bf16.mxu1 %v16538_v36  ;;  %v798_v36 = vld [vmem:[#allocation5 + $0x1450] sm:$0xff]  ;;  %v311_v25 = vld [vmem:[#allocation5 + $0x518] sm:$0xff] }
 0x54a   :  { %14091 = vmatpush1.bf16.msra.mxu0 %v17039_v43  ;;  %v291_v43 = vld [vmem:[#allocation5 + $0x478] sm:$0xff] }
 0x54b   :  { %14092 = vmatprep.subr.bf16.mxu0 %v17048_v37  ;;  %v802_v37 = vld [vmem:[#allocation5 + $0x1470] sm:$0xff]  ;;  %v16570_v44 = vcombine.high %v287_v27, %v291_v43  ;;  %v16569_v9 = vcombine.low %v287_v27, %v291_v43 }
 0x54c   :  { %14585 = vmatpush1.bf16.msra.mxu1 %v16537_v19  ;;  %v17080_v46 = vcombine.high %v798_v36, %v802_v37  ;;  %v295_v19 = vld [vmem:[#allocation5 + $0x498] sm:$0xff]  ;;  %v17079_v48 = vcombine.low %v798_v36, %v802_v37 }
 0x54d   :  { %14586 = vmatprep.subr.bf16.mxu1 %v16546_v45  ;;  %v806_v45 = vld [vmem:[#allocation5 + $0x1490] sm:$0xff]  ;;  %v319_v36 = vld [vmem:[#allocation5 + $0x558] sm:$0xff] }
 0x54e   :  { %14093 = vmatpush1.bf16.msra.mxu0 %v17047_v30  ;;  %v299_v30 = vld [vmem:[#allocation5 + $0x4b8] sm:$0xff] }
 0x54f   :  { %14094 = vmatprep.subr.bf16.mxu0 %v17056_v22  ;;  %v810_v22 = vld [vmem:[#allocation5 + $0x14b0] sm:$0xff]  ;;  %v16578_v62 = vcombine.high %v295_v19, %v299_v30  ;;  %v323_v37 = vld [vmem:[#allocation5 + $0x578] sm:$0xff] }
 0x550   :  { %14587 = vmatpush1.bf16.msra.mxu1 %v16545_v17  ;;  %v17088_v57 = vcombine.high %v806_v45, %v810_v22  ;;  %v303_v17 = vld [vmem:[#allocation5 + $0x4d8] sm:$0xff]  ;;  %v17087_v54 = vcombine.low %v806_v45, %v810_v22 }
 0x551   :  { %14588 = vmatprep.subr.bf16.mxu1 %v16554_v18  ;;  %v814_v18 = vld [vmem:[#allocation5 + $0x14d0] sm:$0xff]  ;;  %v327_v45 = vld [vmem:[#allocation5 + $0x598] sm:$0xff] }
 0x552   :  { %14095 = vmatpush1.bf16.msra.mxu0 %v17055_v60  ;;  %v307_v60 = vld [vmem:[#allocation5 + $0x4f8] sm:$0xff] }
 0x553   :  { %14096 = vmatprep.subr.bf16.mxu0 %v17064_v24  ;;  %v818_v24 = vld [vmem:[#allocation5 + $0x14f0] sm:$0xff]  ;;  %v16586_v31 = vcombine.high %v303_v17, %v307_v60  ;;  %v331_v22 = vld [vmem:[#allocation5 + $0x5b8] sm:$0xff] }
 0x554   :  { %14589 = vmatpush1.bf16.msra.mxu1 %v16553_v53  ;;  %v17096_v3 = vcombine.high %v814_v18, %v818_v24  ;;  %v315_v53 = vld [vmem:[#allocation5 + $0x538] sm:$0xff]  ;;  %v17095_v27 = vcombine.low %v814_v18, %v818_v24 }
 0x555   :  { %14599 = vmatprep.subr.bf16.mxu1 %v16562_v35  ;;  %v826_v35 = vld [vmem:[#allocation5 + $0x1530] sm:$0xff]  ;;  %v16594_v43 = vcombine.high %v311_v25, %v315_v53  ;;  %v335_v18 = vld [vmem:[#allocation5 + $0x5d8] sm:$0xff] }
 0x556   :  { %14097 = vmatpush1.bf16.msra.mxu0 %v17063_v28  ;;  %v822_v28 = vld [vmem:[#allocation5 + $0x1510] sm:$0xff]  ;;  %v339_v24 = vld [vmem:[#allocation5 + $0x5f8] sm:$0xff] }
 0x557   :  { %14107 = vmatprep.subr.bf16.mxu0 %v17072_v26  ;;  %14591 = vmatmul.mubr.bf16.vlgmr.msra.gmra.mrb[8].mxu1 %v19609_v16  ;;  %v16577_v16 = vcombine.low %v295_v19, %v299_v30  ;;  %v16585_v26 = vcombine.low %v303_v17, %v307_v60  ;;  %v16602_v19 = vcombine.high %v319_v36, %v323_v37 }
 0x558   :  { %14600 = vmatpush1.bf16.msra.mxu1 %v16561_v51  ;;  %14631 = vmatprep.mubr.bf16.mxu1 %v19621_v29  ;;  %v17104_v29 = vcombine.high %v822_v28, %v826_v35  ;;  %v830_v51 = vld [vmem:[#allocation5 + $0x1550] sm:$0xff]  ;;  %v16610_v17 = vcombine.high %v327_v45, %v331_v22 }
 0x559   :  { %14099 = vmatmul.mubr.bf16.vlgmr.msra.gmra.mrb[4].mxu0 %v19653_v2  ;;  %14601 = vmatprep.subr.bf16.mxu1 %v16570_v44  ;;  %v16593_v44 = vcombine.low %v311_v25, %v315_v53  ;;  %v16618_v25 = vcombine.high %v335_v18, %v339_v24 }
 0x55a   :  { %14108 = vmatpush1.bf16.msra.mxu0 %v17071_v33  ;;  %14139 = vmatprep.mubr.bf16.mxu0 %v19657_v8  ;;  %v834_v33 = vld [vmem:[#allocation5 + $0x1570] sm:$0xff] }
 0x55b   :  { %14109 = vmatprep.subr.bf16.mxu0 %v17080_v46  ;;  %v17103_v46 = vcombine.low %v822_v28, %v826_v35  ;;  %v17112_v30 = vcombine.high %v830_v51, %v834_v33  ;;  %v343_v28 = vld [vmem:[#allocation5 + $0x618] sm:$0xff] }
 0x55c   :  { %14602 = vmatpush1.bf16.msra.mxu1 %v16569_v9  ;;  %v838_v9 = vld [vmem:[#allocation5 + $0x1590] sm:$0xff]  ;;  %v347_v35 = vld [vmem:[#allocation5 + $0x638] sm:$0xff] }
 0x55d   :  { %14603 = vmatprep.subr.bf16.mxu1 %v16578_v62  ;;  %v16601_v62 = vcombine.low %v319_v36, %v323_v37  ;;  %v16626_v36 = vcombine.high %v343_v28, %v347_v35 }
 0x55e   :  { %14110 = vmatpush1.bf16.msra.mxu0 %v17079_v48  ;;  %v842_v48 = vld [vmem:[#allocation5 + $0x15b0] sm:$0xff] }
 0x55f   :  { %14111 = vmatprep.subr.bf16.mxu0 %v17088_v57  ;;  %v17111_v57 = vcombine.low %v830_v51, %v834_v33  ;;  %v17120_v60 = vcombine.high %v838_v9, %v842_v48  ;;  %v351_v51 = vld [vmem:[#allocation5 + $0x658] sm:$0xff] }
 0x560   :  { %14604 = vmatpush1.bf16.msra.mxu1 %v16577_v16  ;;  %v846_v16 = vld [vmem:[#allocation5 + $0x15d0] sm:$0xff]  ;;  %v355_v33 = vld [vmem:[#allocation5 + $0x678] sm:$0xff] }
 0x561   :  { %14605 = vmatprep.subr.bf16.mxu1 %v16586_v31  ;;  %v16609_v31 = vcombine.low %v327_v45, %v331_v22  ;;  %v16634_v45 = vcombine.high %v351_v51, %v355_v33 }
 0x562   :  { %14112 = vmatpush1.bf16.msra.mxu0 %v17087_v54  ;;  %v850_v54 = vld [vmem:[#allocation5 + $0x15f0] sm:$0xff] }
 0x563   :  { %14113 = vmatprep.subr.bf16.mxu0 %v17096_v3  ;;  %v17119_v3 = vcombine.low %v838_v9, %v842_v48  ;;  %v17128_v53 = vcombine.high %v846_v16, %v850_v54  ;;  %v359_v9 = vld [vmem:[#allocation5 + $0x698] sm:$0xff] }
 0x564   :  { %14606 = vmatpush1.bf16.msra.mxu1 %v16585_v26  ;;  %v854_v26 = vld [vmem:[#allocation5 + $0x1610] sm:$0xff]  ;;  %v363_v48 = vld [vmem:[#allocation5 + $0x6b8] sm:$0xff] }
 0x565   :  { %14607 = vmatprep.subr.bf16.mxu1 %v16594_v43  ;;  %v16617_v43 = vcombine.low %v335_v18, %v339_v24  ;;  %v16642_v18 = vcombine.high %v359_v9, %v363_v48 }
 0x566   :  { %14114 = vmatpush1.bf16.msra.mxu0 %v17095_v27  ;;  %v858_v27 = vld [vmem:[#allocation5 + $0x1630] sm:$0xff] }
 0x567   :  { %14115 = vmatprep.subr.bf16.mxu0 %v17104_v29  ;;  %v17127_v29 = vcombine.low %v846_v16, %v850_v54  ;;  %v17136_v37 = vcombine.high %v854_v26, %v858_v27  ;;  %v367_v16 = vld [vmem:[#allocation5 + $0x6d8] sm:$0xff] }
 0x568   :  { %14608 = vmatpush1.bf16.msra.mxu1 %v16593_v44  ;;  %v862_v44 = vld [vmem:[#allocation5 + $0x1650] sm:$0xff]  ;;  %v371_v54 = vld [vmem:[#allocation5 + $0x6f8] sm:$0xff] }
 0x569   :  { %14609 = vmatprep.subr.bf16.mxu1 %v16602_v19  ;;  %v16625_v19 = vcombine.low %v343_v28, %v347_v35  ;;  %v16650_v28 = vcombine.high %v367_v16, %v371_v54 }
 0x56a   :  { %14116 = vmatpush1.bf16.msra.mxu0 %v17103_v46  ;;  %v866_v46 = vld [vmem:[#allocation5 + $0x1670] sm:$0xff] }
 0x56b   :  { %14117 = vmatprep.subr.bf16.mxu0 %v17112_v30  ;;  %v17135_v30 = vcombine.low %v854_v26, %v858_v27  ;;  %v17144_v22 = vcombine.high %v862_v44, %v866_v46  ;;  %v375_v26 = vld [vmem:[#allocation5 + $0x718] sm:$0xff] }
 0x56c   :  { %14610 = vmatpush1.bf16.msra.mxu1 %v16601_v62  ;;  %v870_v62 = vld [vmem:[#allocation5 + $0x1690] sm:$0xff]  ;;  %v379_v27 = vld [vmem:[#allocation5 + $0x738] sm:$0xff] }
 0x56d   :  { %14611 = vmatprep.subr.bf16.mxu1 %v16610_v17  ;;  %v16633_v17 = vcombine.low %v351_v51, %v355_v33  ;;  %v16658_v51 = vcombine.high %v375_v26, %v379_v27 }
 0x56e   :  { %14118 = vmatpush1.bf16.msra.mxu0 %v17111_v57  ;;  %v874_v57 = vld [vmem:[#allocation5 + $0x16b0] sm:$0xff] }
 0x56f   :  { %14119 = vmatprep.subr.bf16.mxu0 %v17120_v60  ;;  %v17143_v60 = vcombine.low %v862_v44, %v866_v46  ;;  %v17152_v24 = vcombine.high %v870_v62, %v874_v57  ;;  %v383_v44 = vld [vmem:[#allocation5 + $0x758] sm:$0xff] }
 0x570   :  { %14612 = vmatpush1.bf16.msra.mxu1 %v16609_v31  ;;  %v878_v31 = vld [vmem:[#allocation5 + $0x16d0] sm:$0xff]  ;;  %v387_v46 = vld [vmem:[#allocation5 + $0x778] sm:$0xff] }
 0x571   :  { %14613 = vmatprep.subr.bf16.mxu1 %v16618_v25  ;;  %v16641_v25 = vcombine.low %v359_v9, %v363_v48  ;;  %v16666_v9 = vcombine.high %v383_v44, %v387_v46 }
 0x572   :  { %14120 = vmatpush1.bf16.msra.mxu0 %v17119_v3  ;;  %v882_v3 = vld [vmem:[#allocation5 + $0x16f0] sm:$0xff] }
 0x573   :  { %14121 = vmatprep.subr.bf16.mxu0 %v17128_v53  ;;  %v17151_v53 = vcombine.low %v870_v62, %v874_v57  ;;  %v17160_v35 = vcombine.high %v878_v31, %v882_v3  ;;  %v391_v62 = vld [vmem:[#allocation5 + $0x798] sm:$0xff] }
 0x574   :  { %14614 = vmatpush1.bf16.msra.mxu1 %v16617_v43  ;;  %v886_v43 = vld [vmem:[#allocation5 + $0x1710] sm:$0xff]  ;;  %v395_v57 = vld [vmem:[#allocation5 + $0x7b8] sm:$0xff] }
 0x575   :  { %14615 = vmatprep.subr.bf16.mxu1 %v16626_v36  ;;  %v16649_v36 = vcombine.low %v367_v16, %v371_v54  ;;  %v16674_v16 = vcombine.high %v391_v62, %v395_v57 }
 0x576   :  { %14122 = vmatpush1.bf16.msra.mxu0 %v17127_v29  ;;  %v890_v29 = vld [vmem:[#allocation5 + $0x1730] sm:$0xff] }
 0x577   :  { %14123 = vmatprep.subr.bf16.mxu0 %v17136_v37  ;;  %v17159_v37 = vcombine.low %v878_v31, %v882_v3  ;;  %v17168_v33 = vcombine.high %v886_v43, %v890_v29  ;;  %v399_v31 = vld [vmem:[#allocation5 + $0x7d8] sm:$0xff] }
 0x578   :  { %14616 = vmatpush1.bf16.msra.mxu1 %v16625_v19  ;;  %v894_v19 = vld [vmem:[#allocation5 + $0x1750] sm:$0xff]  ;;  %v403_v3 = vld [vmem:[#allocation5 + $0x7f8] sm:$0xff] }
 0x579   :  { %14617 = vmatprep.subr.bf16.mxu1 %v16634_v45  ;;  %v16657_v45 = vcombine.low %v375_v26, %v379_v27  ;;  %v16682_v26 = vcombine.high %v399_v31, %v403_v3 }
 0x57a   :  { %14124 = vmatpush1.bf16.msra.mxu0 %v17135_v30  ;;  %v898_v30 = vld [vmem:[#allocation5 + $0x1770] sm:$0xff] }
 0x57b   :  { %14125 = vmatprep.subr.bf16.mxu0 %v17144_v22  ;;  %v17167_v22 = vcombine.low %v886_v43, %v890_v29  ;;  %v17176_v48 = vcombine.high %v894_v19, %v898_v30  ;;  %v407_v43 = vld [vmem:[#allocation5 + $0x818] sm:$0xff] }
 0x57c   :  { %14618 = vmatpush1.bf16.msra.mxu1 %v16633_v17  ;;  %v902_v17 = vld [vmem:[#allocation5 + $0x1790] sm:$0xff]  ;;  %v411_v29 = vld [vmem:[#allocation5 + $0x838] sm:$0xff] }
 0x57d   :  { %14619 = vmatprep.subr.bf16.mxu1 %v16642_v18  ;;  %v16665_v18 = vcombine.low %v383_v44, %v387_v46  ;;  %v16690_v44 = vcombine.high %v407_v43, %v411_v29 }
 0x57e   :  { %14126 = vmatpush1.bf16.msra.mxu0 %v17143_v60  ;;  %v906_v60 = vld [vmem:[#allocation5 + $0x17b0] sm:$0xff] }
 0x57f   :  { %14127 = vmatprep.subr.bf16.mxu0 %v17152_v24  ;;  %v17175_v24 = vcombine.low %v894_v19, %v898_v30  ;;  %v17184_v54 = vcombine.high %v902_v17, %v906_v60  ;;  %v415_v19 = vld [vmem:[#allocation5 + $0x858] sm:$0xff] }
 0x580   :  { %14620 = vmatpush1.bf16.msra.mxu1 %v16641_v25  ;;  %v910_v25 = vld [vmem:[#allocation5 + $0x17d0] sm:$0xff]  ;;  %v419_v30 = vld [vmem:[#allocation5 + $0x878] sm:$0xff] }
 0x581   :  { %14621 = vmatprep.subr.bf16.mxu1 %v16650_v28  ;;  %v16673_v28 = vcombine.low %v391_v62, %v395_v57  ;;  %v16698_v62 = vcombine.high %v415_v19, %v419_v30 }
 0x582   :  { %14128 = vmatpush1.bf16.msra.mxu0 %v17151_v53  ;;  %v914_v53 = vld [vmem:[#allocation5 + $0x17f0] sm:$0xff] }
 0x583   :  { %14129 = vmatprep.subr.bf16.mxu0 %v17160_v35  ;;  %v17183_v35 = vcombine.low %v902_v17, %v906_v60  ;;  %v17192_v27 = vcombine.high %v910_v25, %v914_v53  ;;  %v423_v17 = vld [vmem:[#allocation5 + $0x898] sm:$0xff] }
 0x584   :  { %14622 = vmatpush1.bf16.msra.mxu1 %v16649_v36  ;;  %v918_v36 = vld [vmem:[#allocation5 + $0x1810] sm:$0xff]  ;;  %v427_v60 = vld [vmem:[#allocation5 + $0x8b8] sm:$0xff] }
 0x585   :  { %14623 = vmatprep.subr.bf16.mxu1 %v16658_v51  ;;  %v16681_v51 = vcombine.low %v399_v31, %v403_v3  ;;  %v16706_v31 = vcombine.high %v423_v17, %v427_v60 }
 0x586   :  { %14130 = vmatpush1.bf16.msra.mxu0 %v17159_v37  ;;  %v922_v37 = vld [vmem:[#allocation5 + $0x1830] sm:$0xff] }
 0x587   :  { %14131 = vmatprep.subr.bf16.mxu0 %v17168_v33  ;;  %v17191_v33 = vcombine.low %v910_v25, %v914_v53  ;;  %v17200_v46 = vcombine.high %v918_v36, %v922_v37  ;;  %v431_v25 = vld [vmem:[#allocation5 + $0x8d8] sm:$0xff] }
 0x588   :  { %14624 = vmatpush1.bf16.msra.mxu1 %v16657_v45  ;;  %v926_v45 = vld [vmem:[#allocation5 + $0x1850] sm:$0xff]  ;;  %v435_v53 = vld [vmem:[#allocation5 + $0x8f8] sm:$0xff] }
 0x589   :  { %14625 = vmatprep.subr.bf16.mxu1 %v16666_v9  ;;  %v16689_v9 = vcombine.low %v407_v43, %v411_v29  ;;  %v439_v29 = vld [vmem:[#allocation5 + $0x918] sm:$0xff] }
 0x58a   :  { %14132 = vmatpush1.bf16.msra.mxu0 %v17167_v22  ;;  %v930_v22 = vld [vmem:[#allocation5 + $0x1870] sm:$0xff] }
 0x58b   :  { %14133 = vmatprep.subr.bf16.mxu0 %v17176_v48  ;;  %v17199_v48 = vcombine.low %v918_v36, %v922_v37  ;;  %v17208_v57 = vcombine.high %v926_v45, %v930_v22  ;;  %v443_v36 = vld [vmem:[#allocation5 + $0x938] sm:$0xff]  ;;  %v950_v37 = vld [vmem:[#allocation5 + $0x1910] sm:$0xff] }
 0x58c   :  { %14626 = vmatpush1.bf16.msra.mxu1 %v16665_v18  ;;  %v934_v18 = vld [vmem:[#allocation5 + $0x1890] sm:$0xff] }
 0x58d   :  { %14627 = vmatprep.subr.bf16.mxu1 %v16674_v16  ;;  %v16697_v16 = vcombine.low %v415_v19, %v419_v30  ;;  %v447_v19 = vld [vmem:[#allocation5 + $0x958] sm:$0xff] }
 0x58e   :  { %14134 = vmatpush1.bf16.msra.mxu0 %v17175_v24  ;;  %v938_v24 = vld [vmem:[#allocation5 + $0x18b0] sm:$0xff]  ;;  %v451_v30 = vld [vmem:[#allocation5 + $0x978] sm:$0xff] }
 0x58f   :  { %14135 = vmatprep.subr.bf16.mxu0 %v17184_v54  ;;  %v17207_v54 = vcombine.low %v926_v45, %v930_v22  ;;  %v17216_v3 = vcombine.high %v934_v18, %v938_v24  ;;  %v958_v45 = vld [vmem:[#allocation5 + $0x1950] sm:$0xff] }
 0x590   :  { %14628 = vmatpush1.bf16.msra.mxu1 %v16673_v28  ;;  %v942_v28 = vld [vmem:[#allocation5 + $0x18d0] sm:$0xff] }
 0x591   :  { %14629 = vmatprep.subr.bf16.mxu1 %v16682_v26  ;;  %v17215_v26 = vcombine.low %v934_v18, %v938_v24  ;;  %v962_v22 = vld [vmem:[#allocation5 + $0x1970] sm:$0xff] }
 0x592   :  { %14136 = vmatpush1.bf16.msra.mxu0 %v17183_v35  ;;  %v946_v35 = vld [vmem:[#allocation5 + $0x18f0] sm:$0xff] }
 0x593   :  { %14137 = vmatprep.subr.bf16.mxu0 %v17192_v27  ;;  %v16714_v27 = vcombine.high %v431_v25, %v435_v53  ;;  %v17224_v43 = vcombine.high %v942_v28, %v946_v35  ;;  %v966_v18 = vld [vmem:[#allocation5 + $0x1990] sm:$0xff] }
 0x594   :  { %14630 = vmatpush1.bf16.msra.mxu1 %v16681_v51  ;;  %v954_v51 = vld [vmem:[#allocation5 + $0x1930] sm:$0xff] }
 0x595   :  { %14640 = vmatprep.subr.bf16.mxu1 %v16690_v44  ;;  %v17223_v44 = vcombine.low %v942_v28, %v946_v35  ;;  %v970_v24 = vld [vmem:[#allocation5 + $0x19b0] sm:$0xff] }
 0x596   :  { %14138 = vmatpush1.bf16.msra.mxu0 %v17191_v33  ;;  %v16713_v33 = vcombine.low %v431_v25, %v435_v53  ;;  %v463_v25 = vld [vmem:[#allocation5 + $0x9d8] sm:$0xff]  ;;  %v974_v28 = vld [vmem:[#allocation5 + $0x19d0] sm:$0xff] }
 0x597   :  { %14148 = vmatprep.subr.bf16.mxu0 %v17200_v46  ;;  %14632 = vmatmul.mubr.bf16.vlgmr.msra.gmra.mrb[8].mxu1 %v19635_v39  ;;  %v16705_v39 = vcombine.low %v423_v17, %v427_v60  ;;  %v16722_v46 = vcombine.high %v439_v29, %v443_v36  ;;  %v455_v17 = vld [vmem:[#allocation5 + $0x998] sm:$0xff]  ;;  %v978_v35 = vld [vmem:[#allocation5 + $0x19f0] sm:$0xff] }
 0x598   :  { %14641 = vmatpush1.bf16.msra.mxu1 %v16689_v9  ;;  %14672 = vmatprep.mubr.bf16.mxu1 %v19603_v61  ;;  %v17232_v61 = vcombine.high %v950_v37, %v954_v51  ;;  %v16721_v9 = vcombine.low %v439_v29, %v443_v36  ;;  %v459_v60 = vld [vmem:[#allocation5 + $0x9b8] sm:$0xff] }
 0x599   :  { %14140 = vmatmul.mubr.bf16.vlgmr.msra.gmra.mrb[4].mxu0 %v19667_v32  ;;  %14642 = vmatprep.subr.bf16.mxu1 %v16698_v62  ;;  %v16730_v62 = vcombine.high %v447_v19, %v451_v30  ;;  %v467_v53 = vld [vmem:[#allocation5 + $0x9f8] sm:$0xff] }
 0x59a   :  { %14149 = vmatpush1.bf16.msra.mxu0 %v17199_v48  ;;  %14180 = vmatprep.mubr.bf16.mxu0 %v19671_v40  ;;  %v17231_v48 = vcombine.low %v950_v37, %v954_v51  ;;  %v471_v29 = vld [vmem:[#allocation5 + $0xa18] sm:$0xff]  ;;  %v982_v37 = vld [vmem:[#allocation5 + $0x1a10] sm:$0xff] }
 0x59b   :  { %14150 = vmatprep.subr.bf16.mxu0 %v17208_v57  ;;  %v17240_v57 = vcombine.high %v958_v45, %v962_v22  ;;  %v475_v36 = vld [vmem:[#allocation5 + $0xa38] sm:$0xff]  ;;  %v986_v51 = vld [vmem:[#allocation5 + $0x1a30] sm:$0xff] }
 0x59c   :  { %14643 = vmatpush1.bf16.msra.mxu1 %v16697_v16  ;;  %v16729_v16 = vcombine.low %v447_v19, %v451_v30  ;;  %v479_v19 = vld [vmem:[#allocation5 + $0xa58] sm:$0xff] }
 0x59d   :  { %14644 = vmatprep.subr.bf16.mxu1 %v16706_v31  ;;  %v16738_v31 = vcombine.high %v455_v17, %v459_v60  ;;  %v483_v30 = vld [vmem:[#allocation5 + $0xa78] sm:$0xff] }
 0x59e   :  { %14151 = vmatpush1.bf16.msra.mxu0 %v17207_v54  ;;  %v17239_v54 = vcombine.low %v958_v45, %v962_v22  ;;  %v990_v45 = vld [vmem:[#allocation5 + $0x1a50] sm:$0xff] }
 0x59f   :  { %14152 = vmatprep.subr.bf16.mxu0 %v17216_v3  ;;  %v17248_v3 = vcombine.high %v966_v18, %v970_v24  ;;  %v994_v22 = vld [vmem:[#allocation5 + $0x1a70] sm:$0xff] }
 0x5a0   :  { %14645 = vmatpush1.bf16.msra.mxu1 %v16705_v39  ;;  %v16737_v39 = vcombine.low %v455_v17, %v459_v60  ;;  %v487_v17 = vld [vmem:[#allocation5 + $0xa98] sm:$0xff] }
 0x5a1   :  { %14646 = vmatprep.subr.bf16.mxu1 %v16714_v27  ;;  %v16746_v27 = vcombine.high %v463_v25, %v467_v53  ;;  %v491_v60 = vld [vmem:[#allocation5 + $0xab8] sm:$0xff] }
 0x5a2   :  { %14153 = vmatpush1.bf16.msra.mxu0 %v17215_v26  ;;  %v17247_v26 = vcombine.low %v966_v18, %v970_v24  ;;  %v998_v18 = vld [vmem:[#allocation5 + $0x1a90] sm:$0xff] }
 0x5a3   :  { %14154 = vmatprep.subr.bf16.mxu0 %v17224_v43  ;;  %v17256_v43 = vcombine.high %v974_v28, %v978_v35  ;;  %v1002_v24 = vld [vmem:[#allocation5 + $0x1ab0] sm:$0xff] }
 0x5a4   :  { %14647 = vmatpush1.bf16.msra.mxu1 %v16713_v33  ;;  %v16745_v33 = vcombine.low %v463_v25, %v467_v53  ;;  %v495_v25 = vld [vmem:[#allocation5 + $0xad8] sm:$0xff] }
 0x5a5   :  { %14648 = vmatprep.subr.bf16.mxu1 %v16722_v46  ;;  %v16754_v46 = vcombine.high %v471_v29, %v475_v36  ;;  %v499_v53 = vld [vmem:[#allocation5 + $0xaf8] sm:$0xff] }
 0x5a6   :  { %14155 = vmatpush1.bf16.msra.mxu0 %v17223_v44  ;;  %v17255_v44 = vcombine.low %v974_v28, %v978_v35  ;;  %v1006_v28 = vld [vmem:[#allocation5 + $0x1ad0] sm:$0xff] }
 0x5a7   :  { %14156 = vmatprep.subr.bf16.mxu0 %v17232_v61  ;;  %v17264_v61 = vcombine.high %v982_v37, %v986_v51  ;;  %v1010_v35 = vld [vmem:[#allocation5 + $0x1af0] sm:$0xff] }
 0x5a8   :  { %14649 = vmatpush1.bf16.msra.mxu1 %v16721_v9  ;;  %v16753_v9 = vcombine.low %v471_v29, %v475_v36  ;;  %v503_v29 = vld [vmem:[#allocation5 + $0xb18] sm:$0xff] }
 0x5a9   :  { %14650 = vmatprep.subr.bf16.mxu1 %v16730_v62  ;;  %v16762_v62 = vcombine.high %v479_v19, %v483_v30  ;;  %v507_v36 = vld [vmem:[#allocation5 + $0xb38] sm:$0xff] }
 0x5aa   :  { %14157 = vmatpush1.bf16.msra.mxu0 %v17231_v48  ;;  %v17263_v48 = vcombine.low %v982_v37, %v986_v51  ;;  %v1014_v37 = vld [vmem:[#allocation5 + $0x1b10] sm:$0xff] }
 0x5ab   :  { %14158 = vmatprep.subr.bf16.mxu0 %v17240_v57  ;;  %v17272_v57 = vcombine.high %v990_v45, %v994_v22  ;;  %v1018_v51 = vld [vmem:[#allocation5 + $0x1b30] sm:$0xff] }
 0x5ac   :  { %14651 = vmatpush1.bf16.msra.mxu1 %v16729_v16  ;;  %v16761_v16 = vcombine.low %v479_v19, %v483_v30  ;;  %v511_v19 = vld [vmem:[#allocation5 + $0xb58] sm:$0xff] }
 0x5ad   :  { %14652 = vmatprep.subr.bf16.mxu1 %v16738_v31  ;;  %v16770_v31 = vcombine.high %v487_v17, %v491_v60  ;;  %v515_v30 = vld [vmem:[#allocation5 + $0xb78] sm:$0xff] }
 0x5ae   :  { %14159 = vmatpush1.bf16.msra.mxu0 %v17239_v54  ;;  %v17271_v54 = vcombine.low %v990_v45, %v994_v22  ;;  %v1022_v45 = vld [vmem:[#allocation5 + $0x1b50] sm:$0xff] }
 0x5af   :  { %14160 = vmatprep.subr.bf16.mxu0 %v17248_v3  ;;  %v17280_v3 = vcombine.high %v998_v18, %v1002_v24  ;;  %v1026_v22 = vld [vmem:[#allocation5 + $0x1b70] sm:$0xff] }
 0x5b0   :  { %14653 = vmatpush1.bf16.msra.mxu1 %v16737_v39  ;;  %v16769_v39 = vcombine.low %v487_v17, %v491_v60  ;;  %v519_v17 = vld [vmem:[#allocation5 + $0xb98] sm:$0xff] }
 0x5b1   :  { %14654 = vmatprep.subr.bf16.mxu1 %v16746_v27  ;;  %v16778_v27 = vcombine.high %v495_v25, %v499_v53  ;;  %v523_v60 = vld [vmem:[#allocation5 + $0xbb8] sm:$0xff] }
 0x5b2   :  { %14161 = vmatpush1.bf16.msra.mxu0 %v17247_v26  ;;  %v17279_v26 = vcombine.low %v998_v18, %v1002_v24  ;;  %v1030_v18 = vld [vmem:[#allocation5 + $0x1b90] sm:$0xff] }
 0x5b3   :  { %14162 = vmatprep.subr.bf16.mxu0 %v17256_v43  ;;  %v17288_v43 = vcombine.high %v1006_v28, %v1010_v35  ;;  %v1034_v24 = vld [vmem:[#allocation5 + $0x1bb0] sm:$0xff] }
 0x5b4   :  { %14655 = vmatpush1.bf16.msra.mxu1 %v16745_v33  ;;  %v16777_v33 = vcombine.low %v495_v25, %v499_v53  ;;  %v527_v25 = vld [vmem:[#allocation5 + $0xbd8] sm:$0xff] }
 0x5b5   :  { %14656 = vmatprep.subr.bf16.mxu1 %v16754_v46  ;;  %v16786_v46 = vcombine.high %v503_v29, %v507_v36  ;;  %v531_v53 = vld [vmem:[#allocation5 + $0xbf8] sm:$0xff] }
 0x5b6   :  { %14163 = vmatpush1.bf16.msra.mxu0 %v17255_v44  ;;  %v17287_v44 = vcombine.low %v1006_v28, %v1010_v35  ;;  %v1038_v28 = vld [vmem:[#allocation5 + $0x1bd0] sm:$0xff] }
 0x5b7   :  { %14164 = vmatprep.subr.bf16.mxu0 %v17264_v61  ;;  %v17296_v61 = vcombine.high %v1014_v37, %v1018_v51  ;;  %v1042_v35 = vld [vmem:[#allocation5 + $0x1bf0] sm:$0xff] }
 0x5b8   :  { %14657 = vmatpush1.bf16.msra.mxu1 %v16753_v9  ;;  %v16785_v9 = vcombine.low %v503_v29, %v507_v36  ;;  %v535_v29 = vld [vmem:[#allocation5 + $0xc18] sm:$0xff] }
 0x5b9   :  { %14658 = vmatprep.subr.bf16.mxu1 %v16762_v62  ;;  %v16794_v62 = vcombine.high %v511_v19, %v515_v30  ;;  %v539_v36 = vld [vmem:[#allocation5 + $0xc38] sm:$0xff] }
 0x5ba   :  { %14165 = vmatpush1.bf16.msra.mxu0 %v17263_v48  ;;  %v17295_v48 = vcombine.low %v1014_v37, %v1018_v51  ;;  %v1046_v37 = vld [vmem:[#allocation5 + $0x1c10] sm:$0xff] }
 0x5bb   :  { %14166 = vmatprep.subr.bf16.mxu0 %v17272_v57  ;;  %v17304_v57 = vcombine.high %v1022_v45, %v1026_v22  ;;  %v1050_v51 = vld [vmem:[#allocation5 + $0x1c30] sm:$0xff] }
 0x5bc   :  { %14659 = vmatpush1.bf16.msra.mxu1 %v16761_v16  ;;  %v16793_v16 = vcombine.low %v511_v19, %v515_v30  ;;  %v543_v19 = vld [vmem:[#allocation5 + $0xc58] sm:$0xff] }
 0x5bd   :  { %14660 = vmatprep.subr.bf16.mxu1 %v16770_v31  ;;  %v16802_v31 = vcombine.high %v519_v17, %v523_v60  ;;  %v547_v30 = vld [vmem:[#allocation5 + $0xc78] sm:$0xff] }
 0x5be   :  { %14167 = vmatpush1.bf16.msra.mxu0 %v17271_v54  ;;  %v17303_v54 = vcombine.low %v1022_v45, %v1026_v22  ;;  %v1054_v45 = vld [vmem:[#allocation5 + $0x1c50] sm:$0xff] }
 0x5bf   :  { %14168 = vmatprep.subr.bf16.mxu0 %v17280_v3  ;;  %v17312_v3 = vcombine.high %v1030_v18, %v1034_v24  ;;  %v1058_v22 = vld [vmem:[#allocation5 + $0x1c70] sm:$0xff] }
 0x5c0   :  { %14661 = vmatpush1.bf16.msra.mxu1 %v16769_v39  ;;  %v16801_v39 = vcombine.low %v519_v17, %v523_v60  ;;  %v551_v17 = vld [vmem:[#allocation5 + $0xc98] sm:$0xff] }
 0x5c1   :  { %14662 = vmatprep.subr.bf16.mxu1 %v16778_v27  ;;  %v16810_v27 = vcombine.high %v527_v25, %v531_v53  ;;  %v555_v60 = vld [vmem:[#allocation5 + $0xcb8] sm:$0xff] }
 0x5c2   :  { %14169 = vmatpush1.bf16.msra.mxu0 %v17279_v26  ;;  %v17311_v26 = vcombine.low %v1030_v18, %v1034_v24  ;;  %v1062_v18 = vld [vmem:[#allocation5 + $0x1c90] sm:$0xff] }
 0x5c3   :  { %14170 = vmatprep.subr.bf16.mxu0 %v17288_v43  ;;  %v17320_v43 = vcombine.high %v1038_v28, %v1042_v35  ;;  %v1066_v24 = vld [vmem:[#allocation5 + $0x1cb0] sm:$0xff] }
 0x5c4   :  { %14663 = vmatpush1.bf16.msra.mxu1 %v16777_v33  ;;  %v16809_v33 = vcombine.low %v527_v25, %v531_v53  ;;  %v559_v25 = vld [vmem:[#allocation5 + $0xcd8] sm:$0xff] }
 0x5c5   :  { %14664 = vmatprep.subr.bf16.mxu1 %v16786_v46  ;;  %v16818_v46 = vcombine.high %v535_v29, %v539_v36  ;;  %v563_v53 = vld [vmem:[#allocation5 + $0xcf8] sm:$0xff] }
 0x5c6   :  { %14171 = vmatpush1.bf16.msra.mxu0 %v17287_v44  ;;  %v17319_v44 = vcombine.low %v1038_v28, %v1042_v35  ;;  %v1070_v28 = vld [vmem:[#allocation5 + $0x1cd0] sm:$0xff] }
 0x5c7   :  { %14172 = vmatprep.subr.bf16.mxu0 %v17296_v61  ;;  %v17328_v61 = vcombine.high %v1046_v37, %v1050_v51  ;;  %v1074_v35 = vld [vmem:[#allocation5 + $0x1cf0] sm:$0xff] }
 0x5c8   :  { %14665 = vmatpush1.bf16.msra.mxu1 %v16785_v9  ;;  %v16817_v9 = vcombine.low %v535_v29, %v539_v36  ;;  %v571_v29 = vld [vmem:[#allocation5 + $0xd38] sm:$0xff]  ;;  %v1078_v36 = vld [vmem:[#allocation5 + $0x1d10] sm:$0xff] }
 0x5c9   :  { %14666 = vmatprep.subr.bf16.mxu1 %v16794_v62  ;;  %v16826_v62 = vcombine.high %v543_v19, %v547_v30 }
 0x5ca   :  { %14173 = vmatpush1.bf16.msra.mxu0 %v17295_v48  ;;  %v17327_v48 = vcombine.low %v1046_v37, %v1050_v51  ;;  %v1082_v37 = vld [vmem:[#allocation5 + $0x1d30] sm:$0xff]  ;;  %v16841_v51 = vcombine.low %v559_v25, %v563_v53 }
 0x5cb   :  { %14174 = vmatprep.subr.bf16.mxu0 %v17304_v57  ;;  %v17336_v57 = vcombine.high %v1054_v45, %v1058_v22 }
 0x5cc   :  { %14667 = vmatpush1.bf16.msra.mxu1 %v16793_v16  ;;  %v16825_v16 = vcombine.low %v543_v19, %v547_v30  ;;  %v1086_v19 = vld [vmem:[#allocation5 + $0x1d50] sm:$0xff] }
 0x5cd   :  { %14668 = vmatprep.subr.bf16.mxu1 %v16802_v31  ;;  %v16834_v31 = vcombine.high %v551_v17, %v555_v60  ;;  %v1090_v30 = vld [vmem:[#allocation5 + $0x1d70] sm:$0xff] }
 0x5ce   :  { %14175 = vmatpush1.bf16.msra.mxu0 %v17303_v54  ;;  %v17335_v54 = vcombine.low %v1054_v45, %v1058_v22  ;;  %v17359_v22 = vcombine.low %v1078_v36, %v1082_v37 }
 0x5cf   :  { %14176 = vmatprep.subr.bf16.mxu0 %v17312_v3  ;;  %v17344_v3 = vcombine.high %v1062_v18, %v1066_v24 }
 0x5d0   :  { %14669 = vmatpush1.bf16.msra.mxu1 %v16801_v39  ;;  %v17343_v39 = vcombine.low %v1062_v18, %v1066_v24  ;;  %v17367_v24 = vcombine.low %v1086_v19, %v1090_v30 }
 0x5d1   :  { %14670 = vmatprep.subr.bf16.mxu1 %v16810_v27  ;;  %v17352_v27 = vcombine.high %v1070_v28, %v1074_v35 }
 0x5d2   :  { %14177 = vmatpush1.bf16.msra.mxu0 %v17311_v26  ;;  %v16842_v26 = vcombine.high %v559_v25, %v563_v53  ;;  %v595_v25 = vld [vmem:[#allocation5 + $0xdf8] sm:$0xff] }
 0x5d3   :  { %14178 = vmatprep.subr.bf16.mxu0 %v17320_v43  ;;  %v567_v43 = vld [vmem:[#allocation5 + $0xd18] sm:$0xff] }
 0x5d4   :  { %14671 = vmatpush1.bf16.msra.mxu1 %v16809_v33  ;;  %v17351_v33 = vcombine.low %v1070_v28, %v1074_v35  ;;  %v16849_v45 = vcombine.low %v567_v43, %v571_v29  ;;  %v1102_v28 = vld [vmem:[#allocation5 + $0x1dd0] sm:$0xff] }
 0x5d5   :  { %14681 = vmatprep.subr.bf16.mxu1 %v16818_v46  ;;  %v575_v46 = vld [vmem:[#allocation5 + $0xd58] sm:$0xff]  ;;  %v1106_v35 = vld [vmem:[#allocation5 + $0x1df0] sm:$0xff] }
 0x5d6   :  { %14179 = vmatpush1.bf16.msra.mxu0 %v17319_v44  ;;  %v16850_v44 = vcombine.high %v567_v43, %v571_v29  ;;  %v17384_v29 = vcombine.high %v1102_v28, %v1106_v35 }
 0x5d7   :  { %14189 = vmatprep.subr.bf16.mxu0 %v17328_v61  ;;  %14673 = vmatmul.mubr.bf16.vlgmr.msra.gmra.mrb[8].mxu1 %v19615_v21  ;;  %v16833_v21 = vcombine.low %v551_v17, %v555_v60  ;;  %v579_v61 = vld [vmem:[#allocation5 + $0xd78] sm:$0xff]  ;;  %v1094_v17 = vld [vmem:[#allocation5 + $0x1d90] sm:$0xff] }
 0x5d8   :  { %14682 = vmatpush1.bf16.msra.mxu1 %v16817_v9  ;;  %14713 = vmatprep.mubr.bf16.mxu1 %v19626_v58  ;;  %v17360_v58 = vcombine.high %v1078_v36, %v1082_v37  ;;  %v16858_v9 = vcombine.high %v575_v46, %v579_v61  ;;  %v1098_v60 = vld [vmem:[#allocation5 + $0x1db0] sm:$0xff]  ;;  %v16857_v18 = vcombine.low %v575_v46, %v579_v61  ;;  %v599_v36 = vld [vmem:[#allocation5 + $0xe18] sm:$0xff] }
 0x5d9   :  { %14181 = vmatmul.mubr.bf16.vlgmr.msra.gmra.mrb[4].mxu0 %v19681_v6  ;;  %14683 = vmatprep.subr.bf16.mxu1 %v16826_v62  ;;  %v583_v62 = vld [vmem:[#allocation5 + $0xd98] sm:$0xff] }
 0x5da   :  { %14190 = vmatpush1.bf16.msra.mxu0 %v17327_v48  ;;  %14221 = vmatprep.mubr.bf16.mxu0 %v19685_v12  ;;  %v17368_v48 = vcombine.high %v1086_v19, %v1090_v30  ;;  %v603_v37 = vld [vmem:[#allocation5 + $0xe38] sm:$0xff] }
 0x5db   :  { %14191 = vmatprep.subr.bf16.mxu0 %v17336_v57  ;;  %v587_v57 = vld [vmem:[#allocation5 + $0xdb8] sm:$0xff]  ;;  %v16882_v46 = vcombine.high %v599_v36, %v603_v37 }
 0x5dc   :  { %14684 = vmatpush1.bf16.msra.mxu1 %v16825_v16  ;;  %v16866_v16 = vcombine.high %v583_v62, %v587_v57  ;;  %v607_v19 = vld [vmem:[#allocation5 + $0xe58] sm:$0xff] }
 0x5dd   :  { %14685 = vmatprep.subr.bf16.mxu1 %v16834_v31  ;;  %v17376_v31 = vcombine.high %v1094_v17, %v1098_v60  ;;  %v611_v30 = vld [vmem:[#allocation5 + $0xe78] sm:$0xff] }
 0x5de   :  { %14192 = vmatpush1.bf16.msra.mxu0 %v17335_v54 }
 0x5df   :  { %14193 = vmatprep.subr.bf16.mxu0 %v17344_v3  ;;  %v591_v3 = vld [vmem:[#allocation5 + $0xdd8] sm:$0xff] }
 0x5e0   :  { %14686 = vmatpush1.bf16.msra.mxu1 %v16833_v21  ;;  %v16874_v43 = vcombine.high %v591_v3, %v595_v25 }
 0x5e1   :  { %14687 = vmatprep.subr.bf16.mxu1 %v16842_v26 }
 0x5e2   :  { %14194 = vmatpush1.bf16.msra.mxu0 %v17343_v39  ;;  %v16865_v39 = vcombine.low %v583_v62, %v587_v57  ;;  %v16890_v62 = vcombine.high %v607_v19, %v611_v30 }
 0x5e3   :  { %14195 = vmatprep.subr.bf16.mxu0 %v17352_v27  ;;  %v17375_v27 = vcombine.low %v1094_v17, %v1098_v60  ;;  %v615_v17 = vld [vmem:[#allocation5 + $0xe98] sm:$0xff] }
 0x5e4   :  { %14688 = vmatpush1.bf16.msra.mxu1 %v16841_v51  ;;  %v1110_v51 = vld [vmem:[#allocation5 + $0x1e10] sm:$0xff]  ;;  %v619_v60 = vld [vmem:[#allocation5 + $0xeb8] sm:$0xff] }
 0x5e5   :  { %14689 = vmatprep.subr.bf16.mxu1 %v16850_v44  ;;  %v16873_v44 = vcombine.low %v591_v3, %v595_v25  ;;  %v16898_v3 = vcombine.high %v615_v17, %v619_v60 }
 0x5e6   :  { %14196 = vmatpush1.bf16.msra.mxu0 %v17351_v33  ;;  %v1114_v33 = vld [vmem:[#allocation5 + $0x1e30] sm:$0xff] }
 0x5e7   :  { %14197 = vmatprep.subr.bf16.mxu0 %v17360_v58  ;;  %v17383_v58 = vcombine.low %v1102_v28, %v1106_v35  ;;  %v17392_v61 = vcombine.high %v1110_v51, %v1114_v33  ;;  %v623_v28 = vld [vmem:[#allocation5 + $0xed8] sm:$0xff] }
 0x5e8   :  { %14690 = vmatpush1.bf16.msra.mxu1 %v16849_v45  ;;  %v1118_v45 = vld [vmem:[#allocation5 + $0x1e50] sm:$0xff]  ;;  %v627_v35 = vld [vmem:[#allocation5 + $0xef8] sm:$0xff] }
 0x5e9   :  { %14691 = vmatprep.subr.bf16.mxu1 %v16858_v9  ;;  %v16881_v9 = vcombine.low %v599_v36, %v603_v37  ;;  %v631_v36 = vld [vmem:[#allocation5 + $0xf18] sm:$0xff] }
 0x5ea   :  { %14198 = vmatpush1.bf16.msra.mxu0 %v17359_v22  ;;  %v19857_v54 = vpop.f32.mrb[4].mxu1  ;;  %v1122_v22 = vld [vmem:[#allocation5 + $0x1e70] sm:$0xff]  ;;  %v635_v37 = vld [vmem:[#allocation5 + $0xf38] sm:$0xff] }
 0x5eb   :  { %14199 = vmatprep.subr.bf16.mxu0 %v17368_v48  ;;  %v19859_v53 = vpop.f32.mrb[5].mxu1  ;;  %v17391_v48 = vcombine.low %v1110_v51, %v1114_v33  ;;  %v17400_v57 = vcombine.high %v1118_v45, %v1122_v22  ;;  %v1142_v51 = vld [vmem:[#allocation5 + $0x1f10] sm:$0xff] }
 0x5ec   :  { %v13899_v21 = vpop.f32.mrb[6].mxu1  ;;  %14692 = vmatpush1.bf16.msra.mxu1 %v16857_v18  ;;  %v1126_v18 = vld [vmem:[#allocation5 + $0x1e90] sm:$0xff] }
 0x5ed   :  { %v13900_v26 = vpop.f32.mrb[7].mxu1  ;;  %14693 = vmatprep.subr.bf16.mxu1 %v16866_v16  ;;  %v16889_v16 = vcombine.low %v607_v19, %v611_v30  ;;  %v1134_v21 = vld [vmem:[#allocation5 + $0x1ed0] sm:$0xff]  ;;  %v639_v19 = vld [vmem:[#allocation5 + $0xf58] sm:$0xff] }
 0x5ee   :  { %14200 = vmatpush1.bf16.msra.mxu0 %v17367_v24  ;;  %v1130_v24 = vld [vmem:[#allocation5 + $0x1eb0] sm:$0xff]  ;;  %v16897_v26 = vcombine.low %v615_v17, %v619_v60  ;;  %v643_v30 = vld [vmem:[#allocation5 + $0xf78] sm:$0xff] }
 0x5ef   :  { %14201 = vmatprep.subr.bf16.mxu0 %v17376_v31  ;;  %v17399_v31 = vcombine.low %v1118_v45, %v1122_v22  ;;  %v17408_v25 = vcombine.high %v1126_v18, %v1130_v24  ;;  %v1146_v33 = vld [vmem:[#allocation5 + $0x1f30] sm:$0xff]  ;;  %v647_v17 = vld [vmem:[#allocation5 + $0xf98] sm:$0xff] }
 0x5f0   :  { %14694 = vmatpush1.bf16.msra.mxu1 %v16865_v39  ;;  %v1138_v39 = vld [vmem:[#allocation5 + $0x1ef0] sm:$0xff]  ;;  %v651_v60 = vld [vmem:[#allocation5 + $0xfb8] sm:$0xff] }
 0x5f1   :  { %14695 = vmatprep.subr.bf16.mxu1 %v16874_v43  ;;  %v16906_v43 = vcombine.high %v623_v28, %v627_v35  ;;  %v1150_v45 = vld [vmem:[#allocation5 + $0x1f50] sm:$0xff] }
 0x5f2   :  { %14202 = vmatpush1.bf16.msra.mxu0 %v17375_v27  ;;  %v17407_v27 = vcombine.low %v1126_v18, %v1130_v24  ;;  %v1154_v22 = vld [vmem:[#allocation5 + $0x1f70] sm:$0xff] }
 0x5f3   :  { %14203 = vmatprep.subr.bf16.mxu0 %v17384_v29  ;;  %v17416_v29 = vcombine.high %v1134_v21, %v1138_v39  ;;  %v1158_v18 = vld [vmem:[#allocation5 + $0x1f90] sm:$0xff] }
 0x5f4   :  { %14696 = vmatpush1.bf16.msra.mxu1 %v16873_v44  ;;  %v16905_v44 = vcombine.low %v623_v28, %v627_v35  ;;  %v1162_v24 = vld [vmem:[#allocation5 + $0x1fb0] sm:$0xff]  ;;  %v655_v28 = vld [vmem:[#allocation5 + $0xfd8] sm:$0xff] }
 0x5f5   :  { %14697 = vmatprep.subr.bf16.mxu1 %v16882_v46  ;;  %v16914_v46 = vcombine.high %v631_v36, %v635_v37  ;;  %v659_v35 = vld [vmem:[#allocation5 + $0xff8] sm:$0xff] }
 0x5f6   :  { %14204 = vmatpush1.bf16.msra.mxu0 %v17383_v58  ;;  %v17415_v58 = vcombine.low %v1134_v21, %v1138_v39  ;;  %v1166_v21 = vld [vmem:[#allocation5 + $0x1fd0] sm:$0xff] }
 0x5f7   :  { %14205 = vmatprep.subr.bf16.mxu0 %v17392_v61  ;;  %v17424_v61 = vcombine.high %v1142_v51, %v1146_v33  ;;  %v1170_v39 = vld [vmem:[#allocation5 + $0x1ff0] sm:$0xff] }
 0x5f8   :  { %14698 = vmatpush1.bf16.msra.mxu1 %v16881_v9  ;;  %v16913_v9 = vcombine.low %v631_v36, %v635_v37  ;;  %v663_v36 = vld [vmem:[#allocation5 + $0x1018] sm:$0xff] }
 0x5f9   :  { %14699 = vmatprep.subr.bf16.mxu1 %v16890_v62  ;;  %v16922_v62 = vcombine.high %v639_v19, %v643_v30  ;;  %v667_v37 = vld [vmem:[#allocation5 + $0x1038] sm:$0xff] }
 0x5fa   :  { %14206 = vmatpush1.bf16.msra.mxu0 %v17391_v48  ;;  %v17423_v48 = vcombine.low %v1142_v51, %v1146_v33  ;;  %v1174_v51 = vld [vmem:[#allocation5 + $0x2010] sm:$0xff] }
 0x5fb   :  { %14207 = vmatprep.subr.bf16.mxu0 %v17400_v57  ;;  %v17432_v57 = vcombine.high %v1150_v45, %v1154_v22  ;;  %v1178_v33 = vld [vmem:[#allocation5 + $0x2030] sm:$0xff] }
 0x5fc   :  { %14700 = vmatpush1.bf16.msra.mxu1 %v16889_v16  ;;  %v16921_v16 = vcombine.low %v639_v19, %v643_v30  ;;  %v671_v19 = vld [vmem:[#allocation5 + $0x1058] sm:$0xff] }
 0x5fd   :  { %14701 = vmatprep.subr.bf16.mxu1 %v16898_v3  ;;  %v16930_v3 = vcombine.high %v647_v17, %v651_v60  ;;  %v675_v30 = vld [vmem:[#allocation5 + $0x1078] sm:$0xff] }
 0x5fe   :  { %14208 = vmatpush1.bf16.msra.mxu0 %v17399_v31  ;;  %v17431_v31 = vcombine.low %v1150_v45, %v1154_v22  ;;  %v1182_v45 = vld [vmem:[#allocation5 + $0x2050] sm:$0xff] }
 0x5ff   :  { %14209 = vmatprep.subr.bf16.mxu0 %v17408_v25  ;;  %v17440_v25 = vcombine.high %v1158_v18, %v1162_v24  ;;  %v1186_v22 = vld [vmem:[#allocation5 + $0x2070] sm:$0xff] }
 0x600   :  { %14702 = vmatpush1.bf16.msra.mxu1 %v16897_v26  ;;  %v16929_v26 = vcombine.low %v647_v17, %v651_v60  ;;  %v679_v17 = vld [vmem:[#allocation5 + $0x1098] sm:$0xff] }
 0x601   :  { %14703 = vmatprep.subr.bf16.mxu1 %v16906_v43  ;;  %v16938_v43 = vcombine.high %v655_v28, %v659_v35  ;;  %v683_v60 = vld [vmem:[#allocation5 + $0x10b8] sm:$0xff] }
 0x602   :  { %14210 = vmatpush1.bf16.msra.mxu0 %v17407_v27  ;;  %v17439_v27 = vcombine.low %v1158_v18, %v1162_v24  ;;  %v1190_v18 = vld [vmem:[#allocation5 + $0x2090] sm:$0xff] }
 0x603   :  { %14211 = vmatprep.subr.bf16.mxu0 %v17416_v29  ;;  %v17448_v29 = vcombine.high %v1166_v21, %v1170_v39  ;;  %v1194_v24 = vld [vmem:[#allocation5 + $0x20b0] sm:$0xff] }
 0x604   :  { %14704 = vmatpush1.bf16.msra.mxu1 %v16905_v44  ;;  %v16937_v44 = vcombine.low %v655_v28, %v659_v35  ;;  %v687_v28 = vld [vmem:[#allocation5 + $0x10d8] sm:$0xff] }
 0x605   :  { %14705 = vmatprep.subr.bf16.mxu1 %v16914_v46  ;;  %v16946_v46 = vcombine.high %v663_v36, %v667_v37  ;;  %v691_v35 = vld [vmem:[#allocation5 + $0x10f8] sm:$0xff] }
 0x606   :  { %14212 = vmatpush1.bf16.msra.mxu0 %v17415_v58  ;;  %v17447_v58 = vcombine.low %v1166_v21, %v1170_v39  ;;  %v1198_v21 = vld [vmem:[#allocation5 + $0x20d0] sm:$0xff] }
 0x607   :  { %14213 = vmatprep.subr.bf16.mxu0 %v17424_v61  ;;  %v17456_v61 = vcombine.high %v1174_v51, %v1178_v33  ;;  %v1202_v39 = vld [vmem:[#allocation5 + $0x20f0] sm:$0xff] }
 0x608   :  { %14706 = vmatpush1.bf16.msra.mxu1 %v16913_v9  ;;  %v16945_v9 = vcombine.low %v663_v36, %v667_v37  ;;  %v699_v36 = vld [vmem:[#allocation5 + $0x1138] sm:$0xff]  ;;  %v1206_v37 = vld [vmem:[#allocation5 + $0x2110] sm:$0xff] }
 0x609   :  { %14707 = vmatprep.subr.bf16.mxu1 %v16922_v62  ;;  %v16954_v62 = vcombine.high %v671_v19, %v675_v30 }
 0x60a   :  { %14214 = vmatpush1.bf16.msra.mxu0 %v17423_v48  ;;  %v17455_v48 = vcombine.low %v1174_v51, %v1178_v33  ;;  %v1210_v51 = vld [vmem:[#allocation5 + $0x2130] sm:$0xff]  ;;  %v16969_v33 = vcombine.low %v687_v28, %v691_v35 }
 0x60b   :  { %14215 = vmatprep.subr.bf16.mxu0 %v17432_v57  ;;  %v17464_v57 = vcombine.high %v1182_v45, %v1186_v22 }
 0x60c   :  { %14708 = vmatpush1.bf16.msra.mxu1 %v16921_v16  ;;  %v16953_v16 = vcombine.low %v671_v19, %v675_v30  ;;  %v1214_v19 = vld [vmem:[#allocation5 + $0x2150] sm:$0xff] }
 0x60d   :  { %14709 = vmatprep.subr.bf16.mxu1 %v16930_v3  ;;  %v16962_v3 = vcombine.high %v679_v17, %v683_v60  ;;  %v1218_v30 = vld [vmem:[#allocation5 + $0x2170] sm:$0xff] }
 0x60e   :  { %14216 = vmatpush1.bf16.msra.mxu0 %v17431_v31  ;;  %v17463_v31 = vcombine.low %v1182_v45, %v1186_v22  ;;  %v17487_v22 = vcombine.low %v1206_v37, %v1210_v51 }
 0x60f   :  { %14217 = vmatprep.subr.bf16.mxu0 %v17440_v25  ;;  %v17472_v25 = vcombine.high %v1190_v18, %v1194_v24 }
 0x610   :  { %14710 = vmatpush1.bf16.msra.mxu1 %v16929_v26  ;;  %v17471_v26 = vcombine.low %v1190_v18, %v1194_v24  ;;  %v17495_v24 = vcombine.low %v1214_v19, %v1218_v30 }
 0x611   :  { %14711 = vmatprep.subr.bf16.mxu1 %v16938_v43  ;;  %v17480_v43 = vcombine.high %v1198_v21, %v1202_v39 }
 0x612   :  { %14218 = vmatpush1.bf16.msra.mxu0 %v17439_v27  ;;  %v16970_v27 = vcombine.high %v687_v28, %v691_v35  ;;  %v1230_v28 = vld [vmem:[#allocation5 + $0x21d0] sm:$0xff] }
 0x613   :  { %14219 = vmatprep.subr.bf16.mxu0 %v17448_v29  ;;  %v695_v29 = vld [vmem:[#allocation5 + $0x1118] sm:$0xff]  ;;  %v1234_v35 = vld [vmem:[#allocation5 + $0x21f0] sm:$0xff] }
 0x614   :  { %14712 = vmatpush1.bf16.msra.mxu1 %v16937_v44  ;;  %v17479_v44 = vcombine.low %v1198_v21, %v1202_v39  ;;  %v16977_v45 = vcombine.low %v695_v29, %v699_v36 }
 0x615   :  { %14722 = vmatprep.subr.bf16.mxu1 %v16946_v46  ;;  %v703_v46 = vld [vmem:[#allocation5 + $0x1158] sm:$0xff] }
 0x616   :  { %14220 = vmatpush1.bf16.msra.mxu0 %v17447_v58  ;;  %v16978_v58 = vcombine.high %v695_v29, %v699_v36  ;;  %v1238_v29 = vld [vmem:[#allocation5 + $0x2210] sm:$0xff] }
 0x617   :  { %14230 = vmatprep.subr.bf16.mxu0 %v17456_v61  ;;  %14714 = vmatmul.mubr.bf16.vlgmr.msra.gmra.mrb[8].mxu1 %v19639_v41  ;;  %v16961_v41 = vcombine.low %v679_v17, %v683_v60  ;;  %v707_v61 = vld [vmem:[#allocation5 + $0x1178] sm:$0xff]  ;;  %v1222_v17 = vld [vmem:[#allocation5 + $0x2190] sm:$0xff] }
 0x618   :  { %14723 = vmatpush1.bf16.msra.mxu1 %v16945_v9  ;;  %14754 = vmatprep.mubr.bf16.mxu1 %v19643_v47  ;;  %v17488_v47 = vcombine.high %v1206_v37, %v1210_v51  ;;  %v16986_v9 = vcombine.high %v703_v46, %v707_v61  ;;  %v1226_v60 = vld [vmem:[#allocation5 + $0x21b0] sm:$0xff]  ;;  %v16985_v18 = vcombine.low %v703_v46, %v707_v61 }
 0x619   :  { %14222 = vmatmul.mubr.bf16.vlgmr.msra.gmra.mrb[4].mxu0 %v19699_v55  ;;  %14724 = vmatprep.subr.bf16.mxu1 %v16954_v62  ;;  %v711_v62 = vld [vmem:[#allocation5 + $0x1198] sm:$0xff]  ;;  %v17503_v39 = vcombine.low %v1222_v17, %v1226_v60  ;;  %v1242_v36 = vld [vmem:[#allocation5 + $0x2230] sm:$0xff]  ;;  %v17511_v51 = vcombine.low %v1230_v28, %v1234_v35 }
 0x61a   :  { %14231 = vmatpush1.bf16.msra.mxu0 %v17455_v48  ;;  %14262 = vmatprep.mubr.bf16.mxu0 %v19703_v5  ;;  %v17496_v48 = vcombine.high %v1214_v19, %v1218_v30  ;;  %v1246_v46 = vld [vmem:[#allocation5 + $0x2250] sm:$0xff]  ;;  %v17519_v30 = vcombine.low %v1238_v29, %v1242_v36 }
 0x61b   :  { %14232 = vmatprep.subr.bf16.mxu0 %v17464_v57  ;;  %v715_v57 = vld [vmem:[#allocation5 + $0x11b8] sm:$0xff]  ;;  %v1250_v61 = vld [vmem:[#allocation5 + $0x2270] sm:$0xff] }
 0x61c   :  { %14725 = vmatpush1.bf16.msra.mxu1 %v16953_v16  ;;  %v16994_v16 = vcombine.high %v711_v62, %v715_v57  ;;  %v16993_v21 = vcombine.low %v711_v62, %v715_v57  ;;  %v1254_v62 = vld [vmem:[#allocation5 + $0x2290] sm:$0xff] }
 0x61d   :  { %14726 = vmatprep.subr.bf16.mxu1 %v16962_v3  ;;  %v719_v3 = vld [vmem:[#allocation5 + $0x11d8] sm:$0xff]  ;;  %v1258_v57 = vld [vmem:[#allocation5 + $0x22b0] sm:$0xff] }
 0x61e   :  { %14233 = vmatpush1.bf16.msra.mxu0 %v17463_v31  ;;  %v17504_v31 = vcombine.high %v1222_v17, %v1226_v60  ;;  %v17527_v60 = vcombine.low %v1246_v46, %v1250_v61 }
 0x61f   :  { %14234 = vmatprep.subr.bf16.mxu0 %v17472_v25  ;;  %v723_v25 = vld [vmem:[#allocation5 + $0x11f8] sm:$0xff] }
 0x620   :  { %14727 = vmatpush1.bf16.msra.mxu1 %v16961_v41  ;;  %v17002_v41 = vcombine.high %v719_v3, %v723_v25  ;;  %v17001_v37 = vcombine.low %v719_v3, %v723_v25  ;;  %v1262_v3 = vld [vmem:[#allocation5 + $0x22d0] sm:$0xff] }
 0x621   :  { %14728 = vmatprep.subr.bf16.mxu1 %v16970_v27  ;;  %v727_v27 = vld [vmem:[#allocation5 + $0x1218] sm:$0xff]  ;;  %v1266_v25 = vld [vmem:[#allocation5 + $0x22f0] sm:$0xff] }
 0x622   :  { %14235 = vmatpush1.bf16.msra.mxu0 %v17471_v26  ;;  %v17512_v26 = vcombine.high %v1230_v28, %v1234_v35  ;;  %v17535_v35 = vcombine.low %v1254_v62, %v1258_v57 }
 0x623   :  { %14236 = vmatprep.subr.bf16.mxu0 %v17480_v43  ;;  %v731_v43 = vld [vmem:[#allocation5 + $0x1238] sm:$0xff] }
 0x624   :  { %14729 = vmatpush1.bf16.msra.mxu1 %v16969_v33  ;;  %v17010_v33 = vcombine.high %v727_v27, %v731_v43  ;;  %v17009_v19 = vcombine.low %v727_v27, %v731_v43  ;;  %v1270_v27 = vld [vmem:[#allocation5 + $0x2310] sm:$0xff] }
 0x625   :  { %14730 = vmatprep.subr.bf16.mxu1 %v16978_v58  ;;  %v735_v58 = vld [vmem:[#allocation5 + $0x1258] sm:$0xff]  ;;  %v1274_v43 = vld [vmem:[#allocation5 + $0x2330] sm:$0xff] }
 0x626   :  { %14237 = vmatpush1.bf16.msra.mxu0 %v17479_v44  ;;  %v17520_v44 = vcombine.high %v1238_v29, %v1242_v36  ;;  %v17543_v36 = vcombine.low %v1262_v3, %v1266_v25 }
 0x627   :  { %14238 = vmatprep.subr.bf16.mxu0 %v17488_v47  ;;  %v739_v47 = vld [vmem:[#allocation5 + $0x1278] sm:$0xff] }
 0x628   :  { %14731 = vmatpush1.bf16.msra.mxu1 %v16977_v45  ;;  %v17018_v45 = vcombine.high %v735_v58, %v739_v47  ;;  %v17017_v17 = vcombine.low %v735_v58, %v739_v47  ;;  %v1278_v58 = vld [vmem:[#allocation5 + $0x2350] sm:$0xff] }
 0x629   :  { %14732 = vmatprep.subr.bf16.mxu1 %v16986_v9  ;;  %v743_v9 = vld [vmem:[#allocation5 + $0x1298] sm:$0xff]  ;;  %v1282_v47 = vld [vmem:[#allocation5 + $0x2370] sm:$0xff] }
 0x62a   :  { %14239 = vmatpush1.bf16.msra.mxu0 %v17487_v22  ;;  %v17528_v22 = vcombine.high %v1246_v46, %v1250_v61  ;;  %v17551_v61 = vcombine.low %v1270_v27, %v1274_v43 }
 0x62b   :  { %14240 = vmatprep.subr.bf16.mxu0 %v17496_v48  ;;  %v747_v48 = vld [vmem:[#allocation5 + $0x12b8] sm:$0xff] }
 0x62c   :  { %14733 = vmatpush1.bf16.msra.mxu1 %v16985_v18  ;;  %v17026_v18 = vcombine.high %v743_v9, %v747_v48  ;;  %v17025_v28 = vcombine.low %v743_v9, %v747_v48  ;;  %v1286_v9 = vld [vmem:[#allocation5 + $0x2390] sm:$0xff] }
 0x62d   :  { %14734 = vmatprep.subr.bf16.mxu1 %v16994_v16  ;;  %v751_v16 = vld [vmem:[#allocation5 + $0x12d8] sm:$0xff]  ;;  %v1290_v48 = vld [vmem:[#allocation5 + $0x23b0] sm:$0xff] }
 0x62e   :  { %14241 = vmatpush1.bf16.msra.mxu0 %v17495_v24  ;;  %v17536_v24 = vcombine.high %v1254_v62, %v1258_v57  ;;  %v17559_v57 = vcombine.low %v1278_v58, %v1282_v47 }
 0x62f   :  { %14242 = vmatprep.subr.bf16.mxu0 %v17504_v31  ;;  %v755_v31 = vld [vmem:[#allocation5 + $0x12f8] sm:$0xff] }
 0x630   :  { %14735 = vmatpush1.bf16.msra.mxu1 %v16993_v21  ;;  %v17034_v21 = vcombine.high %v751_v16, %v755_v31  ;;  %v17033_v29 = vcombine.low %v751_v16, %v755_v31  ;;  %v1294_v16 = vld [vmem:[#allocation5 + $0x23d0] sm:$0xff] }
 0x631   :  { %14736 = vmatprep.subr.bf16.mxu1 %v17002_v41  ;;  %v759_v41 = vld [vmem:[#allocation5 + $0x1318] sm:$0xff]  ;;  %v1298_v31 = vld [vmem:[#allocation5 + $0x23f0] sm:$0xff] }
 0x632   :  { %14243 = vmatpush1.bf16.msra.mxu0 %v17503_v39  ;;  %v17544_v39 = vcombine.high %v1262_v3, %v1266_v25  ;;  %v17567_v25 = vcombine.low %v1286_v9, %v1290_v48 }
 0x633   :  { %14244 = vmatprep.subr.bf16.mxu0 %v17512_v26  ;;  %v763_v26 = vld [vmem:[#allocation5 + $0x1338] sm:$0xff] }
 0x634   :  { %14737 = vmatpush1.bf16.msra.mxu1 %v17001_v37  ;;  %v17042_v37 = vcombine.high %v759_v41, %v763_v26  ;;  %v17041_v46 = vcombine.low %v759_v41, %v763_v26  ;;  %v1302_v41 = vld [vmem:[#allocation5 + $0x2410] sm:$0xff] }
 0x635   :  { %14738 = vmatprep.subr.bf16.mxu1 %v17010_v33  ;;  %v767_v33 = vld [vmem:[#allocation5 + $0x1358] sm:$0xff]  ;;  %v1306_v26 = vld [vmem:[#allocation5 + $0x2430] sm:$0xff] }
 0x636   :  { %14245 = vmatpush1.bf16.msra.mxu0 %v17511_v51  ;;  %v17552_v51 = vcombine.high %v1270_v27, %v1274_v43  ;;  %v17575_v43 = vcombine.low %v1294_v16, %v1298_v31 }
 0x637   :  { %14246 = vmatprep.subr.bf16.mxu0 %v17520_v44  ;;  %v771_v44 = vld [vmem:[#allocation5 + $0x1378] sm:$0xff] }
 0x638   :  { %14739 = vmatpush1.bf16.msra.mxu1 %v17009_v19  ;;  %v17050_v19 = vcombine.high %v767_v33, %v771_v44  ;;  %v17049_v62 = vcombine.low %v767_v33, %v771_v44  ;;  %v1310_v33 = vld [vmem:[#allocation5 + $0x2450] sm:$0xff] }
 0x639   :  { %14740 = vmatprep.subr.bf16.mxu1 %v17018_v45  ;;  %v775_v45 = vld [vmem:[#allocation5 + $0x1398] sm:$0xff]  ;;  %v1314_v44 = vld [vmem:[#allocation5 + $0x2470] sm:$0xff] }
 0x63a   :  { %14247 = vmatpush1.bf16.msra.mxu0 %v17519_v30  ;;  %v17560_v30 = vcombine.high %v1278_v58, %v1282_v47  ;;  %v17583_v47 = vcombine.low %v1302_v41, %v1306_v26 }
 0x63b   :  { %14248 = vmatprep.subr.bf16.mxu0 %v17528_v22  ;;  %v779_v22 = vld [vmem:[#allocation5 + $0x13b8] sm:$0xff] }
 0x63c   :  { %14741 = vmatpush1.bf16.msra.mxu1 %v17017_v17  ;;  %v17058_v17 = vcombine.high %v775_v45, %v779_v22  ;;  %v17057_v3 = vcombine.low %v775_v45, %v779_v22  ;;  %v1318_v45 = vld [vmem:[#allocation5 + $0x2490] sm:$0xff] }
 0x63d   :  { %14742 = vmatprep.subr.bf16.mxu1 %v17026_v18  ;;  %v783_v18 = vld [vmem:[#allocation5 + $0x13d8] sm:$0xff]  ;;  %v1322_v22 = vld [vmem:[#allocation5 + $0x24b0] sm:$0xff] }
 0x63e   :  { %14249 = vmatpush1.bf16.msra.mxu0 %v17527_v60  ;;  %v17568_v60 = vcombine.high %v1286_v9, %v1290_v48  ;;  %v17591_v48 = vcombine.low %v1310_v33, %v1314_v44 }
 0x63f   :  { %14250 = vmatprep.subr.bf16.mxu0 %v17536_v24  ;;  %v787_v24 = vld [vmem:[#allocation5 + $0x13f8] sm:$0xff] }
 0x640   :  { %14743 = vmatpush1.bf16.msra.mxu1 %v17025_v28  ;;  %v17066_v28 = vcombine.high %v783_v18, %v787_v24  ;;  %v17065_v27 = vcombine.low %v783_v18, %v787_v24  ;;  %v1326_v18 = vld [vmem:[#allocation5 + $0x24d0] sm:$0xff] }
 0x641   :  { %14744 = vmatprep.subr.bf16.mxu1 %v17034_v21  ;;  %v791_v21 = vld [vmem:[#allocation5 + $0x1418] sm:$0xff]  ;;  %v1330_v24 = vld [vmem:[#allocation5 + $0x24f0] sm:$0xff] }
 0x642   :  { %14251 = vmatpush1.bf16.msra.mxu0 %v17535_v35  ;;  %v17576_v35 = vcombine.high %v1294_v16, %v1298_v31  ;;  %v17599_v16 = vcombine.low %v1318_v45, %v1322_v22 }
 0x643   :  { %14252 = vmatprep.subr.bf16.mxu0 %v17544_v39  ;;  %v795_v39 = vld [vmem:[#allocation5 + $0x1438] sm:$0xff] }
 0x644   :  { %14745 = vmatpush1.bf16.msra.mxu1 %v17033_v29  ;;  %v17074_v29 = vcombine.high %v791_v21, %v795_v39  ;;  %v17073_v58 = vcombine.low %v791_v21, %v795_v39  ;;  %v1338_v21 = vld [vmem:[#allocation5 + $0x2530] sm:$0xff] }
 0x645   :  { %14746 = vmatprep.subr.bf16.mxu1 %v17042_v37  ;;  %v799_v37 = vld [vmem:[#allocation5 + $0x1458] sm:$0xff] }
 0x646   :  { %14253 = vmatpush1.bf16.msra.mxu0 %v17543_v36  ;;  %v17584_v36 = vcombine.high %v1302_v41, %v1306_v26  ;;  %v17607_v41 = vcombine.low %v1326_v18, %v1330_v24 }
 0x647   :  { %14254 = vmatprep.subr.bf16.mxu0 %v17552_v51  ;;  %v803_v51 = vld [vmem:[#allocation5 + $0x1478] sm:$0xff] }
 0x648   :  { %14747 = vmatpush1.bf16.msra.mxu1 %v17041_v46  ;;  %v17082_v46 = vcombine.high %v799_v37, %v803_v51  ;;  %v17081_v9 = vcombine.low %v799_v37, %v803_v51 }
 0x649   :  { %14748 = vmatprep.subr.bf16.mxu1 %v17050_v19  ;;  %v807_v19 = vld [vmem:[#allocation5 + $0x1498] sm:$0xff] }
 0x64a   :  { %14255 = vmatpush1.bf16.msra.mxu0 %v17551_v61  ;;  %v17592_v61 = vcombine.high %v1310_v33, %v1314_v44 }
 0x64b   :  { %14256 = vmatprep.subr.bf16.mxu0 %v17560_v30  ;;  %v811_v30 = vld [vmem:[#allocation5 + $0x14b8] sm:$0xff] }
 0x64c   :  { %14749 = vmatpush1.bf16.msra.mxu1 %v17049_v62  ;;  %v17090_v62 = vcombine.high %v807_v19, %v811_v30 }
 0x64d   :  { %14750 = vmatprep.subr.bf16.mxu1 %v17058_v17  ;;  %v815_v17 = vld [vmem:[#allocation5 + $0x14d8] sm:$0xff] }
 0x64e   :  { %14257 = vmatpush1.bf16.msra.mxu0 %v17559_v57  ;;  %v17600_v57 = vcombine.high %v1318_v45, %v1322_v22 }
 0x64f   :  { %14258 = vmatprep.subr.bf16.mxu0 %v17568_v60  ;;  %v819_v60 = vld [vmem:[#allocation5 + $0x14f8] sm:$0xff] }
 0x650   :  { %14751 = vmatpush1.bf16.msra.mxu1 %v17057_v3  ;;  %v17098_v31 = vcombine.high %v815_v17, %v819_v60  ;;  %v17608_v3 = vcombine.high %v1326_v18, %v1330_v24  ;;  %v17097_v39 = vcombine.low %v815_v17, %v819_v60 }
 0x651   :  { %14752 = vmatprep.subr.bf16.mxu1 %v17066_v28  ;;  %v827_v28 = vld [vmem:[#allocation5 + $0x1538] sm:$0xff] }
 0x652   :  { %14259 = vmatpush1.bf16.msra.mxu0 %v17567_v25  ;;  %v823_v25 = vld [vmem:[#allocation5 + $0x1518] sm:$0xff] }
 0x653   :  { %14260 = vmatprep.subr.bf16.mxu0 %v17576_v35  ;;  %v1334_v35 = vld [vmem:[#allocation5 + $0x2510] sm:$0xff]  ;;  %v17106_v26 = vcombine.high %v823_v25, %v827_v28  ;;  %v17105_v37 = vcombine.low %v823_v25, %v827_v28 }
 0x654   :  { %14753 = vmatpush1.bf16.msra.mxu1 %v17065_v27  ;;  %v831_v27 = vld [vmem:[#allocation5 + $0x1558] sm:$0xff]  ;;  %v17615_v51 = vcombine.low %v1334_v35, %v1338_v21 }
 0x655   :  { %14763 = vmatprep.subr.bf16.mxu1 %v17074_v29  ;;  %v1342_v29 = vld [vmem:[#allocation5 + $0x2550] sm:$0xff] }
 0x656   :  { %14261 = vmatpush1.bf16.msra.mxu0 %v17575_v43  ;;  %v835_v43 = vld [vmem:[#allocation5 + $0x1578] sm:$0xff] }
 0x657   :  { %14271 = vmatprep.subr.bf16.mxu0 %v17584_v36  ;;  %14755 = vmatmul.mubr.bf16.vlgmr.msra.gmra.mrb[8].mxu1 %v19653_v2  ;;  %v17089_v2 = vcombine.low %v807_v19, %v811_v30  ;;  %v1346_v36 = vld [vmem:[#allocation5 + $0x2570] sm:$0xff]  ;;  %v17114_v33 = vcombine.high %v831_v27, %v835_v43  ;;  %v17113_v19 = vcombine.low %v831_v27, %v835_v43 }
 0x658   :  { %14764 = vmatpush1.bf16.msra.mxu1 %v17073_v58  ;;  %14795 = vmatprep.mubr.bf16.mxu1 %v19657_v8  ;;  %v17616_v8 = vcombine.high %v1334_v35, %v1338_v21  ;;  %v17624_v44 = vcombine.high %v1342_v29, %v1346_v36  ;;  %v839_v58 = vld [vmem:[#allocation5 + $0x1598] sm:$0xff]  ;;  %v17623_v30 = vcombine.low %v1342_v29, %v1346_v36 }
 0x659   :  { %14263 = vmatmul.mubr.bf16.vlgmr.msra.gmra.mrb[4].mxu0 %v19713_v50  ;;  %14765 = vmatprep.subr.bf16.mxu1 %v17082_v46  ;;  %v1350_v46 = vld [vmem:[#allocation5 + $0x2590] sm:$0xff] }
 0x65a   :  { %14272 = vmatpush1.bf16.msra.mxu0 %v17583_v47  ;;  %14303 = vmatprep.mubr.bf16.mxu0 %v19717_v63  ;;  %v843_v47 = vld [vmem:[#allocation5 + $0x15b8] sm:$0xff] }
 0x65b   :  { %14273 = vmatprep.subr.bf16.mxu0 %v17592_v61  ;;  %v1354_v61 = vld [vmem:[#allocation5 + $0x25b0] sm:$0xff]  ;;  %v17122_v45 = vcombine.high %v839_v58, %v843_v47  ;;  %v17121_v17 = vcombine.low %v839_v58, %v843_v47 }
 0x65c   :  { %14766 = vmatpush1.bf16.msra.mxu1 %v17081_v9  ;;  %v17632_v22 = vcombine.high %v1350_v46, %v1354_v61  ;;  %v847_v9 = vld [vmem:[#allocation5 + $0x15d8] sm:$0xff]  ;;  %v17631_v60 = vcombine.low %v1350_v46, %v1354_v61 }
 0x65d   :  { %14767 = vmatprep.subr.bf16.mxu1 %v17090_v62  ;;  %v1358_v62 = vld [vmem:[#allocation5 + $0x25d0] sm:$0xff] }
 0x65e   :  { %14274 = vmatpush1.bf16.msra.mxu0 %v17591_v48  ;;  %v851_v48 = vld [vmem:[#allocation5 + $0x15f8] sm:$0xff] }
 0x65f   :  { %14275 = vmatprep.subr.bf16.mxu0 %v17600_v57  ;;  %v1362_v57 = vld [vmem:[#allocation5 + $0x25f0] sm:$0xff]  ;;  %v17130_v18 = vcombine.high %v847_v9, %v851_v48  ;;  %v17129_v25 = vcombine.low %v847_v9, %v851_v48 }
 0x660   :  { %14768 = vmatpush1.bf16.msra.mxu1 %v17089_v2  ;;  %v17640_v24 = vcombine.high %v1358_v62, %v1362_v57  ;;  %v855_v2 = vld [vmem:[#allocation5 + $0x1618] sm:$0xff]  ;;  %v17639_v28 = vcombine.low %v1358_v62, %v1362_v57 }
 0x661   :  { %14769 = vmatprep.subr.bf16.mxu1 %v17098_v31  ;;  %v1366_v31 = vld [vmem:[#allocation5 + $0x2610] sm:$0xff] }
 0x662   :  { %14276 = vmatpush1.bf16.msra.mxu0 %v17599_v16  ;;  %v859_v16 = vld [vmem:[#allocation5 + $0x1638] sm:$0xff] }
 0x663   :  { %14277 = vmatprep.subr.bf16.mxu0 %v17608_v3  ;;  %v1370_v3 = vld [vmem:[#allocation5 + $0x2630] sm:$0xff]  ;;  %v17138_v35 = vcombine.high %v855_v2, %v859_v16  ;;  %v17137_v27 = vcombine.low %v855_v2, %v859_v16 }
 0x664   :  { %14770 = vmatpush1.bf16.msra.mxu1 %v17097_v39  ;;  %v17648_v21 = vcombine.high %v1366_v31, %v1370_v3  ;;  %v863_v39 = vld [vmem:[#allocation5 + $0x1658] sm:$0xff]  ;;  %v17647_v43 = vcombine.low %v1366_v31, %v1370_v3 }
 0x665   :  { %14771 = vmatprep.subr.bf16.mxu1 %v17106_v26  ;;  %v1374_v26 = vld [vmem:[#allocation5 + $0x2650] sm:$0xff] }
 0x666   :  { %14278 = vmatpush1.bf16.msra.mxu0 %v17607_v41  ;;  %v867_v41 = vld [vmem:[#allocation5 + $0x1678] sm:$0xff] }
 0x667   :  { %14279 = vmatprep.subr.bf16.mxu0 %v17616_v8  ;;  %v1378_v8 = vld [vmem:[#allocation5 + $0x2670] sm:$0xff]  ;;  %v17146_v29 = vcombine.high %v863_v39, %v867_v41  ;;  %v17145_v58 = vcombine.low %v863_v39, %v867_v41 }
 0x668   :  { %14772 = vmatpush1.bf16.msra.mxu1 %v17105_v37  ;;  %v17656_v36 = vcombine.high %v1374_v26, %v1378_v8  ;;  %v871_v37 = vld [vmem:[#allocation5 + $0x1698] sm:$0xff]  ;;  %v17655_v47 = vcombine.low %v1374_v26, %v1378_v8 }
 0x669   :  { %14773 = vmatprep.subr.bf16.mxu1 %v17114_v33  ;;  %v1382_v33 = vld [vmem:[#allocation5 + $0x2690] sm:$0xff] }
 0x66a   :  { %14280 = vmatpush1.bf16.msra.mxu0 %v17615_v51  ;;  %v875_v51 = vld [vmem:[#allocation5 + $0x16b8] sm:$0xff] }
 0x66b   :  { %14281 = vmatprep.subr.bf16.mxu0 %v17624_v44  ;;  %v1386_v44 = vld [vmem:[#allocation5 + $0x26b0] sm:$0xff]  ;;  %v17154_v46 = vcombine.high %v871_v37, %v875_v51  ;;  %v17153_v9 = vcombine.low %v871_v37, %v875_v51 }
 0x66c   :  { %14774 = vmatpush1.bf16.msra.mxu1 %v17113_v19  ;;  %v17664_v61 = vcombine.high %v1382_v33, %v1386_v44  ;;  %v879_v19 = vld [vmem:[#allocation5 + $0x16d8] sm:$0xff]  ;;  %v17663_v48 = vcombine.low %v1382_v33, %v1386_v44 }
 0x66d   :  { %14775 = vmatprep.subr.bf16.mxu1 %v17122_v45  ;;  %v1390_v45 = vld [vmem:[#allocation5 + $0x26d0] sm:$0xff] }
 0x66e   :  { %14282 = vmatpush1.bf16.msra.mxu0 %v17623_v30  ;;  %v883_v30 = vld [vmem:[#allocation5 + $0x16f8] sm:$0xff] }
 0x66f   :  { %14283 = vmatprep.subr.bf16.mxu0 %v17632_v22  ;;  %v1394_v22 = vld [vmem:[#allocation5 + $0x26f0] sm:$0xff]  ;;  %v17162_v62 = vcombine.high %v879_v19, %v883_v30  ;;  %v17161_v2 = vcombine.low %v879_v19, %v883_v30 }
 0x670   :  { %14776 = vmatpush1.bf16.msra.mxu1 %v17121_v17  ;;  %v17672_v57 = vcombine.high %v1390_v45, %v1394_v22  ;;  %v887_v17 = vld [vmem:[#allocation5 + $0x1718] sm:$0xff]  ;;  %v17671_v16 = vcombine.low %v1390_v45, %v1394_v22 }
 0x671   :  { %14777 = vmatprep.subr.bf16.mxu1 %v17130_v18  ;;  %v1398_v18 = vld [vmem:[#allocation5 + $0x2710] sm:$0xff] }
 0x672   :  { %14284 = vmatpush1.bf16.msra.mxu0 %v17631_v60  ;;  %v891_v60 = vld [vmem:[#allocation5 + $0x1738] sm:$0xff] }
 0x673   :  { %14285 = vmatprep.subr.bf16.mxu0 %v17640_v24  ;;  %v1402_v24 = vld [vmem:[#allocation5 + $0x2730] sm:$0xff]  ;;  %v17170_v31 = vcombine.high %v887_v17, %v891_v60  ;;  %v17169_v39 = vcombine.low %v887_v17, %v891_v60 }
 0x674   :  { %14778 = vmatpush1.bf16.msra.mxu1 %v17129_v25  ;;  %v17680_v3 = vcombine.high %v1398_v18, %v1402_v24  ;;  %v895_v25 = vld [vmem:[#allocation5 + $0x1758] sm:$0xff]  ;;  %v17679_v41 = vcombine.low %v1398_v18, %v1402_v24 }
 0x675   :  { %14779 = vmatprep.subr.bf16.mxu1 %v17138_v35  ;;  %v1406_v35 = vld [vmem:[#allocation5 + $0x2750] sm:$0xff] }
 0x676   :  { %14286 = vmatpush1.bf16.msra.mxu0 %v17639_v28  ;;  %v899_v28 = vld [vmem:[#allocation5 + $0x1778] sm:$0xff] }
 0x677   :  { %14287 = vmatprep.subr.bf16.mxu0 %v17648_v21  ;;  %v1410_v21 = vld [vmem:[#allocation5 + $0x2770] sm:$0xff]  ;;  %v17178_v26 = vcombine.high %v895_v25, %v899_v28  ;;  %v17177_v37 = vcombine.low %v895_v25, %v899_v28 }
 0x678   :  { %14780 = vmatpush1.bf16.msra.mxu1 %v17137_v27  ;;  %v17688_v8 = vcombine.high %v1406_v35, %v1410_v21  ;;  %v903_v27 = vld [vmem:[#allocation5 + $0x1798] sm:$0xff]  ;;  %v17687_v51 = vcombine.low %v1406_v35, %v1410_v21 }
 0x679   :  { %14781 = vmatprep.subr.bf16.mxu1 %v17146_v29  ;;  %v1414_v29 = vld [vmem:[#allocation5 + $0x2790] sm:$0xff] }
 0x67a   :  { %14288 = vmatpush1.bf16.msra.mxu0 %v17647_v43  ;;  %v907_v43 = vld [vmem:[#allocation5 + $0x17b8] sm:$0xff] }
 0x67b   :  { %14289 = vmatprep.subr.bf16.mxu0 %v17656_v36  ;;  %v1418_v36 = vld [vmem:[#allocation5 + $0x27b0] sm:$0xff]  ;;  %v17186_v33 = vcombine.high %v903_v27, %v907_v43  ;;  %v17185_v19 = vcombine.low %v903_v27, %v907_v43 }
 0x67c   :  { %14782 = vmatpush1.bf16.msra.mxu1 %v17145_v58  ;;  %v17696_v44 = vcombine.high %v1414_v29, %v1418_v36  ;;  %v911_v58 = vld [vmem:[#allocation5 + $0x17d8] sm:$0xff]  ;;  %v17695_v30 = vcombine.low %v1414_v29, %v1418_v36 }
 0x67d   :  { %14783 = vmatprep.subr.bf16.mxu1 %v17154_v46  ;;  %v1422_v46 = vld [vmem:[#allocation5 + $0x27d0] sm:$0xff] }
 0x67e   :  { %14290 = vmatpush1.bf16.msra.mxu0 %v17655_v47  ;;  %v915_v47 = vld [vmem:[#allocation5 + $0x17f8] sm:$0xff] }
 0x67f   :  { %14291 = vmatprep.subr.bf16.mxu0 %v17664_v61  ;;  %v1426_v61 = vld [vmem:[#allocation5 + $0x27f0] sm:$0xff]  ;;  %v17194_v45 = vcombine.high %v911_v58, %v915_v47  ;;  %v17193_v17 = vcombine.low %v911_v58, %v915_v47 }
 0x680   :  { %14784 = vmatpush1.bf16.msra.mxu1 %v17153_v9  ;;  %v17704_v22 = vcombine.high %v1422_v46, %v1426_v61  ;;  %v919_v9 = vld [vmem:[#allocation5 + $0x1818] sm:$0xff]  ;;  %v17703_v60 = vcombine.low %v1422_v46, %v1426_v61 }
 0x681   :  { %14785 = vmatprep.subr.bf16.mxu1 %v17162_v62  ;;  %v1430_v62 = vld [vmem:[#allocation5 + $0x2810] sm:$0xff]  ;;  %v951_v61 = vld [vmem:[#allocation5 + $0x1918] sm:$0xff] }
 0x682   :  { %14292 = vmatpush1.bf16.msra.mxu0 %v17663_v48  ;;  %v923_v48 = vld [vmem:[#allocation5 + $0x1838] sm:$0xff] }
 0x683   :  { %14293 = vmatprep.subr.bf16.mxu0 %v17672_v57  ;;  %v1434_v57 = vld [vmem:[#allocation5 + $0x2830] sm:$0xff]  ;;  %v17202_v18 = vcombine.high %v919_v9, %v923_v48  ;;  %v17201_v25 = vcombine.low %v919_v9, %v923_v48 }
 0x684   :  { %14786 = vmatpush1.bf16.msra.mxu1 %v17161_v2  ;;  %v17712_v24 = vcombine.high %v1430_v62, %v1434_v57  ;;  %v927_v2 = vld [vmem:[#allocation5 + $0x1858] sm:$0xff]  ;;  %v17711_v28 = vcombine.low %v1430_v62, %v1434_v57 }
 0x685   :  { %14787 = vmatprep.subr.bf16.mxu1 %v17170_v31  ;;  %v1438_v31 = vld [vmem:[#allocation5 + $0x2850] sm:$0xff]  ;;  %v959_v62 = vld [vmem:[#allocation5 + $0x1958] sm:$0xff] }
 0x686   :  { %14294 = vmatpush1.bf16.msra.mxu0 %v17671_v16  ;;  %v931_v16 = vld [vmem:[#allocation5 + $0x1878] sm:$0xff] }
 0x687   :  { %14295 = vmatprep.subr.bf16.mxu0 %v17680_v3  ;;  %v1442_v3 = vld [vmem:[#allocation5 + $0x2870] sm:$0xff]  ;;  %v17210_v35 = vcombine.high %v927_v2, %v931_v16  ;;  %v17209_v27 = vcombine.low %v927_v2, %v931_v16  ;;  %v963_v57 = vld [vmem:[#allocation5 + $0x1978] sm:$0xff] }
 0x688   :  { %14788 = vmatpush1.bf16.msra.mxu1 %v17169_v39  ;;  %v17720_v21 = vcombine.high %v1438_v31, %v1442_v3  ;;  %v935_v39 = vld [vmem:[#allocation5 + $0x1898] sm:$0xff]  ;;  %v17719_v43 = vcombine.low %v1438_v31, %v1442_v3  ;;  %v17242_v2 = vcombine.high %v959_v62, %v963_v57 }
 0x689   :  { %14789 = vmatprep.subr.bf16.mxu1 %v17178_v26  ;;  %v1446_v26 = vld [vmem:[#allocation5 + $0x2890] sm:$0xff]  ;;  %v967_v31 = vld [vmem:[#allocation5 + $0x1998] sm:$0xff] }
 0x68a   :  { %14296 = vmatpush1.bf16.msra.mxu0 %v17679_v41  ;;  %v939_v41 = vld [vmem:[#allocation5 + $0x18b8] sm:$0xff] }
 0x68b   :  { %14297 = vmatprep.subr.bf16.mxu0 %v17688_v8  ;;  %v1450_v8 = vld [vmem:[#allocation5 + $0x28b0] sm:$0xff]  ;;  %v17218_v29 = vcombine.high %v935_v39, %v939_v41  ;;  %v971_v3 = vld [vmem:[#allocation5 + $0x19b8] sm:$0xff] }
 0x68c   :  { %14790 = vmatpush1.bf16.msra.mxu1 %v17177_v37  ;;  %v17728_v36 = vcombine.high %v1446_v26, %v1450_v8  ;;  %v943_v37 = vld [vmem:[#allocation5 + $0x18d8] sm:$0xff]  ;;  %v17727_v58 = vcombine.low %v1446_v26, %v1450_v8 }
 0x68d   :  { %14791 = vmatprep.subr.bf16.mxu1 %v17186_v33  ;;  %v1454_v33 = vld [vmem:[#allocation5 + $0x28d0] sm:$0xff]  ;;  %v975_v26 = vld [vmem:[#allocation5 + $0x19d8] sm:$0xff] }
 0x68e   :  { %14298 = vmatpush1.bf16.msra.mxu0 %v17687_v51  ;;  %v947_v51 = vld [vmem:[#allocation5 + $0x18f8] sm:$0xff] }
 0x68f   :  { %14299 = vmatprep.subr.bf16.mxu0 %v17696_v44  ;;  %v1458_v44 = vld [vmem:[#allocation5 + $0x28f0] sm:$0xff]  ;;  %v17226_v47 = vcombine.high %v943_v37, %v947_v51  ;;  %v979_v8 = vld [vmem:[#allocation5 + $0x19f8] sm:$0xff] }
 0x690   :  { %14792 = vmatpush1.bf16.msra.mxu1 %v17185_v19  ;;  %v17736_v46 = vcombine.high %v1454_v33, %v1458_v44  ;;  %v955_v19 = vld [vmem:[#allocation5 + $0x1938] sm:$0xff]  ;;  %v17735_v9 = vcombine.low %v1454_v33, %v1458_v44 }
 0x691   :  { %14793 = vmatprep.subr.bf16.mxu1 %v17194_v45  ;;  %v1466_v45 = vld [vmem:[#allocation5 + $0x2930] sm:$0xff]  ;;  %v17234_v48 = vcombine.high %v951_v61, %v955_v19  ;;  %v983_v33 = vld [vmem:[#allocation5 + $0x1a18] sm:$0xff] }
 0x692   :  { %14300 = vmatpush1.bf16.msra.mxu0 %v17695_v30  ;;  %v1462_v30 = vld [vmem:[#allocation5 + $0x2910] sm:$0xff]  ;;  %v987_v44 = vld [vmem:[#allocation5 + $0x1a38] sm:$0xff] }
 0x693   :  { %14301 = vmatprep.subr.bf16.mxu0 %v17704_v22  ;;  %v17225_v22 = vcombine.low %v943_v37, %v947_v51  ;;  %v17258_v37 = vcombine.high %v975_v26, %v979_v8 }
 0x694   :  { %14794 = vmatpush1.bf16.msra.mxu1 %v17193_v17  ;;  %v1470_v17 = vld [vmem:[#allocation5 + $0x2950] sm:$0xff] }
 0x695   :  { %14804 = vmatprep.subr.bf16.mxu1 %v17202_v18  ;;  %v17233_v18 = vcombine.low %v951_v61, %v955_v19  ;;  %v17266_v61 = vcombine.high %v983_v33, %v987_v44 }
 0x696   :  { %14302 = vmatpush1.bf16.msra.mxu0 %v17703_v60  ;;  %v1474_v60 = vld [vmem:[#allocation5 + $0x2970] sm:$0xff] }
 0x697   :  { %14312 = vmatprep.subr.bf16.mxu0 %v17712_v24  ;;  %14796 = vmatmul.mubr.bf16.vlgmr.msra.gmra.mrb[8].mxu1 %v19667_v32  ;;  %v17217_v32 = vcombine.low %v935_v39, %v939_v41  ;;  %v17743_v24 = vcombine.low %v1462_v30, %v1466_v45  ;;  %v17752_v16 = vcombine.high %v1470_v17, %v1474_v60 }
 0x698   :  { %14805 = vmatpush1.bf16.msra.mxu1 %v17201_v25  ;;  %14836 = vmatprep.mubr.bf16.mxu1 %v19671_v40  ;;  %v17744_v40 = vcombine.high %v1462_v30, %v1466_v45  ;;  %v1478_v25 = vld [vmem:[#allocation5 + $0x2990] sm:$0xff]  ;;  %v17250_v39 = vcombine.high %v967_v31, %v971_v3  ;;  %v991_v30 = vld [vmem:[#allocation5 + $0x1a58] sm:$0xff] }
 0x699   :  { %14304 = vmatmul.mubr.bf16.vlgmr.msra.gmra.mrb[4].mxu0 %v19727_v59  ;;  %14806 = vmatprep.subr.bf16.mxu1 %v17210_v35  ;;  %v17241_v35 = vcombine.low %v959_v62, %v963_v57  ;;  %v995_v45 = vld [vmem:[#allocation5 + $0x1a78] sm:$0xff] }
 0x69a   :  { %14313 = vmatpush1.bf16.msra.mxu0 %v17711_v28  ;;  %14344 = vmatprep.mubr.bf16.mxu0 %v19731_v4  ;;  %v1482_v28 = vld [vmem:[#allocation5 + $0x29b0] sm:$0xff]  ;;  %v17274_v62 = vcombine.high %v991_v30, %v995_v45 }
 0x69b   :  { %14314 = vmatprep.subr.bf16.mxu0 %v17720_v21  ;;  %v17751_v21 = vcombine.low %v1470_v17, %v1474_v60  ;;  %v17760_v41 = vcombine.high %v1478_v25, %v1482_v28  ;;  %v999_v17 = vld [vmem:[#allocation5 + $0x1a98] sm:$0xff] }
 0x69c   :  { %14807 = vmatpush1.bf16.msra.mxu1 %v17209_v27  ;;  %v1486_v27 = vld [vmem:[#allocation5 + $0x29d0] sm:$0xff]  ;;  %v1003_v60 = vld [vmem:[#allocation5 + $0x1ab8] sm:$0xff] }
 0x69d   :  { %14808 = vmatprep.subr.bf16.mxu1 %v17218_v29  ;;  %v17249_v29 = vcombine.low %v967_v31, %v971_v3  ;;  %v17282_v31 = vcombine.high %v999_v17, %v1003_v60 }
 0x69e   :  { %14315 = vmatpush1.bf16.msra.mxu0 %v17719_v43  ;;  %v1490_v43 = vld [vmem:[#allocation5 + $0x29f0] sm:$0xff] }
 0x69f   :  { %14316 = vmatprep.subr.bf16.mxu0 %v17728_v36  ;;  %v17759_v36 = vcombine.low %v1478_v25, %v1482_v28  ;;  %v17768_v51 = vcombine.high %v1486_v27, %v1490_v43  ;;  %v1007_v25 = vld [vmem:[#allocation5 + $0x1ad8] sm:$0xff] }
 0x6a0   :  { %14809 = vmatpush1.bf16.msra.mxu1 %v17217_v32  ;;  %v1494_v32 = vld [vmem:[#allocation5 + $0x2a10] sm:$0xff]  ;;  %v1011_v28 = vld [vmem:[#allocation5 + $0x1af8] sm:$0xff] }
 0x6a1   :  { %14810 = vmatprep.subr.bf16.mxu1 %v17226_v47  ;;  %v17257_v47 = vcombine.low %v975_v26, %v979_v8  ;;  %v17290_v26 = vcombine.high %v1007_v25, %v1011_v28 }
 0x6a2   :  { %14317 = vmatpush1.bf16.msra.mxu0 %v17727_v58  ;;  %v1498_v58 = vld [vmem:[#allocation5 + $0x2a30] sm:$0xff] }
 0x6a3   :  { %14318 = vmatprep.subr.bf16.mxu0 %v17736_v46  ;;  %v17767_v46 = vcombine.low %v1486_v27, %v1490_v43  ;;  %v17776_v19 = vcombine.high %v1494_v32, %v1498_v58  ;;  %v1015_v27 = vld [vmem:[#allocation5 + $0x1b18] sm:$0xff] }
 0x6a4   :  { %14811 = vmatpush1.bf16.msra.mxu1 %v17225_v22  ;;  %v1502_v22 = vld [vmem:[#allocation5 + $0x2a50] sm:$0xff]  ;;  %v1019_v43 = vld [vmem:[#allocation5 + $0x1b38] sm:$0xff] }
 0x6a5   :  { %14812 = vmatprep.subr.bf16.mxu1 %v17234_v48  ;;  %v17265_v48 = vcombine.low %v983_v33, %v987_v44  ;;  %v17298_v33 = vcombine.high %v1015_v27, %v1019_v43 }
 0x6a6   :  { %14319 = vmatpush1.bf16.msra.mxu0 %v17735_v9  ;;  %v1506_v9 = vld [vmem:[#allocation5 + $0x2a70] sm:$0xff] }
 0x6a7   :  { %14320 = vmatprep.subr.bf16.mxu0 %v17744_v40  ;;  %v17775_v40 = vcombine.low %v1494_v32, %v1498_v58  ;;  %v17784_v57 = vcombine.high %v1502_v22, %v1506_v9  ;;  %v1023_v32 = vld [vmem:[#allocation5 + $0x1b58] sm:$0xff] }
 0x6a8   :  { %14813 = vmatpush1.bf16.msra.mxu1 %v17233_v18  ;;  %v1510_v18 = vld [vmem:[#allocation5 + $0x2a90] sm:$0xff]  ;;  %v1027_v58 = vld [vmem:[#allocation5 + $0x1b78] sm:$0xff] }
 0x6a9   :  { %14814 = vmatprep.subr.bf16.mxu1 %v17242_v2  ;;  %v17273_v2 = vcombine.low %v991_v30, %v995_v45  ;;  %v17306_v30 = vcombine.high %v1023_v32, %v1027_v58 }
 0x6aa   :  { %14321 = vmatpush1.bf16.msra.mxu0 %v17743_v24  ;;  %v1514_v24 = vld [vmem:[#allocation5 + $0x2ab0] sm:$0xff] }
 0x6ab   :  { %14322 = vmatprep.subr.bf16.mxu0 %v17752_v16  ;;  %v17783_v16 = vcombine.low %v1502_v22, %v1506_v9  ;;  %v17792_v3 = vcombine.high %v1510_v18, %v1514_v24  ;;  %v1031_v22 = vld [vmem:[#allocation5 + $0x1b98] sm:$0xff] }
 0x6ac   :  { %14815 = vmatpush1.bf16.msra.mxu1 %v17241_v35  ;;  %v1518_v35 = vld [vmem:[#allocation5 + $0x2ad0] sm:$0xff]  ;;  %v1035_v9 = vld [vmem:[#allocation5 + $0x1bb8] sm:$0xff] }
 0x6ad   :  { %14816 = vmatprep.subr.bf16.mxu1 %v17250_v39  ;;  %v17281_v39 = vcombine.low %v999_v17, %v1003_v60  ;;  %v17314_v17 = vcombine.high %v1031_v22, %v1035_v9 }
 0x6ae   :  { %14323 = vmatpush1.bf16.msra.mxu0 %v17751_v21  ;;  %v1522_v21 = vld [vmem:[#allocation5 + $0x2af0] sm:$0xff] }
 0x6af   :  { %14324 = vmatprep.subr.bf16.mxu0 %v17760_v41  ;;  %v17791_v41 = vcombine.low %v1510_v18, %v1514_v24  ;;  %v17800_v8 = vcombine.high %v1518_v35, %v1522_v21  ;;  %v1039_v18 = vld [vmem:[#allocation5 + $0x1bd8] sm:$0xff] }
 0x6b0   :  { %14817 = vmatpush1.bf16.msra.mxu1 %v17249_v29  ;;  %v1526_v29 = vld [vmem:[#allocation5 + $0x2b10] sm:$0xff]  ;;  %v1043_v24 = vld [vmem:[#allocation5 + $0x1bf8] sm:$0xff] }
 0x6b1   :  { %14818 = vmatprep.subr.bf16.mxu1 %v17258_v37  ;;  %v17289_v37 = vcombine.low %v1007_v25, %v1011_v28  ;;  %v17322_v25 = vcombine.high %v1039_v18, %v1043_v24 }
 0x6b2   :  { %14325 = vmatpush1.bf16.msra.mxu0 %v17759_v36  ;;  %v1530_v36 = vld [vmem:[#allocation5 + $0x2b30] sm:$0xff] }
 0x6b3   :  { %14326 = vmatprep.subr.bf16.mxu0 %v17768_v51  ;;  %v17799_v51 = vcombine.low %v1518_v35, %v1522_v21  ;;  %v17808_v44 = vcombine.high %v1526_v29, %v1530_v36  ;;  %v1047_v35 = vld [vmem:[#allocation5 + $0x1c18] sm:$0xff] }
 0x6b4   :  { %14819 = vmatpush1.bf16.msra.mxu1 %v17257_v47  ;;  %v1534_v47 = vld [vmem:[#allocation5 + $0x2b50] sm:$0xff]  ;;  %v1051_v21 = vld [vmem:[#allocation5 + $0x1c38] sm:$0xff] }
 0x6b5   :  { %14820 = vmatprep.subr.bf16.mxu1 %v17266_v61  ;;  %v17297_v61 = vcombine.low %v1015_v27, %v1019_v43  ;;  %v17330_v27 = vcombine.high %v1047_v35, %v1051_v21 }
 0x6b6   :  { %14327 = vmatpush1.bf16.msra.mxu0 %v17767_v46  ;;  %v1538_v46 = vld [vmem:[#allocation5 + $0x2b70] sm:$0xff] }
 0x6b7   :  { %14328 = vmatprep.subr.bf16.mxu0 %v17776_v19  ;;  %v17807_v19 = vcombine.low %v1526_v29, %v1530_v36  ;;  %v17816_v45 = vcombine.high %v1534_v47, %v1538_v46  ;;  %v1055_v29 = vld [vmem:[#allocation5 + $0x1c58] sm:$0xff] }
 0x6b8   :  { %14821 = vmatpush1.bf16.msra.mxu1 %v17265_v48  ;;  %v1542_v48 = vld [vmem:[#allocation5 + $0x2b90] sm:$0xff]  ;;  %v1059_v36 = vld [vmem:[#allocation5 + $0x1c78] sm:$0xff] }
 0x6b9   :  { %14822 = vmatprep.subr.bf16.mxu1 %v17274_v62  ;;  %v17305_v62 = vcombine.low %v1023_v32, %v1027_v58  ;;  %v17338_v32 = vcombine.high %v1055_v29, %v1059_v36 }
 0x6ba   :  { %14329 = vmatpush1.bf16.msra.mxu0 %v17775_v40  ;;  %v1546_v40 = vld [vmem:[#allocation5 + $0x2bb0] sm:$0xff] }
 0x6bb   :  { %14330 = vmatprep.subr.bf16.mxu0 %v17784_v57  ;;  %v17815_v57 = vcombine.low %v1534_v47, %v1538_v46  ;;  %v17824_v60 = vcombine.high %v1542_v48, %v1546_v40  ;;  %v1063_v47 = vld [vmem:[#allocation5 + $0x1c98] sm:$0xff] }
 0x6bc   :  { %14823 = vmatpush1.bf16.msra.mxu1 %v17273_v2  ;;  %v1550_v2 = vld [vmem:[#allocation5 + $0x2bd0] sm:$0xff]  ;;  %v1067_v46 = vld [vmem:[#allocation5 + $0x1cb8] sm:$0xff] }
 0x6bd   :  { %14824 = vmatprep.subr.bf16.mxu1 %v17282_v31  ;;  %v17313_v31 = vcombine.low %v1031_v22, %v1035_v9  ;;  %v17346_v22 = vcombine.high %v1063_v47, %v1067_v46 }
 0x6be   :  { %14331 = vmatpush1.bf16.msra.mxu0 %v17783_v16  ;;  %v1554_v16 = vld [vmem:[#allocation5 + $0x2bf0] sm:$0xff] }
 0x6bf   :  { %14332 = vmatprep.subr.bf16.mxu0 %v17792_v3  ;;  %v17823_v3 = vcombine.low %v1542_v48, %v1546_v40  ;;  %v17832_v28 = vcombine.high %v1550_v2, %v1554_v16  ;;  %v1071_v48 = vld [vmem:[#allocation5 + $0x1cd8] sm:$0xff] }
 0x6c0   :  { %14825 = vmatpush1.bf16.msra.mxu1 %v17281_v39  ;;  %v1558_v39 = vld [vmem:[#allocation5 + $0x2c10] sm:$0xff]  ;;  %v1075_v40 = vld [vmem:[#allocation5 + $0x1cf8] sm:$0xff] }
 0x6c1   :  { %14826 = vmatprep.subr.bf16.mxu1 %v17290_v26  ;;  %v17321_v26 = vcombine.low %v1039_v18, %v1043_v24  ;;  %v1079_v24 = vld [vmem:[#allocation5 + $0x1d18] sm:$0xff] }
 0x6c2   :  { %14333 = vmatpush1.bf16.msra.mxu0 %v17791_v41  ;;  %v1562_v41 = vld [vmem:[#allocation5 + $0x2c30] sm:$0xff] }
 0x6c3   :  { %14334 = vmatprep.subr.bf16.mxu0 %v17800_v8  ;;  %v17831_v8 = vcombine.low %v1550_v2, %v1554_v16  ;;  %v17840_v43 = vcombine.high %v1558_v39, %v1562_v41  ;;  %v1083_v2 = vld [vmem:[#allocation5 + $0x1d38] sm:$0xff]  ;;  %v1590_v16 = vld [vmem:[#allocation5 + $0x2d10] sm:$0xff] }
 0x6c4   :  { %14827 = vmatpush1.bf16.msra.mxu1 %v17289_v37  ;;  %v1566_v37 = vld [vmem:[#allocation5 + $0x2c50] sm:$0xff] }
 0x6c5   :  { %14828 = vmatprep.subr.bf16.mxu1 %v17298_v33  ;;  %v17329_v33 = vcombine.low %v1047_v35, %v1051_v21  ;;  %v1087_v35 = vld [vmem:[#allocation5 + $0x1d58] sm:$0xff] }
 0x6c6   :  { %14335 = vmatpush1.bf16.msra.mxu0 %v17799_v51  ;;  %v1570_v51 = vld [vmem:[#allocation5 + $0x2c70] sm:$0xff]  ;;  %v1091_v21 = vld [vmem:[#allocation5 + $0x1d78] sm:$0xff] }
 0x6c7   :  { %14336 = vmatprep.subr.bf16.mxu0 %v17808_v44  ;;  %v17839_v44 = vcombine.low %v1558_v39, %v1562_v41  ;;  %v17848_v58 = vcombine.high %v1566_v37, %v1570_v51  ;;  %v1598_v39 = vld [vmem:[#allocation5 + $0x2d50] sm:$0xff] }
 0x6c8   :  { %14829 = vmatpush1.bf16.msra.mxu1 %v17297_v61  ;;  %v1574_v61 = vld [vmem:[#allocation5 + $0x2c90] sm:$0xff] }
 0x6c9   :  { %14830 = vmatprep.subr.bf16.mxu1 %v17306_v30  ;;  %v17337_v30 = vcombine.low %v1055_v29, %v1059_v36  ;;  %v1602_v41 = vld [vmem:[#allocation5 + $0x2d70] sm:$0xff]  ;;  %v1095_v29 = vld [vmem:[#allocation5 + $0x1d98] sm:$0xff] }
 0x6ca   :  { %14337 = vmatpush1.bf16.msra.mxu0 %v17807_v19  ;;  %v1578_v19 = vld [vmem:[#allocation5 + $0x2cb0] sm:$0xff]  ;;  %v1099_v36 = vld [vmem:[#allocation5 + $0x1db8] sm:$0xff] }
 0x6cb   :  { %14338 = vmatprep.subr.bf16.mxu0 %v17816_v45  ;;  %v17847_v45 = vcombine.low %v1566_v37, %v1570_v51  ;;  %v17856_v9 = vcombine.high %v1574_v61, %v1578_v19  ;;  %v1606_v37 = vld [vmem:[#allocation5 + $0x2d90] sm:$0xff] }
 0x6cc   :  { %14831 = vmatpush1.bf16.msra.mxu1 %v17305_v62  ;;  %v1582_v62 = vld [vmem:[#allocation5 + $0x2cd0] sm:$0xff] }
 0x6cd   :  { %14832 = vmatprep.subr.bf16.mxu1 %v17314_v17  ;;  %v17855_v17 = vcombine.low %v1574_v61, %v1578_v19  ;;  %v1610_v51 = vld [vmem:[#allocation5 + $0x2db0] sm:$0xff] }
 0x6ce   :  { %14339 = vmatpush1.bf16.msra.mxu0 %v17815_v57  ;;  %v1586_v57 = vld [vmem:[#allocation5 + $0x2cf0] sm:$0xff] }
 0x6cf   :  { %14340 = vmatprep.subr.bf16.mxu0 %v17824_v60  ;;  %v17354_v60 = vcombine.high %v1071_v48, %v1075_v40  ;;  %v17864_v18 = vcombine.high %v1582_v62, %v1586_v57  ;;  %v1614_v61 = vld [vmem:[#allocation5 + $0x2dd0] sm:$0xff] }
 0x6d0   :  { %14833 = vmatpush1.bf16.msra.mxu1 %v17313_v31  ;;  %v1594_v31 = vld [vmem:[#allocation5 + $0x2d30] sm:$0xff] }
 0x6d1   :  { %14834 = vmatprep.subr.bf16.mxu1 %v17322_v25  ;;  %v17863_v25 = vcombine.low %v1582_v62, %v1586_v57  ;;  %v1618_v19 = vld [vmem:[#allocation5 + $0x2df0] sm:$0xff] }
 0x6d2   :  { %14341 = vmatpush1.bf16.msra.mxu0 %v17823_v3  ;;  %v17353_v3 = vcombine.low %v1071_v48, %v1075_v40  ;;  %v1111_v48 = vld [vmem:[#allocation5 + $0x1e18] sm:$0xff]  ;;  %v1622_v62 = vld [vmem:[#allocation5 + $0x2e10] sm:$0xff] }
 0x6d3   :  { %14342 = vmatprep.subr.bf16.mxu0 %v17832_v28  ;;  %v17362_v28 = vcombine.high %v1079_v24, %v1083_v2  ;;  %v1115_v40 = vld [vmem:[#allocation5 + $0x1e38] sm:$0xff]  ;;  %v1626_v57 = vld [vmem:[#allocation5 + $0x2e30] sm:$0xff] }
 0x6d4   :  { %14835 = vmatpush1.bf16.msra.mxu1 %v17321_v26  ;;  %v17361_v26 = vcombine.low %v1079_v24, %v1083_v2  ;;  %v1119_v24 = vld [vmem:[#allocation5 + $0x1e58] sm:$0xff] }
 0x6d5   :  { %14845 = vmatprep.subr.bf16.mxu1 %v17330_v27  ;;  %v17370_v27 = vcombine.high %v1087_v35, %v1091_v21  ;;  %v1123_v2 = vld [vmem:[#allocation5 + $0x1e78] sm:$0xff] }
 0x6d6   :  { %14343 = vmatpush1.bf16.msra.mxu0 %v17831_v8  ;;  %v17871_v8 = vcombine.low %v1590_v16, %v1594_v31 }
 0x6d7   :  { %14353 = vmatprep.subr.bf16.mxu0 %v17840_v43  ;;  %14837 = vmatmul.mubr.bf16.vlgmr.msra.gmra.mrb[8].mxu1 %v19681_v6  ;;  %v17345_v6 = vcombine.low %v1063_v47, %v1067_v46  ;;  %v17880_v43 = vcombine.high %v1598_v39, %v1602_v41  ;;  %v1103_v47 = vld [vmem:[#allocation5 + $0x1dd8] sm:$0xff] }
 0x6d8   :  { %14846 = vmatpush1.bf16.msra.mxu1 %v17329_v33  ;;  %14877 = vmatprep.mubr.bf16.mxu1 %v19685_v12  ;;  %v17872_v12 = vcombine.high %v1590_v16, %v1594_v31  ;;  %v17369_v33 = vcombine.low %v1087_v35, %v1091_v21  ;;  %v1107_v46 = vld [vmem:[#allocation5 + $0x1df8] sm:$0xff]  ;;  %v1630_v16 = vld [vmem:[#allocation5 + $0x2e50] sm:$0xff] }
 0x6d9   :  { %14345 = vmatmul.mubr.bf16.vlgmr.msra.gmra.mrb[4].mxu0 %v19741_v13  ;;  %14847 = vmatprep.subr.bf16.mxu1 %v17338_v32  ;;  %v17378_v32 = vcombine.high %v1095_v29, %v1099_v36  ;;  %v1634_v31 = vld [vmem:[#allocation5 + $0x2e70] sm:$0xff]  ;;  %v1127_v35 = vld [vmem:[#allocation5 + $0x1e98] sm:$0xff] }
 0x6da   :  { %14354 = vmatpush1.bf16.msra.mxu0 %v17839_v44  ;;  %14385 = vmatprep.mubr.bf16.mxu0 %v19745_v20  ;;  %v17879_v44 = vcombine.low %v1598_v39, %v1602_v41  ;;  %v1131_v21 = vld [vmem:[#allocation5 + $0x1eb8] sm:$0xff]  ;;  %v1638_v39 = vld [vmem:[#allocation5 + $0x2e90] sm:$0xff] }
 0x6db   :  { %14355 = vmatprep.subr.bf16.mxu0 %v17848_v58  ;;  %v17888_v58 = vcombine.high %v1606_v37, %v1610_v51  ;;  %v1642_v41 = vld [vmem:[#allocation5 + $0x2eb0] sm:$0xff] }
 0x6dc   :  { %14848 = vmatpush1.bf16.msra.mxu1 %v17337_v30  ;;  %v17377_v30 = vcombine.low %v1095_v29, %v1099_v36  ;;  %v1135_v29 = vld [vmem:[#allocation5 + $0x1ed8] sm:$0xff] }
 0x6dd   :  { %14849 = vmatprep.subr.bf16.mxu1 %v17346_v22  ;;  %v17386_v22 = vcombine.high %v1103_v47, %v1107_v46  ;;  %v1139_v36 = vld [vmem:[#allocation5 + $0x1ef8] sm:$0xff] }
 0x6de   :  { %14356 = vmatpush1.bf16.msra.mxu0 %v17847_v45  ;;  %v17887_v45 = vcombine.low %v1606_v37, %v1610_v51  ;;  %v1646_v37 = vld [vmem:[#allocation5 + $0x2ed0] sm:$0xff] }
 0x6df   :  { %14357 = vmatprep.subr.bf16.mxu0 %v17856_v9  ;;  %v17896_v9 = vcombine.high %v1614_v61, %v1618_v19  ;;  %v1650_v51 = vld [vmem:[#allocation5 + $0x2ef0] sm:$0xff] }
 0x6e0   :  { %14850 = vmatpush1.bf16.msra.mxu1 %v17345_v6  ;;  %v17385_v6 = vcombine.low %v1103_v47, %v1107_v46  ;;  %v1143_v47 = vld [vmem:[#allocation5 + $0x1f18] sm:$0xff] }
 0x6e1   :  { %14851 = vmatprep.subr.bf16.mxu1 %v17354_v60  ;;  %v17394_v60 = vcombine.high %v1111_v48, %v1115_v40  ;;  %v1147_v46 = vld [vmem:[#allocation5 + $0x1f38] sm:$0xff] }
 0x6e2   :  { %14358 = vmatpush1.bf16.msra.mxu0 %v17855_v17  ;;  %v17895_v17 = vcombine.low %v1614_v61, %v1618_v19  ;;  %v1654_v61 = vld [vmem:[#allocation5 + $0x2f10] sm:$0xff] }
 0x6e3   :  { %14359 = vmatprep.subr.bf16.mxu0 %v17864_v18  ;;  %v17904_v18 = vcombine.high %v1622_v62, %v1626_v57  ;;  %v1658_v19 = vld [vmem:[#allocation5 + $0x2f30] sm:$0xff] }
 0x6e4   :  { %14852 = vmatpush1.bf16.msra.mxu1 %v17353_v3  ;;  %v17393_v3 = vcombine.low %v1111_v48, %v1115_v40  ;;  %v1151_v48 = vld [vmem:[#allocation5 + $0x1f58] sm:$0xff] }
 0x6e5   :  { %14853 = vmatprep.subr.bf16.mxu1 %v17362_v28  ;;  %v17402_v28 = vcombine.high %v1119_v24, %v1123_v2  ;;  %v1155_v40 = vld [vmem:[#allocation5 + $0x1f78] sm:$0xff] }
 0x6e6   :  { %14360 = vmatpush1.bf16.msra.mxu0 %v17863_v25  ;;  %v17903_v25 = vcombine.low %v1622_v62, %v1626_v57  ;;  %v1662_v62 = vld [vmem:[#allocation5 + $0x2f50] sm:$0xff] }
 0x6e7   :  { %14361 = vmatprep.subr.bf16.mxu0 %v17872_v12  ;;  %v17912_v12 = vcombine.high %v1630_v16, %v1634_v31  ;;  %v1666_v57 = vld [vmem:[#allocation5 + $0x2f70] sm:$0xff] }
 0x6e8   :  { %14854 = vmatpush1.bf16.msra.mxu1 %v17361_v26  ;;  %v17401_v26 = vcombine.low %v1119_v24, %v1123_v2  ;;  %v1159_v24 = vld [vmem:[#allocation5 + $0x1f98] sm:$0xff] }
 0x6e9   :  { %14855 = vmatprep.subr.bf16.mxu1 %v17370_v27  ;;  %v17410_v27 = vcombine.high %v1127_v35, %v1131_v21  ;;  %v1163_v2 = vld [vmem:[#allocation5 + $0x1fb8] sm:$0xff] }
 0x6ea   :  { %14362 = vmatpush1.bf16.msra.mxu0 %v17871_v8  ;;  %v17911_v8 = vcombine.low %v1630_v16, %v1634_v31  ;;  %v1670_v16 = vld [vmem:[#allocation5 + $0x2f90] sm:$0xff] }
 0x6eb   :  { %14363 = vmatprep.subr.bf16.mxu0 %v17880_v43  ;;  %v17920_v43 = vcombine.high %v1638_v39, %v1642_v41  ;;  %v1674_v31 = vld [vmem:[#allocation5 + $0x2fb0] sm:$0xff] }
 0x6ec   :  { %14856 = vmatpush1.bf16.msra.mxu1 %v17369_v33  ;;  %v17409_v33 = vcombine.low %v1127_v35, %v1131_v21  ;;  %v1167_v35 = vld [vmem:[#allocation5 + $0x1fd8] sm:$0xff] }
 0x6ed   :  { %14857 = vmatprep.subr.bf16.mxu1 %v17378_v32  ;;  %v17418_v32 = vcombine.high %v1135_v29, %v1139_v36  ;;  %v1171_v21 = vld [vmem:[#allocation5 + $0x1ff8] sm:$0xff] }
 0x6ee   :  { %14364 = vmatpush1.bf16.msra.mxu0 %v17879_v44  ;;  %v17919_v44 = vcombine.low %v1638_v39, %v1642_v41  ;;  %v1678_v39 = vld [vmem:[#allocation5 + $0x2fd0] sm:$0xff] }
 0x6ef   :  { %14365 = vmatprep.subr.bf16.mxu0 %v17888_v58  ;;  %v17928_v58 = vcombine.high %v1646_v37, %v1650_v51  ;;  %v1682_v41 = vld [vmem:[#allocation5 + $0x2ff0] sm:$0xff] }
 0x6f0   :  { %14858 = vmatpush1.bf16.msra.mxu1 %v17377_v30  ;;  %v17417_v30 = vcombine.low %v1135_v29, %v1139_v36  ;;  %v1175_v29 = vld [vmem:[#allocation5 + $0x2018] sm:$0xff] }
 0x6f1   :  { %14859 = vmatprep.subr.bf16.mxu1 %v17386_v22  ;;  %v17426_v22 = vcombine.high %v1143_v47, %v1147_v46  ;;  %v1179_v36 = vld [vmem:[#allocation5 + $0x2038] sm:$0xff] }
 0x6f2   :  { %14366 = vmatpush1.bf16.msra.mxu0 %v17887_v45  ;;  %v17927_v45 = vcombine.low %v1646_v37, %v1650_v51  ;;  %v1686_v37 = vld [vmem:[#allocation5 + $0x3010] sm:$0xff] }
 0x6f3   :  { %14367 = vmatprep.subr.bf16.mxu0 %v17896_v9  ;;  %v17936_v9 = vcombine.high %v1654_v61, %v1658_v19  ;;  %v1690_v51 = vld [vmem:[#allocation5 + $0x3030] sm:$0xff] }
 0x6f4   :  { %14860 = vmatpush1.bf16.msra.mxu1 %v17385_v6  ;;  %v17425_v6 = vcombine.low %v1143_v47, %v1147_v46  ;;  %v1183_v47 = vld [vmem:[#allocation5 + $0x2058] sm:$0xff] }
 0x6f5   :  { %14861 = vmatprep.subr.bf16.mxu1 %v17394_v60  ;;  %v17434_v60 = vcombine.high %v1151_v48, %v1155_v40  ;;  %v1187_v46 = vld [vmem:[#allocation5 + $0x2078] sm:$0xff] }
 0x6f6   :  { %14368 = vmatpush1.bf16.msra.mxu0 %v17895_v17  ;;  %v17935_v17 = vcombine.low %v1654_v61, %v1658_v19  ;;  %v1694_v61 = vld [vmem:[#allocation5 + $0x3050] sm:$0xff] }
 0x6f7   :  { %14369 = vmatprep.subr.bf16.mxu0 %v17904_v18  ;;  %v17944_v18 = vcombine.high %v1662_v62, %v1666_v57  ;;  %v1698_v19 = vld [vmem:[#allocation5 + $0x3070] sm:$0xff] }
 0x6f8   :  { %14862 = vmatpush1.bf16.msra.mxu1 %v17393_v3  ;;  %v17433_v3 = vcombine.low %v1151_v48, %v1155_v40  ;;  %v1191_v48 = vld [vmem:[#allocation5 + $0x2098] sm:$0xff] }
 0x6f9   :  { %14863 = vmatprep.subr.bf16.mxu1 %v17402_v28  ;;  %v17442_v28 = vcombine.high %v1159_v24, %v1163_v2  ;;  %v1195_v40 = vld [vmem:[#allocation5 + $0x20b8] sm:$0xff] }
 0x6fa   :  { %14370 = vmatpush1.bf16.msra.mxu0 %v17903_v25  ;;  %v17943_v25 = vcombine.low %v1662_v62, %v1666_v57  ;;  %v1702_v62 = vld [vmem:[#allocation5 + $0x3090] sm:$0xff] }
 0x6fb   :  { %14371 = vmatprep.subr.bf16.mxu0 %v17912_v12  ;;  %v17952_v12 = vcombine.high %v1670_v16, %v1674_v31  ;;  %v1706_v57 = vld [vmem:[#allocation5 + $0x30b0] sm:$0xff] }
 0x6fc   :  { %14864 = vmatpush1.bf16.msra.mxu1 %v17401_v26  ;;  %v17441_v26 = vcombine.low %v1159_v24, %v1163_v2  ;;  %v1199_v24 = vld [vmem:[#allocation5 + $0x20d8] sm:$0xff] }
 0x6fd   :  { %14865 = vmatprep.subr.bf16.mxu1 %v17410_v27  ;;  %v17450_v27 = vcombine.high %v1167_v35, %v1171_v21  ;;  %v1203_v2 = vld [vmem:[#allocation5 + $0x20f8] sm:$0xff] }
 0x6fe   :  { %14372 = vmatpush1.bf16.msra.mxu0 %v17911_v8  ;;  %v17951_v8 = vcombine.low %v1670_v16, %v1674_v31  ;;  %v1710_v16 = vld [vmem:[#allocation5 + $0x30d0] sm:$0xff] }
 0x6ff   :  { %14373 = vmatprep.subr.bf16.mxu0 %v17920_v43  ;;  %v17960_v43 = vcombine.high %v1678_v39, %v1682_v41  ;;  %v1714_v31 = vld [vmem:[#allocation5 + $0x30f0] sm:$0xff] }
 0x700   :  { %14866 = vmatpush1.bf16.msra.mxu1 %v17409_v33  ;;  %v17449_v33 = vcombine.low %v1167_v35, %v1171_v21  ;;  %v1211_v35 = vld [vmem:[#allocation5 + $0x2138] sm:$0xff]  ;;  %v1718_v21 = vld [vmem:[#allocation5 + $0x3110] sm:$0xff] }
 0x701   :  { %14867 = vmatprep.subr.bf16.mxu1 %v17418_v32  ;;  %v17458_v32 = vcombine.high %v1175_v29, %v1179_v36 }
 0x702   :  { %14374 = vmatpush1.bf16.msra.mxu0 %v17919_v44  ;;  %v17959_v44 = vcombine.low %v1678_v39, %v1682_v41  ;;  %v1722_v39 = vld [vmem:[#allocation5 + $0x3130] sm:$0xff]  ;;  %v17481_v41 = vcombine.low %v1199_v24, %v1203_v2 }
 0x703   :  { %14375 = vmatprep.subr.bf16.mxu0 %v17928_v58  ;;  %v17968_v58 = vcombine.high %v1686_v37, %v1690_v51 }
 0x704   :  { %14868 = vmatpush1.bf16.msra.mxu1 %v17417_v30  ;;  %v17457_v30 = vcombine.low %v1175_v29, %v1179_v36  ;;  %v1726_v29 = vld [vmem:[#allocation5 + $0x3150] sm:$0xff] }
 0x705   :  { %14869 = vmatprep.subr.bf16.mxu1 %v17426_v22  ;;  %v17466_v22 = vcombine.high %v1183_v47, %v1187_v46  ;;  %v1730_v36 = vld [vmem:[#allocation5 + $0x3170] sm:$0xff] }
 0x706   :  { %14376 = vmatpush1.bf16.msra.mxu0 %v17927_v45  ;;  %v17967_v45 = vcombine.low %v1686_v37, %v1690_v51  ;;  %v17999_v51 = vcombine.low %v1718_v21, %v1722_v39 }
 0x707   :  { %14377 = vmatprep.subr.bf16.mxu0 %v17936_v9  ;;  %v17976_v9 = vcombine.high %v1694_v61, %v1698_v19 }
 0x708   :  { %14870 = vmatpush1.bf16.msra.mxu1 %v17425_v6  ;;  %v17465_v6 = vcombine.low %v1183_v47, %v1187_v46  ;;  %v1734_v47 = vld [vmem:[#allocation5 + $0x3190] sm:$0xff] }
 0x709   :  { %14871 = vmatprep.subr.bf16.mxu1 %v17434_v60  ;;  %v17474_v60 = vcombine.high %v1191_v48, %v1195_v40  ;;  %v1738_v46 = vld [vmem:[#allocation5 + $0x31b0] sm:$0xff] }
 0x70a   :  { %14378 = vmatpush1.bf16.msra.mxu0 %v17935_v17  ;;  %v17975_v17 = vcombine.low %v1694_v61, %v1698_v19  ;;  %v18007_v19 = vcombine.low %v1726_v29, %v1730_v36 }
 0x70b   :  { %14379 = vmatprep.subr.bf16.mxu0 %v17944_v18  ;;  %v17984_v18 = vcombine.high %v1702_v62, %v1706_v57 }
 0x70c   :  { %14872 = vmatpush1.bf16.msra.mxu1 %v17433_v3  ;;  %v17983_v3 = vcombine.low %v1702_v62, %v1706_v57  ;;  %v18015_v57 = vcombine.low %v1734_v47, %v1738_v46 }
 0x70d   :  { %14873 = vmatprep.subr.bf16.mxu1 %v17442_v28  ;;  %v17992_v28 = vcombine.high %v1710_v16, %v1714_v31 }
 0x70e   :  { %14380 = vmatpush1.bf16.msra.mxu0 %v17943_v25  ;;  %v17482_v25 = vcombine.high %v1199_v24, %v1203_v2  ;;  %v1750_v24 = vld [vmem:[#allocation5 + $0x3210] sm:$0xff] }
 0x70f   :  { %14381 = vmatprep.subr.bf16.mxu0 %v17952_v12  ;;  %v1207_v12 = vld [vmem:[#allocation5 + $0x2118] sm:$0xff]  ;;  %v1754_v2 = vld [vmem:[#allocation5 + $0x3230] sm:$0xff] }
 0x710   :  { %14874 = vmatpush1.bf16.msra.mxu1 %v17441_v26  ;;  %v17991_v26 = vcombine.low %v1710_v16, %v1714_v31  ;;  %v17489_v37 = vcombine.low %v1207_v12, %v1211_v35 }
 0x711   :  { %14875 = vmatprep.subr.bf16.mxu1 %v17450_v27  ;;  %v1215_v27 = vld [vmem:[#allocation5 + $0x2158] sm:$0xff] }
 0x712   :  { %14382 = vmatpush1.bf16.msra.mxu0 %v17951_v8  ;;  %v17490_v8 = vcombine.high %v1207_v12, %v1211_v35  ;;  %v1758_v12 = vld [vmem:[#allocation5 + $0x3250] sm:$0xff] }
 0x713   :  { %14383 = vmatprep.subr.bf16.mxu0 %v17960_v43  ;;  %v1219_v43 = vld [vmem:[#allocation5 + $0x2178] sm:$0xff]  ;;  %v1762_v35 = vld [vmem:[#allocation5 + $0x3270] sm:$0xff] }
 0x714   :  { %14876 = vmatpush1.bf16.msra.mxu1 %v17449_v33  ;;  %v17498_v33 = vcombine.high %v1215_v27, %v1219_v43  ;;  %v17497_v61 = vcombine.low %v1215_v27, %v1219_v43  ;;  %v1766_v27 = vld [vmem:[#allocation5 + $0x3290] sm:$0xff] }
 0x715   :  { %14886 = vmatprep.subr.bf16.mxu1 %v17458_v32  ;;  %v1223_v32 = vld [vmem:[#allocation5 + $0x2198] sm:$0xff]  ;;  %v1770_v43 = vld [vmem:[#allocation5 + $0x32b0] sm:$0xff] }
 0x716   :  { %14384 = vmatpush1.bf16.msra.mxu0 %v17959_v44  ;;  %v18008_v44 = vcombine.high %v1726_v29, %v1730_v36  ;;  %v18039_v36 = vcombine.low %v1758_v12, %v1762_v35 }
 0x717   :  { %14394 = vmatprep.subr.bf16.mxu0 %v17968_v58  ;;  %14878 = vmatmul.mubr.bf16.vlgmr.msra.gmra.mrb[8].mxu1 %v19699_v55  ;;  %v17473_v55 = vcombine.low %v1191_v48, %v1195_v40  ;;  %v1227_v58 = vld [vmem:[#allocation5 + $0x21b8] sm:$0xff]  ;;  %v1742_v48 = vld [vmem:[#allocation5 + $0x31d0] sm:$0xff] }
 0x718   :  { %14887 = vmatpush1.bf16.msra.mxu1 %v17457_v30  ;;  %14918 = vmatprep.mubr.bf16.mxu1 %v19703_v5  ;;  %v18000_v5 = vcombine.high %v1718_v21, %v1722_v39  ;;  %v17506_v30 = vcombine.high %v1223_v32, %v1227_v58  ;;  %v1746_v40 = vld [vmem:[#allocation5 + $0x31f0] sm:$0xff]  ;;  %v17505_v62 = vcombine.low %v1223_v32, %v1227_v58 }
 0x719   :  { %14386 = vmatmul.mubr.bf16.vlgmr.msra.gmra.mrb[4].mxu0 %v19755_v34  ;;  %14888 = vmatprep.subr.bf16.mxu1 %v17466_v22  ;;  %v1231_v22 = vld [vmem:[#allocation5 + $0x21d8] sm:$0xff]  ;;  %v18023_v31 = vcombine.low %v1742_v48, %v1746_v40  ;;  %v18031_v39 = vcombine.low %v1750_v24, %v1754_v2  ;;  %v1774_v32 = vld [vmem:[#allocation5 + $0x32d0] sm:$0xff] }
 0x71a   :  { %14395 = vmatpush1.bf16.msra.mxu0 %v17967_v45  ;;  %14426 = vmatprep.mubr.bf16.mxu0 %v19759_v0  ;;  %v18016_v45 = vcombine.high %v1734_v47, %v1738_v46  ;;  %v1778_v58 = vld [vmem:[#allocation5 + $0x32f0] sm:$0xff]  ;;  %v18047_v46 = vcombine.low %v1766_v27, %v1770_v43 }
 0x71b   :  { %14396 = vmatprep.subr.bf16.mxu0 %v17976_v9  ;;  %v1235_v9 = vld [vmem:[#allocation5 + $0x21f8] sm:$0xff] }
 0x71c   :  { %14889 = vmatpush1.bf16.msra.mxu1 %v17465_v6  ;;  %v17514_v6 = vcombine.high %v1231_v22, %v1235_v9  ;;  %v17513_v16 = vcombine.low %v1231_v22, %v1235_v9  ;;  %v1782_v22 = vld [vmem:[#allocation5 + $0x3310] sm:$0xff] }
 0x71d   :  { %14890 = vmatprep.subr.bf16.mxu1 %v17474_v60  ;;  %v1239_v60 = vld [vmem:[#allocation5 + $0x2218] sm:$0xff]  ;;  %v1786_v9 = vld [vmem:[#allocation5 + $0x3330] sm:$0xff] }
 0x71e   :  { %14397 = vmatpush1.bf16.msra.mxu0 %v17975_v17  ;;  %v18024_v17 = vcombine.high %v1742_v48, %v1746_v40  ;;  %v18055_v40 = vcombine.low %v1774_v32, %v1778_v58 }
 0x71f   :  { %14398 = vmatprep.subr.bf16.mxu0 %v17984_v18  ;;  %v1243_v18 = vld [vmem:[#allocation5 + $0x2238] sm:$0xff] }
 0x720   :  { %14891 = vmatpush1.bf16.msra.mxu1 %v17473_v55  ;;  %v17522_v55 = vcombine.high %v1239_v60, %v1243_v18  ;;  %v17521_v21 = vcombine.low %v1239_v60, %v1243_v18  ;;  %v1790_v60 = vld [vmem:[#allocation5 + $0x3350] sm:$0xff] }
 0x721   :  { %14892 = vmatprep.subr.bf16.mxu1 %v17482_v25  ;;  %v1247_v25 = vld [vmem:[#allocation5 + $0x2258] sm:$0xff]  ;;  %v1794_v18 = vld [vmem:[#allocation5 + $0x3370] sm:$0xff] }
 0x722   :  { %14399 = vmatpush1.bf16.msra.mxu0 %v17983_v3  ;;  %v18032_v3 = vcombine.high %v1750_v24, %v1754_v2  ;;  %v18063_v2 = vcombine.low %v1782_v22, %v1786_v9 }
 0x723   :  { %14400 = vmatprep.subr.bf16.mxu0 %v17992_v28  ;;  %v1251_v28 = vld [vmem:[#allocation5 + $0x2278] sm:$0xff] }
 0x724   :  { %14893 = vmatpush1.bf16.msra.mxu1 %v17481_v41  ;;  %v17530_v41 = vcombine.high %v1247_v25, %v1251_v28  ;;  %v17529_v29 = vcombine.low %v1247_v25, %v1251_v28  ;;  %v1798_v25 = vld [vmem:[#allocation5 + $0x3390] sm:$0xff] }
 0x725   :  { %14894 = vmatprep.subr.bf16.mxu1 %v17490_v8  ;;  %v1255_v8 = vld [vmem:[#allocation5 + $0x2298] sm:$0xff]  ;;  %v1802_v28 = vld [vmem:[#allocation5 + $0x33b0] sm:$0xff] }
 0x726   :  { %14401 = vmatpush1.bf16.msra.mxu0 %v17991_v26  ;;  %v18040_v26 = vcombine.high %v1758_v12, %v1762_v35  ;;  %v18071_v35 = vcombine.low %v1790_v60, %v1794_v18 }
 0x727   :  { %14402 = vmatprep.subr.bf16.mxu0 %v18000_v5  ;;  %v1259_v5 = vld [vmem:[#allocation5 + $0x22b8] sm:$0xff] }
 0x728   :  { %14895 = vmatpush1.bf16.msra.mxu1 %v17489_v37  ;;  %v17538_v37 = vcombine.high %v1255_v8, %v1259_v5  ;;  %v17537_v47 = vcombine.low %v1255_v8, %v1259_v5  ;;  %v1806_v8 = vld [vmem:[#allocation5 + $0x33d0] sm:$0xff] }
 0x729   :  { %14896 = vmatprep.subr.bf16.mxu1 %v17498_v33  ;;  %v1263_v33 = vld [vmem:[#allocation5 + $0x22d8] sm:$0xff]  ;;  %v1810_v5 = vld [vmem:[#allocation5 + $0x33f0] sm:$0xff] }
 0x72a   :  { %14403 = vmatpush1.bf16.msra.mxu0 %v17999_v51  ;;  %v18048_v51 = vcombine.high %v1766_v27, %v1770_v43  ;;  %v18079_v43 = vcombine.low %v1798_v25, %v1802_v28 }
 0x72b   :  { %14404 = vmatprep.subr.bf16.mxu0 %v18008_v44  ;;  %v1267_v44 = vld [vmem:[#allocation5 + $0x22f8] sm:$0xff] }
 0x72c   :  { %14897 = vmatpush1.bf16.msra.mxu1 %v17497_v61  ;;  %v17546_v61 = vcombine.high %v1263_v33, %v1267_v44  ;;  %v17545_v48 = vcombine.low %v1263_v33, %v1267_v44  ;;  %v1814_v33 = vld [vmem:[#allocation5 + $0x3410] sm:$0xff] }
 0x72d   :  { %14898 = vmatprep.subr.bf16.mxu1 %v17506_v30  ;;  %v1271_v30 = vld [vmem:[#allocation5 + $0x2318] sm:$0xff]  ;;  %v1818_v44 = vld [vmem:[#allocation5 + $0x3430] sm:$0xff] }
 0x72e   :  { %14405 = vmatpush1.bf16.msra.mxu0 %v18007_v19  ;;  %v18056_v19 = vcombine.high %v1774_v32, %v1778_v58  ;;  %v18087_v58 = vcombine.low %v1806_v8, %v1810_v5 }
 0x72f   :  { %14406 = vmatprep.subr.bf16.mxu0 %v18016_v45  ;;  %v1275_v45 = vld [vmem:[#allocation5 + $0x2338] sm:$0xff] }
 0x730   :  { %14899 = vmatpush1.bf16.msra.mxu1 %v17505_v62  ;;  %v17554_v62 = vcombine.high %v1271_v30, %v1275_v45  ;;  %v17553_v24 = vcombine.low %v1271_v30, %v1275_v45  ;;  %v1822_v30 = vld [vmem:[#allocation5 + $0x3450] sm:$0xff] }
 0x731   :  { %14900 = vmatprep.subr.bf16.mxu1 %v17514_v6  ;;  %v1279_v6 = vld [vmem:[#allocation5 + $0x2358] sm:$0xff]  ;;  %v1826_v45 = vld [vmem:[#allocation5 + $0x3470] sm:$0xff] }
 0x732   :  { %14407 = vmatpush1.bf16.msra.mxu0 %v18015_v57  ;;  %v18064_v57 = vcombine.high %v1782_v22, %v1786_v9  ;;  %v18095_v9 = vcombine.low %v1814_v33, %v1818_v44 }
 0x733   :  { %14408 = vmatprep.subr.bf16.mxu0 %v18024_v17  ;;  %v1283_v17 = vld [vmem:[#allocation5 + $0x2378] sm:$0xff] }
 0x734   :  { %14901 = vmatpush1.bf16.msra.mxu1 %v17513_v16  ;;  %v17562_v16 = vcombine.high %v1279_v6, %v1283_v17  ;;  %v17561_v12 = vcombine.low %v1279_v6, %v1283_v17  ;;  %v1830_v6 = vld [vmem:[#allocation5 + $0x3490] sm:$0xff] }
 0x735   :  { %14902 = vmatprep.subr.bf16.mxu1 %v17522_v55  ;;  %v1287_v55 = vld [vmem:[#allocation5 + $0x2398] sm:$0xff]  ;;  %v1834_v17 = vld [vmem:[#allocation5 + $0x34b0] sm:$0xff] }
 0x736   :  { %14409 = vmatpush1.bf16.msra.mxu0 %v18023_v31  ;;  %v18072_v31 = vcombine.high %v1790_v60, %v1794_v18  ;;  %v18103_v18 = vcombine.low %v1822_v30, %v1826_v45 }
 0x737   :  { %14410 = vmatprep.subr.bf16.mxu0 %v18032_v3  ;;  %v1291_v3 = vld [vmem:[#allocation5 + $0x23b8] sm:$0xff] }
 0x738   :  { %14903 = vmatpush1.bf16.msra.mxu1 %v17521_v21  ;;  %v17570_v21 = vcombine.high %v1287_v55, %v1291_v3  ;;  %v17569_v27 = vcombine.low %v1287_v55, %v1291_v3  ;;  %v1838_v55 = vld [vmem:[#allocation5 + $0x34d0] sm:$0xff] }
 0x739   :  { %14904 = vmatprep.subr.bf16.mxu1 %v17530_v41  ;;  %v1295_v41 = vld [vmem:[#allocation5 + $0x23d8] sm:$0xff]  ;;  %v1842_v3 = vld [vmem:[#allocation5 + $0x34f0] sm:$0xff] }
 0x73a   :  { %14411 = vmatpush1.bf16.msra.mxu0 %v18031_v39  ;;  %v18080_v39 = vcombine.high %v1798_v25, %v1802_v28  ;;  %v18111_v25 = vcombine.low %v1830_v6, %v1834_v17 }
 0x73b   :  { %14412 = vmatprep.subr.bf16.mxu0 %v18040_v26  ;;  %v1299_v26 = vld [vmem:[#allocation5 + $0x23f8] sm:$0xff] }
 0x73c   :  { %14905 = vmatpush1.bf16.msra.mxu1 %v17529_v29  ;;  %v17578_v29 = vcombine.high %v1295_v41, %v1299_v26  ;;  %v17577_v32 = vcombine.low %v1295_v41, %v1299_v26  ;;  %v1850_v41 = vld [vmem:[#allocation5 + $0x3530] sm:$0xff] }
 0x73d   :  { %14906 = vmatprep.subr.bf16.mxu1 %v17538_v37  ;;  %v1303_v37 = vld [vmem:[#allocation5 + $0x2418] sm:$0xff] }
 0x73e   :  { %14413 = vmatpush1.bf16.msra.mxu0 %v18039_v36  ;;  %v18088_v36 = vcombine.high %v1806_v8, %v1810_v5  ;;  %v18119_v8 = vcombine.low %v1838_v55, %v1842_v3 }
 0x73f   :  { %14414 = vmatprep.subr.bf16.mxu0 %v18048_v51  ;;  %v1307_v51 = vld [vmem:[#allocation5 + $0x2438] sm:$0xff] }
 0x740   :  { %14907 = vmatpush1.bf16.msra.mxu1 %v17537_v47  ;;  %v17586_v47 = vcombine.high %v1303_v37, %v1307_v51  ;;  %v17585_v22 = vcombine.low %v1303_v37, %v1307_v51 }
 0x741   :  { %14908 = vmatprep.subr.bf16.mxu1 %v17546_v61  ;;  %v1311_v61 = vld [vmem:[#allocation5 + $0x2458] sm:$0xff] }
 0x742   :  { %14415 = vmatpush1.bf16.msra.mxu0 %v18047_v46  ;;  %v18096_v46 = vcombine.high %v1814_v33, %v1818_v44 }
 0x743   :  { %14416 = vmatprep.subr.bf16.mxu0 %v18056_v19  ;;  %v1315_v19 = vld [vmem:[#allocation5 + $0x2478] sm:$0xff] }
 0x744   :  { %14909 = vmatpush1.bf16.msra.mxu1 %v17545_v48  ;;  %v17594_v48 = vcombine.high %v1311_v61, %v1315_v19  ;;  %v17593_v60 = vcombine.low %v1311_v61, %v1315_v19 }
 0x745   :  { %14910 = vmatprep.subr.bf16.mxu1 %v17554_v62  ;;  %v1319_v62 = vld [vmem:[#allocation5 + $0x2498] sm:$0xff] }
 0x746   :  { %14417 = vmatpush1.bf16.msra.mxu0 %v18055_v40  ;;  %v18104_v40 = vcombine.high %v1822_v30, %v1826_v45 }
 0x747   :  { %14418 = vmatprep.subr.bf16.mxu0 %v18064_v57  ;;  %v1323_v57 = vld [vmem:[#allocation5 + $0x24b8] sm:$0xff] }
 0x748   :  { %14911 = vmatpush1.bf16.msra.mxu1 %v17553_v24  ;;  %v17602_v24 = vcombine.high %v1319_v62, %v1323_v57 }
 0x749   :  { %14912 = vmatprep.subr.bf16.mxu1 %v17562_v16  ;;  %v1327_v16 = vld [vmem:[#allocation5 + $0x24d8] sm:$0xff] }
 0x74a   :  { %14419 = vmatpush1.bf16.msra.mxu0 %v18063_v2  ;;  %v18112_v2 = vcombine.high %v1830_v6, %v1834_v17 }
 0x74b   :  { %14420 = vmatprep.subr.bf16.mxu0 %v18072_v31  ;;  %v1331_v31 = vld [vmem:[#allocation5 + $0x24f8] sm:$0xff] }
 0x74c   :  { %14913 = vmatpush1.bf16.msra.mxu1 %v17561_v12  ;;  %v17610_v28 = vcombine.high %v1327_v16, %v1331_v31  ;;  %v18120_v12 = vcombine.high %v1838_v55, %v1842_v3  ;;  %v17609_v26 = vcombine.low %v1327_v16, %v1331_v31 }
 0x74d   :  { %14914 = vmatprep.subr.bf16.mxu1 %v17570_v21  ;;  %v1339_v21 = vld [vmem:[#allocation5 + $0x2538] sm:$0xff] }
 0x74e   :  { %14421 = vmatpush1.bf16.msra.mxu0 %v18071_v35  ;;  %v1335_v35 = vld [vmem:[#allocation5 + $0x2518] sm:$0xff] }
 0x74f   :  { %14422 = vmatprep.subr.bf16.mxu0 %v18080_v39  ;;  %v1846_v39 = vld [vmem:[#allocation5 + $0x3510] sm:$0xff]  ;;  %v17618_v5 = vcombine.high %v1335_v35, %v1339_v21  ;;  %v17617_v37 = vcombine.low %v1335_v35, %v1339_v21 }
 0x750   :  { %14915 = vmatpush1.bf16.msra.mxu1 %v17569_v27  ;;  %v1343_v27 = vld [vmem:[#allocation5 + $0x2558] sm:$0xff]  ;;  %v18127_v51 = vcombine.low %v1846_v39, %v1850_v41 }
 0x751   :  { %14916 = vmatprep.subr.bf16.mxu1 %v17578_v29  ;;  %v1854_v29 = vld [vmem:[#allocation5 + $0x3550] sm:$0xff] }
 0x752   :  { %14423 = vmatpush1.bf16.msra.mxu0 %v18079_v43  ;;  %v1347_v43 = vld [vmem:[#allocation5 + $0x2578] sm:$0xff] }
 0x753   :  { %14424 = vmatprep.subr.bf16.mxu0 %v18088_v36  ;;  %v1858_v36 = vld [vmem:[#allocation5 + $0x3570] sm:$0xff]  ;;  %v17626_v33 = vcombine.high %v1343_v27, %v1347_v43  ;;  %v17625_v61 = vcombine.low %v1343_v27, %v1347_v43 }
 0x754   :  { %14917 = vmatpush1.bf16.msra.mxu1 %v17577_v32  ;;  %v18136_v44 = vcombine.high %v1854_v29, %v1858_v36  ;;  %v1351_v32 = vld [vmem:[#allocation5 + $0x2598] sm:$0xff]  ;;  %v18135_v19 = vcombine.low %v1854_v29, %v1858_v36 }
 0x755   :  { %14927 = vmatprep.subr.bf16.mxu1 %v17586_v47  ;;  %v1862_v47 = vld [vmem:[#allocation5 + $0x3590] sm:$0xff] }
 0x756   :  { %14425 = vmatpush1.bf16.msra.mxu0 %v18087_v58  ;;  %v1355_v58 = vld [vmem:[#allocation5 + $0x25b8] sm:$0xff] }
 0x757   :  { %14435 = vmatprep.subr.bf16.mxu0 %v18096_v46  ;;  %14919 = vmatmul.mubr.bf16.vlgmr.msra.gmra.mrb[8].mxu1 %v19713_v50  ;;  %v17601_v50 = vcombine.low %v1319_v62, %v1323_v57  ;;  %v1866_v46 = vld [vmem:[#allocation5 + $0x35b0] sm:$0xff]  ;;  %v17634_v30 = vcombine.high %v1351_v32, %v1355_v58  ;;  %v17633_v62 = vcombine.low %v1351_v32, %v1355_v58 }
 0x758   :  { %14928 = vmatpush1.bf16.msra.mxu1 %v17585_v22  ;;  %14959 = vmatprep.mubr.bf16.mxu1 %v19717_v63  ;;  %v18128_v63 = vcombine.high %v1846_v39, %v1850_v41  ;;  %v18144_v45 = vcombine.high %v1862_v47, %v1866_v46  ;;  %v1359_v22 = vld [vmem:[#allocation5 + $0x25d8] sm:$0xff]  ;;  %v18143_v57 = vcombine.low %v1862_v47, %v1866_v46 }
 0x759   :  { %14427 = vmatmul.mubr.bf16.vlgmr.msra.gmra.mrb[4].mxu0 %v19769_v11  ;;  %14929 = vmatprep.subr.bf16.mxu1 %v17594_v48  ;;  %v1870_v48 = vld [vmem:[#allocation5 + $0x35d0] sm:$0xff] }
 0x75a   :  { %14436 = vmatpush1.bf16.msra.mxu0 %v18095_v9  ;;  %14467 = vmatprep.mubr.bf16.mxu0 %v19773_v23  ;;  %v1363_v9 = vld [vmem:[#allocation5 + $0x25f8] sm:$0xff] }
 0x75b   :  { %14437 = vmatprep.subr.bf16.mxu0 %v18104_v40  ;;  %v1874_v40 = vld [vmem:[#allocation5 + $0x35f0] sm:$0xff]  ;;  %v17642_v6 = vcombine.high %v1359_v22, %v1363_v9  ;;  %v17641_v16 = vcombine.low %v1359_v22, %v1363_v9 }
 0x75c   :  { %14930 = vmatpush1.bf16.msra.mxu1 %v17593_v60  ;;  %v18152_v17 = vcombine.high %v1870_v48, %v1874_v40  ;;  %v1367_v60 = vld [vmem:[#allocation5 + $0x2618] sm:$0xff]  ;;  %v18151_v31 = vcombine.low %v1870_v48, %v1874_v40 }
 0x75d   :  { %14931 = vmatprep.subr.bf16.mxu1 %v17602_v24  ;;  %v1878_v24 = vld [vmem:[#allocation5 + $0x3610] sm:$0xff] }
 0x75e   :  { %14438 = vmatpush1.bf16.msra.mxu0 %v18103_v18  ;;  %v1371_v18 = vld [vmem:[#allocation5 + $0x2638] sm:$0xff] }
 0x75f   :  { %14439 = vmatprep.subr.bf16.mxu0 %v18112_v2  ;;  %v1882_v2 = vld [vmem:[#allocation5 + $0x3630] sm:$0xff]  ;;  %v17650_v55 = vcombine.high %v1367_v60, %v1371_v18  ;;  %v17649_v35 = vcombine.low %v1367_v60, %v1371_v18 }
 0x760   :  { %14932 = vmatpush1.bf16.msra.mxu1 %v17601_v50  ;;  %v18160_v3 = vcombine.high %v1878_v24, %v1882_v2  ;;  %v1375_v50 = vld [vmem:[#allocation5 + $0x2658] sm:$0xff]  ;;  %v18159_v21 = vcombine.low %v1878_v24, %v1882_v2 }
 0x761   :  { %14933 = vmatprep.subr.bf16.mxu1 %v17610_v28  ;;  %v1886_v28 = vld [vmem:[#allocation5 + $0x3650] sm:$0xff] }
 0x762   :  { %14440 = vmatpush1.bf16.msra.mxu0 %v18111_v25  ;;  %v1379_v25 = vld [vmem:[#allocation5 + $0x2678] sm:$0xff] }
 0x763   :  { %14441 = vmatprep.subr.bf16.mxu0 %v18120_v12  ;;  %v1890_v12 = vld [vmem:[#allocation5 + $0x3670] sm:$0xff]  ;;  %v17658_v39 = vcombine.high %v1375_v50, %v1379_v25  ;;  %v17657_v27 = vcombine.low %v1375_v50, %v1379_v25 }
 0x764   :  { %14934 = vmatpush1.bf16.msra.mxu1 %v17609_v26  ;;  %v18168_v41 = vcombine.high %v1886_v28, %v1890_v12  ;;  %v1383_v26 = vld [vmem:[#allocation5 + $0x2698] sm:$0xff]  ;;  %v18167_v43 = vcombine.low %v1886_v28, %v1890_v12 }
 0x765   :  { %14935 = vmatprep.subr.bf16.mxu1 %v17618_v5  ;;  %v1894_v5 = vld [vmem:[#allocation5 + $0x3690] sm:$0xff] }
 0x766   :  { %14442 = vmatpush1.bf16.msra.mxu0 %v18119_v8  ;;  %v1387_v8 = vld [vmem:[#allocation5 + $0x26b8] sm:$0xff] }
 0x767   :  { %14443 = vmatprep.subr.bf16.mxu0 %v18128_v63  ;;  %v1898_v63 = vld [vmem:[#allocation5 + $0x36b0] sm:$0xff]  ;;  %v17666_v29 = vcombine.high %v1383_v26, %v1387_v8  ;;  %v17665_v32 = vcombine.low %v1383_v26, %v1387_v8 }
 0x768   :  { %14936 = vmatpush1.bf16.msra.mxu1 %v17617_v37  ;;  %v18176_v36 = vcombine.high %v1894_v5, %v1898_v63  ;;  %v1391_v37 = vld [vmem:[#allocation5 + $0x26d8] sm:$0xff]  ;;  %v18175_v58 = vcombine.low %v1894_v5, %v1898_v63 }
 0x769   :  { %14937 = vmatprep.subr.bf16.mxu1 %v17626_v33  ;;  %v1902_v33 = vld [vmem:[#allocation5 + $0x36d0] sm:$0xff] }
 0x76a   :  { %14444 = vmatpush1.bf16.msra.mxu0 %v18127_v51  ;;  %v1395_v51 = vld [vmem:[#allocation5 + $0x26f8] sm:$0xff] }
 0x76b   :  { %14445 = vmatprep.subr.bf16.mxu0 %v18136_v44  ;;  %v1906_v44 = vld [vmem:[#allocation5 + $0x36f0] sm:$0xff]  ;;  %v17674_v47 = vcombine.high %v1391_v37, %v1395_v51  ;;  %v17673_v22 = vcombine.low %v1391_v37, %v1395_v51 }
 0x76c   :  { %14938 = vmatpush1.bf16.msra.mxu1 %v17625_v61  ;;  %v18184_v46 = vcombine.high %v1902_v33, %v1906_v44  ;;  %v1399_v61 = vld [vmem:[#allocation5 + $0x2718] sm:$0xff]  ;;  %v18183_v9 = vcombine.low %v1902_v33, %v1906_v44 }
 0x76d   :  { %14939 = vmatprep.subr.bf16.mxu1 %v17634_v30  ;;  %v1910_v30 = vld [vmem:[#allocation5 + $0x3710] sm:$0xff] }
 0x76e   :  { %14446 = vmatpush1.bf16.msra.mxu0 %v18135_v19  ;;  %v1403_v19 = vld [vmem:[#allocation5 + $0x2738] sm:$0xff] }
 0x76f   :  { %14447 = vmatprep.subr.bf16.mxu0 %v18144_v45  ;;  %v1914_v45 = vld [vmem:[#allocation5 + $0x3730] sm:$0xff]  ;;  %v17682_v48 = vcombine.high %v1399_v61, %v1403_v19  ;;  %v17681_v60 = vcombine.low %v1399_v61, %v1403_v19 }
 0x770   :  { %14940 = vmatpush1.bf16.msra.mxu1 %v17633_v62  ;;  %v18192_v40 = vcombine.high %v1910_v30, %v1914_v45  ;;  %v1407_v62 = vld [vmem:[#allocation5 + $0x2758] sm:$0xff]  ;;  %v18191_v18 = vcombine.low %v1910_v30, %v1914_v45 }
 0x771   :  { %14941 = vmatprep.subr.bf16.mxu1 %v17642_v6  ;;  %v1918_v6 = vld [vmem:[#allocation5 + $0x3750] sm:$0xff] }
 0x772   :  { %14448 = vmatpush1.bf16.msra.mxu0 %v18143_v57  ;;  %v1411_v57 = vld [vmem:[#allocation5 + $0x2778] sm:$0xff] }
 0x773   :  { %14449 = vmatprep.subr.bf16.mxu0 %v18152_v17  ;;  %v1922_v17 = vld [vmem:[#allocation5 + $0x3770] sm:$0xff]  ;;  %v17690_v24 = vcombine.high %v1407_v62, %v1411_v57  ;;  %v17689_v50 = vcombine.low %v1407_v62, %v1411_v57 }
 0x774   :  { %14942 = vmatpush1.bf16.msra.mxu1 %v17641_v16  ;;  %v18200_v2 = vcombine.high %v1918_v6, %v1922_v17  ;;  %v1415_v16 = vld [vmem:[#allocation5 + $0x2798] sm:$0xff]  ;;  %v18199_v25 = vcombine.low %v1918_v6, %v1922_v17 }
 0x775   :  { %14943 = vmatprep.subr.bf16.mxu1 %v17650_v55  ;;  %v1926_v55 = vld [vmem:[#allocation5 + $0x3790] sm:$0xff] }
 0x776   :  { %14450 = vmatpush1.bf16.msra.mxu0 %v18151_v31  ;;  %v1419_v31 = vld [vmem:[#allocation5 + $0x27b8] sm:$0xff] }
 0x777   :  { %14451 = vmatprep.subr.bf16.mxu0 %v18160_v3  ;;  %v1930_v3 = vld [vmem:[#allocation5 + $0x37b0] sm:$0xff]  ;;  %v17698_v28 = vcombine.high %v1415_v16, %v1419_v31  ;;  %v17697_v26 = vcombine.low %v1415_v16, %v1419_v31 }
 0x778   :  { %14944 = vmatpush1.bf16.msra.mxu1 %v17649_v35  ;;  %v18208_v12 = vcombine.high %v1926_v55, %v1930_v3  ;;  %v1423_v35 = vld [vmem:[#allocation5 + $0x27d8] sm:$0xff]  ;;  %v18207_v8 = vcombine.low %v1926_v55, %v1930_v3 }
 0x779   :  { %14945 = vmatprep.subr.bf16.mxu1 %v17658_v39  ;;  %v1934_v39 = vld [vmem:[#allocation5 + $0x37d0] sm:$0xff]  ;;  %v1463_v3 = vld [vmem:[#allocation5 + $0x2918] sm:$0xff] }
 0x77a   :  { %14452 = vmatpush1.bf16.msra.mxu0 %v18159_v21  ;;  %v1427_v21 = vld [vmem:[#allocation5 + $0x27f8] sm:$0xff] }
 0x77b   :  { %14453 = vmatprep.subr.bf16.mxu0 %v18168_v41  ;;  %v1938_v41 = vld [vmem:[#allocation5 + $0x37f0] sm:$0xff]  ;;  %v17706_v5 = vcombine.high %v1423_v35, %v1427_v21  ;;  %v17705_v37 = vcombine.low %v1423_v35, %v1427_v21 }
 0x77c   :  { %14946 = vmatpush1.bf16.msra.mxu1 %v17657_v27  ;;  %v18216_v63 = vcombine.high %v1934_v39, %v1938_v41  ;;  %v1431_v27 = vld [vmem:[#allocation5 + $0x2818] sm:$0xff]  ;;  %v18215_v51 = vcombine.low %v1934_v39, %v1938_v41 }
 0x77d   :  { %14947 = vmatprep.subr.bf16.mxu1 %v17666_v29  ;;  %v1942_v29 = vld [vmem:[#allocation5 + $0x3810] sm:$0xff]  ;;  %v1471_v39 = vld [vmem:[#allocation5 + $0x2958] sm:$0xff] }
 0x77e   :  { %14454 = vmatpush1.bf16.msra.mxu0 %v18167_v43  ;;  %v1435_v43 = vld [vmem:[#allocation5 + $0x2838] sm:$0xff] }
 0x77f   :  { %14455 = vmatprep.subr.bf16.mxu0 %v18176_v36  ;;  %v1946_v36 = vld [vmem:[#allocation5 + $0x3830] sm:$0xff]  ;;  %v17714_v33 = vcombine.high %v1431_v27, %v1435_v43  ;;  %v17713_v61 = vcombine.low %v1431_v27, %v1435_v43  ;;  %v1475_v41 = vld [vmem:[#allocation5 + $0x2978] sm:$0xff] }
 0x780   :  { %14948 = vmatpush1.bf16.msra.mxu1 %v17665_v32  ;;  %v18224_v44 = vcombine.high %v1942_v29, %v1946_v36  ;;  %v1439_v32 = vld [vmem:[#allocation5 + $0x2858] sm:$0xff]  ;;  %v18223_v19 = vcombine.low %v1942_v29, %v1946_v36  ;;  %v17754_v27 = vcombine.high %v1471_v39, %v1475_v41 }
 0x781   :  { %14949 = vmatprep.subr.bf16.mxu1 %v17674_v47  ;;  %v1950_v47 = vld [vmem:[#allocation5 + $0x3850] sm:$0xff]  ;;  %v1479_v29 = vld [vmem:[#allocation5 + $0x2998] sm:$0xff] }
 0x782   :  { %14456 = vmatpush1.bf16.msra.mxu0 %v18175_v58  ;;  %v1443_v58 = vld [vmem:[#allocation5 + $0x2878] sm:$0xff] }
 0x783   :  { %14457 = vmatprep.subr.bf16.mxu0 %v18184_v46  ;;  %v1954_v46 = vld [vmem:[#allocation5 + $0x3870] sm:$0xff]  ;;  %v17722_v30 = vcombine.high %v1439_v32, %v1443_v58  ;;  %v17721_v62 = vcombine.low %v1439_v32, %v1443_v58  ;;  %v1483_v36 = vld [vmem:[#allocation5 + $0x29b8] sm:$0xff] }
 0x784   :  { %14950 = vmatpush1.bf16.msra.mxu1 %v17673_v22  ;;  %v18232_v45 = vcombine.high %v1950_v47, %v1954_v46  ;;  %v1447_v22 = vld [vmem:[#allocation5 + $0x2898] sm:$0xff]  ;;  %v18231_v57 = vcombine.low %v1950_v47, %v1954_v46  ;;  %v17762_v32 = vcombine.high %v1479_v29, %v1483_v36 }
 0x785   :  { %14951 = vmatprep.subr.bf16.mxu1 %v17682_v48  ;;  %v1958_v48 = vld [vmem:[#allocation5 + $0x3890] sm:$0xff]  ;;  %v1487_v47 = vld [vmem:[#allocation5 + $0x29d8] sm:$0xff] }
 0x786   :  { %14458 = vmatpush1.bf16.msra.mxu0 %v18183_v9  ;;  %v1451_v9 = vld [vmem:[#allocation5 + $0x28b8] sm:$0xff] }
 0x787   :  { %14459 = vmatprep.subr.bf16.mxu0 %v18192_v40  ;;  %v1962_v40 = vld [vmem:[#allocation5 + $0x38b0] sm:$0xff]  ;;  %v17730_v6 = vcombine.high %v1447_v22, %v1451_v9  ;;  %v1491_v46 = vld [vmem:[#allocation5 + $0x29f8] sm:$0xff] }
 0x788   :  { %14952 = vmatpush1.bf16.msra.mxu1 %v17681_v60  ;;  %v18240_v17 = vcombine.high %v1958_v48, %v1962_v40  ;;  %v1455_v60 = vld [vmem:[#allocation5 + $0x28d8] sm:$0xff]  ;;  %v18239_v16 = vcombine.low %v1958_v48, %v1962_v40 }
 0x789   :  { %14953 = vmatprep.subr.bf16.mxu1 %v17690_v24  ;;  %v1966_v24 = vld [vmem:[#allocation5 + $0x38d0] sm:$0xff]  ;;  %v1495_v48 = vld [vmem:[#allocation5 + $0x2a18] sm:$0xff] }
 0x78a   :  { %14460 = vmatpush1.bf16.msra.mxu0 %v18191_v18  ;;  %v1459_v18 = vld [vmem:[#allocation5 + $0x28f8] sm:$0xff] }
 0x78b   :  { %14461 = vmatprep.subr.bf16.mxu0 %v18200_v2  ;;  %v1970_v2 = vld [vmem:[#allocation5 + $0x38f0] sm:$0xff]  ;;  %v17738_v31 = vcombine.high %v1455_v60, %v1459_v18  ;;  %v1499_v40 = vld [vmem:[#allocation5 + $0x2a38] sm:$0xff] }
 0x78c   :  { %14954 = vmatpush1.bf16.msra.mxu1 %v17689_v50  ;;  %v18248_v55 = vcombine.high %v1966_v24, %v1970_v2  ;;  %v1467_v50 = vld [vmem:[#allocation5 + $0x2938] sm:$0xff]  ;;  %v18247_v35 = vcombine.low %v1966_v24, %v1970_v2 }
 0x78d   :  { %14955 = vmatprep.subr.bf16.mxu1 %v17698_v28  ;;  %v1978_v28 = vld [vmem:[#allocation5 + $0x3930] sm:$0xff]  ;;  %v17746_v21 = vcombine.high %v1463_v3, %v1467_v50  ;;  %v1503_v24 = vld [vmem:[#allocation5 + $0x2a58] sm:$0xff] }
 0x78e   :  { %14462 = vmatpush1.bf16.msra.mxu0 %v18199_v25  ;;  %v1974_v25 = vld [vmem:[#allocation5 + $0x3910] sm:$0xff]  ;;  %v1507_v2 = vld [vmem:[#allocation5 + $0x2a78] sm:$0xff] }
 0x78f   :  { %14463 = vmatprep.subr.bf16.mxu0 %v18208_v12  ;;  %v17737_v12 = vcombine.low %v1455_v60, %v1459_v18  ;;  %v17778_v60 = vcombine.high %v1495_v48, %v1499_v40 }
 0x790   :  { %14956 = vmatpush1.bf16.msra.mxu1 %v17697_v26  ;;  %v1982_v26 = vld [vmem:[#allocation5 + $0x3950] sm:$0xff] }
 0x791   :  { %14957 = vmatprep.subr.bf16.mxu1 %v17706_v5  ;;  %v17745_v5 = vcombine.low %v1463_v3, %v1467_v50  ;;  %v17786_v3 = vcombine.high %v1503_v24, %v1507_v2 }
 0x792   :  { %14464 = vmatpush1.bf16.msra.mxu0 %v18207_v8  ;;  %v1986_v8 = vld [vmem:[#allocation5 + $0x3970] sm:$0xff] }
 0x793   :  { %14465 = vmatprep.subr.bf16.mxu0 %v18216_v63  ;;  %v18255_v63 = vcombine.low %v1974_v25, %v1978_v28  ;;  %v18264_v43 = vcombine.high %v1982_v26, %v1986_v8 }
 0x794   :  { %14958 = vmatpush1.bf16.msra.mxu1 %v17705_v37  ;;  %v1990_v37 = vld [vmem:[#allocation5 + $0x3990] sm:$0xff] }
 0x795   :  { %14968 = vmatprep.subr.bf16.mxu1 %v17714_v33  ;;  %v17753_v33 = vcombine.low %v1471_v39, %v1475_v41 }
 0x796   :  { %14466 = vmatpush1.bf16.msra.mxu0 %v18215_v51  ;;  %v1994_v51 = vld [vmem:[#allocation5 + $0x39b0] sm:$0xff] }
 0x797   :  { %14476 = vmatprep.subr.bf16.mxu0 %v18224_v44  ;;  %14960 = vmatmul.mubr.bf16.vlgmr.msra.gmra.mrb[8].mxu1 %v19727_v59  ;;  %v17729_v59 = vcombine.low %v1447_v22, %v1451_v9  ;;  %v18263_v44 = vcombine.low %v1982_v26, %v1986_v8  ;;  %v18272_v58 = vcombine.high %v1990_v37, %v1994_v51  ;;  %v1519_v26 = vld [vmem:[#allocation5 + $0x2ad8] sm:$0xff] }
 0x798   :  { %14969 = vmatpush1.bf16.msra.mxu1 %v17713_v61  ;;  %15000 = vmatprep.mubr.bf16.mxu1 %v19731_v4  ;;  %v18256_v4 = vcombine.high %v1974_v25, %v1978_v28  ;;  %v1998_v61 = vld [vmem:[#allocation5 + $0x39d0] sm:$0xff]  ;;  %v17770_v22 = vcombine.high %v1487_v47, %v1491_v46  ;;  %v1511_v25 = vld [vmem:[#allocation5 + $0x2a98] sm:$0xff] }
 0x799   :  { %14468 = vmatmul.mubr.bf16.vlgmr.msra.gmra.mrb[4].mxu0 %v19783_v56  ;;  %14970 = vmatprep.subr.bf16.mxu1 %v17722_v30  ;;  %v17761_v30 = vcombine.low %v1479_v29, %v1483_v36  ;;  %v1515_v28 = vld [vmem:[#allocation5 + $0x2ab8] sm:$0xff] }
 0x79a   :  { %14477 = vmatpush1.bf16.msra.mxu0 %v18223_v19  ;;  %14508 = vmatprep.mubr.bf16.mxu0 %v19787_v38  ;;  %v2002_v19 = vld [vmem:[#allocation5 + $0x39f0] sm:$0xff]  ;;  %v17794_v39 = vcombine.high %v1511_v25, %v1515_v28  ;;  %v1523_v8 = vld [vmem:[#allocation5 + $0x2af8] sm:$0xff] }
 0x79b   :  { %14478 = vmatprep.subr.bf16.mxu0 %v18232_v45  ;;  %v18271_v45 = vcombine.low %v1990_v37, %v1994_v51  ;;  %v18280_v9 = vcombine.high %v1998_v61, %v2002_v19  ;;  %v17802_v29 = vcombine.high %v1519_v26, %v1523_v8  ;;  %v1527_v37 = vld [vmem:[#allocation5 + $0x2b18] sm:$0xff] }
 0x79c   :  { %14971 = vmatpush1.bf16.msra.mxu1 %v17721_v62  ;;  %v2006_v62 = vld [vmem:[#allocation5 + $0x3a10] sm:$0xff]  ;;  %v1531_v51 = vld [vmem:[#allocation5 + $0x2b38] sm:$0xff] }
 0x79d   :  { %14972 = vmatprep.subr.bf16.mxu1 %v17730_v6  ;;  %v17769_v6 = vcombine.low %v1487_v47, %v1491_v46  ;;  %v17810_v47 = vcombine.high %v1527_v37, %v1531_v51 }
 0x79e   :  { %14479 = vmatpush1.bf16.msra.mxu0 %v18231_v57  ;;  %v2010_v57 = vld [vmem:[#allocation5 + $0x3a30] sm:$0xff] }
 0x79f   :  { %14480 = vmatprep.subr.bf16.mxu0 %v18240_v17  ;;  %v18279_v17 = vcombine.low %v1998_v61, %v2002_v19  ;;  %v18288_v18 = vcombine.high %v2006_v62, %v2010_v57  ;;  %v1535_v61 = vld [vmem:[#allocation5 + $0x2b58] sm:$0xff] }
 0x7a0   :  { %14973 = vmatpush1.bf16.msra.mxu1 %v17729_v59  ;;  %v2014_v59 = vld [vmem:[#allocation5 + $0x3a50] sm:$0xff]  ;;  %v1539_v19 = vld [vmem:[#allocation5 + $0x2b78] sm:$0xff] }
 0x7a1   :  { %14974 = vmatprep.subr.bf16.mxu1 %v17738_v31  ;;  %v17777_v31 = vcombine.low %v1495_v48, %v1499_v40  ;;  %v17818_v48 = vcombine.high %v1535_v61, %v1539_v19 }
 0x7a2   :  { %14481 = vmatpush1.bf16.msra.mxu0 %v18239_v16  ;;  %v2018_v16 = vld [vmem:[#allocation5 + $0x3a70] sm:$0xff] }
 0x7a3   :  { %14482 = vmatprep.subr.bf16.mxu0 %v18248_v55  ;;  %v18287_v55 = vcombine.low %v2006_v62, %v2010_v57  ;;  %v18296_v50 = vcombine.high %v2014_v59, %v2018_v16  ;;  %v1543_v62 = vld [vmem:[#allocation5 + $0x2b98] sm:$0xff] }
 0x7a4   :  { %14975 = vmatpush1.bf16.msra.mxu1 %v17737_v12  ;;  %v2022_v12 = vld [vmem:[#allocation5 + $0x3a90] sm:$0xff]  ;;  %v1547_v57 = vld [vmem:[#allocation5 + $0x2bb8] sm:$0xff] }
 0x7a5   :  { %14976 = vmatprep.subr.bf16.mxu1 %v17746_v21  ;;  %v17785_v21 = vcombine.low %v1503_v24, %v1507_v2  ;;  %v17826_v24 = vcombine.high %v1543_v62, %v1547_v57 }
 0x7a6   :  { %14483 = vmatpush1.bf16.msra.mxu0 %v18247_v35  ;;  %v2026_v35 = vld [vmem:[#allocation5 + $0x3ab0] sm:$0xff] }
 0x7a7   :  { %14484 = vmatprep.subr.bf16.mxu0 %v18256_v4  ;;  %v18295_v4 = vcombine.low %v2014_v59, %v2018_v16  ;;  %v18304_v41 = vcombine.high %v2022_v12, %v2026_v35  ;;  %v1551_v59 = vld [vmem:[#allocation5 + $0x2bd8] sm:$0xff] }
 0x7a8   :  { %14977 = vmatpush1.bf16.msra.mxu1 %v17745_v5  ;;  %v2030_v5 = vld [vmem:[#allocation5 + $0x3ad0] sm:$0xff]  ;;  %v1555_v16 = vld [vmem:[#allocation5 + $0x2bf8] sm:$0xff] }
 0x7a9   :  { %14978 = vmatprep.subr.bf16.mxu1 %v17754_v27  ;;  %v17793_v27 = vcombine.low %v1511_v25, %v1515_v28  ;;  %v17834_v25 = vcombine.high %v1551_v59, %v1555_v16 }
 0x7aa   :  { %14485 = vmatpush1.bf16.msra.mxu0 %v18255_v63  ;;  %v2034_v63 = vld [vmem:[#allocation5 + $0x3af0] sm:$0xff] }
 0x7ab   :  { %14486 = vmatprep.subr.bf16.mxu0 %v18264_v43  ;;  %v18303_v43 = vcombine.low %v2022_v12, %v2026_v35  ;;  %v18312_v36 = vcombine.high %v2030_v5, %v2034_v63  ;;  %v1559_v12 = vld [vmem:[#allocation5 + $0x2c18] sm:$0xff] }
 0x7ac   :  { %14979 = vmatpush1.bf16.msra.mxu1 %v17753_v33  ;;  %v2038_v33 = vld [vmem:[#allocation5 + $0x3b10] sm:$0xff]  ;;  %v1563_v35 = vld [vmem:[#allocation5 + $0x2c38] sm:$0xff] }
 0x7ad   :  { %14980 = vmatprep.subr.bf16.mxu1 %v17762_v32  ;;  %v17801_v32 = vcombine.low %v1519_v26, %v1523_v8  ;;  %v17842_v26 = vcombine.high %v1559_v12, %v1563_v35 }
 0x7ae   :  { %14487 = vmatpush1.bf16.msra.mxu0 %v18263_v44  ;;  %v2042_v44 = vld [vmem:[#allocation5 + $0x3b30] sm:$0xff] }
 0x7af   :  { %14488 = vmatprep.subr.bf16.mxu0 %v18272_v58  ;;  %v18311_v58 = vcombine.low %v2030_v5, %v2034_v63  ;;  %v18320_v46 = vcombine.high %v2038_v33, %v2042_v44  ;;  %v1567_v5 = vld [vmem:[#allocation5 + $0x2c58] sm:$0xff] }
 0x7b0   :  { %14981 = vmatpush1.bf16.msra.mxu1 %v17761_v30  ;;  %v2046_v30 = vld [vmem:[#allocation5 + $0x3b50] sm:$0xff]  ;;  %v1571_v63 = vld [vmem:[#allocation5 + $0x2c78] sm:$0xff] }
 0x7b1   :  { %14982 = vmatprep.subr.bf16.mxu1 %v17770_v22  ;;  %v17809_v22 = vcombine.low %v1527_v37, %v1531_v51  ;;  %v17850_v37 = vcombine.high %v1567_v5, %v1571_v63 }
 0x7b2   :  { %14489 = vmatpush1.bf16.msra.mxu0 %v18271_v45  ;;  %v2050_v45 = vld [vmem:[#allocation5 + $0x3b70] sm:$0xff] }
 0x7b3   :  { %14490 = vmatprep.subr.bf16.mxu0 %v18280_v9  ;;  %v18319_v9 = vcombine.low %v2038_v33, %v2042_v44  ;;  %v18328_v40 = vcombine.high %v2046_v30, %v2050_v45  ;;  %v1575_v33 = vld [vmem:[#allocation5 + $0x2c98] sm:$0xff] }
 0x7b4   :  { %14983 = vmatpush1.bf16.msra.mxu1 %v17769_v6  ;;  %v2054_v6 = vld [vmem:[#allocation5 + $0x3b90] sm:$0xff]  ;;  %v1579_v44 = vld [vmem:[#allocation5 + $0x2cb8] sm:$0xff] }
 0x7b5   :  { %14984 = vmatprep.subr.bf16.mxu1 %v17778_v60  ;;  %v17817_v60 = vcombine.low %v1535_v61, %v1539_v19  ;;  %v17858_v61 = vcombine.high %v1575_v33, %v1579_v44 }
 0x7b6   :  { %14491 = vmatpush1.bf16.msra.mxu0 %v18279_v17  ;;  %v2058_v17 = vld [vmem:[#allocation5 + $0x3bb0] sm:$0xff] }
 0x7b7   :  { %14492 = vmatprep.subr.bf16.mxu0 %v18288_v18  ;;  %v18327_v18 = vcombine.low %v2046_v30, %v2050_v45  ;;  %v18336_v2 = vcombine.high %v2054_v6, %v2058_v17  ;;  %v1583_v30 = vld [vmem:[#allocation5 + $0x2cd8] sm:$0xff] }
 0x7b8   :  { %14985 = vmatpush1.bf16.msra.mxu1 %v17777_v31  ;;  %v2062_v31 = vld [vmem:[#allocation5 + $0x3bd0] sm:$0xff]  ;;  %v1587_v45 = vld [vmem:[#allocation5 + $0x2cf8] sm:$0xff] }
 0x7b9   :  { %14986 = vmatprep.subr.bf16.mxu1 %v17786_v3  ;;  %v17825_v3 = vcombine.low %v1543_v62, %v1547_v57  ;;  %v1591_v57 = vld [vmem:[#allocation5 + $0x2d18] sm:$0xff] }
 0x7ba   :  { %14493 = vmatpush1.bf16.msra.mxu0 %v18287_v55  ;;  %v2066_v55 = vld [vmem:[#allocation5 + $0x3bf0] sm:$0xff] }
 0x7bb   :  { %14494 = vmatprep.subr.bf16.mxu0 %v18296_v50  ;;  %v18335_v50 = vcombine.low %v2054_v6, %v2058_v17  ;;  %v18344_v28 = vcombine.high %v2062_v31, %v2066_v55  ;;  %v1595_v6 = vld [vmem:[#allocation5 + $0x2d38] sm:$0xff]  ;;  %v2102_v17 = vld [vmem:[#allocation5 + $0x3d10] sm:$0xff] }
 0x7bc   :  { %14987 = vmatpush1.bf16.msra.mxu1 %v17785_v21  ;;  %v2070_v21 = vld [vmem:[#allocation5 + $0x3c10] sm:$0xff] }
 0x7bd   :  { %14988 = vmatprep.subr.bf16.mxu1 %v17794_v39  ;;  %v17833_v39 = vcombine.low %v1551_v59, %v1555_v16  ;;  %v1599_v59 = vld [vmem:[#allocation5 + $0x2d58] sm:$0xff] }
 0x7be   :  { %14495 = vmatpush1.bf16.msra.mxu0 %v18295_v4  ;;  %v2074_v4 = vld [vmem:[#allocation5 + $0x3c30] sm:$0xff]  ;;  %v1603_v16 = vld [vmem:[#allocation5 + $0x2d78] sm:$0xff] }
 0x7bf   :  { %14496 = vmatprep.subr.bf16.mxu0 %v18304_v41  ;;  %v18343_v41 = vcombine.low %v2062_v31, %v2066_v55  ;;  %v18352_v8 = vcombine.high %v2070_v21, %v2074_v4  ;;  %v2110_v31 = vld [vmem:[#allocation5 + $0x3d50] sm:$0xff] }
 0x7c0   :  { %14989 = vmatpush1.bf16.msra.mxu1 %v17793_v27  ;;  %v2078_v27 = vld [vmem:[#allocation5 + $0x3c50] sm:$0xff] }
 0x7c1   :  { %14990 = vmatprep.subr.bf16.mxu1 %v17802_v29  ;;  %v17841_v29 = vcombine.low %v1559_v12, %v1563_v35  ;;  %v2114_v55 = vld [vmem:[#allocation5 + $0x3d70] sm:$0xff]  ;;  %v1607_v12 = vld [vmem:[#allocation5 + $0x2d98] sm:$0xff] }
 0x7c2   :  { %14497 = vmatpush1.bf16.msra.mxu0 %v18303_v43  ;;  %v2082_v43 = vld [vmem:[#allocation5 + $0x3c70] sm:$0xff]  ;;  %v1611_v35 = vld [vmem:[#allocation5 + $0x2db8] sm:$0xff] }
 0x7c3   :  { %14498 = vmatprep.subr.bf16.mxu0 %v18312_v36  ;;  %v18351_v36 = vcombine.low %v2070_v21, %v2074_v4  ;;  %v18360_v51 = vcombine.high %v2078_v27, %v2082_v43  ;;  %v2118_v21 = vld [vmem:[#allocation5 + $0x3d90] sm:$0xff] }
 0x7c4   :  { %14991 = vmatpush1.bf16.msra.mxu1 %v17801_v32  ;;  %v2086_v32 = vld [vmem:[#allocation5 + $0x3c90] sm:$0xff] }
 0x7c5   :  { %14992 = vmatprep.subr.bf16.mxu1 %v17810_v47  ;;  %v17849_v47 = vcombine.low %v1567_v5, %v1571_v63  ;;  %v2122_v4 = vld [vmem:[#allocation5 + $0x3db0] sm:$0xff]  ;;  %v1615_v5 = vld [vmem:[#allocation5 + $0x2dd8] sm:$0xff] }
 0x7c6   :  { %14499 = vmatpush1.bf16.msra.mxu0 %v18311_v58  ;;  %v2090_v58 = vld [vmem:[#allocation5 + $0x3cb0] sm:$0xff]  ;;  %v1619_v63 = vld [vmem:[#allocation5 + $0x2df8] sm:$0xff] }
 0x7c7   :  { %14500 = vmatprep.subr.bf16.mxu0 %v18320_v46  ;;  %v18359_v46 = vcombine.low %v2078_v27, %v2082_v43  ;;  %v18368_v19 = vcombine.high %v2086_v32, %v2090_v58  ;;  %v2126_v27 = vld [vmem:[#allocation5 + $0x3dd0] sm:$0xff] }
 0x7c8   :  { %14993 = vmatpush1.bf16.msra.mxu1 %v17809_v22  ;;  %v2094_v22 = vld [vmem:[#allocation5 + $0x3cd0] sm:$0xff] }
 0x7c9   :  { %14994 = vmatprep.subr.bf16.mxu1 %v17818_v48  ;;  %v18367_v48 = vcombine.low %v2086_v32, %v2090_v58  ;;  %v2130_v43 = vld [vmem:[#allocation5 + $0x3df0] sm:$0xff] }
 0x7ca   :  { %14501 = vmatpush1.bf16.msra.mxu0 %v18319_v9  ;;  %v2098_v9 = vld [vmem:[#allocation5 + $0x3cf0] sm:$0xff] }
 0x7cb   :  { %14502 = vmatprep.subr.bf16.mxu0 %v18328_v40  ;;  %v17866_v40 = vcombine.high %v1583_v30, %v1587_v45  ;;  %v18376_v62 = vcombine.high %v2094_v22, %v2098_v9  ;;  %v2134_v32 = vld [vmem:[#allocation5 + $0x3e10] sm:$0xff] }
 0x7cc   :  { %14995 = vmatpush1.bf16.msra.mxu1 %v17817_v60  ;;  %v2106_v60 = vld [vmem:[#allocation5 + $0x3d30] sm:$0xff] }
 0x7cd   :  { %14996 = vmatprep.subr.bf16.mxu1 %v17826_v24  ;;  %v18375_v24 = vcombine.low %v2094_v22, %v2098_v9  ;;  %v2138_v58 = vld [vmem:[#allocation5 + $0x3e30] sm:$0xff] }
 0x7ce   :  { %14503 = vmatpush1.bf16.msra.mxu0 %v18327_v18  ;;  %v17865_v18 = vcombine.low %v1583_v30, %v1587_v45  ;;  %v1631_v30 = vld [vmem:[#allocation5 + $0x2e58] sm:$0xff]  ;;  %v2142_v22 = vld [vmem:[#allocation5 + $0x3e50] sm:$0xff] }
 0x7cf   :  { %14504 = vmatprep.subr.bf16.mxu0 %v18336_v2  ;;  %v17874_v2 = vcombine.high %v1591_v57, %v1595_v6  ;;  %v1635_v45 = vld [vmem:[#allocation5 + $0x2e78] sm:$0xff]  ;;  %v2146_v9 = vld [vmem:[#allocation5 + $0x3e70] sm:$0xff] }
 0x7d0   :  { %14997 = vmatpush1.bf16.msra.mxu1 %v17825_v3  ;;  %v17873_v3 = vcombine.low %v1591_v57, %v1595_v6  ;;  %v1639_v57 = vld [vmem:[#allocation5 + $0x2e98] sm:$0xff] }
 0x7d1   :  { %14998 = vmatprep.subr.bf16.mxu1 %v17834_v25  ;;  %v17882_v25 = vcombine.high %v1599_v59, %v1603_v16  ;;  %v1643_v6 = vld [vmem:[#allocation5 + $0x2eb8] sm:$0xff] }
 0x7d2   :  { %14505 = vmatpush1.bf16.msra.mxu0 %v18335_v50  ;;  %v18383_v50 = vcombine.low %v2102_v17, %v2106_v60 }
 0x7d3   :  { %14506 = vmatprep.subr.bf16.mxu0 %v18344_v28  ;;  %v18392_v28 = vcombine.high %v2110_v31, %v2114_v55 }
 0x7d4   :  { %14999 = vmatpush1.bf16.msra.mxu1 %v17833_v39  ;;  %v17881_v39 = vcombine.low %v1599_v59, %v1603_v16  ;;  %v1647_v59 = vld [vmem:[#allocation5 + $0x2ed8] sm:$0xff] }
 0x7d5   :  { %15009 = vmatprep.subr.bf16.mxu1 %v17842_v26  ;;  %v17890_v26 = vcombine.high %v1607_v12, %v1611_v35  ;;  %v1651_v16 = vld [vmem:[#allocation5 + $0x2ef8] sm:$0xff] }
 0x7d6   :  { %14507 = vmatpush1.bf16.msra.mxu0 %v18343_v41  ;;  %v18391_v41 = vcombine.low %v2110_v31, %v2114_v55  ;;  %v2158_v31 = vld [vmem:[#allocation5 + $0x3ed0] sm:$0xff] }
 0x7d7   :  { %14517 = vmatprep.subr.bf16.mxu0 %v18352_v8  ;;  %15001 = vmatmul.mubr.bf16.vlgmr.msra.gmra.mrb[8].mxu1 %v19741_v13  ;;  %v17857_v13 = vcombine.low %v1575_v33, %v1579_v44  ;;  %v18400_v8 = vcombine.high %v2118_v21, %v2122_v4  ;;  %v1623_v33 = vld [vmem:[#allocation5 + $0x2e18] sm:$0xff]  ;;  %v2162_v55 = vld [vmem:[#allocation5 + $0x3ef0] sm:$0xff] }
 0x7d8   :  { %15010 = vmatpush1.bf16.msra.mxu1 %v17841_v29  ;;  %15041 = vmatprep.mubr.bf16.mxu1 %v19745_v20  ;;  %v18384_v20 = vcombine.high %v2102_v17, %v2106_v60  ;;  %v17889_v29 = vcombine.low %v1607_v12, %v1611_v35  ;;  %v1627_v44 = vld [vmem:[#allocation5 + $0x2e38] sm:$0xff]  ;;  %v2150_v17 = vld [vmem:[#allocation5 + $0x3e90] sm:$0xff] }
 0x7d9   :  { %14509 = vmatmul.mubr.bf16.vlgmr.msra.gmra.mrb[4].mxu0 %v19797_v1  ;;  %15011 = vmatprep.subr.bf16.mxu1 %v17850_v37  ;;  %v17898_v37 = vcombine.high %v1615_v5, %v1619_v63  ;;  %v2154_v60 = vld [vmem:[#allocation5 + $0x3eb0] sm:$0xff]  ;;  %v1655_v12 = vld [vmem:[#allocation5 + $0x2f18] sm:$0xff] }
 0x7da   :  { %14518 = vmatpush1.bf16.msra.mxu0 %v18351_v36  ;;  %14549 = vmatprep.mubr.bf16.mxu0 %v19801_v10  ;;  %v18399_v36 = vcombine.low %v2118_v21, %v2122_v4  ;;  %v1659_v35 = vld [vmem:[#allocation5 + $0x2f38] sm:$0xff]  ;;  %v2166_v21 = vld [vmem:[#allocation5 + $0x3f10] sm:$0xff] }
 0x7db   :  { %14519 = vmatprep.subr.bf16.mxu0 %v18360_v51  ;;  %v18408_v51 = vcombine.high %v2126_v27, %v2130_v43  ;;  %v2170_v4 = vld [vmem:[#allocation5 + $0x3f30] sm:$0xff] }
 0x7dc   :  { %15012 = vmatpush1.bf16.msra.mxu1 %v17849_v47  ;;  %v17897_v47 = vcombine.low %v1615_v5, %v1619_v63  ;;  %v1663_v5 = vld [vmem:[#allocation5 + $0x2f58] sm:$0xff] }
 0x7dd   :  { %15013 = vmatprep.subr.bf16.mxu1 %v17858_v61  ;;  %v17906_v61 = vcombine.high %v1623_v33, %v1627_v44  ;;  %v1667_v63 = vld [vmem:[#allocation5 + $0x2f78] sm:$0xff] }
 0x7de   :  { %14520 = vmatpush1.bf16.msra.mxu0 %v18359_v46  ;;  %v18407_v46 = vcombine.low %v2126_v27, %v2130_v43  ;;  %v2174_v27 = vld [vmem:[#allocation5 + $0x3f50] sm:$0xff] }
 0x7df   :  { %14521 = vmatprep.subr.bf16.mxu0 %v18368_v19  ;;  %v18416_v19 = vcombine.high %v2134_v32, %v2138_v58  ;;  %v2178_v43 = vld [vmem:[#allocation5 + $0x3f70] sm:$0xff] }
 0x7e0   :  { %15014 = vmatpush1.bf16.msra.mxu1 %v17857_v13  ;;  %v17905_v13 = vcombine.low %v1623_v33, %v1627_v44  ;;  %v1671_v33 = vld [vmem:[#allocation5 + $0x2f98] sm:$0xff] }
 0x7e1   :  { %15015 = vmatprep.subr.bf16.mxu1 %v17866_v40  ;;  %v17914_v40 = vcombine.high %v1631_v30, %v1635_v45  ;;  %v1675_v44 = vld [vmem:[#allocation5 + $0x2fb8] sm:$0xff] }
 0x7e2   :  { %14522 = vmatpush1.bf16.msra.mxu0 %v18367_v48  ;;  %v18415_v48 = vcombine.low %v2134_v32, %v2138_v58  ;;  %v2182_v32 = vld [vmem:[#allocation5 + $0x3f90] sm:$0xff] }
 0x7e3   :  { %14523 = vmatprep.subr.bf16.mxu0 %v18376_v62  ;;  %v18424_v62 = vcombine.high %v2142_v22, %v2146_v9  ;;  %v2186_v58 = vld [vmem:[#allocation5 + $0x3fb0] sm:$0xff] }
 0x7e4   :  { %15016 = vmatpush1.bf16.msra.mxu1 %v17865_v18  ;;  %v17913_v18 = vcombine.low %v1631_v30, %v1635_v45  ;;  %v1679_v30 = vld [vmem:[#allocation5 + $0x2fd8] sm:$0xff] }
 0x7e5   :  { %15017 = vmatprep.subr.bf16.mxu1 %v17874_v2  ;;  %v17922_v2 = vcombine.high %v1639_v57, %v1643_v6  ;;  %v1683_v45 = vld [vmem:[#allocation5 + $0x2ff8] sm:$0xff] }
 0x7e6   :  { %14524 = vmatpush1.bf16.msra.mxu0 %v18375_v24  ;;  %v18423_v24 = vcombine.low %v2142_v22, %v2146_v9  ;;  %v2190_v22 = vld [vmem:[#allocation5 + $0x3fd0] sm:$0xff] }
 0x7e7   :  { %14525 = vmatprep.subr.bf16.mxu0 %v18384_v20  ;;  %v18432_v20 = vcombine.high %v2150_v17, %v2154_v60  ;;  %v2194_v9 = vld [vmem:[#allocation5 + $0x3ff0] sm:$0xff] }
 0x7e8   :  { %15018 = vmatpush1.bf16.msra.mxu1 %v17873_v3  ;;  %v17921_v3 = vcombine.low %v1639_v57, %v1643_v6  ;;  %v1687_v57 = vld [vmem:[#allocation5 + $0x3018] sm:$0xff] }
 0x7e9   :  { %15019 = vmatprep.subr.bf16.mxu1 %v17882_v25  ;;  %v17930_v25 = vcombine.high %v1647_v59, %v1651_v16  ;;  %v1691_v6 = vld [vmem:[#allocation5 + $0x3038] sm:$0xff] }
 0x7ea   :  { %14526 = vmatpush1.bf16.msra.mxu0 %v18383_v50  ;;  %v18431_v50 = vcombine.low %v2150_v17, %v2154_v60  ;;  %v17961_v17 = vcombine.low %v1679_v30, %v1683_v45  ;;  %v18471_v60 = vcombine.low %v2190_v22, %v2194_v9 }
 0x7eb   :  { %14527 = vmatprep.subr.bf16.mxu0 %v18392_v28  ;;  %v18440_v28 = vcombine.high %v2158_v31, %v2162_v55 }
 0x7ec   :  { %15020 = vmatpush1.bf16.msra.mxu1 %v17881_v39  ;;  %v17929_v39 = vcombine.low %v1647_v59, %v1651_v16  ;;  %v1699_v59 = vld [vmem:[#allocation5 + $0x3078] sm:$0xff]  ;;  %v17969_v16 = vcombine.low %v1687_v57, %v1691_v6 }
 0x7ed   :  { %15021 = vmatprep.subr.bf16.mxu1 %v17890_v26  ;;  %v17938_v26 = vcombine.high %v1655_v12, %v1659_v35 }
 0x7ee   :  { %14528 = vmatpush1.bf16.msra.mxu0 %v18391_v41  ;;  %v18439_v41 = vcombine.low %v2158_v31, %v2162_v55  ;;  %v19021_v31 = vld [vmem:[#allocation8] ss:$8 sps:$4 sm:$0xff]  }
 0x7ef   :  { %14529 = vmatprep.subr.bf16.mxu0 %v18400_v8  ;;  %v18448_v8 = vcombine.high %v2166_v21, %v2170_v4 }
 0x7f0   :  { %15022 = vmatpush1.bf16.msra.mxu1 %v17889_v29  ;;  %v17937_v29 = vcombine.low %v1655_v12, %v1659_v35 }
 0x7f1   :  { %15023 = vmatprep.subr.bf16.mxu1 %v17898_v37  ;;  %v17946_v37 = vcombine.high %v1663_v5, %v1667_v63 }
 0x7f2   :  { %14530 = vmatpush1.bf16.msra.mxu0 %v18399_v36  ;;  %v18447_v36 = vcombine.low %v2166_v21, %v2170_v4  ;;  %v19029_v21 = vld [vmem:[#allocation8 + $0x24] ss:$8 sps:$4 sm:$0xff]   ;;  %v1711_v4 = vld [vmem:[#allocation5 + $0x30d8] sm:$0xff] }
 0x7f3   :  { %14531 = vmatprep.subr.bf16.mxu0 %v18408_v51  ;;  %v18456_v51 = vcombine.high %v2174_v27, %v2178_v43 }
 0x7f4   :  { %15024 = vmatpush1.bf16.msra.mxu1 %v17897_v47  ;;  %v17945_v47 = vcombine.low %v1663_v5, %v1667_v63  ;;  %v1719_v5 = vld [vmem:[#allocation5 + $0x3118] sm:$0xff] }
 0x7f5   :  { %15025 = vmatprep.subr.bf16.mxu1 %v17906_v61  ;;  %v17954_v61 = vcombine.high %v1671_v33, %v1675_v44  ;;  %v1723_v63 = vld [vmem:[#allocation5 + $0x3138] sm:$0xff] }
 0x7f6   :  { %14532 = vmatpush1.bf16.msra.mxu0 %v18407_v46  ;;  %v18455_v46 = vcombine.low %v2174_v27, %v2178_v43  ;;  %v19030_v43 = vld [vmem:[#allocation8 + $0x30] ss:$8 sps:$4 sm:$0xff]  }
 0x7f7   :  { %14533 = vmatprep.subr.bf16.mxu0 %v18416_v19  ;;  %v18464_v19 = vcombine.high %v2182_v32, %v2186_v58 }
 0x7f8   :  { %15026 = vmatpush1.bf16.msra.mxu1 %v17905_v13  ;;  %v17953_v13 = vcombine.low %v1671_v33, %v1675_v44  ;;  %v19033_v33 = vld [vmem:[#allocation8 + $0x40] ss:$8 sps:$4 sm:$0xff]  }
 0x7f9   :  { %15027 = vmatprep.subr.bf16.mxu1 %v17914_v40  ;;  %v17962_v40 = vcombine.high %v1679_v30, %v1683_v45  ;;  %v19041_v30 = vld [vmem:[#allocation8 + $0x64] ss:$8 sps:$4 sm:$0xff]   ;;  %v1743_v45 = vld [vmem:[#allocation5 + $0x31d8] sm:$0xff] }
 0x7fa   :  { %14534 = vmatpush1.bf16.msra.mxu0 %v18415_v48  ;;  %v18463_v48 = vcombine.low %v2182_v32, %v2186_v58  ;;  %v19038_v32 = vld [vmem:[#allocation8 + $0x54] ss:$8 sps:$4 sm:$0xff]  }
 0x7fb   :  { %14535 = vmatprep.subr.bf16.mxu0 %v18424_v62  ;;  %v18472_v62 = vcombine.high %v2190_v22, %v2194_v9  ;;  %v1735_v58 = vld [vmem:[#allocation5 + $0x3198] sm:$0xff] }
 0x7fc   :  { %15028 = vmatpush1.bf16.msra.mxu1 %v17913_v18  ;;  %v17970_v18 = vcombine.high %v1687_v57, %v1691_v6  ;;  %v1747_v22 = vld [vmem:[#allocation5 + $0x31f8] sm:$0xff] }
 0x7fd   :  { %15029 = vmatprep.subr.bf16.mxu1 %v17922_v2  ;;  %v15215_v2 = vmax.f32 %v19839_v14, 0.0  ;;  %v19024_v14 = vld [vmem:[#allocation8 + $0x10] ss:$8 sps:$4 sm:$0xff]   ;;  %v18025_v6 = vcombine.low %v1743_v45, %v1747_v22 }
 0x7fe   :  { %14536 = vmatpush1.bf16.msra.mxu0 %v18423_v24  ;;  %v19023_v24 = vld [vmem:[#allocation8 + $0x4] ss:$8 sps:$4 sm:$0xff]   ;;  %v1755_v57 = vld [vmem:[#allocation5 + $0x3238] sm:$0xff] }
 0x7ff   :  { %14537 = vmatprep.subr.bf16.mxu0 %v18432_v20  ;;  %v1695_v20 = vld [vmem:[#allocation5 + $0x3058] sm:$0xff] }
 0x800   :  { %15030 = vmatpush1.bf16.msra.mxu1 %v17921_v3  ;;  %v17978_v55 = vcombine.high %v1695_v20, %v1699_v59  ;;  %v19026_v3 = vld [vmem:[#allocation8 + $0x14] ss:$8 sps:$4 sm:$0xff]   ;;  %v17977_v12 = vcombine.low %v1695_v20, %v1699_v59  ;;  %v19045_v59 = vld [vmem:[#allocation8 + $0x80] ss:$8 sps:$4 sm:$0xff]  }
 0x801   :  { %15031 = vmatprep.subr.bf16.mxu1 %v17930_v25  ;;  %v1707_v25 = vld [vmem:[#allocation5 + $0x30b8] sm:$0xff] }
 0x802   :  { %14538 = vmatpush1.bf16.msra.mxu0 %v18431_v50  ;;  %v1703_v50 = vld [vmem:[#allocation5 + $0x3098] sm:$0xff] }
 0x803   :  { %14539 = vmatprep.subr.bf16.mxu0 %v18440_v28  ;;  %v15223_v28 = vpack.c.bf16 %v15215_v2, %v15215_v2  ;;  %v17986_v35 = vcombine.high %v1703_v50, %v1707_v25  ;;  %v1763_v2 = vld [vmem:[#allocation5 + $0x3278] sm:$0xff] }
 0x804   :  { %15032 = vmatpush1.bf16.msra.mxu1 %v17929_v39  ;;  %v1715_v39 = vld [vmem:[#allocation5 + $0x30f8] sm:$0xff] }
 0x805   :  { %15033 = vmatprep.subr.bf16.mxu1 %v17938_v26  ;;  %v17994_v26 = vcombine.high %v1711_v4, %v1715_v39  ;;  %v17993_v27 = vcombine.low %v1711_v4, %v1715_v39  ;;  %v19051_v4 = vld [vmem:[#allocation8 + $0xa0] ss:$8 sps:$4 sm:$0xff]  }
 0x806   :  { %14540 = vmatpush1.bf16.msra.mxu0 %v18439_v41  ;;  %v17985_v41 = vcombine.low %v1703_v50, %v1707_v25  ;;  %v19048_v25 = vld [vmem:[#allocation8 + $0x90] ss:$8 sps:$4 sm:$0xff]  }
 0x807   :  { %14541 = vmatprep.subr.bf16.mxu0 %v18448_v8  ;;  %v19032_v8 = vld [vmem:[#allocation8 + $0x34] ss:$8 sps:$4 sm:$0xff]  }
 0x808   :  { %15034 = vmatpush1.bf16.msra.mxu1 %v17937_v29  ;;  %v18002_v29 = vcombine.high %v1719_v5, %v1723_v63 }
 0x809   :  { %15035 = vmatprep.subr.bf16.mxu1 %v17946_v37  ;;  %v1727_v37 = vld [vmem:[#allocation5 + $0x3158] sm:$0xff] }
 0x80a   :  { %14542 = vmatpush1.bf16.msra.mxu0 %v18447_v36  ;;  %v19035_v36 = vld [vmem:[#allocation8 + $0x44] ss:$8 sps:$4 sm:$0xff]  }
 0x80b   :  { %14543 = vmatprep.subr.bf16.mxu0 %v18456_v51  ;;  %v18001_v51 = vcombine.low %v1719_v5, %v1723_v63  ;;  %v19054_v5 = vld [vmem:[#allocation8 + $0xb0] ss:$8 sps:$4 sm:$0xff]  }
 0x80c   :  { %15036 = vmatpush1.bf16.msra.mxu1 %v17945_v47  ;;  %v1739_v47 = vld [vmem:[#allocation5 + $0x31b8] sm:$0xff] }
 0x80d   :  { %15037 = vmatprep.subr.bf16.mxu1 %v17954_v61  ;;  %v19036_v61 = vld [vmem:[#allocation8 + $0x50] ss:$8 sps:$4 sm:$0xff]   ;;  %v18017_v9 = vcombine.low %v1735_v58, %v1739_v47 }
 0x80e   :  { %14544 = vmatpush1.bf16.msra.mxu0 %v18455_v46 }
 0x80f   :  { %14545 = vmatprep.subr.bf16.mxu0 %v18464_v19  ;;  %v18018_v19 = vcombine.high %v1735_v58, %v1739_v47  ;;  %v19060_v47 = vld [vmem:[#allocation8 + $0xd0] ss:$8 sps:$4 sm:$0xff]  }
 0x810   :  { %15038 = vmatpush1.bf16.msra.mxu1 %v17953_v13  ;;  %v19039_v13 = vld [vmem:[#allocation8 + $0x60] ss:$8 sps:$4 sm:$0xff]  }
 0x811   :  { %15039 = vmatprep.subr.bf16.mxu1 %v17962_v40  ;;  %v19044_v40 = vld [vmem:[#allocation8 + $0x74] ss:$8 sps:$4 sm:$0xff]  }
 0x812   :  { %14546 = vmatpush1.bf16.msra.mxu0 %v18463_v48  ;;  %v18026_v48 = vcombine.high %v1743_v45, %v1747_v22  ;;  %v19898_v45 = vld [vmem:[#allocation7] sm:$0xff] }
 0x813   :  { %14547 = vmatprep.subr.bf16.mxu0 %v18472_v62  ;;  %v1751_v62 = vld [vmem:[#allocation5 + $0x3218] sm:$0xff] }
 0x814   :  { %15040 = vmatpush1.bf16.msra.mxu1 %v17961_v17  ;;  %v19042_v17 = vld [vmem:[#allocation8 + $0x70] ss:$8 sps:$4 sm:$0xff]   ;;  %v18033_v20 = vcombine.low %v1751_v62, %v1755_v57 }
 0x815   :  { %15050 = vmatprep.subr.bf16.mxu1 %v17970_v18  ;;  %v19047_v18 = vld [vmem:[#allocation8 + $0x84] ss:$8 sps:$4 sm:$0xff]  }
 0x816   :  { %14548 = vmatpush1.bf16.msra.mxu0 %v18471_v60  ;;  %v18034_v60 = vcombine.high %v1751_v62, %v1755_v57  ;;  %v1815_v62 = vld [vmem:[#allocation5 + $0x3418] sm:$0xff] }
 0x817   :  { %16010 = vmatprep.subr.bf16.mxu0 %v19023_v24  ;;  %15042 = vmatmul.mubr.bf16.vlgmr.msra.gmra.mrb[8].mxu1 %v19755_v34  ;;  %v19027_v34 = vld [vmem:[#allocation8 + $0x20] ss:$8 sps:$4 sm:$0xff]   ;;  %v1759_v24 = vld [vmem:[#allocation5 + $0x3258] sm:$0xff] }
 0x818   :  { %15051 = vmatpush1.bf16.msra.mxu1 %v17969_v16  ;;  %15082 = vmatprep.mubr.bf16.mxu1 %v19759_v0  ;;  %v1731_v0 = vld [vmem:[#allocation5 + $0x3178] sm:$0xff]  ;;  %v18042_v16 = vcombine.high %v1759_v24, %v1763_v2  ;;  %v18041_v50 = vcombine.low %v1759_v24, %v1763_v2  ;;  %v15214_v24 = vmax.f32 %v19837_v52, 0.0  ;;  %v19071_v2 = vld [vmem:[#allocation8 + $0x104] ss:$8 sps:$4 sm:$0xff]  }
 0x819   :  { %14550 = vmatmul.mubr.bf16.vlgmr.msra.gmra.mrb[4].mxu0 %v19809_v49  ;;  %15052 = vmatprep.subr.bf16.mxu1 %v17978_v55  ;;  %v18010_v44 = vcombine.high %v1727_v37, %v1731_v0  ;;  %v18009_v46 = vcombine.low %v1727_v37, %v1731_v0  ;;  %v1767_v55 = vld [vmem:[#allocation5 + $0x3298] sm:$0xff]  ;;  %v19057_v37 = vld [vmem:[#allocation8 + $0xc0] ss:$8 sps:$4 sm:$0xff]  }
 0x81a   :  { %16011 = vmatpush1.bf16.msra.mxu0 %v19021_v31  ;;  %16042 = vmatprep.mubr.bf16.mxu0 %v15223_v28  ;;  %v19050_v31 = vld [vmem:[#allocation8 + $0x94] ss:$8 sps:$4 sm:$0xff]  }
 0x81b   :  { %16012 = vmatprep.subr.bf16.mxu0 %v19026_v3  ;;  %v1771_v3 = vld [vmem:[#allocation5 + $0x32b8] sm:$0xff] }
 0x81c   :  { %15053 = vmatpush1.bf16.msra.mxu1 %v17977_v12  ;;  %v18050_v28 = vcombine.high %v1767_v55, %v1771_v3  ;;  %v19053_v12 = vld [vmem:[#allocation8 + $0xa4] ss:$8 sps:$4 sm:$0xff]   ;;  %v1819_v57 = vld [vmem:[#allocation5 + $0x3438] sm:$0xff] }
 0x81d   :  { %15054 = vmatprep.subr.bf16.mxu1 %v17986_v35  ;;  %v1779_v35 = vld [vmem:[#allocation5 + $0x32f8] sm:$0xff] }
 0x81e   :  { %16013 = vmatpush1.bf16.msra.mxu0 %v19024_v14  ;;  %v1775_v14 = vld [vmem:[#allocation5 + $0x32d8] sm:$0xff] }
 0x81f   :  { %16014 = vmatprep.subr.bf16.mxu0 %v19029_v21  ;;  %v18049_v21 = vcombine.low %v1767_v55, %v1771_v3  ;;  %v18058_v39 = vcombine.high %v1775_v14, %v1779_v35  ;;  %v19069_v55 = vld [vmem:[#allocation8 + $0x100] ss:$8 sps:$4 sm:$0xff]   ;;  %v15222_v3 = vpack.c.bf16 %v15214_v24, %v15214_v24  ;;  %v1891_v24 = vld [vmem:[#allocation5 + $0x3678] sm:$0xff] }
 0x820   :  { %15055 = vmatpush1.bf16.msra.mxu1 %v17985_v41  ;;  %v19056_v41 = vld [vmem:[#allocation8 + $0xb4] ss:$8 sps:$4 sm:$0xff]  }
 0x821   :  { %15056 = vmatprep.subr.bf16.mxu1 %v17994_v26  ;;  %v1787_v26 = vld [vmem:[#allocation5 + $0x3338] sm:$0xff] }
 0x822   :  { %16015 = vmatpush1.bf16.msra.mxu0 %v19027_v34  ;;  %v1783_v34 = vld [vmem:[#allocation5 + $0x3318] sm:$0xff] }
 0x823   :  { %16016 = vmatprep.subr.bf16.mxu0 %v19032_v8  ;;  %v18057_v8 = vcombine.low %v1775_v14, %v1779_v35  ;;  %v18066_v63 = vcombine.high %v1783_v34, %v1787_v26  ;;  %v19072_v14 = vld [vmem:[#allocation8 + $0x110] ss:$8 sps:$4 sm:$0xff]  }
 0x824   :  { %15057 = vmatpush1.bf16.msra.mxu1 %v17993_v27  ;;  %v19059_v27 = vld [vmem:[#allocation8 + $0xc4] ss:$8 sps:$4 sm:$0xff]  }
 0x825   :  { %15058 = vmatprep.subr.bf16.mxu1 %v18002_v29  ;;  %v1795_v29 = vld [vmem:[#allocation5 + $0x3378] sm:$0xff] }
 0x826   :  { %16017 = vmatpush1.bf16.msra.mxu0 %v19030_v43  ;;  %v1791_v43 = vld [vmem:[#allocation5 + $0x3358] sm:$0xff] }
 0x827   :  { %16018 = vmatprep.subr.bf16.mxu0 %v19035_v36  ;;  %v18065_v36 = vcombine.low %v1783_v34, %v1787_v26  ;;  %v18074_v0 = vcombine.high %v1791_v43, %v1795_v29  ;;  %v18073_v58 = vcombine.low %v1791_v43, %v1795_v29  ;;  %v19075_v34 = vld [vmem:[#allocation8 + $0x120] ss:$8 sps:$4 sm:$0xff]   ;;  %v19080_v26 = vld [vmem:[#allocation8 + $0x134] ss:$8 sps:$4 sm:$0xff]   ;;  %v19083_v29 = vld [vmem:[#allocation8 + $0x144] ss:$8 sps:$4 sm:$0xff]  }
 0x828   :  { %15059 = vmatpush1.bf16.msra.mxu1 %v18001_v51  ;;  %v19062_v51 = vld [vmem:[#allocation8 + $0xd4] ss:$8 sps:$4 sm:$0xff]  }
 0x829   :  { %15060 = vmatprep.subr.bf16.mxu1 %v18010_v44  ;;  %v1803_v44 = vld [vmem:[#allocation5 + $0x33b8] sm:$0xff] }
 0x82a   :  { %16019 = vmatpush1.bf16.msra.mxu0 %v19033_v33  ;;  %v1799_v33 = vld [vmem:[#allocation5 + $0x3398] sm:$0xff] }
 0x82b   :  { %16020 = vmatprep.subr.bf16.mxu0 %v19038_v32  ;;  %v2212_v32 = vsub.s32 3, %v19827_v42 }
 0x82c   :  { %15061 = vmatpush1.bf16.msra.mxu1 %v18009_v46  ;;  %v18082_v46 = vcombine.high %v1799_v33, %v1803_v44 }
 0x82d   :  { %15062 = vmatprep.subr.bf16.mxu1 %v18018_v19  ;;  %v1807_v19 = vld [vmem:[#allocation5 + $0x33d8] sm:$0xff]  ;;  %v2213_v22 = vrot.slane %v19898_v45, %v2212_v32 }
 0x82e   :  { %16021 = vmatpush1.bf16.msra.mxu0 %v19036_v61  ;;  %v19065_v61 = vld [vmem:[#allocation8 + $0xe4] ss:$8 sps:$4 sm:$0xff]   ;;  %v1867_v32 = vld [vmem:[#allocation5 + $0x35b8] sm:$0xff] }
 0x82f   :  { %16022 = vmatprep.subr.bf16.mxu0 %v19041_v30  ;;  %v1811_v30 = vld [vmem:[#allocation5 + $0x33f8] sm:$0xff] }
 0x830   :  { %15063 = vmatpush1.bf16.msra.mxu1 %v18017_v9  ;;  %v18081_v9 = vcombine.low %v1799_v33, %v1803_v44  ;;  %v19086_v33 = vld [vmem:[#allocation8 + $0x154] ss:$8 sps:$4 sm:$0xff]  }
 0x831   :  { %15064 = vmatprep.subr.bf16.mxu1 %v18026_v48  ;;  %v18090_v48 = vcombine.high %v1807_v19, %v1811_v30  ;;  %v1863_v44 = vld [vmem:[#allocation5 + $0x3598] sm:$0xff] }
 0x832   :  { %16023 = vmatpush1.bf16.msra.mxu0 %v19039_v13  ;;  %v19063_v13 = vld [vmem:[#allocation8 + $0xe0] ss:$8 sps:$4 sm:$0xff]  }
 0x833   :  { %16024 = vmatprep.subr.bf16.mxu0 %v19044_v40  ;;  %v19068_v40 = vld [vmem:[#allocation8 + $0xf4] ss:$8 sps:$4 sm:$0xff]  }
 0x834   :  { %15065 = vmatpush1.bf16.msra.mxu1 %v18025_v6  ;;  %v18718_v6 = vadd.f32 %v19859_v53, %v2213_v22  ;;  %v18145_v22 = vcombine.low %v1863_v44, %v1867_v32 }
 0x835   :  { %15066 = vmatprep.subr.bf16.mxu1 %v18034_v60  ;;  %v19066_v60 = vld [vmem:[#allocation8 + $0xf0] ss:$8 sps:$4 sm:$0xff]  }
 0x836   :  { %16025 = vmatpush1.bf16.msra.mxu0 %v19042_v17  ;;  %v18089_v17 = vcombine.low %v1807_v19, %v1811_v30  ;;  %v1871_v19 = vld [vmem:[#allocation5 + $0x35d8] sm:$0xff] }
 0x837   :  { %16026 = vmatprep.subr.bf16.mxu0 %v19047_v18  ;;  %v18098_v18 = vcombine.high %v1815_v62, %v1819_v57  ;;  %v1875_v30 = vld [vmem:[#allocation5 + $0x35f8] sm:$0xff] }
 0x838   :  { %15067 = vmatpush1.bf16.msra.mxu1 %v18033_v20  ;;  %v15217_v20 = vmax.f32 %v18718_v6, 0.0  ;;  %v19090_v6 = vld [vmem:[#allocation8 + $0x170] ss:$8 sps:$4 sm:$0xff]  }
 0x839   :  { %15068 = vmatprep.subr.bf16.mxu1 %v18042_v16  ;;  %v1827_v16 = vld [vmem:[#allocation5 + $0x3478] sm:$0xff] }
 0x83a   :  { %16027 = vmatpush1.bf16.msra.mxu0 %v19045_v59  ;;  %v1823_v59 = vld [vmem:[#allocation5 + $0x3458] sm:$0xff] }
 0x83b   :  { %16028 = vmatprep.subr.bf16.mxu0 %v19050_v31  ;;  %v18097_v31 = vcombine.low %v1815_v62, %v1819_v57  ;;  %v18106_v53 = vcombine.high %v1823_v59, %v1827_v16  ;;  %v18105_v52 = vcombine.low %v1823_v59, %v1827_v16  ;;  %v1883_v62 = vld [vmem:[#allocation5 + $0x3638] sm:$0xff]  ;;  %v18153_v57 = vcombine.low %v1871_v19, %v1875_v30 }
 0x83c   :  { %15069 = vmatpush1.bf16.msra.mxu1 %v18041_v50  ;;  %v19074_v50 = vld [vmem:[#allocation8 + $0x114] ss:$8 sps:$4 sm:$0xff]  }
 0x83d   :  { %15070 = vmatprep.subr.bf16.mxu1 %v18050_v28  ;;  %v1835_v28 = vld [vmem:[#allocation5 + $0x34b8] sm:$0xff] }
 0x83e   :  { %16029 = vmatpush1.bf16.msra.mxu0 %v19048_v25  ;;  %v1831_v25 = vld [vmem:[#allocation5 + $0x3498] sm:$0xff] }
 0x83f   :  { %16030 = vmatprep.subr.bf16.mxu0 %v19053_v12  ;;  %v15225_v12 = vpack.c.bf16 %v15217_v20, %v15217_v20  ;;  %v18114_v35 = vcombine.high %v1831_v25, %v1835_v28  ;;  %v19093_v20 = vld [vmem:[#allocation8 + $0x180] ss:$8 sps:$4 sm:$0xff]   ;;  %v19098_v16 = vld [vmem:[#allocation8 + $0x194] ss:$8 sps:$4 sm:$0xff]  }
 0x840   :  { %15071 = vmatpush1.bf16.msra.mxu1 %v18049_v21  ;;  %v19077_v21 = vld [vmem:[#allocation8 + $0x124] ss:$8 sps:$4 sm:$0xff]  }
 0x841   :  { %15072 = vmatprep.subr.bf16.mxu1 %v18058_v39  ;;  %v1843_v39 = vld [vmem:[#allocation5 + $0x34f8] sm:$0xff] }
 0x842   :  { %16031 = vmatpush1.bf16.msra.mxu0 %v19051_v4  ;;  %v1839_v4 = vld [vmem:[#allocation5 + $0x34d8] sm:$0xff] }
 0x843   :  { %16032 = vmatprep.subr.bf16.mxu0 %v19056_v41  ;;  %v18113_v41 = vcombine.low %v1831_v25, %v1835_v28  ;;  %v19101_v25 = vld [vmem:[#allocation8 + $0x1a4] ss:$8 sps:$4 sm:$0xff]   ;;  %v1903_v28 = vld [vmem:[#allocation5 + $0x36d8] sm:$0xff] }
 0x844   :  { %15073 = vmatpush1.bf16.msra.mxu1 %v18057_v8  ;;  %v1847_v8 = vld [vmem:[#allocation5 + $0x3518] sm:$0xff] }
 0x845   :  { %15074 = vmatprep.subr.bf16.mxu1 %v18066_v63  ;;  %v18121_v63 = vcombine.low %v1839_v4, %v1843_v39 }
 0x846   :  { %16033 = vmatpush1.bf16.msra.mxu0 %v19054_v5  ;;  %v1851_v5 = vld [vmem:[#allocation5 + $0x3538] sm:$0xff] }
 0x847   :  { %16034 = vmatprep.subr.bf16.mxu0 %v19059_v27  ;;  %v19078_v27 = vld [vmem:[#allocation8 + $0x130] ss:$8 sps:$4 sm:$0xff]   ;;  %v18130_v43 = vcombine.high %v1847_v8, %v1851_v5 }
 0x848   :  { %15075 = vmatpush1.bf16.msra.mxu1 %v18065_v36  ;;  %v1855_v36 = vld [vmem:[#allocation5 + $0x3558] sm:$0xff] }
 0x849   :  { %15076 = vmatprep.subr.bf16.mxu1 %v18074_v0  ;;  %v19081_v0 = vld [vmem:[#allocation8 + $0x140] ss:$8 sps:$4 sm:$0xff]  }
 0x84a   :  { %16035 = vmatpush1.bf16.msra.mxu0 %v19057_v37  ;;  %v18129_v37 = vcombine.low %v1847_v8, %v1851_v5  ;;  %v1919_v8 = vld [vmem:[#allocation5 + $0x3758] sm:$0xff] }
 0x84b   :  { %16036 = vmatprep.subr.bf16.mxu0 %v19062_v51  ;;  %v1923_v5 = vld [vmem:[#allocation5 + $0x3778] sm:$0xff] }
 0x84c   :  { %15077 = vmatpush1.bf16.msra.mxu1 %v18073_v58 }
 0x84d   :  { %15078 = vmatprep.subr.bf16.mxu1 %v18082_v46  ;;  %v18146_v46 = vcombine.high %v1863_v44, %v1867_v32  ;;  %v19113_v32 = vld [vmem:[#allocation8 + $0x1e4] ss:$8 sps:$4 sm:$0xff]  }
 0x84e   :  { %16037 = vmatpush1.bf16.msra.mxu0 %v19060_v47  ;;  %v19084_v47 = vld [vmem:[#allocation8 + $0x150] ss:$8 sps:$4 sm:$0xff]  }
 0x84f   :  { %16038 = vmatprep.subr.bf16.mxu0 %v19065_v61  ;;  %v19089_v61 = vld [vmem:[#allocation8 + $0x164] ss:$8 sps:$4 sm:$0xff]  }
 0x850   :  { %15079 = vmatpush1.bf16.msra.mxu1 %v18081_v9  ;;  %v19087_v9 = vld [vmem:[#allocation8 + $0x160] ss:$8 sps:$4 sm:$0xff]  }
 0x851   :  { %15080 = vmatprep.subr.bf16.mxu1 %v18090_v48  ;;  %v19092_v48 = vld [vmem:[#allocation8 + $0x174] ss:$8 sps:$4 sm:$0xff]  }
 0x852   :  { %16039 = vmatpush1.bf16.msra.mxu0 %v19063_v13  ;;  %v18154_v13 = vcombine.high %v1871_v19, %v1875_v30 }
 0x853   :  { %16040 = vmatprep.subr.bf16.mxu0 %v19068_v40  ;;  %v1879_v40 = vld [vmem:[#allocation5 + $0x3618] sm:$0xff] }
 0x854   :  { %15081 = vmatpush1.bf16.msra.mxu1 %v18089_v17  ;;  %v18162_v17 = vcombine.high %v1879_v40, %v1883_v62 }
 0x855   :  { %15091 = vmatprep.subr.bf16.mxu1 %v18098_v18  ;;  %v1887_v18 = vld [vmem:[#allocation5 + $0x3658] sm:$0xff] }
 0x856   :  { %16041 = vmatpush1.bf16.msra.mxu0 %v19066_v60  ;;  %v19095_v60 = vld [vmem:[#allocation8 + $0x184] ss:$8 sps:$4 sm:$0xff]   ;;  %v18170_v59 = vcombine.high %v1887_v18, %v1891_v24 }
 0x857   :  { %16051 = vmatprep.subr.bf16.mxu0 %v19071_v2  ;;  %15083 = vmatmul.mubr.bf16.vlgmr.msra.gmra.mrb[8].mxu1 %v19769_v11  ;;  %v18122_v11 = vcombine.high %v1839_v4, %v1843_v39  ;;  %v18161_v2 = vcombine.low %v1879_v40, %v1883_v62  ;;  %v1911_v4 = vld [vmem:[#allocation5 + $0x3718] sm:$0xff] }
 0x858   :  { %15092 = vmatpush1.bf16.msra.mxu1 %v18097_v31  ;;  %15123 = vmatprep.mubr.bf16.mxu1 %v19773_v23  ;;  %v1859_v23 = vld [vmem:[#allocation5 + $0x3578] sm:$0xff] }
 0x859   :  { %16043 = vmatmul.mubr.bf16.vlgmr.msra.gmra.mrb[8].mxu0 %v15222_v3  ;;  %15093 = vmatprep.subr.bf16.mxu1 %v18106_v53  ;;  %v18138_v51 = vcombine.high %v1855_v36, %v1859_v23  ;;  %v18137_v58 = vcombine.low %v1855_v36, %v1859_v23  ;;  %v1895_v31 = vld [vmem:[#allocation5 + $0x3698] sm:$0xff]  ;;  %v18169_v3 = vcombine.low %v1887_v18, %v1891_v24  ;;  %v19117_v24 = vld [vmem:[#allocation8 + $0x200] ss:$8 sps:$4 sm:$0xff]  }
 0x85a   :  { %16052 = vmatpush1.bf16.msra.mxu0 %v19069_v55  ;;  %16083 = vmatprep.mubr.bf16.mxu0 %v15225_v12  ;;  %v1899_v55 = vld [vmem:[#allocation5 + $0x36b8] sm:$0xff] }
 0x85b   :  { %16053 = vmatprep.subr.bf16.mxu0 %v19074_v50  ;;  %v19096_v53 = vld [vmem:[#allocation8 + $0x190] ss:$8 sps:$4 sm:$0xff]   ;;  %v18178_v50 = vcombine.high %v1895_v31, %v1899_v55  ;;  %v19110_v36 = vld [vmem:[#allocation8 + $0x1d4] ss:$8 sps:$4 sm:$0xff]  }
 0x85c   :  { %15094 = vmatpush1.bf16.msra.mxu1 %v18105_v52  ;;  %v1907_v12 = vld [vmem:[#allocation5 + $0x36f8] sm:$0xff]  ;;  %v18177_v52 = vcombine.low %v1895_v31, %v1899_v55 }
 0x85d   :  { %15095 = vmatprep.subr.bf16.mxu1 %v18114_v35  ;;  %v18186_v35 = vcombine.high %v1903_v28, %v1907_v12  ;;  %v1915_v39 = vld [vmem:[#allocation5 + $0x3738] sm:$0xff] }
 0x85e   :  { %16054 = vmatpush1.bf16.msra.mxu0 %v19072_v14  ;;  %v19099_v14 = vld [vmem:[#allocation8 + $0x1a0] ss:$8 sps:$4 sm:$0xff]   ;;  %v1927_v23 = vld [vmem:[#allocation5 + $0x3798] sm:$0xff] }
 0x85f   :  { %16055 = vmatprep.subr.bf16.mxu0 %v19077_v21  ;;  %v19104_v21 = vld [vmem:[#allocation8 + $0x1b4] ss:$8 sps:$4 sm:$0xff]   ;;  %v19114_v40 = vld [vmem:[#allocation8 + $0x1f0] ss:$8 sps:$4 sm:$0xff]  }
 0x860   :  { %15096 = vmatpush1.bf16.msra.mxu1 %v18113_v41  ;;  %v18185_v41 = vcombine.low %v1903_v28, %v1907_v12 }
 0x861   :  { %15097 = vmatprep.subr.bf16.mxu1 %v18122_v11  ;;  %v18194_v11 = vcombine.high %v1911_v4, %v1915_v39 }
 0x862   :  { %16056 = vmatpush1.bf16.msra.mxu0 %v19075_v34  ;;  %v19102_v34 = vld [vmem:[#allocation8 + $0x1b0] ss:$8 sps:$4 sm:$0xff]  }
 0x863   :  { %16057 = vmatprep.subr.bf16.mxu0 %v19080_v26  ;;  %v19107_v26 = vld [vmem:[#allocation8 + $0x1c4] ss:$8 sps:$4 sm:$0xff]  }
 0x864   :  { %15098 = vmatpush1.bf16.msra.mxu1 %v18121_v63  ;;  %v18193_v63 = vcombine.low %v1911_v4, %v1915_v39  ;;  %v19126_v39 = vld [vmem:[#allocation8 + $0x230] ss:$8 sps:$4 sm:$0xff]  }
 0x865   :  { %15099 = vmatprep.subr.bf16.mxu1 %v18130_v43  ;;  %v18202_v43 = vcombine.high %v1919_v8, %v1923_v5 }
 0x866   :  { %16058 = vmatpush1.bf16.msra.mxu0 %v19078_v27  ;;  %v19105_v27 = vld [vmem:[#allocation8 + $0x1c0] ss:$8 sps:$4 sm:$0xff]  }
 0x867   :  { %16059 = vmatprep.subr.bf16.mxu0 %v19083_v29  ;;  %v2208_v29 = vsub.s32 2, %v19827_v42 }
 0x868   :  { %15100 = vmatpush1.bf16.msra.mxu1 %v18129_v37  ;;  %v1931_v37 = vld [vmem:[#allocation5 + $0x37b8] sm:$0xff] }
 0x869   :  { %15101 = vmatprep.subr.bf16.mxu1 %v18138_v51  ;;  %v19108_v51 = vld [vmem:[#allocation8 + $0x1d0] ss:$8 sps:$4 sm:$0xff]   ;;  %v2209_v44 = vrot.slane %v19898_v45, %v2208_v29 }
 0x86a   :  { %16060 = vmatpush1.bf16.msra.mxu0 %v19081_v0  ;;  %v18201_v0 = vcombine.low %v1919_v8, %v1923_v5  ;;  %v19129_v8 = vld [vmem:[#allocation8 + $0x240] ss:$8 sps:$4 sm:$0xff]   ;;  %v1991_v5 = vld [vmem:[#allocation5 + $0x3998] sm:$0xff] }
 0x86b   :  { %16061 = vmatprep.subr.bf16.mxu0 %v19086_v33  ;;  %v18210_v33 = vcombine.high %v1927_v23, %v1931_v37  ;;  %v18717_v30 = vadd.f32 %v19857_v54, %v2209_v44  ;;  %v19135_v44 = vld [vmem:[#allocation8 + $0x260] ss:$8 sps:$4 sm:$0xff]  }
 0x86c   :  { %15102 = vmatpush1.bf16.msra.mxu1 %v18137_v58  ;;  %v1935_v58 = vld [vmem:[#allocation5 + $0x37d8] sm:$0xff] }
 0x86d   :  { %15103 = vmatprep.subr.bf16.mxu1 %v18146_v46  ;;  %v18209_v46 = vcombine.low %v1927_v23, %v1931_v37  ;;  %v1999_v23 = vld [vmem:[#allocation5 + $0x39d8] sm:$0xff] }
 0x86e   :  { %16062 = vmatpush1.bf16.msra.mxu0 %v19084_v47  ;;  %v1939_v47 = vld [vmem:[#allocation5 + $0x37f8] sm:$0xff] }
 0x86f   :  { %16063 = vmatprep.subr.bf16.mxu0 %v19089_v61  ;;  %v19111_v61 = vld [vmem:[#allocation8 + $0x1e0] ss:$8 sps:$4 sm:$0xff]   ;;  %v18218_v19 = vcombine.high %v1935_v58, %v1939_v47  ;;  %v2003_v37 = vld [vmem:[#allocation5 + $0x39f8] sm:$0xff] }
 0x870   :  { %15104 = vmatpush1.bf16.msra.mxu1 %v18145_v22  ;;  %v19116_v22 = vld [vmem:[#allocation8 + $0x1f4] ss:$8 sps:$4 sm:$0xff]  }
 0x871   :  { %15105 = vmatprep.subr.bf16.mxu1 %v18154_v13  ;;  %v1947_v13 = vld [vmem:[#allocation5 + $0x3838] sm:$0xff] }
 0x872   :  { %16064 = vmatpush1.bf16.msra.mxu0 %v19087_v9  ;;  %v1943_v9 = vld [vmem:[#allocation5 + $0x3818] sm:$0xff] }
 0x873   :  { %16065 = vmatprep.subr.bf16.mxu0 %v19092_v48  ;;  %v18217_v48 = vcombine.low %v1935_v58, %v1939_v47  ;;  %v18226_v62 = vcombine.high %v1943_v9, %v1947_v13  ;;  %v18225_v18 = vcombine.low %v1943_v9, %v1947_v13  ;;  %v2011_v58 = vld [vmem:[#allocation5 + $0x3a38] sm:$0xff]  ;;  %v19143_v9 = vld [vmem:[#allocation8 + $0x284] ss:$8 sps:$4 sm:$0xff]  }
 0x874   :  { %15106 = vmatpush1.bf16.msra.mxu1 %v18153_v57  ;;  %v15216_v57 = vmax.f32 %v18717_v30, 0.0  ;;  %v19140_v47 = vld [vmem:[#allocation8 + $0x274] ss:$8 sps:$4 sm:$0xff]  }
 0x875   :  { %15107 = vmatprep.subr.bf16.mxu1 %v18162_v17  ;;  %v1955_v17 = vld [vmem:[#allocation5 + $0x3878] sm:$0xff] }
 0x876   :  { %16066 = vmatpush1.bf16.msra.mxu0 %v19090_v6  ;;  %v1951_v6 = vld [vmem:[#allocation5 + $0x3858] sm:$0xff] }
 0x877   :  { %16067 = vmatprep.subr.bf16.mxu0 %v19095_v60  ;;  %v19119_v60 = vld [vmem:[#allocation8 + $0x204] ss:$8 sps:$4 sm:$0xff]   ;;  %v18234_v54 = vcombine.high %v1951_v6, %v1955_v17  ;;  %v18233_v31 = vcombine.low %v1951_v6, %v1955_v17  ;;  %v2015_v30 = vld [vmem:[#allocation5 + $0x3a58] sm:$0xff] }
 0x878   :  { %15108 = vmatpush1.bf16.msra.mxu1 %v18161_v2  ;;  %v15224_v2 = vpack.c.bf16 %v15216_v57, %v15216_v57  ;;  %v2027_v57 = vld [vmem:[#allocation5 + $0x3ab8] sm:$0xff] }
 0x879   :  { %15109 = vmatprep.subr.bf16.mxu1 %v18170_v59  ;;  %v1963_v59 = vld [vmem:[#allocation5 + $0x38b8] sm:$0xff] }
 0x87a   :  { %16068 = vmatpush1.bf16.msra.mxu0 %v19093_v20  ;;  %v1959_v20 = vld [vmem:[#allocation5 + $0x3898] sm:$0xff] }
 0x87b   :  { %16069 = vmatprep.subr.bf16.mxu0 %v19098_v16  ;;  %v19122_v16 = vld [vmem:[#allocation8 + $0x214] ss:$8 sps:$4 sm:$0xff]   ;;  %v18242_v55 = vcombine.high %v1959_v20, %v1963_v59  ;;  %v18241_v28 = vcombine.low %v1959_v20, %v1963_v59 }
 0x87c   :  { %15110 = vmatpush1.bf16.msra.mxu1 %v18169_v3  ;;  %v19120_v3 = vld [vmem:[#allocation8 + $0x210] ss:$8 sps:$4 sm:$0xff]   ;;  %v19146_v6 = vld [vmem:[#allocation8 + $0x294] ss:$8 sps:$4 sm:$0xff]  }
 0x87d   :  { %15111 = vmatprep.subr.bf16.mxu1 %v18178_v50  ;;  %v1971_v50 = vld [vmem:[#allocation5 + $0x38f8] sm:$0xff] }
 0x87e   :  { %16070 = vmatpush1.bf16.msra.mxu0 %v19096_v53  ;;  %v1967_v53 = vld [vmem:[#allocation5 + $0x38d8] sm:$0xff] }
 0x87f   :  { %16071 = vmatprep.subr.bf16.mxu0 %v19101_v25  ;;  %v19125_v25 = vld [vmem:[#allocation8 + $0x224] ss:$8 sps:$4 sm:$0xff]   ;;  %v18250_v12 = vcombine.high %v1967_v53, %v1971_v50 }
 0x880   :  { %15112 = vmatpush1.bf16.msra.mxu1 %v18177_v52  ;;  %v19123_v52 = vld [vmem:[#allocation8 + $0x220] ss:$8 sps:$4 sm:$0xff]  }
 0x881   :  { %15113 = vmatprep.subr.bf16.mxu1 %v18186_v35  ;;  %v19128_v35 = vld [vmem:[#allocation8 + $0x234] ss:$8 sps:$4 sm:$0xff]  }
 0x882   :  { %16072 = vmatpush1.bf16.msra.mxu0 %v19099_v14  ;;  %v1979_v14 = vld [vmem:[#allocation5 + $0x3938] sm:$0xff] }
 0x883   :  { %16073 = vmatprep.subr.bf16.mxu0 %v19104_v21  ;;  %v18249_v21 = vcombine.low %v1967_v53, %v1971_v50 }
 0x884   :  { %15114 = vmatpush1.bf16.msra.mxu1 %v18185_v41  ;;  %v1983_v41 = vld [vmem:[#allocation5 + $0x3958] sm:$0xff] }
 0x885   :  { %15115 = vmatprep.subr.bf16.mxu1 %v18194_v11 }
 0x886   :  { %16074 = vmatpush1.bf16.msra.mxu0 %v19102_v34  ;;  %v1987_v34 = vld [vmem:[#allocation5 + $0x3978] sm:$0xff] }
 0x887   :  { %16075 = vmatprep.subr.bf16.mxu0 %v19107_v26  ;;  %v18266_v26 = vcombine.high %v1983_v41, %v1987_v34 }
 0x888   :  { %15116 = vmatpush1.bf16.msra.mxu1 %v18193_v63  ;;  %v1995_v63 = vld [vmem:[#allocation5 + $0x39b8] sm:$0xff] }
 0x889   :  { %15117 = vmatprep.subr.bf16.mxu1 %v18202_v43  ;;  %v18265_v43 = vcombine.low %v1983_v41, %v1987_v34  ;;  %v18274_v29 = vcombine.high %v1991_v5, %v1995_v63 }
 0x88a   :  { %16076 = vmatpush1.bf16.msra.mxu0 %v19105_v27  ;;  %v19134_v27 = vld [vmem:[#allocation8 + $0x254] ss:$8 sps:$4 sm:$0xff]  }
 0x88b   :  { %16077 = vmatprep.subr.bf16.mxu0 %v19110_v36  ;;  %v19132_v36 = vld [vmem:[#allocation8 + $0x250] ss:$8 sps:$4 sm:$0xff]  }
 0x88c   :  { %15118 = vmatpush1.bf16.msra.mxu1 %v18201_v0  ;;  %v19137_v0 = vld [vmem:[#allocation8 + $0x264] ss:$8 sps:$4 sm:$0xff]  }
 0x88d   :  { %15119 = vmatprep.subr.bf16.mxu1 %v18210_v33  ;;  %v18282_v33 = vcombine.high %v1999_v23, %v2003_v37 }
 0x88e   :  { %16078 = vmatpush1.bf16.msra.mxu0 %v19108_v51  ;;  %v18273_v51 = vcombine.low %v1991_v5, %v1995_v63 }
 0x88f   :  { %16079 = vmatprep.subr.bf16.mxu0 %v19113_v32  ;;  %v2007_v32 = vld [vmem:[#allocation5 + $0x3a18] sm:$0xff] }
 0x890   :  { %15120 = vmatpush1.bf16.msra.mxu1 %v18209_v46  ;;  %v18281_v46 = vcombine.low %v1999_v23, %v2003_v37  ;;  %v18289_v13 = vcombine.low %v2007_v32, %v2011_v58 }
 0x891   :  { %15121 = vmatprep.subr.bf16.mxu1 %v18218_v19  ;;  %v19138_v19 = vld [vmem:[#allocation8 + $0x270] ss:$8 sps:$4 sm:$0xff]  }
 0x892   :  { %16080 = vmatpush1.bf16.msra.mxu0 %v19111_v61  ;;  %v18290_v61 = vcombine.high %v2007_v32, %v2011_v58 }
 0x893   :  { %16081 = vmatprep.subr.bf16.mxu0 %v19116_v22  ;;  %v2019_v22 = vld [vmem:[#allocation5 + $0x3a78] sm:$0xff] }
 0x894   :  { %15122 = vmatpush1.bf16.msra.mxu1 %v18217_v48  ;;  %v18298_v48 = vcombine.high %v2015_v30, %v2019_v22  ;;  %v18297_v17 = vcombine.low %v2015_v30, %v2019_v22  ;;  %v2095_v30 = vld [vmem:[#allocation5 + $0x3cd8] sm:$0xff] }
 0x895   :  { %15132 = vmatprep.subr.bf16.mxu1 %v18226_v62  ;;  %v2023_v62 = vld [vmem:[#allocation5 + $0x3a98] sm:$0xff] }
 0x896   :  { %16082 = vmatpush1.bf16.msra.mxu0 %v19114_v40  ;;  %v19141_v40 = vld [vmem:[#allocation8 + $0x280] ss:$8 sps:$4 sm:$0xff]   ;;  %v18305_v20 = vcombine.low %v2023_v62, %v2027_v57  ;;  %v2099_v22 = vld [vmem:[#allocation5 + $0x3cf8] sm:$0xff] }
 0x897   :  { %16092 = vmatprep.subr.bf16.mxu0 %v19119_v60  ;;  %15124 = vmatmul.mubr.bf16.vlgmr.msra.gmra.mrb[8].mxu1 %v19783_v56  ;;  %v1975_v56 = vld [vmem:[#allocation5 + $0x3918] sm:$0xff]  ;;  %v18306_v60 = vcombine.high %v2023_v62, %v2027_v57  ;;  %v18377_v62 = vcombine.low %v2095_v30, %v2099_v22 }
 0x898   :  { %15133 = vmatpush1.bf16.msra.mxu1 %v18225_v18  ;;  %15164 = vmatprep.mubr.bf16.mxu1 %v19787_v38  ;;  %v18258_v4 = vcombine.high %v1975_v56, %v1979_v14  ;;  %v19131_v38 = vld [vmem:[#allocation8 + $0x244] ss:$8 sps:$4 sm:$0xff]   ;;  %v18257_v11 = vcombine.low %v1975_v56, %v1979_v14  ;;  %v19144_v18 = vld [vmem:[#allocation8 + $0x290] ss:$8 sps:$4 sm:$0xff]  }
 0x899   :  { %16084 = vmatmul.mubr.bf16.vlgmr.msra.gmra.mrb[8].mxu0 %v15224_v2  ;;  %15134 = vmatprep.subr.bf16.mxu1 %v18234_v54  ;;  %v2031_v54 = vld [vmem:[#allocation5 + $0x3ad8] sm:$0xff]  ;;  %v19149_v2 = vld [vmem:[#allocation8 + $0x2a4] ss:$8 sps:$4 sm:$0xff]  }
 0x89a   :  { %16093 = vmatpush1.bf16.msra.mxu0 %v19117_v24  ;;  %v2035_v24 = vld [vmem:[#allocation5 + $0x3af8] sm:$0xff] }
 0x89b   :  { %16094 = vmatprep.subr.bf16.mxu0 %v19122_v16  ;;  %v18314_v59 = vcombine.high %v2031_v54, %v2035_v24  ;;  %v19147_v16 = vld [vmem:[#allocation8 + $0x2a0] ss:$8 sps:$4 sm:$0xff]   ;;  %v18313_v53 = vcombine.low %v2031_v54, %v2035_v24  ;;  %v2119_v54 = vld [vmem:[#allocation5 + $0x3d98] sm:$0xff] }
 0x89c   :  { %15135 = vmatpush1.bf16.msra.mxu1 %v18233_v31  ;;  %v2039_v31 = vld [vmem:[#allocation5 + $0x3b18] sm:$0xff] }
 0x89d   :  { %15136 = vmatprep.subr.bf16.mxu1 %v18242_v55  ;;  %v2043_v55 = vld [vmem:[#allocation5 + $0x3b38] sm:$0xff] }
 0x89e   :  { %16095 = vmatpush1.bf16.msra.mxu0 %v19120_v3  ;;  %v19152_v3 = vld [vmem:[#allocation8 + $0x2b4] ss:$8 sps:$4 sm:$0xff]   ;;  %v18322_v50 = vcombine.high %v2039_v31, %v2043_v55  ;;  %v18321_v56 = vcombine.low %v2039_v31, %v2043_v55 }
 0x89f   :  { %16096 = vmatprep.subr.bf16.mxu0 %v19125_v25  ;;  %v19150_v25 = vld [vmem:[#allocation8 + $0x2b0] ss:$8 sps:$4 sm:$0xff]  }
 0x8a0   :  { %15137 = vmatpush1.bf16.msra.mxu1 %v18241_v28  ;;  %v2047_v28 = vld [vmem:[#allocation5 + $0x3b58] sm:$0xff] }
 0x8a1   :  { %15138 = vmatprep.subr.bf16.mxu1 %v18250_v12  ;;  %v2051_v12 = vld [vmem:[#allocation5 + $0x3b78] sm:$0xff] }
 0x8a2   :  { %16097 = vmatpush1.bf16.msra.mxu0 %v19123_v52  ;;  %v19155_v52 = vld [vmem:[#allocation8 + $0x2c4] ss:$8 sps:$4 sm:$0xff]   ;;  %v18330_v14 = vcombine.high %v2047_v28, %v2051_v12  ;;  %v18329_v41 = vcombine.low %v2047_v28, %v2051_v12  ;;  %v2123_v24 = vld [vmem:[#allocation5 + $0x3db8] sm:$0xff] }
 0x8a3   :  { %16098 = vmatprep.subr.bf16.mxu0 %v19128_v35  ;;  %v19153_v35 = vld [vmem:[#allocation8 + $0x2c0] ss:$8 sps:$4 sm:$0xff]   ;;  %v2127_v31 = vld [vmem:[#allocation5 + $0x3dd8] sm:$0xff] }
 0x8a4   :  { %15139 = vmatpush1.bf16.msra.mxu1 %v18249_v21  ;;  %v2055_v21 = vld [vmem:[#allocation5 + $0x3b98] sm:$0xff] }
 0x8a5   :  { %15140 = vmatprep.subr.bf16.mxu1 %v18258_v4  ;;  %v2059_v4 = vld [vmem:[#allocation5 + $0x3bb8] sm:$0xff] }
 0x8a6   :  { %16099 = vmatpush1.bf16.msra.mxu0 %v19126_v39  ;;  %v19158_v39 = vld [vmem:[#allocation8 + $0x2d4] ss:$8 sps:$4 sm:$0xff]   ;;  %v18338_v34 = vcombine.high %v2055_v21, %v2059_v4  ;;  %v18337_v5 = vcombine.low %v2055_v21, %v2059_v4 }
 0x8a7   :  { %16100 = vmatprep.subr.bf16.mxu0 %v19131_v38  ;;  %v19156_v38 = vld [vmem:[#allocation8 + $0x2d0] ss:$8 sps:$4 sm:$0xff]  }
 0x8a8   :  { %15141 = vmatpush1.bf16.msra.mxu1 %v18257_v11  ;;  %v2063_v11 = vld [vmem:[#allocation5 + $0x3bd8] sm:$0xff] }
 0x8a9   :  { %15142 = vmatprep.subr.bf16.mxu1 %v18266_v26  ;;  %v2067_v26 = vld [vmem:[#allocation5 + $0x3bf8] sm:$0xff] }
 0x8aa   :  { %16101 = vmatpush1.bf16.msra.mxu0 %v19129_v8  ;;  %v19161_v8 = vld [vmem:[#allocation8 + $0x2e4] ss:$8 sps:$4 sm:$0xff]   ;;  %v18346_v63 = vcombine.high %v2063_v11, %v2067_v26  ;;  %v18345_v23 = vcombine.low %v2063_v11, %v2067_v26  ;;  %v2131_v55 = vld [vmem:[#allocation5 + $0x3df8] sm:$0xff] }
 0x8ab   :  { %16102 = vmatprep.subr.bf16.mxu0 %v19134_v27  ;;  %v19159_v27 = vld [vmem:[#allocation8 + $0x2e0] ss:$8 sps:$4 sm:$0xff]   ;;  %v2139_v21 = vld [vmem:[#allocation5 + $0x3e38] sm:$0xff] }
 0x8ac   :  { %15143 = vmatpush1.bf16.msra.mxu1 %v18265_v43  ;;  %v2071_v43 = vld [vmem:[#allocation5 + $0x3c18] sm:$0xff] }
 0x8ad   :  { %15144 = vmatprep.subr.bf16.mxu1 %v18274_v29  ;;  %v2075_v29 = vld [vmem:[#allocation5 + $0x3c38] sm:$0xff] }
 0x8ae   :  { %16103 = vmatpush1.bf16.msra.mxu0 %v19132_v36  ;;  %v19164_v36 = vld [vmem:[#allocation8 + $0x2f4] ss:$8 sps:$4 sm:$0xff]   ;;  %v18354_v37 = vcombine.high %v2071_v43, %v2075_v29  ;;  %v18353_v32 = vcombine.low %v2071_v43, %v2075_v29 }
 0x8af   :  { %16104 = vmatprep.subr.bf16.mxu0 %v19137_v0  ;;  %v19162_v0 = vld [vmem:[#allocation8 + $0x2f0] ss:$8 sps:$4 sm:$0xff]  }
 0x8b0   :  { %15145 = vmatpush1.bf16.msra.mxu1 %v18273_v51  ;;  %v2079_v51 = vld [vmem:[#allocation5 + $0x3c58] sm:$0xff] }
 0x8b1   :  { %15146 = vmatprep.subr.bf16.mxu1 %v18282_v33  ;;  %v2083_v33 = vld [vmem:[#allocation5 + $0x3c78] sm:$0xff] }
 0x8b2   :  { %16105 = vmatpush1.bf16.msra.mxu0 %v19135_v44  ;;  %v19167_v44 = vld [vmem:[#allocation8 + $0x304] ss:$8 sps:$4 sm:$0xff]   ;;  %v18362_v58 = vcombine.high %v2079_v51, %v2083_v33  ;;  %v2143_v11 = vld [vmem:[#allocation5 + $0x3e58] sm:$0xff] }
 0x8b3   :  { %16106 = vmatprep.subr.bf16.mxu0 %v19140_v47  ;;  %v2087_v47 = vld [vmem:[#allocation5 + $0x3c98] sm:$0xff] }
 0x8b4   :  { %15147 = vmatpush1.bf16.msra.mxu1 %v18281_v46  ;;  %v2091_v46 = vld [vmem:[#allocation5 + $0x3cb8] sm:$0xff] }
 0x8b5   :  { %15148 = vmatprep.subr.bf16.mxu1 %v18290_v61  ;;  %v18361_v61 = vcombine.low %v2079_v51, %v2083_v33  ;;  %v2147_v26 = vld [vmem:[#allocation5 + $0x3e78] sm:$0xff] }
 0x8b6   :  { %16107 = vmatpush1.bf16.msra.mxu0 %v19138_v19  ;;  %v18370_v19 = vcombine.high %v2087_v47, %v2091_v46  ;;  %v2151_v43 = vld [vmem:[#allocation5 + $0x3e98] sm:$0xff] }
 0x8b7   :  { %16108 = vmatprep.subr.bf16.mxu0 %v19143_v9  ;;  %v18369_v9 = vcombine.low %v2087_v47, %v2091_v46  ;;  %v2155_v29 = vld [vmem:[#allocation5 + $0x3eb8] sm:$0xff] }
 0x8b8   :  { %15149 = vmatpush1.bf16.msra.mxu1 %v18289_v13  ;;  %v18378_v13 = vcombine.high %v2095_v30, %v2099_v22  ;;  %v2159_v51 = vld [vmem:[#allocation5 + $0x3ed8] sm:$0xff] }
 0x8b9   :  { %15150 = vmatprep.subr.bf16.mxu1 %v18298_v48  ;;  %v2103_v48 = vld [vmem:[#allocation5 + $0x3d18] sm:$0xff] }
 0x8ba   :  { %16109 = vmatpush1.bf16.msra.mxu0 %v19141_v40  ;;  %v2107_v40 = vld [vmem:[#allocation5 + $0x3d38] sm:$0xff] }
 0x8bb   :  { %16110 = vmatprep.subr.bf16.mxu0 %v19146_v6  ;;  %v18386_v57 = vcombine.high %v2103_v48, %v2107_v40  ;;  %v2111_v6 = vld [vmem:[#allocation5 + $0x3d58] sm:$0xff] }
 0x8bc   :  { %15151 = vmatpush1.bf16.msra.mxu1 %v18297_v17  ;;  %v18385_v17 = vcombine.low %v2103_v48, %v2107_v40  ;;  %v2163_v33 = vld [vmem:[#allocation5 + $0x3ef8] sm:$0xff] }
 0x8bd   :  { %15152 = vmatprep.subr.bf16.mxu1 %v18306_v60  ;;  %v2220_v60 = vsub.s32 5, %v19827_v42  ;;  %v19174_v47 = vld [vmem:[#allocation8 + $0x330] ss:$8 sps:$4 sm:$0xff]   ;;  %v18441_v30 = vcombine.low %v2159_v51, %v2163_v33  ;;  %v19182_v40 = vld [vmem:[#allocation8 + $0x354] ss:$8 sps:$4 sm:$0xff]  }
 0x8be   :  { %16111 = vmatpush1.bf16.msra.mxu0 %v19144_v18  ;;  %v2167_v46 = vld [vmem:[#allocation5 + $0x3f18] sm:$0xff] }
 0x8bf   :  { %16112 = vmatprep.subr.bf16.mxu0 %v19149_v2  ;;  %v2179_v48 = vld [vmem:[#allocation5 + $0x3f78] sm:$0xff] }
 0x8c0   :  { %15153 = vmatpush1.bf16.msra.mxu1 %v18305_v20 }
 0x8c1   :  { %15154 = vmatprep.subr.bf16.mxu1 %v18314_v59  ;;  %v2221_v59 = vrot.slane %v19898_v45, %v2220_v60 }
 0x8c2   :  { %16113 = vmatpush1.bf16.msra.mxu0 %v19147_v16  ;;  %v18402_v16 = vcombine.high %v2119_v54, %v2123_v24 }
 0x8c3   :  { %16114 = vmatprep.subr.bf16.mxu0 %v19152_v3 }
 0x8c4   :  { %15155 = vmatpush1.bf16.msra.mxu1 %v18313_v53 }
 0x8c5   :  { %15156 = vmatprep.subr.bf16.mxu1 %v18322_v50 }
 0x8c6   :  { %16115 = vmatpush1.bf16.msra.mxu0 %v19150_v25  ;;  %v18401_v25 = vcombine.low %v2119_v54, %v2123_v24  ;;  %v19183_v54 = vld [vmem:[#allocation8 + $0x360] ss:$8 sps:$4 sm:$0xff]   ;;  %v2191_v24 = vld [vmem:[#allocation5 + $0x3fd8] sm:$0xff] }
 0x8c7   :  { %16116 = vmatprep.subr.bf16.mxu0 %v19155_v52  ;;  %v18410_v52 = vcombine.high %v2127_v31, %v2131_v55 }
 0x8c8   :  { %15157 = vmatpush1.bf16.msra.mxu1 %v18321_v56 }
 0x8c9   :  { %15158 = vmatprep.subr.bf16.mxu1 %v18330_v14 }
 0x8ca   :  { %16117 = vmatpush1.bf16.msra.mxu0 %v19153_v35  ;;  %v2135_v35 = vld [vmem:[#allocation5 + $0x3e18] sm:$0xff] }
 0x8cb   :  { %16118 = vmatprep.subr.bf16.mxu0 %v19158_v39 }
 0x8cc   :  { %15159 = vmatpush1.bf16.msra.mxu1 %v18329_v41  ;;  %v18418_v41 = vcombine.high %v2135_v35, %v2139_v21 }
 0x8cd   :  { %15160 = vmatprep.subr.bf16.mxu1 %v18338_v34  ;;  %v19165_v34 = vld [vmem:[#allocation8 + $0x300] ss:$8 sps:$4 sm:$0xff]  }
 0x8ce   :  { %16119 = vmatpush1.bf16.msra.mxu0 %v19156_v38 }
 0x8cf   :  { %16120 = vmatprep.subr.bf16.mxu0 %v19161_v8  ;;  %v19170_v8 = vld [vmem:[#allocation8 + $0x314] ss:$8 sps:$4 sm:$0xff]  }
 0x8d0   :  { %15161 = vmatpush1.bf16.msra.mxu1 %v18337_v5  ;;  %v18417_v5 = vcombine.low %v2135_v35, %v2139_v21  ;;  %v19201_v35 = vld [vmem:[#allocation8 + $0x3c0] ss:$8 sps:$4 sm:$0xff]   ;;  %v19206_v21 = vld [vmem:[#allocation8 + $0x3d4] ss:$8 sps:$4 sm:$0xff]  }
 0x8d1   :  { %15162 = vmatprep.subr.bf16.mxu1 %v18346_v63  ;;  %v18426_v63 = vcombine.high %v2143_v11, %v2147_v26 }
 0x8d2   :  { %16121 = vmatpush1.bf16.msra.mxu0 %v19159_v27  ;;  %v19168_v27 = vld [vmem:[#allocation8 + $0x310] ss:$8 sps:$4 sm:$0xff]  }
 0x8d3   :  { %16122 = vmatprep.subr.bf16.mxu0 %v19164_v36  ;;  %v19173_v36 = vld [vmem:[#allocation8 + $0x324] ss:$8 sps:$4 sm:$0xff]  }
 0x8d4   :  { %15163 = vmatpush1.bf16.msra.mxu1 %v18345_v23  ;;  %v18425_v23 = vcombine.low %v2143_v11, %v2147_v26  ;;  %v2224_v26 = vsub.s32 6, %v19827_v42 }
 0x8d5   :  { %15173 = vmatprep.subr.bf16.mxu1 %v18354_v37  ;;  %v18434_v37 = vcombine.high %v2151_v43, %v2155_v29 }
 0x8d6   :  { %16123 = vmatpush1.bf16.msra.mxu0 %v19162_v0  ;;  %v19171_v0 = vld [vmem:[#allocation8 + $0x320] ss:$8 sps:$4 sm:$0xff]  }
 0x8d7   :  { %16133 = vmatprep.subr.bf16.mxu0 %v19167_v44  ;;  %15165 = vmatmul.mubr.bf16.vlgmr.msra.gmra.mrb[8].mxu1 %v19797_v1  ;;  %v2115_v1 = vld [vmem:[#allocation5 + $0x3d78] sm:$0xff] }
 0x8d8   :  { %15174 = vmatpush1.bf16.msra.mxu1 %v18353_v32  ;;  %15205 = vmatprep.mubr.bf16.mxu1 %v19801_v10  ;;  %v2216_v10 = vsub.s32 4, %v19827_v42  ;;  %v18394_v18 = vcombine.high %v2111_v6, %v2115_v1  ;;  %v18393_v20 = vcombine.low %v2111_v6, %v2115_v1  ;;  %v19176_v44 = vld [vmem:[#allocation8 + $0x334] ss:$8 sps:$4 sm:$0xff]   ;;  %v18433_v32 = vcombine.low %v2151_v43, %v2155_v29  ;;  %v19180_v6 = vld [vmem:[#allocation8 + $0x350] ss:$8 sps:$4 sm:$0xff]  }
 0x8d9   :  { %15175 = vmatprep.subr.bf16.mxu1 %v18362_v58  ;;  %v18442_v58 = vcombine.high %v2159_v51, %v2163_v33  ;;  %v2183_v1 = vld [vmem:[#allocation5 + $0x3f98] sm:$0xff]  ;;  %v16176_v33 = vld [vmem:[%s20036_s5] sm:$0xff] }
 0x8da   :  { %v2217_v2 = vrot.slane %v19898_v45, %v2216_v10  ;;  %v18409_v45 = vcombine.low %v2127_v31, %v2131_v55  ;;  %v19185_v10 = vld [vmem:[#allocation8 + $0x364] ss:$8 sps:$4 sm:$0xff]   ;;  %v19186_v31 = vld [vmem:[#allocation8 + $0x370] ss:$8 sps:$4 sm:$0xff]  }
 0x8db   :  { %v19191_v55 = vld [vmem:[#allocation8 + $0x384] ss:$8 sps:$4 sm:$0xff]  }
 0x8dc   :  { %15176 = vmatpush1.bf16.msra.mxu1 %v18361_v61  ;;  %v2171_v61 = vld [vmem:[#allocation5 + $0x3f38] sm:$0xff] }
 0x8dd   :  { %15177 = vmatprep.subr.bf16.mxu1 %v18370_v19  ;;  %v19179_v19 = vld [vmem:[#allocation8 + $0x344] ss:$8 sps:$4 sm:$0xff]   ;;  %v18450_v22 = vcombine.high %v2167_v46, %v2171_v61 }
 0x8e0   :  { %15178 = vmatpush1.bf16.msra.mxu1 %v18369_v9  ;;  %v19177_v9 = vld [vmem:[#allocation8 + $0x340] ss:$8 sps:$4 sm:$0xff]  }
 0x8e1   :  { %15179 = vmatprep.subr.bf16.mxu1 %v18378_v13  ;;  %v2175_v13 = vld [vmem:[#allocation5 + $0x3f58] sm:$0xff] }
 0x8e2   :  { %v18457_v60 = vcombine.low %v2175_v13, %v2179_v48 }
 0x8e4   :  { %15180 = vmatpush1.bf16.msra.mxu1 %v18377_v62  ;;  %v18449_v62 = vcombine.low %v2167_v46, %v2171_v61 }
 0x8e5   :  { %15181 = vmatprep.subr.bf16.mxu1 %v18386_v57  ;;  %v18458_v57 = vcombine.high %v2175_v13, %v2179_v48  ;;  %v16196_v13 = vld [vmem:[%s20036_s5 + $0xa0] sm:$0xff]  ;;  %v16197_v48 = vld [vmem:[%s20036_s5 + $0xa8] sm:$0xff] }
 0x8e8   :  { %15182 = vmatpush1.bf16.msra.mxu1 %v18385_v17  ;;  %v2187_v17 = vld [vmem:[#allocation5 + $0x3fb8] sm:$0xff] }
 0x8e9   :  { %15183 = vmatprep.subr.bf16.mxu1 %v18394_v18  ;;  %v18466_v18 = vcombine.high %v2183_v1, %v2187_v17 }
 0x8ec   :  { %v14551_v3 = vpop.f32.mrb[4].mxu0  ;;  %15184 = vmatpush1.bf16.msra.mxu1 %v18393_v20  ;;  %v19188_v20 = vld [vmem:[#allocation8 + $0x374] ss:$8 sps:$4 sm:$0xff]  }
 0x8ed   :  { %v18719_v53 = vadd.f32 %v14551_v3, %v2217_v2  ;;  %v14553_v50 = vpop.f32.mrb[5].mxu0  ;;  %15185 = vmatprep.subr.bf16.mxu1 %v18402_v16  ;;  %v2195_v2 = vld [vmem:[#allocation5 + $0x3ff8] sm:$0xff] }
 0x8ee   :  { %v18720_v28 = vadd.f32 %v14553_v50, %v2221_v59  ;;  %v14555_v12 = vpop.f32.mrb[6].mxu0  ;;  %v18465_v59 = vcombine.low %v2183_v1, %v2187_v17  ;;  %v18474_v16 = vcombine.high %v2191_v24, %v2195_v2  ;;  %v18473_v3 = vcombine.low %v2191_v24, %v2195_v2  ;;  %v19194_v50 = vld [vmem:[#allocation8 + $0x394] ss:$8 sps:$4 sm:$0xff]   ;;  %v16198_v1 = vld [vmem:[%s20036_s5 + $0xb0] sm:$0xff]  ;;  %v16201_v2 = vld [vmem:[%s20036_s5 + $0xc8] sm:$0xff] }
 0x8ef   :  { %v15218_v56 = vmax.f32 %v18719_v53, 0.0  ;;  %v14556_v14 = vpop.f32.mrb[7].mxu0  ;;  %v19189_v53 = vld [vmem:[#allocation8 + $0x380] ss:$8 sps:$4 sm:$0xff]   ;;  %v16199_v17 = vld [vmem:[%s20036_s5 + $0xb8] sm:$0xff]  ;;  %v16200_v24 = vld [vmem:[%s20036_s5 + $0xc0] sm:$0xff] }
 0x8f0   :  { %v15219_v4 = vmax.f32 %v18720_v28, 0.0  ;;  %15186 = vmatpush1.bf16.msra.mxu1 %v18401_v25  ;;  %v19192_v25 = vld [vmem:[#allocation8 + $0x390] ss:$8 sps:$4 sm:$0xff]   ;;  %v19197_v28 = vld [vmem:[#allocation8 + $0x3a4] ss:$8 sps:$4 sm:$0xff]  }
 0x8f1   :  { %15187 = vmatprep.subr.bf16.mxu1 %v18410_v52  ;;  %v15226_v38 = vpack.c.bf16 %v15218_v56, %v15218_v56  ;;  %v19195_v12 = vld [vmem:[#allocation8 + $0x3a0] ss:$8 sps:$4 sm:$0xff]   ;;  %v19200_v52 = vld [vmem:[#allocation8 + $0x3b4] ss:$8 sps:$4 sm:$0xff]   ;;  %v19198_v56 = vld [vmem:[#allocation8 + $0x3b0] ss:$8 sps:$4 sm:$0xff]  }
 0x8f2   :  { %v15227_v39 = vpack.c.bf16 %v15219_v4, %v15219_v4  ;;  %v19203_v14 = vld [vmem:[#allocation8 + $0x3c4] ss:$8 sps:$4 sm:$0xff]   ;;  %v19204_v4 = vld [vmem:[#allocation8 + $0x3d0] ss:$8 sps:$4 sm:$0xff]  }
 0x8f4   :  { %16124 = vmatprep.mubr.bf16.mxu0 %v15227_v39  ;;  %15188 = vmatpush1.bf16.msra.mxu1 %v18409_v45  ;;  %v19209_v45 = vld [vmem:[#allocation8 + $0x3e4] ss:$8 sps:$4 sm:$0xff]   ;;  %v19207_v39 = vld [vmem:[#allocation8 + $0x3e0] ss:$8 sps:$4 sm:$0xff]  }
 0x8f5   :  { %16125 = vmatmul.mubr.bf16.vlgmr.msra.gmra.mrb[8].mxu0 %v15226_v38  ;;  %15189 = vmatprep.subr.bf16.mxu1 %v18418_v41  ;;  %v19210_v41 = vld [vmem:[#allocation8 + $0x3f0] ss:$8 sps:$4 sm:$0xff]   ;;  %v16193_v38 = vld [vmem:[%s20036_s5 + $0x88] sm:$0xff] }
 0x8f6   :  { %16134 = vmatpush1.bf16.msra.mxu0 %v19165_v34  ;;  %v16192_v34 = vld [vmem:[%s20036_s5 + $0x80] sm:$0xff] }
 0x8f7   :  { %16135 = vmatprep.subr.bf16.mxu0 %v19170_v8  ;;  %v18669_v11 = vpack.c.bf16 %v16193_v38, %v16192_v34  ;;  %v2228_v8 = vsub.s32 7, %v19827_v42  ;;  %v16191_v34 = vld [vmem:[%s20036_s5 + $0x78] sm:$0xff]  ;;  %v19439_v42 = vmov 0.0  }
 0x8f8   :  { %15190 = vmatpush1.bf16.msra.mxu1 %v18417_v5  ;;  %v19214_v5 = vld [vmem:[#allocation7] sm:$0xff] }
 0x8f9   :  { %15191 = vmatprep.subr.bf16.mxu1 %v18426_v63  ;;  %v2225_v63 = vrot.slane %v19214_v5, %v2224_v26  ;;  %v16287_v26 = vld [vmem:[#allocation13 + $0x8] sm:$0xff] }
 0x8fa   :  { %16136 = vmatpush1.bf16.msra.mxu0 %v19168_v27  ;;  %v2229_v27 = vrot.slane %v19214_v5, %v2228_v8  ;;  %v16288_v8 = vld [vmem:[#allocation13 + $0x10] sm:$0xff]  ;;  %v19437_v5 = vmov 0.0|0.0  }
 0x8fb   :  { %16137 = vmatprep.subr.bf16.mxu0 %v19173_v36 }
 0x8fc   :  { %15192 = vmatpush1.bf16.msra.mxu1 %v18425_v23 }
 0x8fd   :  { %15193 = vmatprep.subr.bf16.mxu1 %v18434_v37 }
 0x8fe   :  { %16138 = vmatpush1.bf16.msra.mxu0 %v19171_v0 }
 0x8ff   :  { %16139 = vmatprep.subr.bf16.mxu0 %v19176_v44  ;;  %v16177_v44 = vld [vmem:[%s20036_s5 + $0x8] sm:$0xff] }
 0x900   :  { %15194 = vmatpush1.bf16.msra.mxu1 %v18433_v32  ;;  %v18671_v61 = vpack.c.bf16 %v16177_v44, %v16176_v33 }
 0x901   :  { %15195 = vmatprep.subr.bf16.mxu1 %v18442_v58  ;;  %v16194_v58 = vld [vmem:[%s20036_s5 + $0x90] sm:$0xff] }
 0x902   :  { %16140 = vmatpush1.bf16.msra.mxu0 %v19174_v47  ;;  %v16195_v47 = vld [vmem:[%s20036_s5 + $0x98] sm:$0xff] }
 0x903   :  { %16141 = vmatprep.subr.bf16.mxu0 %v19179_v19 }
 0x904   :  { %15196 = vmatpush1.bf16.msra.mxu1 %v18441_v30  ;;  %v18673_v30 = vpack.c.bf16 %v16195_v47, %v16194_v58 }
 0x905   :  { %15197 = vmatprep.subr.bf16.mxu1 %v18450_v22  ;;  %v16178_v22 = vld [vmem:[%s20036_s5 + $0x10] sm:$0xff] }
 0x906   :  { %16142 = vmatpush1.bf16.msra.mxu0 %v19177_v9  ;;  %v16179_v9 = vld [vmem:[%s20036_s5 + $0x18] sm:$0xff] }
 0x907   :  { %16143 = vmatprep.subr.bf16.mxu0 %v19182_v40  ;;  %v18675_v40 = vpack.c.bf16 %v16179_v9, %v16178_v22  ;;  %v18603_v9 = vld [vmem:[#allocation11] ss:$0 sm:$0xff] }
 0x908   :  { %15198 = vmatpush1.bf16.msra.mxu1 %v18449_v62  ;;  %v18677_v62 = vpack.c.bf16 %v16197_v48, %v16196_v13 }
 0x909   :  { %15199 = vmatprep.subr.bf16.mxu1 %v18458_v57  ;;  %v16180_v57 = vld [vmem:[%s20036_s5 + $0x20] sm:$0xff] }
 0x90a   :  { %16144 = vmatpush1.bf16.msra.mxu0 %v19180_v6  ;;  %v16181_v6 = vld [vmem:[%s20036_s5 + $0x28] sm:$0xff] }
 0x90b   :  { %16145 = vmatprep.subr.bf16.mxu0 %v19185_v10  ;;  %v18679_v10 = vpack.c.bf16 %v16181_v6, %v16180_v57  ;;  %v18604_v57 = vld [vmem:[#allocation14] ss:$0 sm:$0xff] }
 0x90c   :  { %15200 = vmatpush1.bf16.msra.mxu1 %v18457_v60  ;;  %v18681_v60 = vpack.c.bf16 %v16199_v17, %v16198_v1 }
 0x90d   :  { %15201 = vmatprep.subr.bf16.mxu1 %v18466_v18  ;;  %v16182_v18 = vld [vmem:[%s20036_s5 + $0x30] sm:$0xff] }
 0x90e   :  { %16146 = vmatpush1.bf16.msra.mxu0 %v19183_v54  ;;  %v16183_v54 = vld [vmem:[%s20036_s5 + $0x38] sm:$0xff] }
 0x90f   :  { %16147 = vmatprep.subr.bf16.mxu0 %v19188_v20  ;;  %v18683_v20 = vpack.c.bf16 %v16183_v54, %v16182_v18 }
 0x910   :  { %15202 = vmatpush1.bf16.msra.mxu1 %v18465_v59  ;;  %v18685_v59 = vpack.c.bf16 %v16201_v2, %v16200_v24 }
 0x911   :  { %15203 = vmatprep.subr.bf16.mxu1 %v18474_v16  ;;  %v16184_v16 = vld [vmem:[%s20036_s5 + $0x40] sm:$0xff] }
 0x912   :  { %16148 = vmatpush1.bf16.msra.mxu0 %v19186_v31  ;;  %v16185_v31 = vld [vmem:[%s20036_s5 + $0x48] sm:$0xff] }
 0x913   :  { %16149 = vmatprep.subr.bf16.mxu0 %v19191_v55  ;;  %v16202_v55 = vld [vmem:[%s20036_s5 + $0xd0] sm:$0xff] }
 0x914   :  { %15204 = vmatpush1.bf16.msra.mxu1 %v18473_v3  ;;  %v16203_v3 = vld [vmem:[%s20036_s5 + $0xd8] sm:$0xff] }
 0x915   :  { %18701 = vmatprep.subr.bf16.mxu1 %v19437_v5 }
 0x916   :  { %16150 = vmatpush1.bf16.msra.mxu0 %v19189_v53  ;;  %v18687_v53 = vpack.c.bf16 %v16185_v31, %v16184_v16 }
 0x917   :  { %16151 = vmatprep.subr.bf16.mxu0 %v19194_v50  ;;  %15206 = vmatmul.mubr.bf16.vlgmr.msra.gmra.mrb[8].mxu1 %v19809_v49  ;;  %v19212_v49 = vld [vmem:[#allocation8 + $0x3f4] ss:$8 sps:$4 sm:$0xff]   ;;  %v18689_v50 = vpack.c.bf16 %v16203_v3, %v16202_v55 }
 0x918   :  { %18666 = vmatprep.mubr.msk.f32.mxu1 %vm19438_vm0, %v19439_v42 }
 0x91a   :  { %16152 = vmatpush1.bf16.msra.mxu0 %v19192_v25  ;;  %v16186_v25 = vld [vmem:[%s20036_s5 + $0x50] sm:$0xff] }
 0x91b   :  { %16153 = vmatprep.subr.bf16.mxu0 %v19197_v28  ;;  %v16187_v28 = vld [vmem:[%s20036_s5 + $0x58] sm:$0xff] }
 0x91e   :  { %16154 = vmatpush1.bf16.msra.mxu0 %v19195_v12  ;;  %v16204_v12 = vld [vmem:[%s20036_s5 + $0xe0] sm:$0xff] }
 0x91f   :  { %16155 = vmatprep.subr.bf16.mxu0 %v19200_v52  ;;  %v16205_v52 = vld [vmem:[%s20036_s5 + $0xe8] sm:$0xff] }
 0x922   :  { %16156 = vmatpush1.bf16.msra.mxu0 %v19198_v56  ;;  %v18691_v56 = vpack.c.bf16 %v16187_v28, %v16186_v25 }
 0x923   :  { %16157 = vmatprep.subr.bf16.mxu0 %v19203_v14  ;;  %v18693_v14 = vpack.c.bf16 %v16205_v52, %v16204_v12 }
 0x926   :  { %16158 = vmatpush1.bf16.msra.mxu0 %v19201_v35  ;;  %v16188_v35 = vld [vmem:[%s20036_s5 + $0x60] sm:$0xff] }
 0x927   :  { %16159 = vmatprep.subr.bf16.mxu0 %v19206_v21  ;;  %v16189_v21 = vld [vmem:[%s20036_s5 + $0x68] sm:$0xff] }
 0x92a   :  { %16160 = vmatpush1.bf16.msra.mxu0 %v19204_v4  ;;  %v18695_v4 = vpack.c.bf16 %v16189_v21, %v16188_v35 }
 0x92b   :  { %16161 = vmatprep.subr.bf16.mxu0 %v19209_v45  ;;  %v16206_v45 = vld [vmem:[%s20036_s5 + $0xf0] sm:$0xff] }
 0x92e   :  { %16162 = vmatpush1.bf16.msra.mxu0 %v19207_v39  ;;  %v16207_v39 = vld [vmem:[%s20036_s5 + $0xf8] sm:$0xff] }
 0x92f   :  { %16163 = vmatprep.subr.bf16.mxu0 %v19212_v49  ;;  %v18697_v49 = vpack.c.bf16 %v16207_v39, %v16206_v45 }
 0x932   :  { %16164 = vmatpush1.bf16.msra.mxu0 %v19210_v41  ;;  %v16190_v41 = vld [vmem:[%s20036_s5 + $0x70] sm:$0xff]  ;;  %s19440_s5 = smov [#allocation16]  }
 0x933   :  { %18670 = vmatprep.subr.bf16.mxu0 %v18669_v11  ;;  %v18699_v38 = vpack.c.bf16 %v16191_v34, %v16190_v41  ;;  %v16286_v11 = vld [vmem:[#allocation13] sm:$0xff]  ;;  %s16382_s21 = sshll.u32 %s19440_s5, 4  ;;  %s16383_s21 = int_to_ptr.vmem [resolvable:$true] %s16382_s21 }
 0x934   :  { %s19391_s23 = scalar_lea.vmem %s16383_s21, 128  ;;  %p19396_p9 = scmp.lt.s32.totalorder %s16383_s21, %s16383_s21 }
 0x935   :  { %p19392_p8 = scmp.ne.s32.totalorder %s16383_s21, %s19391_s23  ;;  %p19397_p10 = scmp.lt.s32.totalorder %s19391_s23, %s19391_s23 }
 0x937   :  { %p19398_p11 = por %p19397_p10, %p19396_p9 }
 0x939   :  { %p19399_p12 = pnand %p19398_p11, %p19392_p8 }
 0x9ea   :  { %v15207_v43 = vpop.f32.mrb[8].mxu1 }
 0x9eb   :  { %v18721_v29 = vadd.f32 %v15207_v43, %v2225_v63  ;;  %v15209_v36 = vpop.f32.mrb[9].mxu1  ;;  %v18702_v63 = vpack.c.bf16 %v16287_v26, %v16286_v11 }
 0x9ec   :  { %v18722_v23 = vadd.f32 %v15209_v36, %v2229_v27  ;;  %v15211_v37 = vpop.f32.mrb[10].mxu1  ;;  %v16289_v27 = vld [vmem:[#allocation13 + $0x18] sm:$0xff] }
 0x9ed   :  { %v15220_v0 = vmax.f32 %v18721_v29, 0.0  ;;  %v15212_v51 = vpop.f32.mrb[11].mxu1  ;;  %18703 = vmatpush3.bf16.msra.mxu1 %v18702_v63  ;;  %v18705_v43 = vpack.c.bf16 %v16289_v27, %v16288_v8  ;;  %v15358_v29 = vld [vmem:[#allocation10] sm:$0x3] }
 0x9ee   :  { %v15221_v32 = vmax.f32 %v18722_v23, 0.0  ;;  %18704 = vmatprep.subr.bf16.mxu1 %v19437_v5  ;;  %v15363_v36 = vrot.slane %v15358_v29, %v2200_v7  ;;  %v15367_v23 = vrot.slane %v15358_v29, %v2204_v15  ;;  %v16293_v7 = vld [vmem:[#allocation13 + $0x38] sm:$0xff] }
 0x9ef   :  { %v15228_v19 = vpack.c.bf16 %v15220_v0, %v15220_v0 }
 0x9f0   :  { %v15229_v46 = vpack.c.bf16 %v15221_v32, %v15221_v32 }
 0x9f1   :  { %18706 = vmatpush3.bf16.msra.mxu1 %v18705_v43 }
 0x9f2   :  { %16165 = vmatprep.mubr.bf16.mxu0 %v15229_v46  ;;  %18707 = vmatprep.subr.bf16.mxu1 %v19437_v5  ;;  %v16290_v46 = vld [vmem:[#allocation13 + $0x20] sm:$0xff] }
 0x9f3   :  { %16166 = vmatmul.mubr.bf16.vlgmr.msra.gmra.mrb[8].mxu0 %v15228_v19 }
 0x9f4   :  { %18672 = vmatpush3.bf16.msra.mxu0 %v18671_v61  ;;  %v16291_v61 = vld [vmem:[#allocation13 + $0x28] sm:$0xff] }
 0x9f5   :  { %18674 = vmatprep.subr.bf16.mxu0 %v18673_v30  ;;  %v18708_v19 = vpack.c.bf16 %v16291_v61, %v16290_v46  ;;  %v16292_v30 = vld [vmem:[#allocation13 + $0x30] sm:$0xff] }
 0x9f6   :  { %v18711_v22 = vpack.c.bf16 %v16293_v7, %v16292_v30 }
 0x9f7   :  { %18709 = vmatpush3.bf16.msra.mxu1 %v18708_v19 }
 0x9f8   :  { %18676 = vmatpush3.bf16.msra.mxu0 %v18675_v40  ;;  %18710 = vmatprep.subr.bf16.mxu1 %v19437_v5 }
 0x9f9   :  { %18678 = vmatprep.subr.bf16.mxu0 %v18677_v62 }
 0x9fb   :  { %18712 = vmatpush3.bf16.msra.mxu1 %v18711_v22 }
 0x9fc   :  { %18680 = vmatpush3.bf16.msra.mxu0 %v18679_v10 }
 0x9fd   :  { %18682 = vmatprep.subr.bf16.mxu0 %v18681_v60 }
 0xa00   :  { %18684 = vmatpush3.bf16.msra.mxu0 %v18683_v20 }
 0xa01   :  { %18686 = vmatprep.subr.bf16.mxu0 %v18685_v59 }
 0xa04   :  { %18688 = vmatpush3.bf16.msra.mxu0 %v18687_v53 }
 0xa05   :  { %18690 = vmatprep.subr.bf16.mxu0 %v18689_v50 }
 0xa08   :  { %18692 = vmatpush3.bf16.msra.mxu0 %v18691_v56 }
 0xa09   :  { %18694 = vmatprep.subr.bf16.mxu0 %v18693_v14 }
 0xa0c   :  { %18696 = vmatpush3.bf16.msra.mxu0 %v18695_v4 }
 0xa0d   :  { %18698 = vmatprep.subr.bf16.mxu0 %v18697_v49 }
 0xa10   :  { %18700 = vmatpush3.bf16.msra.mxu0 %v18699_v38 }
 0xac6   :  { %v16167_v37 = vpop.f32.mrb[8].mxu0 }
 0xac7   :  { %v18723_v0 = vadd.f32 %v16167_v37, %v15363_v36  ;;  %v16169_v51 = vpop.f32.mrb[9].mxu0 }
 0xac8   :  { %v18724_v33 = vadd.f32 %v16169_v51, %v15367_v23  ;;  %v16171_v44 = vpop.f32.mrb[10].mxu0 }
 0xac9   :  { %v16172_v32 = vpop.f32.mrb[11].mxu0  ;;  %v16174_v47 = vmax.f32 %v18723_v0, 0.0 }
 0xaca   :  { %v16175_v58 = vmax.f32 %v18724_v33, 0.0 }
 0xacc   :  { %16279 = vmatprep.mubr.f32.mxu0 %v16175_v58 }
 0xacd   :  { %16280 = vmatmul.mubr.f32.vlgmr.msra.gmra.mrb[12].mxu0 %v16174_v47 }
 0xba0   :  { %v18638_v15 = vpop.f32.mrb[12].mxu0 }
 0xba1   :  { %v18639_v13 = vpop.f32.mrb[13].mxu0 }
 0xba2   :  { %v18640_v48 = vadd.f32 %v18639_v13, %v18638_v15 }
 0xba4   :  { %v16282_v40 = vadd.f32 %v18640_v48, %v18603_v9 }
 0xba6   :  { %v16285_v62 = vmax.f32 %v16282_v40, 0.0 }
 0xba8   :  { %18667 = vmatmul.mubr.msk.f32.vlgmr.msra.gmra.mrb[12].mxu1 %vm16301_vm1, %v16285_v62 }
 0xc7b   :  { %v16371_v6 = vpop.f32.mrb[12].mxu1 }
 0xc7c   :  { %v16372_v1 = vadd.f32 %v18604_v57, %v16371_v6  ;;  %v18668_v17 = vpop.f32.mrb[13].mxu1 }
 0xc7e   :  { %16375 = vst [vmem:[#allocation16] sm:$0xff] %v16372_v1 }
 0xc7f   :  { %19402 = shalt.err (!%p19399_p12)
}
 0xc80   :  { %s19403_s3 = scalar_lea.hbm %s20040_s9, 128 }
 0xc81   :  { %p19404_p13 = scmp.ne.s32.totalorder %s20040_s9, %s19403_s3  ;;  %p19407_p0 = scmp.lt.u32.totalorder %s19403_s3, %s20040_s9 }
 0xc83   :  { %p19409_p1 = pnand %p19407_p0, %p19404_p13 }
 0xc85   :  { %19412 = shalt.err (!%p19409_p1)
}
 0xc86   :  { %16385 = dma.vmem_to_hbm [thread:$0]  %s16383_s21, 128, %s20040_s9, [#allocation4]  }
 0xc87   :  { %19423 = dma.done.wait [#allocation4], 128  }
 0xc88   :  { %19424 = vsyncadd [#allocation4], 4294967168 }
 0xc89   :  { %16389 = vsyncpa [#allocation3], 1 }
 0xc8a   :  { %16390 = vsyncpa [#allocation6], 1 }
 0xc8b   :  { %16391 = vsyncpa [#allocation9], 1 }
 0xc8c   :  { %16392 = vsyncpa [#allocation12], 1 }
 0xc8d   :  { %16393 = vsyncpa [#allocation15], 1 }
 0xc8e   :  { %16394 = vsyncpa [#allocation4], 1 }

</bundles_post_ra>
